<compile_context>
chip_gen: v7x
topology: tpu7x:2x2x1
jax: 0.10.0
libtpu: 0.0.40
codegen_flags: <defaults>
</compile_context>

<pallas_src>
import functools

import numpy as np
import jax
import jax.numpy as jnp
from jax.experimental import pallas as pl
from jax.experimental.pallas import tpu as pltpu

ENCODING_BLOCK = 1
BN_EPS = 1e-5


def _get_cut(encoding_block):
    if encoding_block == 1:
        cut_at = 5
    elif encoding_block == 2 or encoding_block == 2.5:
        cut_at = 6
    elif encoding_block == 3 or encoding_block == 3.5:
        cut_at = 7
    elif encoding_block == 4:
        cut_at = 8
    return cut_at


def _layout(h, w):
    """Row-layout constants for an h x w feature map stored 'padded flat'.

    Rows = zero-padded (pad=1) spatial positions flattened row-major, plus
    `guard` all-zero rows on each end so that every 3x3 spatial shift is a
    contiguous, in-bounds row slice.
    """
    pw = w + 2                       # padded width
    rows = (h + 2) * pw              # padded-flat rows
    guard = w + 3                    # >= max |3x3 shift| = pw + 1
    return pw, rows, guard, rows + 2 * guard


# ---------------------------------------------------------------------------
# The single fused Pallas kernel
# ---------------------------------------------------------------------------
def _cutr_kernel(a1_ref, w1_ref, b1_ref, m1_ref, wb_ref, bb_ref,
                 pool_ref, repad_ref, gather_ref, o_ref,
                 t1_ref, xa_ref, xb_ref,
                 *, pw1, r1, g1, pw2, r2, g2):
    cin = wb_ref.shape[1] // 9        # = 64 channels throughout the cut net

    # ---- conv1 (7x7 s2, im2col'd outside) + folded BN + ReLU ---------------
    # bf16 operands on the MXU, f32 accumulation + epilogue; mask zeroes the
    # pad/guard rows of the padded-flat layout (needed by the maxpool below).
    t1 = jnp.dot(a1_ref[0], w1_ref[...], preferred_element_type=jnp.float32)
    t1 = jnp.maximum(t1 + b1_ref[...], 0.0) * m1_ref[...]
    t1_ref[...] = t1                                  # (t1_rows, 64) in VMEM

    # ---- maxpool 3x3 s2 p1: dense 3x3 stride-1 max via 9 shifted row reads,
    # ---- then stride-2 subsample + re-pad with one constant 0/1 matmul.
    m = None
    for dh in (-1, 0, 1):
        for dw in (-1, 0, 1):
            off = g1 + dh * pw1 + dw
            s = t1_ref[pl.ds(off, r1), :]
            m = s if m is None else jnp.maximum(m, s)
    # xa <- pool output embedded in the padded+guarded 8x8 layout
    xa_ref[...] = jnp.dot(pool_ref[...], m, preferred_element_type=jnp.float32)

    # ---- 3x3 s1 p1 conv + folded BN (+ residual) + ReLU as 9 shifted matmuls
    def conv3x3(src_ref, idx, residual=None):
        w = wb_ref[idx]                               # (9*cin, cout) bf16
        acc = None
        k = 0
        for dh in (-1, 0, 1):
            for dw in (-1, 0, 1):
                off = g2 + dh * pw2 + dw
                xs = src_ref[pl.ds(off, r2), :].astype(jnp.bfloat16)
                d = jnp.dot(xs, w[k * cin:(k + 1) * cin, :],
                            preferred_element_type=jnp.float32)
                acc = d if acc is None else acc + d
                k += 1
        acc = acc + bb_ref[idx]
        if residual is not None:
            acc = acc + residual
        return jnp.maximum(acc, 0.0)                  # (r2, cout) f32

    repad = repad_ref[...]
    # layer1 / BasicBlock 0      (xa holds the block input x0)
    z = conv3x3(xa_ref, 0)
    xb_ref[...] = jnp.dot(repad, z, preferred_element_type=jnp.float32)
    z = conv3x3(xb_ref, 1, residual=xa_ref[pl.ds(g2, r2), :])
    xa_ref[...] = jnp.dot(repad, z, preferred_element_type=jnp.float32)
    # layer1 / BasicBlock 1      (xa now holds block0's output)
    z = conv3x3(xa_ref, 2)
    xb_ref[...] = jnp.dot(repad, z, preferred_element_type=jnp.float32)
    z = conv3x3(xb_ref, 3, residual=xa_ref[pl.ds(g2, r2), :])

    # gather the valid rows of the final padded-flat output in (h, w) order
    o_ref[0] = jnp.dot(gather_ref[...], z, preferred_element_type=jnp.float32)


# ---------------------------------------------------------------------------
# Host-side preparation (XLA glue on constants / raw input only)
# ---------------------------------------------------------------------------
def _fold_bn(bn):
    gamma, beta, mean, var = bn
    scale = gamma / jnp.sqrt(var + BN_EPS)
    bias = beta - mean * scale
    return scale, bias


def _prep_conv(w, bn):
    """Torch conv weight (Cout,Cin,KH,KW) + BN -> BN-scale-folded GEMM operand."""
    cout, cin, kh, kw = w.shape
    scale, bias = _fold_bn(bn)
    wmat = jnp.transpose(w, (2, 3, 1, 0)).reshape(kh * kw * cin, cout)
    wmat = wmat * scale[None, :]                      # fold BN scale (in f32)
    return wmat.astype(jnp.bfloat16), bias.reshape(1, cout).astype(jnp.float32)


def _im2col_nhwc(x, kh, kw, stride, pad):
    """x: NHWC -> (N, Ho, Wo, kh*kw*C) patch tensor (input preprocessing)."""
    N, H, W, C = x.shape
    xp = jnp.pad(x, ((0, 0), (pad, pad), (pad, pad), (0, 0)))
    Ho = (H + 2 * pad - kh) // stride + 1
    Wo = (W + 2 * pad - kw) // stride + 1
    cols = []
    for i in range(kh):
        for j in range(kw):
            cols.append(xp[:, i:i + stride * Ho:stride,
                           j:j + stride * Wo:stride, :])
    return jnp.concatenate(cols, axis=-1), Ho, Wo


def _selection_matrices(h1, w1, hp, wp):
    """Constant 0/1 matrices implementing spatial re-layouts as tiny matmuls."""
    pw1, r1, g1, t1 = _layout(h1, w1)
    pw2, r2, g2, t2 = _layout(hp, wp)
    mask1 = np.zeros((t1, 1), np.float32)     # 1 at valid conv1-output rows
    pool = np.zeros((t2, r1), np.float32)     # stride-2 subsample + re-pad
    repad = np.zeros((t2, r2), np.float32)    # re-embed conv out into guarded layout
    gather = np.zeros((hp * wp, r2), np.float32)   # final valid-row gather
    for h in range(h1):
        for w in range(w1):
            mask1[g1 + (h + 1) * pw1 + (w + 1), 0] = 1.0
    for h in range(hp):
        for w in range(wp):
            p2 = (h + 1) * pw2 + (w + 1)
            pool[g2 + p2, (1 + 2 * h) * pw1 + (1 + 2 * w)] = 1.0
            repad[g2 + p2, p2] = 1.0
            gather[h * wp + w, p2] = 1.0
    return mask1, pool, repad, gather


def cutr_cifar_forward(x, params, in_channels=3):
    """Forward of CutrCIFAR with encoding_block=1 (children[:5] of resnet18).

    x: (N, C, H, W) float32 (NCHW, like PyTorch). Returns (N, 64, H/4, W/4).
    """
    assert _get_cut(ENCODING_BLOCK) == 5
    if in_channels == 1:
        x = jnp.tile(x, (1, 3, 1, 1))          # x.repeat(1, 3, 1, 1)
    assert x.ndim == 4, 'Tensor has wrong number of dimensions'
    N = x.shape[0]
    xh = jnp.transpose(x, (0, 2, 3, 1))        # NCHW -> NHWC

    # conv1 im2col (input preprocessing), laid out in the padded+guarded row
    # order that the in-kernel maxpool expects. Pad/guard rows are all-zero.
    patches, h1, w1 = _im2col_nhwc(xh, 7, 7, stride=2, pad=3)
    k1 = patches.shape[-1]                     # 7*7*3 = 147 (no padding of K)
    hp, wp = (h1 - 1) // 2 + 1, (w1 - 1) // 2 + 1
    pw1, r1, g1, t1 = _layout(h1, w1)
    pw2, r2, g2, t2 = _layout(hp, wp)
    a1 = jnp.pad(patches, ((0, 0), (1, 1), (1, 1), (0, 0)))
    a1 = a1.reshape(N, r1, k1)
    a1 = jnp.pad(a1, ((0, 0), (g1, g1), (0, 0)))
    a1 = a1.astype(jnp.bfloat16)               # (N, t1, k1) bf16

    # Fold BatchNorm scale into the (compile-time constant) weights.
    w1m, b1 = _prep_conv(params['conv1_w'], params['bn1'])
    wbs, bbs = [], []
    for blk in ('block0', 'block1'):
        p = params[blk]
        for cw, cb in (('conv1_w', 'bn1'), ('conv2_w', 'bn2')):
            wm, bm = _prep_conv(p[cw], p[cb])
            wbs.append(wm)
            bbs.append(bm)
    wb = jnp.stack(wbs)                        # (4, 9*64, 64) bf16
    bb = jnp.stack(bbs)                        # (4, 1, 64) f32
    cout = wb.shape[-1]

    mask1, pool, repad, gather = map(
        jnp.asarray, _selection_matrices(h1, w1, hp, wp))

    kernel = functools.partial(_cutr_kernel, pw1=pw1, r1=r1, g1=g1,
                               pw2=pw2, r2=r2, g2=g2)

    def _bcast(arr):
        nd = arr.ndim
        return pl.BlockSpec(arr.shape, lambda n, _nd=nd: (0,) * _nd)

    out = pl.pallas_call(
        kernel,
        out_shape=jax.ShapeDtypeStruct((N, hp * wp, cout), jnp.float32),
        grid_spec=pltpu.PrefetchScalarGridSpec(
            num_scalar_prefetch=0,
            grid=(N,),                          # one image per step; >= 2
            in_specs=[                          # parallel blocks for v7x 2-TC
                pl.BlockSpec((1, t1, k1), lambda n: (n, 0, 0)),
                _bcast(w1m), _bcast(b1), _bcast(mask1),
                _bcast(wb), _bcast(bb),
                _bcast(pool), _bcast(repad), _bcast(gather),
            ],
            out_specs=pl.BlockSpec((1, hp * wp, cout), lambda n: (n, 0, 0)),
            scratch_shapes=[
                pltpu.VMEM((t1, cout), jnp.float32),   # conv1 output (guarded)
                pltpu.VMEM((t2, cout), jnp.float32),   # block input / output
                pltpu.VMEM((t2, cout), jnp.float32),   # intra-block intermediate
            ],
        ),
        compiler_params=pltpu.CompilerParams(
            dimension_semantics=("parallel",)),
    )(a1, w1m, b1, mask1, wb, bb, pool, repad, gather)

    out = out.reshape(N, hp, wp, cout)
    return jnp.transpose(out, (0, 3, 1, 2))    # NHWC -> NCHW


# ---------------------------------------------------------------------------
# Deterministic parameter init (stands in for the .pt checkpoint)
# ---------------------------------------------------------------------------
def init_params(key):
    keys = jax.random.split(key, 10)

    def conv_init(k, cout, cin, kh, kw):
        fan_in = cin * kh * kw
        return jax.random.normal(k, (cout, cin, kh, kw), jnp.float32) * (fan_in ** -0.5)

    def bn_init(k, c):
        k1, k2, k3, k4 = jax.random.split(k, 4)
        gamma = 1.0 + 0.1 * jax.random.normal(k1, (c,), jnp.float32)
        beta = 0.1 * jax.random.normal(k2, (c,), jnp.float32)
        mean = 0.1 * jax.random.normal(k3, (c,), jnp.float32)
        var = 0.5 + jnp.abs(jax.random.normal(k4, (c,), jnp.float32))
        return (gamma, beta, mean, var)

    return {
        'conv1_w': conv_init(keys[0], 64, 3, 7, 7),
        'bn1': bn_init(keys[1], 64),
        'block0': {
            'conv1_w': conv_init(keys[2], 64, 64, 3, 3),
            'bn1': bn_init(keys[3], 64),
            'conv2_w': conv_init(keys[4], 64, 64, 3, 3),
            'bn2': bn_init(keys[5], 64),
        },
        'block1': {
            'conv1_w': conv_init(keys[6], 64, 64, 3, 3),
            'bn1': bn_init(keys[7], 64),
            'conv2_w': conv_init(keys[8], 64, 64, 3, 3),
            'bn2': bn_init(keys[9], 64),
        },
    }


# ---------------------------------------------------------------------------
# Plain-JAX reference (for correctness check)
# ---------------------------------------------------------------------------
def _ref_conv_bn(x, w, bn, stride, pad, relu=True, residual=None):
    y = jax.lax.conv_general_dilated(
        x, w, window_strides=(stride, stride),
        padding=((pad, pad), (pad, pad)),
        dimension_numbers=('NCHW', 'OIHW', 'NCHW'))
    scale, bias = _fold_bn(bn)
    y = y * scale[None, :, None, None] + bias[None, :, None, None]
    if residual is not None:
        y = y + residual
    if relu:
        y = jnp.maximum(y, 0.0)
    return y


def reference_forward(x, params):
    y = _ref_conv_bn(x, params['conv1_w'], params['bn1'], 2, 3)
    y = jax.lax.reduce_window(y, -jnp.inf, jax.lax.max,
                              (1, 1, 3, 3), (1, 1, 2, 2),
                              ((0, 0), (0, 0), (1, 1), (1, 1)))
    for name in ('block0', 'block1'):
        p = params[name]
        identity = y
        z = _ref_conv_bn(y, p['conv1_w'], p['bn1'], 1, 1)
        y = _ref_conv_bn(z, p['conv2_w'], p['bn2'], 1, 1, residual=identity)
    return y


# ---------------------------------------------------------------------------
if __name__ == "__main__":
    key = jax.random.PRNGKey(0)
    pkey, xkey = jax.random.split(key)
    params = init_params(pkey)

    # CIFAR-like input: batch=2, channels=3, 32x32
    x = jax.random.normal(xkey, (2, 3, 32, 32), jnp.float32)

    fwd = jax.jit(lambda inp: cutr_cifar_forward(inp, params, in_channels=3))
    out = jax.block_until_ready(fwd(x))

    assert out.shape == (2, 64, 8, 8), out.shape

    ref = reference_forward(x, params)
    max_err = float(jnp.max(jnp.abs(out - ref)))
    assert jnp.allclose(out, ref, rtol=5e-2, atol=5e-2), f"max abs err {max_err}"

    print("KERNEL_OK")
</pallas_src>

<mosaic_0001>
module attributes {stable_mosaic.version = 11 : i64} {
  func.func @_cutr_kernel(%arg0: i32, %arg1: memref<1x362x147xbf16, #tpu.memory_space<vmem>>, %arg2: memref<147x64xbf16, #tpu.memory_space<vmem>>, %arg3: memref<1x64xf32, #tpu.memory_space<vmem>>, %arg4: memref<362x1xf32, #tpu.memory_space<vmem>>, %arg5: memref<4x576x64xbf16, #tpu.memory_space<vmem>>, %arg6: memref<4x1x64xf32, #tpu.memory_space<vmem>>, %arg7: memref<122x324xf32, #tpu.memory_space<vmem>>, %arg8: memref<122x100xf32, #tpu.memory_space<vmem>>, %arg9: memref<64x100xf32, #tpu.memory_space<vmem>>, %arg10: memref<1x64x64xf32, #tpu.memory_space<vmem>>, %arg11: memref<362x64xf32, #tpu.memory_space<vmem>>, %arg12: memref<122x64xf32, #tpu.memory_space<vmem>>, %arg13: memref<122x64xf32, #tpu.memory_space<vmem>>) attributes {dimension_semantics = [#tpu.dimension_semantics<parallel>], iteration_bounds = array<i64: 2>, scalar_prefetch = 0 : i64, scratch_operands = 3 : i64, tpu.core_type = #tpu.core_type<tc>, window_params = [{transform_indices = @transform_0, window_bounds = array<i64: 1, 362, 147>}, {pipeline_mode = #tpu.pipeline_mode<synchronous>, transform_indices = @transform_1, window_bounds = array<i64: 147, 64>}, {pipeline_mode = #tpu.pipeline_mode<synchronous>, transform_indices = @transform_2, window_bounds = array<i64: 1, 64>}, {pipeline_mode = #tpu.pipeline_mode<synchronous>, transform_indices = @transform_3, window_bounds = array<i64: 362, 1>}, {pipeline_mode = #tpu.pipeline_mode<synchronous>, transform_indices = @transform_4, window_bounds = array<i64: 4, 576, 64>}, {pipeline_mode = #tpu.pipeline_mode<synchronous>, transform_indices = @transform_5, window_bounds = array<i64: 4, 1, 64>}, {pipeline_mode = #tpu.pipeline_mode<synchronous>, transform_indices = @transform_6, window_bounds = array<i64: 122, 324>}, {pipeline_mode = #tpu.pipeline_mode<synchronous>, transform_indices = @transform_7, window_bounds = array<i64: 122, 100>}, {pipeline_mode = #tpu.pipeline_mode<synchronous>, transform_indices = @transform_8, window_bounds = array<i64: 64, 100>}, {transform_indices = @transform_9, window_bounds = array<i64: 1, 64, 64>}]} {
    %c0 = arith.constant 0 : index
    %c0_0 = arith.constant 0 : index
    %c0_1 = arith.constant 0 : index
    %0 = vector.load %arg1[%c0, %c0_0, %c0_1] : memref<1x362x147xbf16, #tpu.memory_space<vmem>>, vector<1x362x147xbf16>
    %1 = vector.shape_cast %0 : vector<1x362x147xbf16> to vector<362x147xbf16>
    %c0_2 = arith.constant 0 : index
    %c0_3 = arith.constant 0 : index
    %2 = vector.load %arg2[%c0_2, %c0_3] : memref<147x64xbf16, #tpu.memory_space<vmem>>, vector<147x64xbf16>
    %cst = arith.constant dense<0.000000e+00> : vector<362x64xf32>
    %3 = tpu.matmul %1, %2, %cst {dimension_numbers = #tpu.dot_dimension_numbers<[1], [0], [0], [1], [0, 0, 1, 1], [], []>} : vector<362x147xbf16>, vector<147x64xbf16>, vector<362x64xf32> -> vector<362x64xf32>
    %c0_4 = arith.constant 0 : index
    %c0_5 = arith.constant 0 : index
    %4 = vector.load %arg3[%c0_4, %c0_5] : memref<1x64xf32, #tpu.memory_space<vmem>>, vector<1x64xf32>
    %5 = vector.broadcast %4 : vector<1x64xf32> to vector<362x64xf32>
    %6 = arith.addf %3, %5 : vector<362x64xf32>
    %cst_6 = arith.constant 0.000000e+00 : f32
    %7 = vector.broadcast %cst_6 : f32 to vector<362x64xf32>
    %8 = arith.maximumf %6, %7 : vector<362x64xf32>
    %c0_7 = arith.constant 0 : index
    %c0_8 = arith.constant 0 : index
    %9 = vector.load %arg4[%c0_7, %c0_8] : memref<362x1xf32, #tpu.memory_space<vmem>>, vector<362x1xf32>
    %10 = vector.broadcast %9 : vector<362x1xf32> to vector<362x64xf32>
    %11 = arith.mulf %8, %10 : vector<362x64xf32>
    %c0_9 = arith.constant 0 : index
    %c0_10 = arith.constant 0 : index
    %12 = vector.load %arg11[%c0_9, %c0_10] : memref<362x64xf32, #tpu.memory_space<vmem>>, vector<362x64xf32>
    tpu.vector_store %arg11[%c0_9, %c0_10], %11 {strides = array<i32>} : memref<362x64xf32, #tpu.memory_space<vmem>>, vector<362x64xf32>,
    %c0_11 = arith.constant 0 : index
    %c0_12 = arith.constant 0 : index
    %13 = vector.load %arg11[%c0_11, %c0_12] : memref<362x64xf32, #tpu.memory_space<vmem>>, vector<324x64xf32>
    %c1 = arith.constant 1 : index
    %c0_13 = arith.constant 0 : index
    %14 = vector.load %arg11[%c1, %c0_13] : memref<362x64xf32, #tpu.memory_space<vmem>>, vector<324x64xf32>
    %15 = arith.maximumf %13, %14 : vector<324x64xf32>
    %c2 = arith.constant 2 : index
    %c0_14 = arith.constant 0 : index
    %16 = vector.load %arg11[%c2, %c0_14] : memref<362x64xf32, #tpu.memory_space<vmem>>, vector<324x64xf32>
    %17 = arith.maximumf %15, %16 : vector<324x64xf32>
    %c18 = arith.constant 18 : index
    %c0_15 = arith.constant 0 : index
    %18 = vector.load %arg11[%c18, %c0_15] : memref<362x64xf32, #tpu.memory_space<vmem>>, vector<324x64xf32>
    %19 = arith.maximumf %17, %18 : vector<324x64xf32>
    %c19 = arith.constant 19 : index
    %c0_16 = arith.constant 0 : index
    %20 = vector.load %arg11[%c19, %c0_16] : memref<362x64xf32, #tpu.memory_space<vmem>>, vector<324x64xf32>
    %21 = arith.maximumf %19, %20 : vector<324x64xf32>
    %c20 = arith.constant 20 : index
    %c0_17 = arith.constant 0 : index
    %22 = vector.load %arg11[%c20, %c0_17] : memref<362x64xf32, #tpu.memory_space<vmem>>, vector<324x64xf32>
    %23 = arith.maximumf %21, %22 : vector<324x64xf32>
    %c36 = arith.constant 36 : index
    %c0_18 = arith.constant 0 : index
    %24 = vector.load %arg11[%c36, %c0_18] : memref<362x64xf32, #tpu.memory_space<vmem>>, vector<324x64xf32>
    %25 = arith.maximumf %23, %24 : vector<324x64xf32>
    %c37 = arith.constant 37 : index
    %c0_19 = arith.constant 0 : index
    %26 = vector.load %arg11[%c37, %c0_19] : memref<362x64xf32, #tpu.memory_space<vmem>>, vector<324x64xf32>
    %27 = arith.maximumf %25, %26 : vector<324x64xf32>
    %c38 = arith.constant 38 : index
    %c0_20 = arith.constant 0 : index
    %28 = vector.load %arg11[%c38, %c0_20] : memref<362x64xf32, #tpu.memory_space<vmem>>, vector<324x64xf32>
    %29 = arith.maximumf %27, %28 : vector<324x64xf32>
    %c0_21 = arith.constant 0 : index
    %c0_22 = arith.constant 0 : index
    %30 = vector.load %arg7[%c0_21, %c0_22] : memref<122x324xf32, #tpu.memory_space<vmem>>, vector<122x324xf32>
    %cst_23 = arith.constant dense<0.000000e+00> : vector<122x64xf32>
    %31 = tpu.matmul %30, %29, %cst_23 {dimension_numbers = #tpu.dot_dimension_numbers<[1], [0], [0], [1], [0, 0, 1, 1], [], []>} : vector<122x324xf32>, vector<324x64xf32>, vector<122x64xf32> -> vector<122x64xf32>
    %c0_24 = arith.constant 0 : index
    %c0_25 = arith.constant 0 : index
    %32 = vector.load %arg12[%c0_24, %c0_25] : memref<122x64xf32, #tpu.memory_space<vmem>>, vector<122x64xf32>
    tpu.vector_store %arg12[%c0_24, %c0_25], %31 {strides = array<i32>} : memref<122x64xf32, #tpu.memory_space<vmem>>, vector<122x64xf32>,
    %c0_26 = arith.constant 0 : index
    %c0_27 = arith.constant 0 : index
    %33 = vector.load %arg8[%c0_26, %c0_27] : memref<122x100xf32, #tpu.memory_space<vmem>>, vector<122x100xf32>
    %c0_28 = arith.constant 0 : index
    %c0_29 = arith.constant 0 : index
    %c0_30 = arith.constant 0 : index
    %34 = vector.load %arg5[%c0_28, %c0_29, %c0_30] : memref<4x576x64xbf16, #tpu.memory_space<vmem>>, vector<1x576x64xbf16>
    %35 = vector.shape_cast %34 : vector<1x576x64xbf16> to vector<576x64xbf16>
    %c0_31 = arith.constant 0 : index
    %c0_32 = arith.constant 0 : index
    %36 = vector.load %arg12[%c0_31, %c0_32] : memref<122x64xf32, #tpu.memory_space<vmem>>, vector<100x64xf32>
    %37 = arith.truncf %36 : vector<100x64xf32> to vector<100x64xbf16>
    %38 = vector.extract_strided_slice %35 {offsets = [0, 0], sizes = [64, 64], strides = [1, 1]} : vector<576x64xbf16> to vector<64x64xbf16>
    %cst_33 = arith.constant dense<0.000000e+00> : vector<100x64xf32>
    %39 = tpu.matmul %37, %38, %cst_33 {dimension_numbers = #tpu.dot_dimension_numbers<[1], [0], [0], [1], [0, 0, 1, 1], [], []>} : vector<100x64xbf16>, vector<64x64xbf16>, vector<100x64xf32> -> vector<100x64xf32>
    %c1_34 = arith.constant 1 : index
    %c0_35 = arith.constant 0 : index
    %40 = vector.load %arg12[%c1_34, %c0_35] : memref<122x64xf32, #tpu.memory_space<vmem>>, vector<100x64xf32>
    %41 = arith.truncf %40 : vector<100x64xf32> to vector<100x64xbf16>
    %42 = vector.extract_strided_slice %35 {offsets = [64, 0], sizes = [64, 64], strides = [1, 1]} : vector<576x64xbf16> to vector<64x64xbf16>
    %cst_36 = arith.constant dense<0.000000e+00> : vector<100x64xf32>
    %43 = tpu.matmul %41, %42, %cst_36 {dimension_numbers = #tpu.dot_dimension_numbers<[1], [0], [0], [1], [0, 0, 1, 1], [], []>} : vector<100x64xbf16>, vector<64x64xbf16>, vector<100x64xf32> -> vector<100x64xf32>
    %44 = arith.addf %39, %43 : vector<100x64xf32>
    %c2_37 = arith.constant 2 : index
    %c0_38 = arith.constant 0 : index
    %45 = vector.load %arg12[%c2_37, %c0_38] : memref<122x64xf32, #tpu.memory_space<vmem>>, vector<100x64xf32>
    %46 = arith.truncf %45 : vector<100x64xf32> to vector<100x64xbf16>
    %47 = vector.extract_strided_slice %35 {offsets = [128, 0], sizes = [64, 64], strides = [1, 1]} : vector<576x64xbf16> to vector<64x64xbf16>
    %cst_39 = arith.constant dense<0.000000e+00> : vector<100x64xf32>
    %48 = tpu.matmul %46, %47, %cst_39 {dimension_numbers = #tpu.dot_dimension_numbers<[1], [0], [0], [1], [0, 0, 1, 1], [], []>} : vector<100x64xbf16>, vector<64x64xbf16>, vector<100x64xf32> -> vector<100x64xf32>
    %49 = arith.addf %44, %48 : vector<100x64xf32>
    %c10 = arith.constant 10 : index
    %c0_40 = arith.constant 0 : index
    %50 = vector.load %arg12[%c10, %c0_40] : memref<122x64xf32, #tpu.memory_space<vmem>>, vector<100x64xf32>
    %51 = arith.truncf %50 : vector<100x64xf32> to vector<100x64xbf16>
    %52 = vector.extract_strided_slice %35 {offsets = [192, 0], sizes = [64, 64], strides = [1, 1]} : vector<576x64xbf16> to vector<64x64xbf16>
    %cst_41 = arith.constant dense<0.000000e+00> : vector<100x64xf32>
    %53 = tpu.matmul %51, %52, %cst_41 {dimension_numbers = #tpu.dot_dimension_numbers<[1], [0], [0], [1], [0, 0, 1, 1], [], []>} : vector<100x64xbf16>, vector<64x64xbf16>, vector<100x64xf32> -> vector<100x64xf32>
    %54 = arith.addf %49, %53 : vector<100x64xf32>
    %c11 = arith.constant 11 : index
    %c0_42 = arith.constant 0 : index
    %55 = vector.load %arg12[%c11, %c0_42] : memref<122x64xf32, #tpu.memory_space<vmem>>, vector<100x64xf32>
    %56 = arith.truncf %55 : vector<100x64xf32> to vector<100x64xbf16>
    %57 = vector.extract_strided_slice %35 {offsets = [256, 0], sizes = [64, 64], strides = [1, 1]} : vector<576x64xbf16> to vector<64x64xbf16>
    %cst_43 = arith.constant dense<0.000000e+00> : vector<100x64xf32>
    %58 = tpu.matmul %56, %57, %cst_43 {dimension_numbers = #tpu.dot_dimension_numbers<[1], [0], [0], [1], [0, 0, 1, 1], [], []>} : vector<100x64xbf16>, vector<64x64xbf16>, vector<100x64xf32> -> vector<100x64xf32>
    %59 = arith.addf %54, %58 : vector<100x64xf32>
    %c12 = arith.constant 12 : index
    %c0_44 = arith.constant 0 : index
    %60 = vector.load %arg12[%c12, %c0_44] : memref<122x64xf32, #tpu.memory_space<vmem>>, vector<100x64xf32>
    %61 = arith.truncf %60 : vector<100x64xf32> to vector<100x64xbf16>
    %62 = vector.extract_strided_slice %35 {offsets = [320, 0], sizes = [64, 64], strides = [1, 1]} : vector<576x64xbf16> to vector<64x64xbf16>
    %cst_45 = arith.constant dense<0.000000e+00> : vector<100x64xf32>
    %63 = tpu.matmul %61, %62, %cst_45 {dimension_numbers = #tpu.dot_dimension_numbers<[1], [0], [0], [1], [0, 0, 1, 1], [], []>} : vector<100x64xbf16>, vector<64x64xbf16>, vector<100x64xf32> -> vector<100x64xf32>
    %64 = arith.addf %59, %63 : vector<100x64xf32>
    %c20_46 = arith.constant 20 : index
    %c0_47 = arith.constant 0 : index
    %65 = vector.load %arg12[%c20_46, %c0_47] : memref<122x64xf32, #tpu.memory_space<vmem>>, vector<100x64xf32>
    %66 = arith.truncf %65 : vector<100x64xf32> to vector<100x64xbf16>
    %67 = vector.extract_strided_slice %35 {offsets = [384, 0], sizes = [64, 64], strides = [1, 1]} : vector<576x64xbf16> to vector<64x64xbf16>
    %cst_48 = arith.constant dense<0.000000e+00> : vector<100x64xf32>
    %68 = tpu.matmul %66, %67, %cst_48 {dimension_numbers = #tpu.dot_dimension_numbers<[1], [0], [0], [1], [0, 0, 1, 1], [], []>} : vector<100x64xbf16>, vector<64x64xbf16>, vector<100x64xf32> -> vector<100x64xf32>
    %69 = arith.addf %64, %68 : vector<100x64xf32>
    %c21 = arith.constant 21 : index
    %c0_49 = arith.constant 0 : index
    %70 = vector.load %arg12[%c21, %c0_49] : memref<122x64xf32, #tpu.memory_space<vmem>>, vector<100x64xf32>
    %71 = arith.truncf %70 : vector<100x64xf32> to vector<100x64xbf16>
    %72 = vector.extract_strided_slice %35 {offsets = [448, 0], sizes = [64, 64], strides = [1, 1]} : vector<576x64xbf16> to vector<64x64xbf16>
    %cst_50 = arith.constant dense<0.000000e+00> : vector<100x64xf32>
    %73 = tpu.matmul %71, %72, %cst_50 {dimension_numbers = #tpu.dot_dimension_numbers<[1], [0], [0], [1], [0, 0, 1, 1], [], []>} : vector<100x64xbf16>, vector<64x64xbf16>, vector<100x64xf32> -> vector<100x64xf32>
    %74 = arith.addf %69, %73 : vector<100x64xf32>
    %c22 = arith.constant 22 : index
    %c0_51 = arith.constant 0 : index
    %75 = vector.load %arg12[%c22, %c0_51] : memref<122x64xf32, #tpu.memory_space<vmem>>, vector<100x64xf32>
    %76 = arith.truncf %75 : vector<100x64xf32> to vector<100x64xbf16>
    %77 = vector.extract_strided_slice %35 {offsets = [512, 0], sizes = [64, 64], strides = [1, 1]} : vector<576x64xbf16> to vector<64x64xbf16>
    %cst_52 = arith.constant dense<0.000000e+00> : vector<100x64xf32>
    %78 = tpu.matmul %76, %77, %cst_52 {dimension_numbers = #tpu.dot_dimension_numbers<[1], [0], [0], [1], [0, 0, 1, 1], [], []>} : vector<100x64xbf16>, vector<64x64xbf16>, vector<100x64xf32> -> vector<100x64xf32>
    %79 = arith.addf %74, %78 : vector<100x64xf32>
    %c0_53 = arith.constant 0 : index
    %c0_54 = arith.constant 0 : index
    %c0_55 = arith.constant 0 : index
    %80 = vector.load %arg6[%c0_53, %c0_54, %c0_55] : memref<4x1x64xf32, #tpu.memory_space<vmem>>, vector<1x1x64xf32>
    %81 = vector.shape_cast %80 : vector<1x1x64xf32> to vector<1x64xf32>
    %82 = vector.broadcast %81 : vector<1x64xf32> to vector<100x64xf32>
    %83 = arith.addf %79, %82 : vector<100x64xf32>
    %cst_56 = arith.constant 0.000000e+00 : f32
    %84 = vector.broadcast %cst_56 : f32 to vector<100x64xf32>
    %85 = arith.maximumf %83, %84 : vector<100x64xf32>
    %cst_57 = arith.constant dense<0.000000e+00> : vector<122x64xf32>
    %86 = tpu.matmul %33, %85, %cst_57 {dimension_numbers = #tpu.dot_dimension_numbers<[1], [0], [0], [1], [0, 0, 1, 1], [], []>} : vector<122x100xf32>, vector<100x64xf32>, vector<122x64xf32> -> vector<122x64xf32>
    %c0_58 = arith.constant 0 : index
    %c0_59 = arith.constant 0 : index
    %87 = vector.load %arg13[%c0_58, %c0_59] : memref<122x64xf32, #tpu.memory_space<vmem>>, vector<122x64xf32>
    tpu.vector_store %arg13[%c0_58, %c0_59], %86 {strides = array<i32>} : memref<122x64xf32, #tpu.memory_space<vmem>>, vector<122x64xf32>,
    %c11_60 = arith.constant 11 : index
    %c0_61 = arith.constant 0 : index
    %88 = vector.load %arg12[%c11_60, %c0_61] : memref<122x64xf32, #tpu.memory_space<vmem>>, vector<100x64xf32>
    %c1_62 = arith.constant 1 : index
    %c0_63 = arith.constant 0 : index
    %c0_64 = arith.constant 0 : index
    %89 = vector.load %arg5[%c1_62, %c0_63, %c0_64] : memref<4x576x64xbf16, #tpu.memory_space<vmem>>, vector<1x576x64xbf16>
    %90 = vector.shape_cast %89 : vector<1x576x64xbf16> to vector<576x64xbf16>
    %c0_65 = arith.constant 0 : index
    %c0_66 = arith.constant 0 : index
    %91 = vector.load %arg13[%c0_65, %c0_66] : memref<122x64xf32, #tpu.memory_space<vmem>>, vector<100x64xf32>
    %92 = arith.truncf %91 : vector<100x64xf32> to vector<100x64xbf16>
    %93 = vector.extract_strided_slice %90 {offsets = [0, 0], sizes = [64, 64], strides = [1, 1]} : vector<576x64xbf16> to vector<64x64xbf16>
    %cst_67 = arith.constant dense<0.000000e+00> : vector<100x64xf32>
    %94 = tpu.matmul %92, %93, %cst_67 {dimension_numbers = #tpu.dot_dimension_numbers<[1], [0], [0], [1], [0, 0, 1, 1], [], []>} : vector<100x64xbf16>, vector<64x64xbf16>, vector<100x64xf32> -> vector<100x64xf32>
    %c1_68 = arith.constant 1 : index
    %c0_69 = arith.constant 0 : index
    %95 = vector.load %arg13[%c1_68, %c0_69] : memref<122x64xf32, #tpu.memory_space<vmem>>, vector<100x64xf32>
    %96 = arith.truncf %95 : vector<100x64xf32> to vector<100x64xbf16>
    %97 = vector.extract_strided_slice %90 {offsets = [64, 0], sizes = [64, 64], strides = [1, 1]} : vector<576x64xbf16> to vector<64x64xbf16>
    %cst_70 = arith.constant dense<0.000000e+00> : vector<100x64xf32>
    %98 = tpu.matmul %96, %97, %cst_70 {dimension_numbers = #tpu.dot_dimension_numbers<[1], [0], [0], [1], [0, 0, 1, 1], [], []>} : vector<100x64xbf16>, vector<64x64xbf16>, vector<100x64xf32> -> vector<100x64xf32>
    %99 = arith.addf %94, %98 : vector<100x64xf32>
    %c2_71 = arith.constant 2 : index
    %c0_72 = arith.constant 0 : index
    %100 = vector.load %arg13[%c2_71, %c0_72] : memref<122x64xf32, #tpu.memory_space<vmem>>, vector<100x64xf32>
    %101 = arith.truncf %100 : vector<100x64xf32> to vector<100x64xbf16>
    %102 = vector.extract_strided_slice %90 {offsets = [128, 0], sizes = [64, 64], strides = [1, 1]} : vector<576x64xbf16> to vector<64x64xbf16>
    %cst_73 = arith.constant dense<0.000000e+00> : vector<100x64xf32>
    %103 = tpu.matmul %101, %102, %cst_73 {dimension_numbers = #tpu.dot_dimension_numbers<[1], [0], [0], [1], [0, 0, 1, 1], [], []>} : vector<100x64xbf16>, vector<64x64xbf16>, vector<100x64xf32> -> vector<100x64xf32>
    %104 = arith.addf %99, %103 : vector<100x64xf32>
    %c10_74 = arith.constant 10 : index
    %c0_75 = arith.constant 0 : index
    %105 = vector.load %arg13[%c10_74, %c0_75] : memref<122x64xf32, #tpu.memory_space<vmem>>, vector<100x64xf32>
    %106 = arith.truncf %105 : vector<100x64xf32> to vector<100x64xbf16>
    %107 = vector.extract_strided_slice %90 {offsets = [192, 0], sizes = [64, 64], strides = [1, 1]} : vector<576x64xbf16> to vector<64x64xbf16>
    %cst_76 = arith.constant dense<0.000000e+00> : vector<100x64xf32>
    %108 = tpu.matmul %106, %107, %cst_76 {dimension_numbers = #tpu.dot_dimension_numbers<[1], [0], [0], [1], [0, 0, 1, 1], [], []>} : vector<100x64xbf16>, vector<64x64xbf16>, vector<100x64xf32> -> vector<100x64xf32>
    %109 = arith.addf %104, %108 : vector<100x64xf32>
    %c11_77 = arith.constant 11 : index
    %c0_78 = arith.constant 0 : index
    %110 = vector.load %arg13[%c11_77, %c0_78] : memref<122x64xf32, #tpu.memory_space<vmem>>, vector<100x64xf32>
    %111 = arith.truncf %110 : vector<100x64xf32> to vector<100x64xbf16>
    %112 = vector.extract_strided_slice %90 {offsets = [256, 0], sizes = [64, 64], strides = [1, 1]} : vector<576x64xbf16> to vector<64x64xbf16>
    %cst_79 = arith.constant dense<0.000000e+00> : vector<100x64xf32>
    %113 = tpu.matmul %111, %112, %cst_79 {dimension_numbers = #tpu.dot_dimension_numbers<[1], [0], [0], [1], [0, 0, 1, 1], [], []>} : vector<100x64xbf16>, vector<64x64xbf16>, vector<100x64xf32> -> vector<100x64xf32>
    %114 = arith.addf %109, %113 : vector<100x64xf32>
    %c12_80 = arith.constant 12 : index
    %c0_81 = arith.constant 0 : index
    %115 = vector.load %arg13[%c12_80, %c0_81] : memref<122x64xf32, #tpu.memory_space<vmem>>, vector<100x64xf32>
    %116 = arith.truncf %115 : vector<100x64xf32> to vector<100x64xbf16>
    %117 = vector.extract_strided_slice %90 {offsets = [320, 0], sizes = [64, 64], strides = [1, 1]} : vector<576x64xbf16> to vector<64x64xbf16>
    %cst_82 = arith.constant dense<0.000000e+00> : vector<100x64xf32>
    %118 = tpu.matmul %116, %117, %cst_82 {dimension_numbers = #tpu.dot_dimension_numbers<[1], [0], [0], [1], [0, 0, 1, 1], [], []>} : vector<100x64xbf16>, vector<64x64xbf16>, vector<100x64xf32> -> vector<100x64xf32>
    %119 = arith.addf %114, %118 : vector<100x64xf32>
    %c20_83 = arith.constant 20 : index
    %c0_84 = arith.constant 0 : index
    %120 = vector.load %arg13[%c20_83, %c0_84] : memref<122x64xf32, #tpu.memory_space<vmem>>, vector<100x64xf32>
    %121 = arith.truncf %120 : vector<100x64xf32> to vector<100x64xbf16>
    %122 = vector.extract_strided_slice %90 {offsets = [384, 0], sizes = [64, 64], strides = [1, 1]} : vector<576x64xbf16> to vector<64x64xbf16>
    %cst_85 = arith.constant dense<0.000000e+00> : vector<100x64xf32>
    %123 = tpu.matmul %121, %122, %cst_85 {dimension_numbers = #tpu.dot_dimension_numbers<[1], [0], [0], [1], [0, 0, 1, 1], [], []>} : vector<100x64xbf16>, vector<64x64xbf16>, vector<100x64xf32> -> vector<100x64xf32>
    %124 = arith.addf %119, %123 : vector<100x64xf32>
    %c21_86 = arith.constant 21 : index
    %c0_87 = arith.constant 0 : index
    %125 = vector.load %arg13[%c21_86, %c0_87] : memref<122x64xf32, #tpu.memory_space<vmem>>, vector<100x64xf32>
    %126 = arith.truncf %125 : vector<100x64xf32> to vector<100x64xbf16>
    %127 = vector.extract_strided_slice %90 {offsets = [448, 0], sizes = [64, 64], strides = [1, 1]} : vector<576x64xbf16> to vector<64x64xbf16>
    %cst_88 = arith.constant dense<0.000000e+00> : vector<100x64xf32>
    %128 = tpu.matmul %126, %127, %cst_88 {dimension_numbers = #tpu.dot_dimension_numbers<[1], [0], [0], [1], [0, 0, 1, 1], [], []>} : vector<100x64xbf16>, vector<64x64xbf16>, vector<100x64xf32> -> vector<100x64xf32>
    %129 = arith.addf %124, %128 : vector<100x64xf32>
    %c22_89 = arith.constant 22 : index
    %c0_90 = arith.constant 0 : index
    %130 = vector.load %arg13[%c22_89, %c0_90] : memref<122x64xf32, #tpu.memory_space<vmem>>, vector<100x64xf32>
    %131 = arith.truncf %130 : vector<100x64xf32> to vector<100x64xbf16>
    %132 = vector.extract_strided_slice %90 {offsets = [512, 0], sizes = [64, 64], strides = [1, 1]} : vector<576x64xbf16> to vector<64x64xbf16>
    %cst_91 = arith.constant dense<0.000000e+00> : vector<100x64xf32>
    %133 = tpu.matmul %131, %132, %cst_91 {dimension_numbers = #tpu.dot_dimension_numbers<[1], [0], [0], [1], [0, 0, 1, 1], [], []>} : vector<100x64xbf16>, vector<64x64xbf16>, vector<100x64xf32> -> vector<100x64xf32>
    %134 = arith.addf %129, %133 : vector<100x64xf32>
    %c1_92 = arith.constant 1 : index
    %c0_93 = arith.constant 0 : index
    %c0_94 = arith.constant 0 : index
    %135 = vector.load %arg6[%c1_92, %c0_93, %c0_94] : memref<4x1x64xf32, #tpu.memory_space<vmem>>, vector<1x1x64xf32>
    %136 = vector.shape_cast %135 : vector<1x1x64xf32> to vector<1x64xf32>
    %137 = vector.broadcast %136 : vector<1x64xf32> to vector<100x64xf32>
    %138 = arith.addf %134, %137 : vector<100x64xf32>
    %139 = arith.addf %138, %88 : vector<100x64xf32>
    %cst_95 = arith.constant 0.000000e+00 : f32
    %140 = vector.broadcast %cst_95 : f32 to vector<100x64xf32>
    %141 = arith.maximumf %139, %140 : vector<100x64xf32>
    %cst_96 = arith.constant dense<0.000000e+00> : vector<122x64xf32>
    %142 = tpu.matmul %33, %141, %cst_96 {dimension_numbers = #tpu.dot_dimension_numbers<[1], [0], [0], [1], [0, 0, 1, 1], [], []>} : vector<122x100xf32>, vector<100x64xf32>, vector<122x64xf32> -> vector<122x64xf32>
    %c0_97 = arith.constant 0 : index
    %c0_98 = arith.constant 0 : index
    %143 = vector.load %arg12[%c0_97, %c0_98] : memref<122x64xf32, #tpu.memory_space<vmem>>, vector<122x64xf32>
    tpu.vector_store %arg12[%c0_97, %c0_98], %142 {strides = array<i32>} : memref<122x64xf32, #tpu.memory_space<vmem>>, vector<122x64xf32>,
    %c2_99 = arith.constant 2 : index
    %c0_100 = arith.constant 0 : index
    %c0_101 = arith.constant 0 : index
    %144 = vector.load %arg5[%c2_99, %c0_100, %c0_101] : memref<4x576x64xbf16, #tpu.memory_space<vmem>>, vector<1x576x64xbf16>
    %145 = vector.shape_cast %144 : vector<1x576x64xbf16> to vector<576x64xbf16>
    %c0_102 = arith.constant 0 : index
    %c0_103 = arith.constant 0 : index
    %146 = vector.load %arg12[%c0_102, %c0_103] : memref<122x64xf32, #tpu.memory_space<vmem>>, vector<100x64xf32>
    %147 = arith.truncf %146 : vector<100x64xf32> to vector<100x64xbf16>
    %148 = vector.extract_strided_slice %145 {offsets = [0, 0], sizes = [64, 64], strides = [1, 1]} : vector<576x64xbf16> to vector<64x64xbf16>
    %cst_104 = arith.constant dense<0.000000e+00> : vector<100x64xf32>
    %149 = tpu.matmul %147, %148, %cst_104 {dimension_numbers = #tpu.dot_dimension_numbers<[1], [0], [0], [1], [0, 0, 1, 1], [], []>} : vector<100x64xbf16>, vector<64x64xbf16>, vector<100x64xf32> -> vector<100x64xf32>
    %c1_105 = arith.constant 1 : index
    %c0_106 = arith.constant 0 : index
    %150 = vector.load %arg12[%c1_105, %c0_106] : memref<122x64xf32, #tpu.memory_space<vmem>>, vector<100x64xf32>
    %151 = arith.truncf %150 : vector<100x64xf32> to vector<100x64xbf16>
    %152 = vector.extract_strided_slice %145 {offsets = [64, 0], sizes = [64, 64], strides = [1, 1]} : vector<576x64xbf16> to vector<64x64xbf16>
    %cst_107 = arith.constant dense<0.000000e+00> : vector<100x64xf32>
    %153 = tpu.matmul %151, %152, %cst_107 {dimension_numbers = #tpu.dot_dimension_numbers<[1], [0], [0], [1], [0, 0, 1, 1], [], []>} : vector<100x64xbf16>, vector<64x64xbf16>, vector<100x64xf32> -> vector<100x64xf32>
    %154 = arith.addf %149, %153 : vector<100x64xf32>
    %c2_108 = arith.constant 2 : index
    %c0_109 = arith.constant 0 : index
    %155 = vector.load %arg12[%c2_108, %c0_109] : memref<122x64xf32, #tpu.memory_space<vmem>>, vector<100x64xf32>
    %156 = arith.truncf %155 : vector<100x64xf32> to vector<100x64xbf16>
    %157 = vector.extract_strided_slice %145 {offsets = [128, 0], sizes = [64, 64], strides = [1, 1]} : vector<576x64xbf16> to vector<64x64xbf16>
    %cst_110 = arith.constant dense<0.000000e+00> : vector<100x64xf32>
    %158 = tpu.matmul %156, %157, %cst_110 {dimension_numbers = #tpu.dot_dimension_numbers<[1], [0], [0], [1], [0, 0, 1, 1], [], []>} : vector<100x64xbf16>, vector<64x64xbf16>, vector<100x64xf32> -> vector<100x64xf32>
    %159 = arith.addf %154, %158 : vector<100x64xf32>
    %c10_111 = arith.constant 10 : index
    %c0_112 = arith.constant 0 : index
    %160 = vector.load %arg12[%c10_111, %c0_112] : memref<122x64xf32, #tpu.memory_space<vmem>>, vector<100x64xf32>
    %161 = arith.truncf %160 : vector<100x64xf32> to vector<100x64xbf16>
    %162 = vector.extract_strided_slice %145 {offsets = [192, 0], sizes = [64, 64], strides = [1, 1]} : vector<576x64xbf16> to vector<64x64xbf16>
    %cst_113 = arith.constant dense<0.000000e+00> : vector<100x64xf32>
    %163 = tpu.matmul %161, %162, %cst_113 {dimension_numbers = #tpu.dot_dimension_numbers<[1], [0], [0], [1], [0, 0, 1, 1], [], []>} : vector<100x64xbf16>, vector<64x64xbf16>, vector<100x64xf32> -> vector<100x64xf32>
    %164 = arith.addf %159, %163 : vector<100x64xf32>
    %c11_114 = arith.constant 11 : index
    %c0_115 = arith.constant 0 : index
    %165 = vector.load %arg12[%c11_114, %c0_115] : memref<122x64xf32, #tpu.memory_space<vmem>>, vector<100x64xf32>
    %166 = arith.truncf %165 : vector<100x64xf32> to vector<100x64xbf16>
    %167 = vector.extract_strided_slice %145 {offsets = [256, 0], sizes = [64, 64], strides = [1, 1]} : vector<576x64xbf16> to vector<64x64xbf16>
    %cst_116 = arith.constant dense<0.000000e+00> : vector<100x64xf32>
    %168 = tpu.matmul %166, %167, %cst_116 {dimension_numbers = #tpu.dot_dimension_numbers<[1], [0], [0], [1], [0, 0, 1, 1], [], []>} : vector<100x64xbf16>, vector<64x64xbf16>, vector<100x64xf32> -> vector<100x64xf32>
    %169 = arith.addf %164, %168 : vector<100x64xf32>
    %c12_117 = arith.constant 12 : index
    %c0_118 = arith.constant 0 : index
    %170 = vector.load %arg12[%c12_117, %c0_118] : memref<122x64xf32, #tpu.memory_space<vmem>>, vector<100x64xf32>
    %171 = arith.truncf %170 : vector<100x64xf32> to vector<100x64xbf16>
    %172 = vector.extract_strided_slice %145 {offsets = [320, 0], sizes = [64, 64], strides = [1, 1]} : vector<576x64xbf16> to vector<64x64xbf16>
    %cst_119 = arith.constant dense<0.000000e+00> : vector<100x64xf32>
    %173 = tpu.matmul %171, %172, %cst_119 {dimension_numbers = #tpu.dot_dimension_numbers<[1], [0], [0], [1], [0, 0, 1, 1], [], []>} : vector<100x64xbf16>, vector<64x64xbf16>, vector<100x64xf32> -> vector<100x64xf32>
    %174 = arith.addf %169, %173 : vector<100x64xf32>
    %c20_120 = arith.constant 20 : index
    %c0_121 = arith.constant 0 : index
    %175 = vector.load %arg12[%c20_120, %c0_121] : memref<122x64xf32, #tpu.memory_space<vmem>>, vector<100x64xf32>
    %176 = arith.truncf %175 : vector<100x64xf32> to vector<100x64xbf16>
    %177 = vector.extract_strided_slice %145 {offsets = [384, 0], sizes = [64, 64], strides = [1, 1]} : vector<576x64xbf16> to vector<64x64xbf16>
    %cst_122 = arith.constant dense<0.000000e+00> : vector<100x64xf32>
    %178 = tpu.matmul %176, %177, %cst_122 {dimension_numbers = #tpu.dot_dimension_numbers<[1], [0], [0], [1], [0, 0, 1, 1], [], []>} : vector<100x64xbf16>, vector<64x64xbf16>, vector<100x64xf32> -> vector<100x64xf32>
    %179 = arith.addf %174, %178 : vector<100x64xf32>
    %c21_123 = arith.constant 21 : index
    %c0_124 = arith.constant 0 : index
    %180 = vector.load %arg12[%c21_123, %c0_124] : memref<122x64xf32, #tpu.memory_space<vmem>>, vector<100x64xf32>
    %181 = arith.truncf %180 : vector<100x64xf32> to vector<100x64xbf16>
    %182 = vector.extract_strided_slice %145 {offsets = [448, 0], sizes = [64, 64], strides = [1, 1]} : vector<576x64xbf16> to vector<64x64xbf16>
    %cst_125 = arith.constant dense<0.000000e+00> : vector<100x64xf32>
    %183 = tpu.matmul %181, %182, %cst_125 {dimension_numbers = #tpu.dot_dimension_numbers<[1], [0], [0], [1], [0, 0, 1, 1], [], []>} : vector<100x64xbf16>, vector<64x64xbf16>, vector<100x64xf32> -> vector<100x64xf32>
    %184 = arith.addf %179, %183 : vector<100x64xf32>
    %c22_126 = arith.constant 22 : index
    %c0_127 = arith.constant 0 : index
    %185 = vector.load %arg12[%c22_126, %c0_127] : memref<122x64xf32, #tpu.memory_space<vmem>>, vector<100x64xf32>
    %186 = arith.truncf %185 : vector<100x64xf32> to vector<100x64xbf16>
    %187 = vector.extract_strided_slice %145 {offsets = [512, 0], sizes = [64, 64], strides = [1, 1]} : vector<576x64xbf16> to vector<64x64xbf16>
    %cst_128 = arith.constant dense<0.000000e+00> : vector<100x64xf32>
    %188 = tpu.matmul %186, %187, %cst_128 {dimension_numbers = #tpu.dot_dimension_numbers<[1], [0], [0], [1], [0, 0, 1, 1], [], []>} : vector<100x64xbf16>, vector<64x64xbf16>, vector<100x64xf32> -> vector<100x64xf32>
    %189 = arith.addf %184, %188 : vector<100x64xf32>
    %c2_129 = arith.constant 2 : index
    %c0_130 = arith.constant 0 : index
    %c0_131 = arith.constant 0 : index
    %190 = vector.load %arg6[%c2_129, %c0_130, %c0_131] : memref<4x1x64xf32, #tpu.memory_space<vmem>>, vector<1x1x64xf32>
    %191 = vector.shape_cast %190 : vector<1x1x64xf32> to vector<1x64xf32>
    %192 = vector.broadcast %191 : vector<1x64xf32> to vector<100x64xf32>
    %193 = arith.addf %189, %192 : vector<100x64xf32>
    %cst_132 = arith.constant 0.000000e+00 : f32
    %194 = vector.broadcast %cst_132 : f32 to vector<100x64xf32>
    %195 = arith.maximumf %193, %194 : vector<100x64xf32>
    %cst_133 = arith.constant dense<0.000000e+00> : vector<122x64xf32>
    %196 = tpu.matmul %33, %195, %cst_133 {dimension_numbers = #tpu.dot_dimension_numbers<[1], [0], [0], [1], [0, 0, 1, 1], [], []>} : vector<122x100xf32>, vector<100x64xf32>, vector<122x64xf32> -> vector<122x64xf32>
    %c0_134 = arith.constant 0 : index
    %c0_135 = arith.constant 0 : index
    %197 = vector.load %arg13[%c0_134, %c0_135] : memref<122x64xf32, #tpu.memory_space<vmem>>, vector<122x64xf32>
    tpu.vector_store %arg13[%c0_134, %c0_135], %196 {strides = array<i32>} : memref<122x64xf32, #tpu.memory_space<vmem>>, vector<122x64xf32>,
    %c11_136 = arith.constant 11 : index
    %c0_137 = arith.constant 0 : index
    %198 = vector.load %arg12[%c11_136, %c0_137] : memref<122x64xf32, #tpu.memory_space<vmem>>, vector<100x64xf32>
    %c3 = arith.constant 3 : index
    %c0_138 = arith.constant 0 : index
    %c0_139 = arith.constant 0 : index
    %199 = vector.load %arg5[%c3, %c0_138, %c0_139] : memref<4x576x64xbf16, #tpu.memory_space<vmem>>, vector<1x576x64xbf16>
    %200 = vector.shape_cast %199 : vector<1x576x64xbf16> to vector<576x64xbf16>
    %c0_140 = arith.constant 0 : index
    %c0_141 = arith.constant 0 : index
    %201 = vector.load %arg13[%c0_140, %c0_141] : memref<122x64xf32, #tpu.memory_space<vmem>>, vector<100x64xf32>
    %202 = arith.truncf %201 : vector<100x64xf32> to vector<100x64xbf16>
    %203 = vector.extract_strided_slice %200 {offsets = [0, 0], sizes = [64, 64], strides = [1, 1]} : vector<576x64xbf16> to vector<64x64xbf16>
    %cst_142 = arith.constant dense<0.000000e+00> : vector<100x64xf32>
    %204 = tpu.matmul %202, %203, %cst_142 {dimension_numbers = #tpu.dot_dimension_numbers<[1], [0], [0], [1], [0, 0, 1, 1], [], []>} : vector<100x64xbf16>, vector<64x64xbf16>, vector<100x64xf32> -> vector<100x64xf32>
    %c1_143 = arith.constant 1 : index
    %c0_144 = arith.constant 0 : index
    %205 = vector.load %arg13[%c1_143, %c0_144] : memref<122x64xf32, #tpu.memory_space<vmem>>, vector<100x64xf32>
    %206 = arith.truncf %205 : vector<100x64xf32> to vector<100x64xbf16>
    %207 = vector.extract_strided_slice %200 {offsets = [64, 0], sizes = [64, 64], strides = [1, 1]} : vector<576x64xbf16> to vector<64x64xbf16>
    %cst_145 = arith.constant dense<0.000000e+00> : vector<100x64xf32>
    %208 = tpu.matmul %206, %207, %cst_145 {dimension_numbers = #tpu.dot_dimension_numbers<[1], [0], [0], [1], [0, 0, 1, 1], [], []>} : vector<100x64xbf16>, vector<64x64xbf16>, vector<100x64xf32> -> vector<100x64xf32>
    %209 = arith.addf %204, %208 : vector<100x64xf32>
    %c2_146 = arith.constant 2 : index
    %c0_147 = arith.constant 0 : index
    %210 = vector.load %arg13[%c2_146, %c0_147] : memref<122x64xf32, #tpu.memory_space<vmem>>, vector<100x64xf32>
    %211 = arith.truncf %210 : vector<100x64xf32> to vector<100x64xbf16>
    %212 = vector.extract_strided_slice %200 {offsets = [128, 0], sizes = [64, 64], strides = [1, 1]} : vector<576x64xbf16> to vector<64x64xbf16>
    %cst_148 = arith.constant dense<0.000000e+00> : vector<100x64xf32>
    %213 = tpu.matmul %211, %212, %cst_148 {dimension_numbers = #tpu.dot_dimension_numbers<[1], [0], [0], [1], [0, 0, 1, 1], [], []>} : vector<100x64xbf16>, vector<64x64xbf16>, vector<100x64xf32> -> vector<100x64xf32>
    %214 = arith.addf %209, %213 : vector<100x64xf32>
    %c10_149 = arith.constant 10 : index
    %c0_150 = arith.constant 0 : index
    %215 = vector.load %arg13[%c10_149, %c0_150] : memref<122x64xf32, #tpu.memory_space<vmem>>, vector<100x64xf32>
    %216 = arith.truncf %215 : vector<100x64xf32> to vector<100x64xbf16>
    %217 = vector.extract_strided_slice %200 {offsets = [192, 0], sizes = [64, 64], strides = [1, 1]} : vector<576x64xbf16> to vector<64x64xbf16>
    %cst_151 = arith.constant dense<0.000000e+00> : vector<100x64xf32>
    %218 = tpu.matmul %216, %217, %cst_151 {dimension_numbers = #tpu.dot_dimension_numbers<[1], [0], [0], [1], [0, 0, 1, 1], [], []>} : vector<100x64xbf16>, vector<64x64xbf16>, vector<100x64xf32> -> vector<100x64xf32>
    %219 = arith.addf %214, %218 : vector<100x64xf32>
    %c11_152 = arith.constant 11 : index
    %c0_153 = arith.constant 0 : index
    %220 = vector.load %arg13[%c11_152, %c0_153] : memref<122x64xf32, #tpu.memory_space<vmem>>, vector<100x64xf32>
    %221 = arith.truncf %220 : vector<100x64xf32> to vector<100x64xbf16>
    %222 = vector.extract_strided_slice %200 {offsets = [256, 0], sizes = [64, 64], strides = [1, 1]} : vector<576x64xbf16> to vector<64x64xbf16>
    %cst_154 = arith.constant dense<0.000000e+00> : vector<100x64xf32>
    %223 = tpu.matmul %221, %222, %cst_154 {dimension_numbers = #tpu.dot_dimension_numbers<[1], [0], [0], [1], [0, 0, 1, 1], [], []>} : vector<100x64xbf16>, vector<64x64xbf16>, vector<100x64xf32> -> vector<100x64xf32>
    %224 = arith.addf %219, %223 : vector<100x64xf32>
    %c12_155 = arith.constant 12 : index
    %c0_156 = arith.constant 0 : index
    %225 = vector.load %arg13[%c12_155, %c0_156] : memref<122x64xf32, #tpu.memory_space<vmem>>, vector<100x64xf32>
    %226 = arith.truncf %225 : vector<100x64xf32> to vector<100x64xbf16>
    %227 = vector.extract_strided_slice %200 {offsets = [320, 0], sizes = [64, 64], strides = [1, 1]} : vector<576x64xbf16> to vector<64x64xbf16>
    %cst_157 = arith.constant dense<0.000000e+00> : vector<100x64xf32>
    %228 = tpu.matmul %226, %227, %cst_157 {dimension_numbers = #tpu.dot_dimension_numbers<[1], [0], [0], [1], [0, 0, 1, 1], [], []>} : vector<100x64xbf16>, vector<64x64xbf16>, vector<100x64xf32> -> vector<100x64xf32>
    %229 = arith.addf %224, %228 : vector<100x64xf32>
    %c20_158 = arith.constant 20 : index
    %c0_159 = arith.constant 0 : index
    %230 = vector.load %arg13[%c20_158, %c0_159] : memref<122x64xf32, #tpu.memory_space<vmem>>, vector<100x64xf32>
    %231 = arith.truncf %230 : vector<100x64xf32> to vector<100x64xbf16>
    %232 = vector.extract_strided_slice %200 {offsets = [384, 0], sizes = [64, 64], strides = [1, 1]} : vector<576x64xbf16> to vector<64x64xbf16>
    %cst_160 = arith.constant dense<0.000000e+00> : vector<100x64xf32>
    %233 = tpu.matmul %231, %232, %cst_160 {dimension_numbers = #tpu.dot_dimension_numbers<[1], [0], [0], [1], [0, 0, 1, 1], [], []>} : vector<100x64xbf16>, vector<64x64xbf16>, vector<100x64xf32> -> vector<100x64xf32>
    %234 = arith.addf %229, %233 : vector<100x64xf32>
    %c21_161 = arith.constant 21 : index
    %c0_162 = arith.constant 0 : index
    %235 = vector.load %arg13[%c21_161, %c0_162] : memref<122x64xf32, #tpu.memory_space<vmem>>, vector<100x64xf32>
    %236 = arith.truncf %235 : vector<100x64xf32> to vector<100x64xbf16>
    %237 = vector.extract_strided_slice %200 {offsets = [448, 0], sizes = [64, 64], strides = [1, 1]} : vector<576x64xbf16> to vector<64x64xbf16>
    %cst_163 = arith.constant dense<0.000000e+00> : vector<100x64xf32>
    %238 = tpu.matmul %236, %237, %cst_163 {dimension_numbers = #tpu.dot_dimension_numbers<[1], [0], [0], [1], [0, 0, 1, 1], [], []>} : vector<100x64xbf16>, vector<64x64xbf16>, vector<100x64xf32> -> vector<100x64xf32>
    %239 = arith.addf %234, %238 : vector<100x64xf32>
    %c22_164 = arith.constant 22 : index
    %c0_165 = arith.constant 0 : index
    %240 = vector.load %arg13[%c22_164, %c0_165] : memref<122x64xf32, #tpu.memory_space<vmem>>, vector<100x64xf32>
    %241 = arith.truncf %240 : vector<100x64xf32> to vector<100x64xbf16>
    %242 = vector.extract_strided_slice %200 {offsets = [512, 0], sizes = [64, 64], strides = [1, 1]} : vector<576x64xbf16> to vector<64x64xbf16>
    %cst_166 = arith.constant dense<0.000000e+00> : vector<100x64xf32>
    %243 = tpu.matmul %241, %242, %cst_166 {dimension_numbers = #tpu.dot_dimension_numbers<[1], [0], [0], [1], [0, 0, 1, 1], [], []>} : vector<100x64xbf16>, vector<64x64xbf16>, vector<100x64xf32> -> vector<100x64xf32>
    %244 = arith.addf %239, %243 : vector<100x64xf32>
    %c3_167 = arith.constant 3 : index
    %c0_168 = arith.constant 0 : index
    %c0_169 = arith.constant 0 : index
    %245 = vector.load %arg6[%c3_167, %c0_168, %c0_169] : memref<4x1x64xf32, #tpu.memory_space<vmem>>, vector<1x1x64xf32>
    %246 = vector.shape_cast %245 : vector<1x1x64xf32> to vector<1x64xf32>
    %247 = vector.broadcast %246 : vector<1x64xf32> to vector<100x64xf32>
    %248 = arith.addf %244, %247 : vector<100x64xf32>
    %249 = arith.addf %248, %198 : vector<100x64xf32>
    %cst_170 = arith.constant 0.000000e+00 : f32
    %250 = vector.broadcast %cst_170 : f32 to vector<100x64xf32>
    %251 = arith.maximumf %249, %250 : vector<100x64xf32>
    %c0_171 = arith.constant 0 : index
    %c0_172 = arith.constant 0 : index
    %252 = vector.load %arg9[%c0_171, %c0_172] : memref<64x100xf32, #tpu.memory_space<vmem>>, vector<64x100xf32>
    %cst_173 = arith.constant dense<0.000000e+00> : vector<64x64xf32>
    %253 = tpu.matmul %252, %251, %cst_173 {dimension_numbers = #tpu.dot_dimension_numbers<[1], [0], [0], [1], [0, 0, 1, 1], [], []>} : vector<64x100xf32>, vector<100x64xf32>, vector<64x64xf32> -> vector<64x64xf32>
    %c0_174 = arith.constant 0 : index
    %c0_175 = arith.constant 0 : index
    %c0_176 = arith.constant 0 : index
    %254 = vector.load %arg10[%c0_174, %c0_175, %c0_176] : memref<1x64x64xf32, #tpu.memory_space<vmem>>, vector<1x64x64xf32>
    %255 = vector.shape_cast %254 : vector<1x64x64xf32> to vector<64x64xf32>
    %256 = vector.shape_cast %253 : vector<64x64xf32> to vector<1x64x64xf32>
    tpu.vector_store %arg10[%c0_174, %c0_175, %c0_176], %256 {strides = array<i32>} : memref<1x64x64xf32, #tpu.memory_space<vmem>>, vector<1x64x64xf32>,
    return
  }
  func.func @transform_0(%arg0: i32) -> (i32, i32, i32) {
    %c0_i32 = arith.constant 0 : i32
    %c0_i32_0 = arith.constant 0 : i32
    %c0_i32_1 = arith.constant 0 : i32
    return %arg0, %c0_i32, %c0_i32_0 : i32, i32, i32
  }
  func.func @transform_1(%arg0: i32) -> (i32, i32) {
    %c0_i32 = arith.constant 0 : i32
    %c0_i32_0 = arith.constant 0 : i32
    %c0_i32_1 = arith.constant 0 : i32
    return %c0_i32, %c0_i32_0 : i32, i32
  }
  func.func @transform_2(%arg0: i32) -> (i32, i32) {
    %c0_i32 = arith.constant 0 : i32
    %c0_i32_0 = arith.constant 0 : i32
    %c0_i32_1 = arith.constant 0 : i32
    return %c0_i32, %c0_i32_0 : i32, i32
  }
  func.func @transform_3(%arg0: i32) -> (i32, i32) {
    %c0_i32 = arith.constant 0 : i32
    %c0_i32_0 = arith.constant 0 : i32
    %c0_i32_1 = arith.constant 0 : i32
    return %c0_i32, %c0_i32_0 : i32, i32
  }
  func.func @transform_4(%arg0: i32) -> (i32, i32, i32) {
    %c0_i32 = arith.constant 0 : i32
    %c0_i32_0 = arith.constant 0 : i32
    %c0_i32_1 = arith.constant 0 : i32
    %c0_i32_2 = arith.constant 0 : i32
    return %c0_i32, %c0_i32_0, %c0_i32_1 : i32, i32, i32
  }
  func.func @transform_5(%arg0: i32) -> (i32, i32, i32) {
    %c0_i32 = arith.constant 0 : i32
    %c0_i32_0 = arith.constant 0 : i32
    %c0_i32_1 = arith.constant 0 : i32
    %c0_i32_2 = arith.constant 0 : i32
    return %c0_i32, %c0_i32_0, %c0_i32_1 : i32, i32, i32
  }
  func.func @transform_6(%arg0: i32) -> (i32, i32) {
    %c0_i32 = arith.constant 0 : i32
    %c0_i32_0 = arith.constant 0 : i32
    %c0_i32_1 = arith.constant 0 : i32
    return %c0_i32, %c0_i32_0 : i32, i32
  }
  func.func @transform_7(%arg0: i32) -> (i32, i32) {
    %c0_i32 = arith.constant 0 : i32
    %c0_i32_0 = arith.constant 0 : i32
    %c0_i32_1 = arith.constant 0 : i32
    return %c0_i32, %c0_i32_0 : i32, i32
  }
  func.func @transform_8(%arg0: i32) -> (i32, i32) {
    %c0_i32 = arith.constant 0 : i32
    %c0_i32_0 = arith.constant 0 : i32
    %c0_i32_1 = arith.constant 0 : i32
    return %c0_i32, %c0_i32_0 : i32, i32
  }
  func.func @transform_9(%arg0: i32) -> (i32, i32, i32) {
    %c0_i32 = arith.constant 0 : i32
    %c0_i32_0 = arith.constant 0 : i32
    %c0_i32_1 = arith.constant 0 : i32
    return %arg0, %c0_i32, %c0_i32_0 : i32, i32, i32
  }
}

</mosaic_0001>

<bundles_post_ra>
// kernel: _lambda_.1
= control target key start
LH: loop header
LB: loop body
LE: loop exit
PB: predicated region body
PF: predicated region fallthrough
CT: control target
= control target key end

     0   :  { %14 = vsyncpa [#allocation6], 0  ;;  %s16717_s0 = inlined_call_operand.vmem [shape: bf16[2,362,147], index: 0, kind: input, shape index: {}]   ;;  %s16718_s1 = inlined_call_operand.vmem [shape: bf16[147,64], index: 1, kind: input, shape index: {}]   ;;  %s16719_s2 = inlined_call_operand.vmem [shape: f32[1,64], index: 2, kind: input, shape index: {}]   ;;  %s16720_s3 = inlined_call_operand.vmem [shape: f32[362,1], index: 3, kind: input, shape index: {}]   ;;  %s16721_s4 = inlined_call_operand.vmem [shape: bf16[4,576,64], index: 4, kind: input, shape index: {}]   ;;  %s16722_s5 = inlined_call_operand.vmem [shape: f32[4,1,64], index: 5, kind: input, shape index: {}]   ;;  %s16723_s6 = inlined_call_operand.vmem [shape: f32[122,324], index: 6, kind: input, shape index: {}]   ;;  %s16724_s7 = inlined_call_operand.vmem [shape: f32[122,100], index: 7, kind: input, shape index: {}]   ;;  %s16725_s8 = inlined_call_operand.vmem [shape: f32[64,100], index: 8, kind: input, shape index: {}]   ;;  %s16726_s9 = inlined_call_operand.hbm [shape: f32[2,64,64], index: 9, kind: output, shape index: {}]  }
   0x1   :  { %16 = vsyncpa [#allocation6 + $0x1], 0  ;;  %s13045_s30 = smov 0   ;;  %s13047_s10 = smov 0  }
   0x2   :  { %s13049_s11 = smov 0   ;;  %s13051_s12 = smov 0  }
   0x3 LB: > { %s13066_s13 = sadd.s32 4294967295, %s12986_s12   ;;  %s9537_s14 = sadd.s32 4294967294, %s12986_s12   ;;  %s12986_s12 = sphi %s13051_s12, %s16732_s12   ;;  %s12982_s11 = sphi %s13049_s11, %s16731_s11   ;;  %s12978_s10 = sphi %s13047_s10, %s16730_s10   ;;  %s12974_s30 = sphi %s13045_s30, %s16729_s30  }
   0x4   : > { %s13070_s15 = sadd.s32 1, %s12986_s12   ;;  %s223_s16 = sadd.s32 1, %s12982_s11 }
   0x5   : > { %s220_s17 = ssub.s32 %s12986_s12, %s13070_s15  ;;  %p233_p0 = scmp.ne.s32.totalorder %s12982_s11, %s12978_s10 }
   0x6   : > { %p221_p1 = scmp.eq.s32.totalorder %s220_s17, 0  ;;  %p234_p2 = scmp.eq.s32.totalorder %s13066_s13, 1 }
   0x7   : > { %p239_p3 = scmp.ne.s32.totalorder %s12978_s10, %s12974_s30  ;;  %p240_p4 = scmp.eq.s32.totalorder %s9537_s14, 1 }
   0x8   : > { %s13081_s18 = scalar_select %p221_p1, %s12982_s11, %s223_s16  }
   0x9   : > { %p13083_p5 = por %p234_p2, %p233_p0  ;;  %p13087_p6 = por %p240_p4, %p239_p3 }
   0xa   : > { %p9540_p7 = scmp.ge.s32.totalorder %s12986_s12, 1  ;;  %p290_p8 = scmp.lt.s32.totalorder %s12986_s12, 3 }
   0xc   : > { %p291_p9 = pnand %p9540_p7, %p290_p8 }
   0xd   : > { %v12668_v0 = vld [vmem:[%s16718_s1] sm:$0xff] (!%p291_p9)   ;;  %v12988_v1 = vmov (!%p291_p9), 0   ;;  %v12669_v2 = vld [vmem:[%s16718_s1 + $0x8] sm:$0xff] (!%p291_p9)   ;;  %v12670_v3 = vld [vmem:[%s16718_s1 + $0x10] sm:$0xff] (!%p291_p9)   ;;  %p326_p10 = scmp.lt.s32.totalorder (!%p291_p9), %s13066_s13, 1  ;;  %vm668_vm0 = vcmask (!%p291_p9), 154624  }
   0xe   : > { %294 = sbr.rel (%p291_p9) target bundleno = 3611 (0xe1b), region = 56  ;;  %745 = vmatprep.subr.bf16.mxu0 (!%p291_p9), %v12988_v1  ;;  %12667 = vset.pattern.permute.xlu1 (!%p291_p9), %v12988_v1  ;;  %v1026_v4 = vld [vmem:[%s16720_s3 + $0x90] sm:$0xff] (!%p291_p9)  ;;  %v12671_v5 = vld [vmem:[%s16718_s1 + $0x18] sm:$0xff] (!%p291_p9)   ;;  %v1024_v6 = vld [vmem:[%s16720_s3 + $0x80] sm:$0xff] (!%p291_p9)  ;;  %vm738_vm1 = vcmask (!%p291_p9), 1040384   ;;  %vm739_vm2 = vcmask (!%p291_p9), 1041408  }
   0xf   : > { %746 = vmatpush1.bf16.msra.mxu0 (!%p291_p9), %v12668_v0  ;;  %12666 = vset.pattern.permute.xlu0 (!%p291_p9), %v12988_v1  ;;  %v1008_v7 = vld [vmem:[%s16720_s3] sm:$0xff] (!%p291_p9)  ;;  %v1025_v8 = vld [vmem:[%s16720_s3 + $0x88] sm:$0xff] (!%p291_p9)  ;;  %v1010_v11 = vld [vmem:[%s16720_s3 + $0x10] sm:$0xff] (!%p291_p9)  ;;  %v12989_v21 = vmov (!%p291_p9), 65535   ;;  %vm1330_vm3 = vcmask (!%p291_p9), 523264   ;;  %vm1376_vm4 = vcmask (!%p291_p9), 517120  }
  0x10   : > { %747 = vmatprep.subr.bf16.mxu0 (!%p291_p9), %v12988_v1  ;;  %1146 = vperm.xlu1 (!%p291_p9), %12667, %v1026_v4   ;;  %v12672_v9 = vld [vmem:[%s16718_s1 + $0x20] sm:$0xff] (!%p291_p9)   ;;  %v1009_v12 = vld [vmem:[%s16720_s3 + $0x8] sm:$0xff] (!%p291_p9)  ;;  %v1027_v15 = vld [vmem:[%s16720_s3 + $0x98] sm:$0xff] (!%p291_p9)  ;;  %v740_v22 = vsel (!%p291_p9), %vm738_vm1, 4294967295, %v12989_v21  ;;  %vm2096_vm5 = vcmask (!%p291_p9), 1043456   ;;  %vm2047_vm6 = vcmask (!%p291_p9), 556032  }
  0x11   : > { %1136 = vperm.xlu0 (!%p291_p9), %12666, %v1024_v6   ;;  %v12673_v13 = vld [vmem:[%s16718_s1 + $0x28] sm:$0xff] (!%p291_p9)   ;;  %v1028_v14 = vld [vmem:[%s16720_s3 + $0xa0] sm:$0xff] (!%p291_p9)  ;;  %v12674_v16 = vld [vmem:[%s16718_s1 + $0x30] sm:$0xff] (!%p291_p9)   ;;  %v741_v26 = vsel (!%p291_p9), %vm739_vm2, %v740_v22, 0  ;;  %vm12991_vm7 = vmmov (!%p291_p9), 0   ;;  %vm3995_vm8 = vcmask (!%p291_p9), 818176  }
  0x12   : > { %v1012_v17 = vld [vmem:[%s16720_s3 + $0x20] sm:$0xff] (!%p291_p9)  ;;  %v1011_v18 = vld [vmem:[%s16720_s3 + $0x18] sm:$0xff] (!%p291_p9)  ;;  %v1030_v20 = vld [vmem:[%s16720_s3 + $0xb0] sm:$0xff] (!%p291_p9)  ;;  %s10324_s22 = sshll.u32 (!%p291_p9), %s13066_s13, 10  ;;  %s12992_s29 = smov (!%p291_p9), [#allocation5]  }
  0x13   : > { %748 = vmatpush1.bf16.msra.mxu0 (!%p291_p9), %v12669_v2  ;;  %v12675_v19 = vld [vmem:[%s16718_s1 + $0x38] sm:$0xff] (!%p291_p9)   ;;  %v1029_v23 = vld [vmem:[%s16720_s3 + $0xa8] sm:$0xff] (!%p291_p9)  ;;  %v12676_v24 = vld [vmem:[%s16718_s1 + $0x40] sm:$0xff] (!%p291_p9)   ;;  %s16670_s25 = scalar_lea.hbm (!%p291_p9), %s16726_s9, %s10324_s22 }
  0x14   : > { %749 = vmatprep.subr.bf16.mxu0 (!%p291_p9), %v12988_v1  ;;  %1056 = vperm.xlu1 (!%p291_p9), %12667, %v1008_v7   ;;  %v12677_v25 = vld [vmem:[%s16718_s1 + $0x48] ss:$0 sps:$4 sm:$0x33] (!%p291_p9)   ;;  %v1014_v27 = vld [vmem:[%s16720_s3 + $0x30] sm:$0xff] (!%p291_p9)  ;;  %v1032_v30 = vld [vmem:[%s16720_s3 + $0xc0] sm:$0xff] (!%p291_p9) }
  0x15   : > { %s327_s27 = scalar_select %p326_p10, %s13066_s13, 1  ;;  %1141 = vperm.xlu0 %12666, %v1025_v8   ;;  %v1013_v28 = vld [vmem:[%s16720_s3 + $0x28] sm:$0xff]  ;;  %v743_v29 = vand.u32 %v12677_v25, %v741_v26  ;;  %v1031_v31 = vld [vmem:[%s16720_s3 + $0xb8] sm:$0xff]  ;;  %v1016_v34 = vld [vmem:[%s16720_s3 + $0x40] sm:$0xff] }
  0x16   : > { %v1015_v35 = vld [vmem:[%s16720_s3 + $0x38] sm:$0xff]  ;;  %v1034_v37 = vld [vmem:[%s16720_s3 + $0xd0] sm:$0xff]  ;;  %v1033_v38 = vld [vmem:[%s16720_s3 + $0xc8] sm:$0xff] }
  0x17   : > { %750 = vmatpush1.bf16.msra.mxu0 %v12670_v3  ;;  %s12620_s17 = smul.u32 368, %s327_s27  ;;  %v1018_v40 = vld [vmem:[%s16720_s3 + $0x50] sm:$0xff]  ;;  %v1017_v41 = vld [vmem:[%s16720_s3 + $0x48] sm:$0xff]  ;;  %v1036_v42 = vld [vmem:[%s16720_s3 + $0xe0] sm:$0xff]  ;;  %s323_s27 = sand.u32 1, %s12978_s10  }
  0x18   : > { %751 = vmatprep.subr.bf16.mxu0 %v12988_v1  ;;  %1066 = vperm.xlu1 %12667, %v1010_v11   ;;  %v1035_v43 = vld [vmem:[%s16720_s3 + $0xd8] sm:$0xff]  ;;  %v1020_v46 = vld [vmem:[%s16720_s3 + $0x60] sm:$0xff]  ;;  %v1038_v48 = vld [vmem:[%s16720_s3 + $0xf0] sm:$0xff]  ;;  %s9541_s16 = sshll.u32 %s323_s27, 6  ;;  %s16676_s13 = scalar_lea.sflag [#allocation6], %s323_s27 }
  0x19   : > { %s13125_s28 = scalar_lea.vmem %s16717_s0, %s12620_s17  ;;  %1061 = vperm.xlu0 %12666, %v1009_v12   ;;  %v1019_v47 = vld [vmem:[%s16720_s3 + $0x58] sm:$0xff]  ;;  %v1037_v49 = vld [vmem:[%s16720_s3 + $0xe8] sm:$0xff]  ;;  %v1022_v52 = vld [vmem:[%s16720_s3 + $0x70] sm:$0xff]  ;;  %s325_s21 = scalar_lea.vmem [#allocation5], %s9541_s16 }
  0x1a   : > { %v12680_v10 = vld [vmem:[%s13125_s28 + $0x4] ss:$8 sps:$4 sm:$0xff]   ;;  %v12678_v32 = vld [vmem:[%s13125_s28] ss:$8 sps:$4 sm:$0xff]   ;;  %v12681_v33 = vld [vmem:[%s13125_s28 + $0x14] ss:$8 sps:$4 sm:$0xff]  }
  0x1b   : > { %752 = vmatpush1.bf16.msra.mxu0 %v12671_v5  ;;  %9600 = vmatprep.mubr.msk.bf16.mxu0 %vm668_vm0, %v12680_v10  ;;  %v12683_v36 = vld [vmem:[%s13125_s28 + $0x10] ss:$8 sps:$4 sm:$0xff]   ;;  %v12684_v39 = vld [vmem:[%s13125_s28 + $0x24] ss:$8 sps:$4 sm:$0xff]   ;;  %v12686_v44 = vld [vmem:[%s13125_s28 + $0x20] ss:$8 sps:$4 sm:$0xff]  }
  0x1c   : > { %753 = vmatprep.subr.bf16.mxu0 %v12988_v1  ;;  %1156 = vperm.xlu1 %12667, %v1028_v14   ;;  %v12687_v45 = vld [vmem:[%s13125_s28 + $0x34] ss:$8 sps:$4 sm:$0xff]   ;;  %v12689_v50 = vld [vmem:[%s13125_s28 + $0x30] ss:$8 sps:$4 sm:$0xff]   ;;  %v12690_v51 = vld [vmem:[%s13125_s28 + $0x44] ss:$8 sps:$4 sm:$0xff]  }
  0x1d   : > { %1151 = vperm.xlu0 %12666, %v1027_v15   ;;  %v1021_v53 = vld [vmem:[%s16720_s3 + $0x68] sm:$0xff]  ;;  %v1040_v54 = vld [vmem:[%s16720_s3 + $0x100] sm:$0xff]  ;;  %v1039_v55 = vld [vmem:[%s16720_s3 + $0xf8] sm:$0xff]  ;;  %s9475_s17 = sshll.u32 %s325_s21, 4  ;;  %s16672_s17 = int_to_ptr.vmem [resolvable:$true] %s9475_s17 }
  0x1e   : > { %v12692_v56 = vld [vmem:[%s13125_s28 + $0x40] ss:$8 sps:$4 sm:$0xff]   ;;  %v12693_v57 = vld [vmem:[%s13125_s28 + $0x54] ss:$8 sps:$4 sm:$0xff]   ;;  %v12695_v62 = vld [vmem:[%s13125_s28 + $0x50] ss:$8 sps:$4 sm:$0xff]  }
  0x1f   : > { %754 = vmatpush1.bf16.msra.mxu0 %v12672_v9  ;;  %v1041_v58 = vld [vmem:[%s16720_s3 + $0x108] sm:$0xff]  ;;  %v1023_v59 = vld [vmem:[%s16720_s3 + $0x78] sm:$0xff]  ;;  %v1042_v61 = vld [vmem:[%s16720_s3 + $0x110] sm:$0xff]  ;;  %s12924_s26 = scalar_lea.vmem %s16672_s17, 1024 }
  0x20   : > { %755 = vmatprep.subr.bf16.mxu0 %v12988_v1  ;;  %1076 = vperm.xlu1 %12667, %v1012_v17   ;;  %v1043_v60 = vld [vmem:[%s16720_s3 + $0x118] sm:$0xff]  ;;  %v12696_v63 = vld [vmem:[%s13125_s28 + $0x64] ss:$8 sps:$4 sm:$0xff]   ;;  %v1046_v3 = vld [vmem:[%s16720_s3 + $0x130] sm:$0xff]  ;;  %p12925_p11 = scmp.ne.s32.totalorder %s16672_s17, %s12924_s26 }
  0x21   : > { %1071 = vperm.xlu0 %12666, %v1011_v18   ;;  %v1045_v0 = vld [vmem:[%s16720_s3 + $0x128] sm:$0xff]  ;;  %v1047_v2 = vld [vmem:[%s16720_s3 + $0x138] sm:$0xff]  ;;  %v1048_v7 = vld [vmem:[%s16720_s3 + $0x140] sm:$0xff] }
  0x22   : > { %v12698_v4 = vld [vmem:[%s13125_s28 + $0x60] ss:$8 sps:$4 sm:$0xff]   ;;  %v12699_v5 = vld [vmem:[%s13125_s28 + $0x74] ss:$8 sps:$4 sm:$0xff]   ;;  %v12701_v10 = vld [vmem:[%s13125_s28 + $0x70] ss:$8 sps:$4 sm:$0xff]   ;;  %p12926_p12 = pnand %p12925_p11, %p13083_p5 }
  0x23   : > { %756 = vmatpush1.bf16.msra.mxu0 %v12673_v13  ;;  %v1049_v6 = vld [vmem:[%s16720_s3 + $0x148] sm:$0xff]  ;;  %v1051_v8 = vld [vmem:[%s16720_s3 + $0x158] sm:$0xff]  ;;  %v1050_v9 = vld [vmem:[%s16720_s3 + $0x150] sm:$0xff] }
  0x24   : > { %757 = vmatprep.subr.bf16.mxu0 %v12988_v1  ;;  %1166 = vperm.xlu1 %12667, %v1030_v20   ;;  %v12702_v11 = vld [vmem:[%s13125_s28 + $0x84] ss:$8 sps:$4 sm:$0xff]   ;;  %v1053_v12 = vld [vmem:[%s16720_s3 + $0x168] sm:$0x3]  ;;  %v12705_v15 = vld [vmem:[%s13125_s28 + $0x94] ss:$8 sps:$4 sm:$0xff]   ;;  %p12927_p13 = pneg %p12926_p12 }
  0x25   : > { %1161 = vperm.xlu0 %12666, %v1029_v23   ;;  %v1052_v13 = vld [vmem:[%s16720_s3 + $0x160] sm:$0xff]  ;;  %v12713_v20 = vld [vmem:[%s13125_s28 + $0xb0] ss:$8 sps:$4 sm:$0xff]   ;;  %v12717_v23 = vld [vmem:[%s13125_s28 + $0xd4] ss:$8 sps:$4 sm:$0xff]  }
  0x26   : > { %v12704_v14 = vld [vmem:[%s13125_s28 + $0x80] ss:$8 sps:$4 sm:$0xff]   ;;  %v12708_v17 = vld [vmem:[%s13125_s28 + $0xa4] ss:$8 sps:$4 sm:$0xff]  }
  0x27   : > { %758 = vmatpush1.bf16.msra.mxu0 %v12674_v16  ;;  %v12707_v16 = vld [vmem:[%s13125_s28 + $0x90] ss:$8 sps:$4 sm:$0xff]   ;;  %v12710_v18 = vld [vmem:[%s13125_s28 + $0xa0] ss:$8 sps:$4 sm:$0xff]   ;;  %v12714_v21 = vld [vmem:[%s13125_s28 + $0xc4] ss:$8 sps:$4 sm:$0xff]  }
  0x28   : > { %759 = vmatprep.subr.bf16.mxu0 %v12988_v1  ;;  %1086 = vperm.xlu1 %12667, %v1014_v27   ;;  %v12716_v22 = vld [vmem:[%s13125_s28 + $0xc0] ss:$8 sps:$4 sm:$0xff]   ;;  %v12720_v25 = vld [vmem:[%s13125_s28 + $0xe4] ss:$8 sps:$4 sm:$0xff]   ;;  %v12723_v27 = vld [vmem:[%s13125_s28 + $0xf4] ss:$8 sps:$4 sm:$0xff]  }
  0x29   : > { %1081 = vperm.xlu0 %12666, %v1013_v28   ;;  %v12722_v26 = vld [vmem:[%s13125_s28 + $0xe0] ss:$8 sps:$4 sm:$0xff]   ;;  %v12725_v28 = vld [vmem:[%s13125_s28 + $0xf0] ss:$8 sps:$4 sm:$0xff]  }
  0x2b   : > { %760 = vmatpush1.bf16.msra.mxu0 %v12675_v19  ;;  %v12711_v19 = vld [vmem:[%s13125_s28 + $0xb4] ss:$8 sps:$4 sm:$0xff]  }
  0x2c   : > { %761 = vmatprep.subr.bf16.mxu0 %v12988_v1  ;;  %1176 = vperm.xlu1 %12667, %v1032_v30   ;;  %v12728_v30 = vld [vmem:[%s13125_s28 + $0x100] ss:$8 sps:$4 sm:$0xff]  }
  0x2d   : > { %1171 = vperm.xlu0 %12666, %v1031_v31   ;;  %v12729_v31 = vld [vmem:[%s13125_s28 + $0x114] ss:$8 sps:$4 sm:$0xff]  }
  0x2f   : > { %762 = vmatpush1.bf16.msra.mxu0 %v12676_v24  ;;  %v12719_v24 = vld [vmem:[%s13125_s28 + $0xd0] ss:$8 sps:$4 sm:$0xff]  }
  0x30   : > { %763 = vmatprep.subr.bf16.mxu0 %v12988_v1  ;;  %1096 = vperm.xlu1 %12667, %v1016_v34   ;;  %v1044_v1 = vld [vmem:[%s16720_s3 + $0x120] sm:$0xff] }
  0x31   : > { %1091 = vperm.xlu0 %12666, %v1015_v35   ;;  %v12734_v34 = vld [vmem:[%s13125_s28 + $0x120] ss:$8 sps:$4 sm:$0xff]   ;;  %v12735_v35 = vld [vmem:[%s13125_s28 + $0x134] ss:$8 sps:$4 sm:$0xff]  }
  0x33   : > { %764 = vmatpush1.bf16.msra.mxu0 %v743_v29  ;;  %v12726_v29 = vld [vmem:[%s13125_s28 + $0x104] ss:$8 sps:$4 sm:$0xff]  }
  0x34   : > { %1186 = vperm.xlu1 %12667, %v1034_v37   ;;  %v12738_v37 = vld [vmem:[%s13125_s28 + $0x144] ss:$8 sps:$4 sm:$0xff]  }
  0x35   : > { %1181 = vperm.xlu0 %12666, %v1033_v38   ;;  %v12740_v38 = vld [vmem:[%s13125_s28 + $0x140] ss:$8 sps:$4 sm:$0xff]  }
  0x36   : > { %778 = vmatmul.mubr.bf16.vlgmr.msra.gmra.mrb[0].mxu0 %v12678_v32  ;;  %v12731_v32 = vld [vmem:[%s13125_s28 + $0x110] ss:$8 sps:$4 sm:$0xff]  }
  0x37   : > { %9601 = vmatprep.mubr.msk.bf16.mxu0 %vm668_vm0, %v12681_v33  ;;  %v12732_v33 = vld [vmem:[%s13125_s28 + $0x124] ss:$8 sps:$4 sm:$0xff]  }
  0x38   : > { %1106 = vperm.xlu1 %12667, %v1018_v40   ;;  %v12743_v40 = vld [vmem:[%s13125_s28 + $0x150] ss:$8 sps:$4 sm:$0xff]  }
  0x39   : > { %1101 = vperm.xlu0 %12666, %v1017_v41   ;;  %v12744_v41 = vld [vmem:[%s13125_s28 + $0x164] ss:$8 sps:$4 sm:$0x1f]  }
  0x3c   : > { %1196 = vperm.xlu1 %12667, %v1036_v42   ;;  %v12746_v42 = vld [vmem:[%s13125_s28 + $0x160] ss:$8 sps:$4 sm:$0x1f]  }
  0x3d   : > { %1191 = vperm.xlu0 %12666, %v1035_v43  }
  0x3e   : > { %786 = vmatmul.mubr.bf16.gmra.mrb[4].mxu0 %v12683_v36  ;;  %v12737_v36 = vld [vmem:[%s13125_s28 + $0x130] ss:$8 sps:$4 sm:$0xff]  }
  0x3f   : > { %9602 = vmatprep.mubr.msk.bf16.mxu0 %vm668_vm0, %v12684_v39  ;;  %v12741_v39 = vld [vmem:[%s13125_s28 + $0x154] ss:$8 sps:$4 sm:$0xff]   ;;  %s12928_s28 = sshll.u32 %s12992_s29, 4  ;;  %s12929_s28 = int_to_ptr.vmem [resolvable:$false] %s12928_s28 }
  0x40   : > { %1116 = vperm.xlu1 %12667, %v1020_v46   ;;  %s12930_s14 = scalar_lea.vmem %s12929_s28, 2048  ;;  %p12931_p0 = scmp.lt.s32.totalorder %s16672_s17, %s12929_s28 }
  0x41   : > { %1111 = vperm.xlu0 %12666, %v1019_v47   ;;  %p12932_p1 = scmp.lt.s32.totalorder %s12930_s14, %s12924_s26 }
  0x43   : > { %p12933_p2 = por %p12932_p1, %p12931_p0 }
  0x44   : > { %1206 = vperm.xlu1 %12667, %v1038_v48  }
  0x45   : > { %1201 = vperm.xlu0 %12666, %v1037_v49   ;;  %p12934_p3 = pnand %p12933_p2, %p12927_p13 }
  0x46   : > { %794 = vmatmul.mubr.bf16.gmra.mrb[8].mxu0 %v12686_v44 }
  0x47   : > { %9603 = vmatprep.mubr.msk.bf16.mxu0 %vm668_vm0, %v12687_v45 }
  0x48   : > { %1126 = vperm.xlu1 %12667, %v1022_v52  }
  0x49   : > { %1121 = vperm.xlu0 %12666, %v1021_v53   ;;  %v13364_v53 = vld [vmem:[%s16719_s2] ss:$0 sm:$0xff] }
  0x4c   : > { %1216 = vperm.xlu1 %12667, %v1040_v54  }
  0x4d   : > { %1211 = vperm.xlu0 %12666, %v1039_v55  }
  0x4e   : > { %802 = vmatmul.mubr.bf16.gmra.mrb[12].mxu0 %v12689_v50 }
  0x4f   : > { %9604 = vmatprep.mubr.msk.bf16.mxu0 %vm668_vm0, %v12690_v51 }
  0x50   : > { %1221 = vperm.xlu1 %12667, %v1041_v58  }
  0x51   : > { %1131 = vperm.xlu0 %12666, %v1023_v59  }
  0x54   : > { %1231 = vperm.xlu1 %12667, %v1043_v60  }
  0x55   : > { %1226 = vperm.xlu0 %12666, %v1042_v61  }
  0x56   : > { %810 = vmatmul.mubr.bf16.gmra.mrb[16].mxu0 %v12692_v56 }
  0x57   : > { %9605 = vmatprep.mubr.msk.bf16.mxu0 %vm668_vm0, %v12693_v57 }
  0x58   : > { %1241 = vperm.xlu1 %12667, %v1045_v0  }
  0x59   : > { %1236 = vperm.xlu0 %12666, %v1044_v1  }
  0x5c   : > { %1251 = vperm.xlu1 %12667, %v1047_v2  }
  0x5d   : > { %1246 = vperm.xlu0 %12666, %v1046_v3  }
  0x5e   : > { %818 = vmatmul.mubr.bf16.gmra.mrb[20].mxu0 %v12695_v62 }
  0x5f   : > { %9606 = vmatprep.mubr.msk.bf16.mxu0 %vm668_vm0, %v12696_v63 }
  0x60   : > { %1261 = vperm.xlu1 %12667, %v1049_v6  }
  0x61   : > { %1256 = vperm.xlu0 %12666, %v1048_v7  }
  0x64   : > { %1271 = vperm.xlu1 %12667, %v1051_v8  }
  0x65   : > { %1266 = vperm.xlu0 %12666, %v1050_v9  }
  0x66   : > { %826 = vmatmul.mubr.bf16.gmra.mrb[24].mxu0 %v12698_v4 }
  0x67   : > { %9607 = vmatprep.mubr.msk.bf16.mxu0 %vm668_vm0, %v12699_v5 }
  0x68   : > { %1281 = vperm.xlu1 %12667, %v1053_v12  }
  0x69   : > { %1276 = vperm.xlu0 %12666, %v1052_v13  }
  0x6e   : > { %834 = vmatmul.mubr.bf16.gmra.mrb[28].mxu0 %v12701_v10 }
  0x6f   : > { %9608 = vmatprep.mubr.msk.bf16.mxu0 %vm668_vm0, %v12702_v11 }
  0x76   : > { %842 = vmatmul.mubr.bf16.gmra.mrb[32].mxu0 %v12704_v14 }
  0x77   : > { %9609 = vmatprep.mubr.msk.bf16.mxu0 %vm668_vm0, %v12705_v15 }
  0x7e   : > { %850 = vmatmul.mubr.bf16.gmra.mrb[36].mxu0 %v12707_v16 }
  0x7f   : > { %9610 = vmatprep.mubr.msk.bf16.mxu0 %vm668_vm0, %v12708_v17 }
  0x86   : > { %858 = vmatmul.mubr.bf16.gmra.mrb[40].mxu0 %v12710_v18 }
  0x87   : > { %9611 = vmatprep.mubr.msk.bf16.mxu0 %vm668_vm0, %v12711_v19 }
  0x8e   : > { %866 = vmatmul.mubr.bf16.gmra.mrb[44].mxu0 %v12713_v20 }
  0x8f   : > { %9612 = vmatprep.mubr.msk.bf16.mxu0 %vm668_vm0, %v12714_v21  ;;  %v13353_v45 = vpop.permute.xlu1 %1146 }
  0x90   : > { %v13349_v43 = vpop.permute.xlu0 %1136 }
  0x93   : > { %v1057_v47 = vpop.permute.xlu1 %1056 }
  0x94   : > { %v13351_v44 = vpop.permute.xlu0 %1141 }
  0x96   : > { %874 = vmatmul.mubr.bf16.gmra.mrb[48].mxu0 %v12716_v22 }
  0x97   : > { %9613 = vmatprep.mubr.msk.bf16.mxu0 %vm668_vm0, %v12717_v23  ;;  %v1067_v49 = vpop.permute.xlu1 %1066 }
  0x98   : > { %v1062_v46 = vpop.permute.xlu0 %1061 }
  0x9b   : > { %v13357_v51 = vpop.permute.xlu1 %1156 }
  0x9c   : > { %v13355_v48 = vpop.permute.xlu0 %1151 }
  0x9e   : > { %882 = vmatmul.mubr.bf16.gmra.mrb[52].mxu0 %v12719_v24 }
  0x9f   : > { %9614 = vmatprep.mubr.msk.bf16.mxu0 %vm668_vm0, %v12720_v25  ;;  %v1077_v54 = vpop.permute.xlu1 %1076 }
  0xa0   : > { %v1072_v50 = vpop.permute.xlu0 %1071 }
  0xa3   : > { %v13368_v1 = vpop.permute.xlu1 %1166 }
  0xa4   : > { %v13359_v52 = vpop.permute.xlu0 %1161 }
  0xa6   : > { %890 = vmatmul.mubr.bf16.gmra.mrb[56].mxu0 %v12722_v26 }
  0xa7   : > { %9615 = vmatprep.mubr.msk.bf16.mxu0 %vm668_vm0, %v12723_v27  ;;  %v1087_v11 = vpop.permute.xlu1 %1086 }
  0xa8   : > { %v1082_v59 = vpop.permute.xlu0 %1081 }
  0xab   : > { %v13379_v19 = vpop.permute.xlu1 %1176 }
  0xac   : > { %v13371_v4 = vpop.permute.xlu0 %1171 }
  0xae   : > { %898 = vmatmul.mubr.bf16.gmra.mrb[60].mxu0 %v12725_v28 }
  0xaf   : > { %9616 = vmatprep.mubr.msk.bf16.mxu0 %vm668_vm0, %v12726_v29  ;;  %v1097_v28 = vpop.permute.xlu1 %1096 }
  0xb0   : > { %v1092_v14 = vpop.permute.xlu0 %1091 }
  0xb4   : > { %v13382_v24 = vpop.permute.xlu0 %1181 }
  0xb6   : > { %906 = vmatmul.mubr.bf16.gmra.mrb[64].mxu0 %v12728_v30 }
  0xb7   : > { %9617 = vmatprep.mubr.msk.bf16.mxu0 %vm668_vm0, %v12729_v31 }
  0xbe   : > { %914 = vmatmul.mubr.bf16.gmra.mrb[68].mxu0 %v12731_v32  ;;  %v1102_v32 = vpop.permute.xlu0 %1101 }
  0xbf   : > { %9618 = vmatprep.mubr.msk.bf16.mxu0 %vm668_vm0, %v12732_v33 }
  0xc6   : > { %922 = vmatmul.mubr.bf16.gmra.mrb[72].mxu0 %v12734_v34 }
  0xc7   : > { %9619 = vmatprep.mubr.msk.bf16.mxu0 %vm668_vm0, %v12735_v35 }
  0xce   : > { %930 = vmatmul.mubr.bf16.gmra.mrb[76].mxu0 %v12737_v36 }
  0xcf   : > { %9620 = vmatprep.mubr.msk.bf16.mxu0 %vm668_vm0, %v12738_v37 }
  0xd6   : > { %938 = vmatmul.mubr.bf16.gmra.mrb[80].mxu0 %v12740_v38 }
  0xd7   : > { %9621 = vmatprep.mubr.msk.bf16.mxu0 %vm668_vm0, %v12741_v39  ;;  %v13388_v39 = vpop.permute.xlu1 %1186 }
  0xde   : > { %946 = vmatmul.mubr.bf16.gmra.mrb[84].mxu0 %v12743_v40 }
  0xdf   : > { %9622 = vmatprep.mubr.msk.bf16.mxu0 %vm668_vm0, %v12744_v41  ;;  %v13391_v41 = vpop.permute.xlu0 %1191 }
  0xe6   : > { %954 = vmatmul.mubr.bf16.gmra.mrb[88].mxu0 %v12746_v42 }
 0x109   : > { %v779_v55 = vpop.f32.mrb[0].mxu0 }
 0x10a   : > { %v780_v56 = vadd.f32 %v13364_v53, %v779_v55  ;;  %v781_v57 = vpop.f32.mrb[1].mxu0 }
 0x10b   : > { %v782_v58 = vpop.f32.mrb[2].mxu0 }
 0x10c   : > { %v962_v60 = vmax.f32 %v780_v56, 0.0  ;;  %v783_v61 = vadd.f32 %v13364_v53, %v782_v58  ;;  %v784_v62 = vpop.f32.mrb[3].mxu0  ;;  %v1107_v56 = vpop.permute.xlu1 %1106 }
 0x10e   : > { %v1284_v63 = vmul.f32 %v1057_v47, %v962_v60  ;;  %v963_v0 = vmax.f32 %v783_v61, 0.0 }
 0x110   : > { %1331 = vst.msk [vmem:[#allocation2] sm:$0xff] %vm1330_vm3, %v1284_v63  ;;  %v1285_v2 = vmul.f32 %v1062_v46, %v963_v0  ;;  %v13399_v0 = vpop.permute.xlu1 %1196 }
 0x111   : > { %v787_v3 = vpop.f32.mrb[4].mxu0 }
 0x112   : > { %1332 = vst.msk [vmem:[#allocation2 + $0x8] sm:$0xff] %vm1330_vm3, %v1285_v2  ;;  %v788_v5 = vadd.f32 %v13364_v53, %v787_v3  ;;  %v789_v6 = vpop.f32.mrb[5].mxu0 }
 0x113   : > { %v790_v7 = vpop.f32.mrb[6].mxu0 }
 0x114   : > { %v964_v8 = vmax.f32 %v788_v5, 0.0  ;;  %v791_v9 = vadd.f32 %v13364_v53, %v790_v7  ;;  %v792_v10 = vpop.f32.mrb[7].mxu0 }
 0x116   : > { %v1286_v12 = vmul.f32 %v1067_v49, %v964_v8  ;;  %v965_v13 = vmax.f32 %v791_v9, 0.0 }
 0x118   : > { %1333 = vst.msk [vmem:[#allocation2 + $0x10] sm:$0xff] %vm1330_vm3, %v1286_v12  ;;  %v1287_v15 = vmul.f32 %v1072_v50, %v965_v13 }
 0x119   : > { %v795_v16 = vpop.f32.mrb[8].mxu0 }
 0x11a   : > { %1334 = vst.msk [vmem:[#allocation2 + $0x18] sm:$0xff] %vm1330_vm3, %v1287_v15  ;;  %v796_v17 = vadd.f32 %v13364_v53, %v795_v16  ;;  %v797_v18 = vpop.f32.mrb[9].mxu0 }
 0x11b   : > { %v798_v20 = vpop.f32.mrb[10].mxu0 }
 0x11c   : > { %v966_v21 = vmax.f32 %v796_v17, 0.0  ;;  %v799_v22 = vadd.f32 %v13364_v53, %v798_v20  ;;  %v800_v23 = vpop.f32.mrb[11].mxu0  ;;  %v2012_v17 = vld [vmem:[%s16723_s6 + $0x68] sm:$0xff] }
 0x11d   : > { %2184 = vmatprep.mubr.f32.mxu1 %v2012_v17 }
 0x11e   : > { %v1288_v25 = vmul.f32 %v1077_v54, %v966_v21  ;;  %v967_v26 = vmax.f32 %v799_v22, 0.0 }
 0x120   : > { %1335 = vst.msk [vmem:[#allocation2 + $0x20] sm:$0xff] %vm1330_vm3, %v1288_v25  ;;  %v1289_v27 = vmul.f32 %v1082_v59, %v967_v26  ;;  %v1112_v59 = vpop.permute.xlu0 %1111 }
 0x121   : > { %v803_v29 = vpop.f32.mrb[12].mxu0 }
 0x122   : > { %1336 = vst.msk [vmem:[#allocation2 + $0x28] sm:$0xff] %vm1330_vm3, %v1289_v27  ;;  %v804_v30 = vadd.f32 %v13364_v53, %v803_v29  ;;  %v805_v31 = vpop.f32.mrb[13].mxu0 }
 0x123   : > { %v806_v33 = vpop.f32.mrb[14].mxu0 }
 0x124   : > { %v968_v34 = vmax.f32 %v804_v30, 0.0  ;;  %v807_v35 = vadd.f32 %v13364_v53, %v806_v33  ;;  %v808_v36 = vpop.f32.mrb[15].mxu0  ;;  %v13402_v7 = vpop.permute.xlu0 %1201 }
 0x126   : > { %v1290_v37 = vmul.f32 %v1087_v11, %v968_v34  ;;  %v969_v38 = vmax.f32 %v807_v35, 0.0  ;;  %v1117_v11 = vpop.permute.xlu1 %1116  ;;  %v1419_v35 = vld [vmem:[#allocation2 + $0x1] sm:$0xff] }
 0x128   : > { %1337 = vst.msk [vmem:[#allocation2 + $0x30] sm:$0xff] %vm1330_vm3, %v1290_v37  ;;  %v1291_v40 = vmul.f32 %v1092_v14, %v969_v38  ;;  %v1122_v15 = vpop.permute.xlu0 %1121  ;;  %v1420_v37 = vld [vmem:[#allocation2 + $0x9] sm:$0xff] }
 0x129   : > { %v811_v42 = vpop.f32.mrb[16].mxu0 }
 0x12a   : > { %1338 = vst.msk [vmem:[#allocation2 + $0x38] sm:$0xff] %vm1330_vm3, %v1291_v40  ;;  %v812_v46 = vadd.f32 %v13364_v53, %v811_v42  ;;  %v813_v47 = vpop.f32.mrb[17].mxu0  ;;  %v13411_v25 = vpop.permute.xlu1 %1206  ;;  %v1378_v42 = vld [vmem:[#allocation2] sm:$0xff] }
 0x12b   : > { %v814_v49 = vpop.f32.mrb[18].mxu0 }
 0x12c   : > { %v970_v50 = vmax.f32 %v812_v46, 0.0  ;;  %v815_v54 = vadd.f32 %v13364_v53, %v814_v49  ;;  %v816_v55 = vpop.f32.mrb[19].mxu0  ;;  %v13414_v27 = vpop.permute.xlu0 %1211  ;;  %v1421_v46 = vld [vmem:[#allocation2 + $0x11] sm:$0xff]  ;;  %v1379_v49 = vld [vmem:[#allocation2 + $0x8] sm:$0xff] }
 0x12e   : > { %v1292_v57 = vmul.f32 %v1097_v28, %v970_v50  ;;  %v971_v58 = vmax.f32 %v815_v54, 0.0  ;;  %v1127_v36 = vpop.permute.xlu1 %1126  ;;  %v1460_v50 = vmax.f32 %v1378_v42, %v1419_v35  ;;  %v1422_v54 = vld [vmem:[#allocation2 + $0x19] sm:$0xff] }
 0x130   : > { %1339 = vst.msk [vmem:[#allocation2 + $0x40] sm:$0xff] %vm1330_vm3, %v1292_v57  ;;  %v1293_v60 = vmul.f32 %v1102_v32, %v971_v58  ;;  %v1132_v47 = vpop.permute.xlu0 %1131  ;;  %v1380_v57 = vld [vmem:[#allocation2 + $0x10] sm:$0xff] }
 0x131   : > { %v819_v61 = vpop.f32.mrb[20].mxu0  ;;  %v1425_v42 = vld [vmem:[#allocation2 + $0x31] sm:$0xff] }
 0x132   : > { %1340 = vst.msk [vmem:[#allocation2 + $0x48] sm:$0xff] %vm1330_vm3, %v1293_v60  ;;  %v820_v62 = vadd.f32 %v13364_v53, %v819_v61  ;;  %v821_v63 = vpop.f32.mrb[21].mxu0  ;;  %v1462_v60 = vmax.f32 %v1380_v57, %v1421_v46 }
 0x133   : > { %v822_v2 = vpop.f32.mrb[22].mxu0  ;;  %v1501_v63 = vld [vmem:[#allocation2 + $0x2] sm:$0xff] }
 0x134   : > { %v972_v3 = vmax.f32 %v820_v62, 0.0  ;;  %v823_v5 = vadd.f32 %v13364_v53, %v822_v2  ;;  %v824_v6 = vpop.f32.mrb[23].mxu0  ;;  %v1503_v2 = vld [vmem:[#allocation2 + $0x12] sm:$0xff] }
 0x135   : > { %v1502_v6 = vld [vmem:[#allocation2 + $0xa] sm:$0xff] }
 0x136   : > { %v1294_v8 = vmul.f32 %v1107_v56, %v972_v3  ;;  %v973_v9 = vmax.f32 %v823_v5, 0.0  ;;  %v1461_v56 = vmax.f32 %v1379_v49, %v1420_v37  ;;  %v1628_v37 = vld [vmem:[#allocation2 + $0x1b] sm:$0xff]  ;;  %v1507_v49 = vld [vmem:[#allocation2 + $0x32] sm:$0xff] }
 0x138   : > { %1341 = vst.msk [vmem:[#allocation2 + $0x50] sm:$0xff] %vm1330_vm3, %v1294_v8  ;;  %v1295_v10 = vmul.f32 %v1112_v59, %v973_v9  ;;  %v1381_v59 = vld [vmem:[#allocation2 + $0x18] sm:$0xff]  ;;  %v1542_v9 = vmax.f32 %v1460_v50, %v1501_v63 }
 0x139   : > { %v827_v12 = vpop.f32.mrb[24].mxu0  ;;  %v1463_v3 = vmax.f32 %v1381_v59, %v1422_v54  ;;  %v1504_v8 = vld [vmem:[#allocation2 + $0x1a] sm:$0xff]  ;;  %v1384_v59 = vld [vmem:[#allocation2 + $0x30] sm:$0xff] }
 0x13a   : > { %1342 = vst.msk [vmem:[#allocation2 + $0x58] sm:$0xff] %vm1330_vm3, %v1295_v10  ;;  %v828_v13 = vadd.f32 %v13364_v53, %v827_v12  ;;  %v829_v14 = vpop.f32.mrb[25].mxu0  ;;  %v1586_v17 = vmax.f32 %v1542_v9, %v1503_v2  ;;  %v1508_v50 = vld [vmem:[#allocation2 + $0x3a] sm:$0xff]  ;;  %v1712_v9 = vld [vmem:[#allocation2 + $0x2c] sm:$0xff] }
 0x13b   : > { %v830_v16 = vpop.f32.mrb[26].mxu0  ;;  %v1505_v14 = vld [vmem:[#allocation2 + $0x22] sm:$0xff]  ;;  %v1426_v54 = vld [vmem:[#allocation2 + $0x39] sm:$0xff] }
 0x13c   : > { %v974_v18 = vmax.f32 %v828_v13, 0.0  ;;  %v831_v20 = vadd.f32 %v13364_v53, %v830_v16  ;;  %v832_v21 = vpop.f32.mrb[27].mxu0  ;;  %v1543_v13 = vmax.f32 %v1461_v56, %v1502_v6  ;;  %v1424_v16 = vld [vmem:[#allocation2 + $0x29] sm:$0xff]  ;;  %v1709_v63 = vld [vmem:[#allocation2 + $0x14] sm:$0xff]  ;;  %v1466_v6 = vmax.f32 %v1384_v59, %v1425_v42 }
 0x13d   : > { %v1630_v56 = vld [vmem:[#allocation2 + $0x2b] sm:$0xff] }
 0x13e   : > { %v1296_v22 = vmul.f32 %v1117_v11, %v974_v18  ;;  %v975_v23 = vmax.f32 %v831_v20, 0.0  ;;  %v1506_v18 = vld [vmem:[#allocation2 + $0x2a] sm:$0xff]  ;;  %v1544_v20 = vmax.f32 %v1462_v60, %v1503_v2 }
 0x13f   : > { %v1711_v2 = vld [vmem:[#allocation2 + $0x24] sm:$0xff] }
 0x140   : > { %1343 = vst.msk [vmem:[#allocation2 + $0x60] sm:$0xff] %vm1330_vm3, %v1296_v22  ;;  %v1297_v26 = vmul.f32 %v1122_v15, %v975_v23  ;;  %v1423_v15 = vld [vmem:[#allocation2 + $0x21] sm:$0xff]  ;;  %v1587_v23 = vmax.f32 %v1543_v13, %v1504_v8 }
 0x141   : > { %v835_v28 = vpop.f32.mrb[28].mxu0 }
 0x142   : > { %1344 = vst.msk [vmem:[#allocation2 + $0x68] sm:$0xff] %vm1330_vm3, %v1297_v26  ;;  %v836_v29 = vadd.f32 %v13364_v53, %v835_v28  ;;  %v837_v30 = vpop.f32.mrb[29].mxu0  ;;  %v1545_v26 = vmax.f32 %v1463_v3, %v1504_v8  ;;  %v1382_v28 = vld [vmem:[#allocation2 + $0x20] sm:$0xff] }
 0x143   : > { %v838_v31 = vpop.f32.mrb[30].mxu0  ;;  %v1588_v30 = vmax.f32 %v1544_v20, %v1505_v14  ;;  %v1710_v8 = vld [vmem:[#allocation2 + $0x1c] sm:$0xff] }
 0x144   : > { %v976_v32 = vmax.f32 %v836_v29, 0.0  ;;  %v839_v33 = vadd.f32 %v13364_v53, %v838_v31  ;;  %v840_v34 = vpop.f32.mrb[31].mxu0  ;;  %v1383_v29 = vld [vmem:[#allocation2 + $0x28] sm:$0xff]  ;;  %v1464_v31 = vmax.f32 %v1382_v28, %v1423_v15  ;;  %v1589_v35 = vmax.f32 %v1545_v26, %v1506_v18  ;;  %v1714_v20 = vld [vmem:[#allocation2 + $0x3c] sm:$0xff] }
 0x145   : > { %v1627_v34 = vld [vmem:[#allocation2 + $0x13] sm:$0xff] }
 0x146   : > { %v1298_v38 = vmul.f32 %v1127_v36, %v976_v32  ;;  %v977_v40 = vmax.f32 %v839_v33, 0.0  ;;  %v1465_v32 = vmax.f32 %v1383_v29, %v1424_v16  ;;  %v1671_v3 = vmax.f32 %v1589_v35, %v1630_v56  ;;  %v1837_v56 = vld [vmem:[#allocation2 + $0x35] sm:$0xff] }
 0x148   : > { %1345 = vst.msk [vmem:[#allocation2 + $0x70] sm:$0xff] %vm1330_vm3, %v1298_v38  ;;  %v1299_v55 = vmul.f32 %v1132_v47, %v977_v40  ;;  %v1668_v38 = vmax.f32 %v1586_v17, %v1627_v34  ;;  %v1629_v40 = vld [vmem:[#allocation2 + $0x23] sm:$0xff]  ;;  %v1669_v47 = vmax.f32 %v1587_v23, %v1628_v37  ;;  %v1713_v17 = vld [vmem:[#allocation2 + $0x34] sm:$0xff]  ;;  %v1753_v29 = vmax.f32 %v1671_v3, %v1712_v9 }
 0x149   : > { %v843_v58 = vpop.f32.mrb[32].mxu0  ;;  %v1670_v57 = vmax.f32 %v1588_v30, %v1629_v40  ;;  %v1509_v23 = vld [vmem:[#allocation2 + $0x42] sm:$0xff] }
 0x14a   : > { %1346 = vst.msk [vmem:[#allocation2 + $0x78] sm:$0xff] %vm1330_vm3, %v1299_v55  ;;  %v844_v61 = vadd.f32 %v13364_v53, %v843_v58  ;;  %v845_v62 = vpop.f32.mrb[33].mxu0  ;;  %v1547_v58 = vmax.f32 %v1465_v32, %v1506_v18  ;;  %v1751_v16 = vmax.f32 %v1669_v47, %v1710_v8  ;;  %v1632_v30 = vld [vmem:[#allocation2 + $0x3b] sm:$0xff] }
 0x14b   : > { %v846_v5 = vpop.f32.mrb[34].mxu0  ;;  %v1427_v32 = vld [vmem:[#allocation2 + $0x41] sm:$0xff] }
 0x14c   : > { %v978_v10 = vmax.f32 %v844_v61, 0.0  ;;  %v847_v11 = vadd.f32 %v13364_v53, %v846_v5  ;;  %v848_v12 = vpop.f32.mrb[35].mxu0  ;;  %v1385_v5 = vld [vmem:[#allocation2 + $0x38] sm:$0xff]  ;;  %v13434_v28 = vmax.f32 %v1751_v16, %v1712_v9  ;;  %v1386_v47 = vld [vmem:[#allocation2 + $0x40] sm:$0xff] }
 0x14d   : > { %v1591_v12 = vmax.f32 %v1547_v58, %v1508_v50  ;;  %v1467_v13 = vmax.f32 %v1385_v5, %v1426_v54  ;;  %v1838_v5 = vld [vmem:[#allocation2 + $0x3d] sm:$0xff] }
 0x14e   : > { %v1300_v21 = vmul.f32 %v13349_v43, %v978_v10  ;;  %v979_v22 = vmax.f32 %v847_v11, 0.0  ;;  %v1750_v10 = vmax.f32 %v1668_v38, %v1709_v63  ;;  %v13445_v63 = vld [vmem:[#allocation2 + $0x4c] sm:$0xff] }
 0x14f   : > { %v1673_v37 = vmax.f32 %v1591_v12, %v1632_v30  ;;  %v1549_v38 = vmax.f32 %v1467_v13, %v1508_v50 }
 0x150   : > { %1347 = vst.msk [vmem:[#allocation2 + $0x80] sm:$0xff] %vm1330_vm3, %v1300_v21  ;;  %v1301_v33 = vmul.f32 %v13351_v44, %v979_v22  ;;  %v1546_v44 = vmax.f32 %v1464_v31, %v1505_v14  ;;  %v13430_v18 = vmax.f32 %v1750_v10, %v1711_v2  ;;  %v1752_v21 = vmax.f32 %v1670_v57, %v1711_v2  ;;  %v1631_v22 = vld [vmem:[#allocation2 + $0x33] sm:$0xff]  ;;  %v13436_v31 = vld [vmem:[#allocation2 + $0x4a] sm:$0xff] }
 0x151   : > { %v851_v36 = vpop.f32.mrb[36].mxu0  ;;  %v1593_v57 = vmax.f32 %v1549_v38, %v13436_v31  ;;  %v2000_v2 = vld [vmem:[%s16723_s6 + $0x8] sm:$0xff]  ;;  %v1755_v9 = vmax.f32 %v1673_v37, %v1714_v20 }
 0x152   : > { %1348 = vst.msk [vmem:[#allocation2 + $0x88] sm:$0xff] %vm1330_vm3, %v1301_v33  ;;  %v852_v43 = vadd.f32 %v13364_v53, %v851_v36  ;;  %v853_v46 = vpop.f32.mrb[37].mxu0  ;;  %v1590_v11 = vmax.f32 %v1546_v44, %v1507_v49  ;;  %v1796_v35 = vmax.f32 %v1752_v21, %v1713_v17  ;;  %v1468_v44 = vmax.f32 %v1386_v47, %v1427_v32  ;;  %v1633_v10 = vld [vmem:[#allocation2 + $0x43] sm:$0xff]  ;;  %v1634_v21 = vld [vmem:[#allocation2 + $0x4b] sm:$0xff]  ;;  %v13463_v47 = vld [vmem:[#allocation2 + $0x54] sm:$0xff] }
 0x153   : > { %v854_v55 = vpop.f32.mrb[38].mxu0  ;;  %2164 = vmatprep.mubr.f32.mxu0 %v2000_v2  ;;  %v1675_v30 = vmax.f32 %v1593_v57, %v1634_v21  ;;  %v13468_v57 = vld [vmem:[#allocation2 + $0x5c] sm:$0xff] }
 0x154   : > { %v980_v60 = vmax.f32 %v852_v43, 0.0  ;;  %v855_v61 = vadd.f32 %v13364_v53, %v854_v55  ;;  %v856_v62 = vpop.f32.mrb[39].mxu0  ;;  %v1672_v36 = vmax.f32 %v1590_v11, %v1631_v22  ;;  %v13440_v43 = vmax.f32 %v1753_v29, %v1714_v20  ;;  %v1428_v11 = vld [vmem:[#allocation2 + $0x49] sm:$0xff] }
 0x155   : > { %v1715_v62 = vld [vmem:[#allocation2 + $0x44] sm:$0xff]  ;;  %v13458_v20 = vmax.f32 %v1755_v9, %v13445_v63  ;;  %v1757_v2 = vmax.f32 %v1675_v30, %v13445_v63  ;;  %v13482_v63 = vld [vmem:[#allocation2 + $0x5a] sm:$0xff] }
 0x156   : > { %v1302_v15 = vmul.f32 %v13353_v45, %v980_v60  ;;  %v981_v14 = vmax.f32 %v855_v61, 0.0  ;;  %v1548_v45 = vmax.f32 %v1466_v6, %v1507_v49  ;;  %v1836_v49 = vld [vmem:[#allocation2 + $0x2d] sm:$0xff]  ;;  %v1878_v6 = vmax.f32 %v1796_v35, %v1837_v56  ;;  %v1839_v35 = vld [vmem:[#allocation2 + $0x45] sm:$0xff] }
 0x157   : > { %v1394_v55 = vld [vmem:[#allocation2 + $0x80] sm:$0xff]  ;;  %v1877_v3 = vmax.f32 %v13434_v28, %v1836_v49  ;;  %v1754_v8 = vmax.f32 %v1672_v36, %v1713_v17  ;;  %v1879_v16 = vmax.f32 %v13440_v43, %v1838_v5  ;;  %v1840_v36 = vld [vmem:[#allocation2 + $0x4d] sm:$0xff] }
 0x158   : > { %1349 = vst.msk [vmem:[#allocation2 + $0x90] sm:$0xff] %vm1330_vm3, %v1302_v15  ;;  %v1303_v26 = vmul.f32 %v13355_v48, %v981_v14  ;;  %v1835_v48 = vld [vmem:[#allocation2 + $0x25] sm:$0xff]  ;;  %v1592_v46 = vmax.f32 %v1548_v45, %v1509_v23  ;;  %v1918_v14 = vld [vmem:[#allocation2 + $0x2e] sm:$0xff] }
 0x159   : > { %v859_v33 = vpop.f32.mrb[40].mxu0  ;;  %v1435_v34 = vld [vmem:[#allocation2 + $0x81] sm:$0xff]  ;;  %v1876_v61 = vmax.f32 %v13430_v18, %v1835_v48  ;;  %v1919_v18 = vld [vmem:[#allocation2 + $0x36] sm:$0xff]  ;;  %v1798_v17 = vmax.f32 %v1754_v8, %v1715_v62  ;;  %v1959_v43 = vmax.f32 %v1877_v3, %v1918_v14  ;;  %v13480_v14 = vmax.f32 %v1757_v2, %v13468_v57 }
 0x15a   : > { %1350 = vst.msk [vmem:[#allocation2 + $0x98] sm:$0xff] %vm1330_vm3, %v1303_v26  ;;  %v860_v40 = vadd.f32 %v13364_v53, %v859_v33  ;;  %v861_v42 = vpop.f32.mrb[41].mxu0  ;;  %v1476_v60 = vmax.f32 %v1394_v55, %v1435_v34  ;;  %v1917_v15 = vld [vmem:[#allocation2 + $0x26] sm:$0xff]  ;;  %v1674_v22 = vmax.f32 %v1592_v46, %v1633_v10  ;;  %v13453_v26 = vld [vmem:[#allocation2 + $0x52] sm:$0xff]  ;;  %v1920_v34 = vld [vmem:[#allocation2 + $0x3e] sm:$0xff]  ;;  %v1960_v46 = vmax.f32 %v1878_v6, %v1919_v18 }
 0x15b   : > { %v862_v54 = vpop.f32.mrb[42].mxu0  ;;  %v13455_v29 = vld [vmem:[#allocation2 + $0x82] sm:$0xff]  ;;  %v1958_v48 = vmax.f32 %v1876_v61, %v1917_v15  ;;  %v1881_v61 = vmax.f32 %v13458_v20, %v1840_v36  ;;  %v1922_v20 = vld [vmem:[#allocation2 + $0x4e] sm:$0xff] }
 0x15c   : > { %v982_v58 = vmax.f32 %v860_v40, 0.0  ;;  %v863_v50 = vadd.f32 %v13364_v53, %v862_v54  ;;  %v864_v59 = vpop.f32.mrb[43].mxu0  ;;  %v1387_v45 = vld [vmem:[#allocation2 + $0x48] sm:$0xff]  ;;  %v1558_v33 = vmax.f32 %v1476_v60, %v13455_v29  ;;  %v1880_v60 = vmax.f32 %v1798_v17, %v1839_v35 }
 0x15d   : > { %v1469_v37 = vmax.f32 %v1387_v45, %v1428_v11  ;;  %v1395_v40 = vld [vmem:[#allocation2 + $0x88] sm:$0xff]  ;;  %v1961_v59 = vmax.f32 %v1879_v16, %v1920_v34  ;;  %v1635_v11 = vld [vmem:[#allocation2 + $0x53] sm:$0xff]  ;;  %v13486_v45 = vpack.c.bf16 %v1959_v43, %v1958_v48  ;;  %v1842_v34 = vld [vmem:[#allocation2 + $0x5d] sm:$0xff] }
 0x15e   : > { %v1304_v12 = vmul.f32 %v13357_v51, %v982_v58  ;;  %v983_v13 = vmax.f32 %v863_v50, 0.0  ;;  %v1550_v51 = vmax.f32 %v1468_v44, %v1509_v23  ;;  %v1756_v44 = vmax.f32 %v1674_v22, %v1715_v62  ;;  %v1429_v58 = vld [vmem:[#allocation2 + $0x51] sm:$0xff] }
 0x15f   : > { %v1436_v28 = vld [vmem:[#allocation2 + $0x89] sm:$0xff]  ;;  %v1551_v10 = vmax.f32 %v1469_v37, %v13436_v31  ;;  %v1963_v37 = vmax.f32 %v1881_v61, %v1922_v20  ;;  %v1883_v2 = vmax.f32 %v13480_v14, %v1842_v34 }
 0x160   : > { %1351 = vst.msk [vmem:[#allocation2 + $0xa0] sm:$0xff] %vm1330_vm3, %v1304_v12  ;;  %v1305_v32 = vmul.f32 %v13359_v52, %v983_v13  ;;  %v1594_v23 = vmax.f32 %v1550_v51, %v13453_v26  ;;  %v1477_v55 = vmax.f32 %v1395_v40, %v1436_v28  ;;  %v1396_v8 = vld [vmem:[#allocation2 + $0x90] sm:$0xff]  ;;  %v13474_v9 = vmax.f32 %v1756_v44, %v13463_v47  ;;  %v1921_v31 = vld [vmem:[#allocation2 + $0x46] sm:$0xff] }
 0x161   : > { %v867_v38 = vpop.f32.mrb[44].mxu0  ;;  %v1519_v42 = vld [vmem:[#allocation2 + $0x92] sm:$0xff]  ;;  %v13477_v12 = vld [vmem:[#allocation2 + $0x8a] sm:$0xff]  ;;  %v13488_v51 = vpack.c.bf16 %v1961_v59, %v1960_v46 }
 0x162   : > { %1352 = vst.msk [vmem:[#allocation2 + $0xa8] sm:$0xff] %vm1330_vm3, %v1305_v32  ;;  %v868_v52 = vadd.f32 %v13364_v53, %v867_v38  ;;  %v869_v54 = vpop.f32.mrb[45].mxu0  ;;  %v1602_v49 = vmax.f32 %v1558_v33, %v1519_v42  ;;  %v1437_v56 = vld [vmem:[#allocation2 + $0x91] sm:$0xff]  ;;  %v1676_v16 = vmax.f32 %v1594_v23, %v1635_v11  ;;  %v1559_v28 = vmax.f32 %v1477_v55, %v13477_v12  ;;  %v13493_v40 = vld [vmem:[#allocation2 + $0x64] sm:$0xff] }
 0x163   : > { %v870_v50 = vpop.f32.mrb[46].mxu0  ;;  %v1388_v62 = vld [vmem:[#allocation2 + $0x50] sm:$0xff]  ;;  %v1478_v15 = vmax.f32 %v1396_v8, %v1437_v56  ;;  %v1962_v32 = vmax.f32 %v1880_v60, %v1921_v31  ;;  %v1595_v38 = vmax.f32 %v1551_v10, %v13482_v63  ;;  %v1389_v23 = vld [vmem:[#allocation2 + $0x58] sm:$0xff] }
 0x164   : > { %v984_v3 = vmax.f32 %v868_v52, 0.0  ;;  %v871_v5 = vadd.f32 %v13364_v53, %v870_v50  ;;  %v872_v6 = vpop.f32.mrb[47].mxu0  ;;  %v1643_v13 = vld [vmem:[#allocation2 + $0x93] sm:$0xff]  ;;  %v1470_v18 = vmax.f32 %v1388_v62, %v1429_v58  ;;  %v1636_v8 = vld [vmem:[#allocation2 + $0x5b] sm:$0xff] }
 0x165   : > { %v1684_v17 = vmax.f32 %v1602_v49, %v1643_v13  ;;  %v1841_v33 = vld [vmem:[#allocation2 + $0x55] sm:$0xff]  ;;  %v1560_v55 = vmax.f32 %v1478_v15, %v1519_v42  ;;  %v13513_v14 = vmax.f32 %v1595_v38, %v1636_v8 }
 0x166   : > { %v1306_v21 = vmul.f32 %v13368_v1, %v984_v3  ;;  %v985_v22 = vmax.f32 %v871_v5, 0.0  ;;  %v1430_v52 = vld [vmem:[#allocation2 + $0x59] sm:$0xff]  ;;  %v1882_v49 = vmax.f32 %v13474_v9, %v1841_v33  ;;  %v1552_v56 = vmax.f32 %v1470_v18, %v13453_v26  ;;  %v13506_v3 = vld [vmem:[#allocation2 + $0x62] sm:$0xff] }
 0x167   : > { %v1520_v30 = vld [vmem:[#allocation2 + $0x9a] sm:$0xff]  ;;  %v1471_v9 = vmax.f32 %v1389_v23, %v1430_v52  ;;  %v1637_v23 = vld [vmem:[#allocation2 + $0x63] sm:$0xff] }
 0x168   : > { %1353 = vst.msk [vmem:[#allocation2 + $0xb0] sm:$0xff] %vm1330_vm3, %v1306_v21  ;;  %v1307_v35 = vmul.f32 %v13371_v4, %v985_v22  ;;  %v1603_v36 = vmax.f32 %v1559_v28, %v1520_v30  ;;  %v1438_v1 = vld [vmem:[#allocation2 + $0x99] sm:$0xff]  ;;  %v1758_v4 = vmax.f32 %v1676_v16, %v13463_v47  ;;  %v13517_v28 = vpack.c.bf16 %v1963_v37, %v1962_v32 }
 0x169   : > { %v875_v48 = vpop.f32.mrb[48].mxu0  ;;  %v1644_v43 = vld [vmem:[#allocation2 + $0x9b] sm:$0xff]  ;;  %v13497_v54 = vld [vmem:[#allocation2 + $0xa4] sm:$0xff]  ;;  %v1596_v31 = vmax.f32 %v1552_v56, %v13506_v3  ;;  %v13526_v37 = vmax.f32 %v1471_v9, %v13482_v63 }
 0x16a   : > { %v13495_v46 = vld [vmem:[#allocation2 + $0x94] sm:$0xff]  ;;  %1354 = vst.msk [vmem:[#allocation2 + $0xb8] sm:$0xff] %vm1330_vm3, %v1307_v35  ;;  %v876_v44 = vadd.f32 %v13364_v53, %v875_v48  ;;  %v877_v58 = vpop.f32.mrb[49].mxu0  ;;  %v1685_v50 = vmax.f32 %v1603_v36, %v1644_v43  ;;  %v1521_v61 = vld [vmem:[#allocation2 + $0xa2] sm:$0xff]  ;;  %v13509_v26 = vmax.f32 %v1758_v4, %v13493_v40 }
 0x16b   : > { %v1766_v59 = vmax.f32 %v1684_v17, %v13495_v46  ;;  %v1397_v60 = vld [vmem:[#allocation2 + $0x98] sm:$0xff]  ;;  %v878_v42 = vpop.f32.mrb[50].mxu0  ;;  %v1604_v6 = vmax.f32 %v1560_v55, %v1521_v61  ;;  %v1439_v47 = vld [vmem:[#allocation2 + $0xa1] sm:$0xff] }
 0x16c   : > { %v1479_v5 = vmax.f32 %v1397_v60, %v1438_v1  ;;  %v986_v10 = vmax.f32 %v876_v44, 0.0  ;;  %v879_v11 = vadd.f32 %v13364_v53, %v878_v42  ;;  %v880_v62 = vpop.f32.mrb[51].mxu0  ;;  %v1645_v15 = vld [vmem:[#allocation2 + $0xa3] sm:$0xff]  ;;  %v1923_v35 = vld [vmem:[#allocation2 + $0x56] sm:$0xff] }
 0x16d   : > { %v1810_v13 = vmax.f32 %v1766_v59, %v13497_v54  ;;  %v1398_v16 = vld [vmem:[#allocation2 + $0xa0] sm:$0xff]  ;;  %v1686_v21 = vmax.f32 %v1604_v6, %v1645_v15  ;;  %v1964_v43 = vmax.f32 %v1882_v49, %v1923_v35 }
 0x16e   : > { %v13515_v18 = vld [vmem:[#allocation2 + $0x9c] sm:$0xff]  ;;  %v1480_v22 = vmax.f32 %v1398_v16, %v1439_v47  ;;  %v1308_v20 = vmul.f32 %v13379_v19, %v986_v10  ;;  %v987_v33 = vmax.f32 %v879_v11, 0.0  ;;  %v1843_v1 = vld [vmem:[#allocation2 + $0x65] sm:$0xff]  ;;  %v1561_v48 = vmax.f32 %v1479_v5, %v1520_v30 }
 0x16f   : > { %v1924_v17 = vld [vmem:[#allocation2 + $0x5e] sm:$0xff]  ;;  %v1767_v34 = vmax.f32 %v1685_v50, %v13515_v18  ;;  %v13522_v38 = vld [vmem:[#allocation2 + $0xac] sm:$0xff]  ;;  %v1884_v32 = vmax.f32 %v13509_v26, %v1843_v1  ;;  %v1759_v50 = vmax.f32 %v13513_v14, %v13468_v57  ;;  %v1768_v63 = vmax.f32 %v1686_v21, %v13497_v54 }
 0x170   : > { %v1965_v36 = vmax.f32 %v1883_v2, %v1924_v17  ;;  %v1851_v52 = vld [vmem:[#allocation2 + $0xa5] sm:$0xff]  ;;  %1355 = vst.msk [vmem:[#allocation2 + $0xc0] sm:$0xff] %vm1330_vm3, %v1308_v20  ;;  %v1309_v19 = vmul.f32 %v13382_v24, %v987_v33  ;;  %v1852_v59 = vld [vmem:[#allocation2 + $0xad] sm:$0xff]  ;;  %v1562_v42 = vmax.f32 %v1480_v22, %v1521_v61  ;;  %v13538_v24 = vmax.f32 %v1596_v31, %v1637_v23 }
 0x171   : > { %v1431_v55 = vld [vmem:[#allocation2 + $0x61] sm:$0xff]  ;;  %v1811_v4 = vmax.f32 %v1767_v34, %v13522_v38  ;;  %v1892_v56 = vmax.f32 %v1810_v13, %v1851_v52  ;;  %v1522_v44 = vld [vmem:[#allocation2 + $0xaa] sm:$0xff]  ;;  %v883_v49 = vpop.f32.mrb[52].mxu0  ;;  %v13533_v2 = vld [vmem:[#allocation2 + $0xb4] sm:$0xff] }
 0x172   : > { %v1440_v58 = vld [vmem:[#allocation2 + $0xa9] sm:$0xff]  ;;  %v1390_v30 = vld [vmem:[#allocation2 + $0x60] sm:$0xff]  ;;  %v1605_v60 = vmax.f32 %v1561_v48, %v1522_v44  ;;  %1356 = vst.msk [vmem:[#allocation2 + $0xc8] sm:$0xff] %vm1330_vm3, %v1309_v19  ;;  %v884_v6 = vadd.f32 %v13364_v53, %v883_v49  ;;  %v885_v47 = vpop.f32.mrb[53].mxu0  ;;  %v1523_v9 = vld [vmem:[#allocation2 + $0xb2] sm:$0xff]  ;;  %v13542_v10 = vpack.c.bf16 %v1965_v36, %v1964_v43  ;;  %v1812_v15 = vmax.f32 %v1768_v63, %v13533_v2 }
 0x173   : > { %v13536_v5 = vld [vmem:[#allocation2 + $0x6c] sm:$0xff]  ;;  %v1893_v8 = vmax.f32 %v1811_v4, %v1852_v59  ;;  %v1472_v11 = vmax.f32 %v1390_v30, %v1431_v55  ;;  %v886_v62 = vpop.f32.mrb[54].mxu0  ;;  %v1606_v14 = vmax.f32 %v1562_v42, %v1523_v9 }
 0x174   : > { %v1646_v57 = vld [vmem:[#allocation2 + $0xab] sm:$0xff]  ;;  %v988_v22 = vmax.f32 %v884_v6, 0.0  ;;  %v887_v17 = vadd.f32 %v13364_v53, %v886_v62  ;;  %v888_v31 = vpop.f32.mrb[55].mxu0  ;;  %v1647_v1 = vld [vmem:[#allocation2 + $0xb3] sm:$0xff]  ;;  %v13548_v52 = vmax.f32 %v1759_v50, %v13536_v5  ;;  %v1760_v50 = vmax.f32 %v13538_v24, %v13493_v40 }
 0x175   : > { %v1399_v26 = vld [vmem:[#allocation2 + $0xa8] sm:$0xff]  ;;  %v1687_v61 = vmax.f32 %v1605_v60, %v1646_v57  ;;  %v1441_v21 = vld [vmem:[#allocation2 + $0xb1] sm:$0xff]  ;;  %v13562_v63 = vmax.f32 %v1472_v11, %v13506_v3 }
 0x176   : > { %v1933_v13 = vld [vmem:[#allocation2 + $0xa6] sm:$0xff]  ;;  %v1934_v54 = vld [vmem:[#allocation2 + $0xae] sm:$0xff]  ;;  %v1481_v16 = vmax.f32 %v1399_v26, %v1440_v58  ;;  %v1310_v55 = vmul.f32 %v13388_v39, %v988_v22  ;;  %v989_v19 = vmax.f32 %v887_v17, 0.0 }
 0x177   : > { %v1974_v20 = vmax.f32 %v1892_v56, %v1933_v13  ;;  %v1975_v33 = vmax.f32 %v1893_v8, %v1934_v54  ;;  %v1400_v34 = vld [vmem:[#allocation2 + $0xb0] sm:$0xff]  ;;  %v1925_v35 = vld [vmem:[#allocation2 + $0x66] sm:$0xff]  ;;  %v1769_v36 = vmax.f32 %v1687_v61, %v13522_v38  ;;  %v1688_v56 = vmax.f32 %v1606_v14, %v1647_v1  ;;  %v13557_v49 = vld [vmem:[#allocation2 + $0xbc] sm:$0xff] }
 0x178   : > { %v1482_v23 = vmax.f32 %v1400_v34, %v1441_v21  ;;  %v13550_v48 = vmax.f32 %v1884_v32, %v1925_v35  ;;  %v13552_v43 = vld [vmem:[#allocation2 + $0x6a] sm:$0xff]  ;;  %v1853_v58 = vld [vmem:[#allocation2 + $0xb5] sm:$0xff]  ;;  %v1563_v59 = vmax.f32 %v1481_v16, %v1522_v44  ;;  %1357 = vst.msk [vmem:[#allocation2 + $0xd0] sm:$0xff] %vm1330_vm3, %v1310_v55  ;;  %v1311_v39 = vmul.f32 %v13391_v41, %v989_v19  ;;  %v1854_v3 = vld [vmem:[#allocation2 + $0xbd] sm:$0xff] }
 0x179   : > { %v12460_v4 = vpack.c.bf16 %v1975_v33, %v1974_v20  ;;  %v13555_v30 = vld [vmem:[#allocation2 + $0x69] sm:$0xff]  ;;  %v1894_v38 = vmax.f32 %v1812_v15, %v1853_v58  ;;  %v1813_v42 = vmax.f32 %v1769_v36, %v13557_v49  ;;  %v1524_v6 = vld [vmem:[#allocation2 + $0xba] sm:$0xff]  ;;  %v1597_v44 = vmax.f32 %v13526_v37, %v13552_v43  ;;  %v13571_v40 = vld [vmem:[#allocation2 + $0x72] sm:$0xff]  ;;  %v891_v24 = vpop.f32.mrb[56].mxu0 }
 0x17a   : > { %v1844_v60 = vld [vmem:[#allocation2 + $0x6d] sm:$0xff]  ;;  %v1442_v47 = vld [vmem:[#allocation2 + $0xb9] sm:$0xff]  ;;  %v1607_v57 = vmax.f32 %v1563_v59, %v1524_v6  ;;  %v13575_v26 = vld [vmem:[#allocation2 + $0xc4] sm:$0xff]  ;;  %v1564_v11 = vmax.f32 %v1482_v23, %v1523_v9  ;;  %1358 = vst.msk [vmem:[#allocation2 + $0xd8] sm:$0xff] %vm1330_vm3, %v1311_v39  ;;  %v892_v37 = vadd.f32 %v13364_v53, %v891_v24  ;;  %v893_v13 = vpop.f32.mrb[57].mxu0  ;;  %v1770_v15 = vmax.f32 %v1688_v56, %v13533_v2 }
 0x17b   : > { %v1391_v32 = vld [vmem:[#allocation2 + $0x68] sm:$0xff]  ;;  %12461 = vmatprep.subr.bf16.mxu0 %v12460_v4  ;;  %12604 = vmatprep.subr.bf16.mxu1 %v12460_v4  ;;  %v13569_v8 = vld [vmem:[#allocation2 + $0x74] sm:$0xff]  ;;  %v1895_v54 = vmax.f32 %v1813_v42, %v1854_v3  ;;  %v894_v21 = vpop.f32.mrb[58].mxu0  ;;  %v1936_v22 = vld [vmem:[#allocation2 + $0xbe] sm:$0xff]  ;;  %v1598_v58 = vmax.f32 %v13562_v63, %v13571_v40 }
 0x17c   : > { %12463 = vmatpush3.bf16.msra.mxu0 %v13486_v45  ;;  %12612 = vmatpush3.bf16.msra.mxu1 %v13486_v45  ;;  %v1935_v41 = vld [vmem:[#allocation2 + $0xb6] sm:$0xff]  ;;  %v1473_v62 = vmax.f32 %v1391_v32, %v13555_v30  ;;  %v1525_v14 = vld [vmem:[#allocation2 + $0xc2] sm:$0xff]  ;;  %v1885_v45 = vmax.f32 %v13548_v52, %v1844_v60  ;;  %v990_v34 = vmax.f32 %v892_v37, 0.0  ;;  %v895_v35 = vadd.f32 %v13364_v53, %v894_v21  ;;  %v896_v36 = vpop.f32.mrb[59].mxu0  ;;  %v1926_v59 = vld [vmem:[#allocation2 + $0x6e] sm:$0xff] }
 0x17d   : > { %v1648_v61 = vld [vmem:[#allocation2 + $0xbb] sm:$0xff]  ;;  %v1976_v17 = vmax.f32 %v1894_v38, %v1935_v41  ;;  %v1608_v20 = vmax.f32 %v1564_v11, %v1525_v14  ;;  %v1977_v1 = vmax.f32 %v1895_v54, %v1936_v22  ;;  %v1814_v23 = vmax.f32 %v1770_v15, %v13575_v26  ;;  %v1649_v55 = vld [vmem:[#allocation2 + $0xc3] sm:$0xff]  ;;  %v1638_v60 = vld [vmem:[#allocation2 + $0x6b] sm:$0xff] }
 0x17e   : > { %v1401_v16 = vld [vmem:[#allocation2 + $0xb8] sm:$0xff]  ;;  %v1689_v31 = vmax.f32 %v1607_v57, %v1648_v61  ;;  %v1443_v33 = vld [vmem:[#allocation2 + $0xc1] sm:$0xff]  ;;  %v13585_v52 = vmax.f32 %v1760_v50, %v13569_v8  ;;  %v1312_v56 = vmul.f32 %v13399_v0, %v990_v34  ;;  %v991_v30 = vmax.f32 %v895_v35, 0.0  ;;  %v13612_v54 = vld [vmem:[%s16719_s2] ss:$0 sm:$0xff] }
 0x17f   : > { %v1483_v9 = vmax.f32 %v1401_v16, %v1442_v47  ;;  %v1402_v2 = vld [vmem:[#allocation2 + $0xc0] sm:$0xff]  ;;  %v1690_v19 = vmax.f32 %v1608_v20, %v1649_v55  ;;  %v12464_v38 = vpack.c.bf16 %v1977_v1, %v1976_v17  ;;  %v13591_v32 = vld [vmem:[#allocation2 + $0xcc] sm:$0xff]  ;;  %v1967_v47 = vmax.f32 %v1885_v45, %v1926_v59  ;;  %v1845_v50 = vld [vmem:[#allocation2 + $0x75] sm:$0xff] }
 0x180   : > { %v1484_v4 = vmax.f32 %v1402_v2, %v1443_v33  ;;  %v1771_v53 = vmax.f32 %v1689_v31, %v13557_v49  ;;  %v1855_v39 = vld [vmem:[#allocation2 + $0xc5] sm:$0xff]  ;;  %v13593_v24 = vmax.f32 %v1597_v44, %v1638_v60  ;;  %v13596_v3 = vmax.f32 %v1473_v62, %v13552_v43  ;;  %1359 = vst.msk [vmem:[#allocation2 + $0xe0] sm:$0xff] %vm1330_vm3, %v1312_v56  ;;  %v1639_v11 = vld [vmem:[#allocation2 + $0x73] sm:$0xff] }
 0x181   : > { %v1565_v42 = vmax.f32 %v1483_v9, %v1524_v6  ;;  %v1313_v0 = vmul.f32 %v13402_v7, %v991_v30  ;;  %12465 = vmatprep.subr.bf16.mxu0 %v12464_v38  ;;  %12605 = vmatprep.subr.bf16.mxu1 %v12464_v38  ;;  %v1896_v63 = vmax.f32 %v1814_v23, %v1855_v39  ;;  %v1526_v41 = vld [vmem:[#allocation2 + $0xca] sm:$0xff]  ;;  %v899_v6 = vpop.f32.mrb[60].mxu0  ;;  %v13603_v62 = vld [vmem:[#allocation2 + $0xd4] sm:$0xff] }
 0x182   : > { %v1815_v49 = vmax.f32 %v1771_v53, %v13591_v32  ;;  %v1444_v57 = vld [vmem:[#allocation2 + $0xc9] sm:$0xff]  ;;  %12467 = vmatpush3.bf16.msra.mxu0 %v13488_v51  ;;  %12613 = vmatpush3.bf16.msra.mxu1 %v13488_v51  ;;  %v1772_v37 = vmax.f32 %v1690_v19, %v13575_v26  ;;  %v1566_v7 = vmax.f32 %v1484_v4, %v1525_v14  ;;  %v13606_v13 = vld [vmem:[#allocation2 + $0x71] sm:$0xff]  ;;  %v901_v15 = vpop.f32.mrb[61].mxu0 }
 0x183   : > { %v1856_v44 = vld [vmem:[#allocation2 + $0xcd] sm:$0xff]  ;;  %v1609_v43 = vmax.f32 %v1565_v42, %v1526_v41  ;;  %1360 = vst.msk [vmem:[#allocation2 + $0xe8] sm:$0xff] %vm1330_vm3, %v1313_v0  ;;  %v900_v61 = vadd.f32 %v13612_v54, %v899_v6  ;;  %v1886_v22 = vmax.f32 %v13585_v52, %v1845_v50  ;;  %v13616_v26 = vmax.f32 %v1598_v58, %v1639_v11  ;;  %v902_v14 = vpop.f32.mrb[62].mxu0  ;;  %v1857_v39 = vld [vmem:[#allocation2 + $0xd5] sm:$0xff] }
 0x184   : > { %v1897_v51 = vmax.f32 %v1815_v49, %v1856_v44  ;;  %v1650_v16 = vld [vmem:[#allocation2 + $0xcb] sm:$0xff]  ;;  %v1816_v20 = vmax.f32 %v1772_v37, %v13603_v62  ;;  %v903_v1 = vadd.f32 %v13612_v54, %v902_v14  ;;  %v904_v23 = vpop.f32.mrb[63].mxu0  ;;  %v1651_v58 = vld [vmem:[#allocation2 + $0xd3] sm:$0xff]  ;;  %v1761_v30 = vmax.f32 %v13593_v24, %v13536_v5  ;;  %v13628_v50 = vld [vmem:[#allocation2 + $0x7c] sm:$0xff] }
 0x185   : > { %v1403_v45 = vld [vmem:[#allocation2 + $0xc8] sm:$0xff]  ;;  %v1527_v21 = vld [vmem:[#allocation2 + $0xd2] sm:$0xff]  ;;  %v1691_v9 = vmax.f32 %v1609_v43, %v1650_v16  ;;  %v992_v36 = vmax.f32 %v900_v61, 0.0  ;;  %v13637_v24 = vld [vmem:[#allocation2 + $0x7a] sm:$0xff] }
 0x186   : > { %v1937_v17 = vld [vmem:[#allocation2 + $0xc6] sm:$0xff]  ;;  %v1938_v31 = vld [vmem:[#allocation2 + $0xce] sm:$0xff]  ;;  %v1485_v33 = vmax.f32 %v1403_v45, %v1444_v57  ;;  %v1610_v34 = vmax.f32 %v1566_v7, %v1527_v21  ;;  %v993_v59 = vmax.f32 %v903_v1, 0.0  ;;  %v1927_v0 = vld [vmem:[#allocation2 + $0x76] sm:$0xff]  ;;  %v13633_v57 = vpack.c.bf16 %v1967_v47, %v13550_v48  ;;  %v1217_v48 = vpop.permute.xlu1 %1216 }
 0x187   : > { %v1445_v35 = vld [vmem:[#allocation2 + $0xd1] sm:$0xff]  ;;  %v1978_v55 = vmax.f32 %v1896_v63, %v1937_v17  ;;  %v1979_v2 = vmax.f32 %v1897_v51, %v1938_v31  ;;  %v1773_v52 = vmax.f32 %v1691_v9, %v13591_v32  ;;  %v1314_v53 = vmul.f32 %v13411_v25, %v992_v36  ;;  %v13630_v49 = vld [vmem:[#allocation2 + $0xdc] sm:$0xff] }
 0x188   : > { %v1404_v19 = vld [vmem:[#allocation2 + $0xd0] sm:$0xff]  ;;  %v1692_v42 = vmax.f32 %v1610_v34, %v1651_v58  ;;  %v1898_v32 = vmax.f32 %v1816_v20, %v1857_v39  ;;  %v1567_v63 = vmax.f32 %v1485_v33, %v1526_v41  ;;  %v13635_v5 = vmax.f32 %v1886_v22, %v1927_v0  ;;  %v1528_v6 = vld [vmem:[#allocation2 + $0xda] sm:$0xff] }
 0x189   : > { %v13620_v4 = vld [vmem:[#allocation2 + $0x70] sm:$0xff]  ;;  %v1486_v56 = vmax.f32 %v1404_v19, %v1445_v35  ;;  %v12468_v60 = vpack.c.bf16 %v1979_v2, %v1978_v55  ;;  %1361 = vst.msk [vmem:[#allocation2 + $0xf0] sm:$0xff] %vm1330_vm3, %v1314_v53  ;;  %v1315_v25 = vmul.f32 %v13414_v27, %v993_v59  ;;  %v1817_v11 = vmax.f32 %v1773_v52, %v13630_v49  ;;  %v1446_v44 = vld [vmem:[#allocation2 + $0xd9] sm:$0xff]  ;;  %v907_v47 = vpop.f32.mrb[64].mxu0 }
 0x18a   : > { %v1474_v38 = vmax.f32 %v13620_v4, %v13606_v13  ;;  %v1762_v41 = vmax.f32 %v13616_v26, %v13569_v8  ;;  %v13644_v43 = vld [vmem:[#allocation2 + $0x79] sm:$0xff]  ;;  %v1611_v27 = vmax.f32 %v1567_v63, %v1528_v6  ;;  %v13648_v13 = vld [vmem:[#allocation2 + $0xe4] sm:$0xff]  ;;  %v13651_v15 = vmax.f32 %v1761_v30, %v13628_v50  ;;  %v909_v16 = vpop.f32.mrb[65].mxu0  ;;  %v1227_v26 = vpop.permute.xlu0 %1226 }
 0x18b   : > { %12469 = vmatprep.subr.bf16.mxu0 %v12468_v60  ;;  %12606 = vmatprep.subr.bf16.mxu1 %v12468_v60  ;;  %v1858_v37 = vld [vmem:[#allocation2 + $0xdd] sm:$0xff]  ;;  %v1568_v61 = vmax.f32 %v1486_v56, %v1527_v21  ;;  %1362 = vst.msk [vmem:[#allocation2 + $0xf8] sm:$0xff] %vm1330_vm3, %v1315_v25  ;;  %v908_v51 = vadd.f32 %v13612_v54, %v907_v47  ;;  %v910_v9 = vpop.f32.mrb[66].mxu0  ;;  %v1859_v25 = vld [vmem:[#allocation2 + $0xe5] sm:$0xff] }
 0x18c   : > { %12471 = vmatpush3.bf16.msra.mxu0 %v13517_v28  ;;  %12614 = vmatpush3.bf16.msra.mxu1 %v13517_v28  ;;  %v1939_v7 = vld [vmem:[#allocation2 + $0xd6] sm:$0xff]  ;;  %v1899_v45 = vmax.f32 %v1817_v11, %v1858_v37  ;;  %v1774_v14 = vmax.f32 %v1692_v42, %v13603_v62  ;;  %v1529_v28 = vld [vmem:[#allocation2 + $0xe2] sm:$0xff]  ;;  %v1599_v31 = vmax.f32 %v13596_v3, %v13637_v24  ;;  %v912_v55 = vpop.f32.mrb[67].mxu0 }
 0x18d   : > { %v1652_v22 = vld [vmem:[#allocation2 + $0xdb] sm:$0xff]  ;;  %v1980_v21 = vmax.f32 %v1898_v32, %v1939_v7  ;;  %v1612_v35 = vmax.f32 %v1568_v61, %v1529_v28  ;;  %v994_v1 = vmax.f32 %v908_v51, 0.0  ;;  %v911_v23 = vadd.f32 %v13612_v54, %v910_v9  ;;  %v1653_v62 = vld [vmem:[#allocation2 + $0xe3] sm:$0xff]  ;;  %v1222_v32 = vpop.permute.xlu1 %1221 }
 0x18e   : > { %v1405_v17 = vld [vmem:[#allocation2 + $0xd8] sm:$0xff]  ;;  %v1693_v33 = vmax.f32 %v1611_v27, %v1652_v22  ;;  %v1447_v36 = vld [vmem:[#allocation2 + $0xe1] sm:$0xff]  ;;  %v1818_v19 = vmax.f32 %v1774_v14, %v13648_v13  ;;  %v13662_v30 = vmax.f32 %v1474_v38, %v13571_v40 }
 0x18f   : > { %v1940_v20 = vld [vmem:[#allocation2 + $0xde] sm:$0xff]  ;;  %v1487_v34 = vmax.f32 %v1405_v17, %v1446_v44  ;;  %v1694_v58 = vmax.f32 %v1612_v35, %v1653_v62  ;;  %v1316_v53 = vmul.f32 %v1217_v48, %v994_v1  ;;  %v995_v59 = vmax.f32 %v911_v23, 0.0 }
 0x190   : > { %v1981_v2 = vmax.f32 %v1899_v45, %v1940_v20  ;;  %v1406_v4 = vld [vmem:[#allocation2 + $0xe0] sm:$0xff]  ;;  %v1393_v52 = vld [vmem:[#allocation2 + $0x78] sm:$0xff]  ;;  %v1775_v39 = vmax.f32 %v1693_v33, %v13630_v49  ;;  %v13667_v63 = vld [vmem:[#allocation2 + $0xec] sm:$0xff]  ;;  %v1600_v38 = vmax.f32 %v13662_v30, %v13455_v29  ;;  %v1900_v47 = vmax.f32 %v1818_v19, %v1859_v25  ;;  %v1237_v29 = vpop.permute.xlu0 %1236 }
 0x191   : > { %v1488_v56 = vmax.f32 %v1406_v4, %v1447_v36  ;;  %v1475_v3 = vmax.f32 %v1393_v52, %v13644_v43  ;;  %v13665_v42 = vld [vmem:[#allocation2 + $0x7d] sm:$0xff]  ;;  %v1569_v11 = vmax.f32 %v1487_v34, %v1528_v6  ;;  %1363 = vst.msk [vmem:[#allocation2 + $0x100] sm:$0xff] %vm1330_vm3, %v1316_v53  ;;  %v1317_v49 = vmul.f32 %v1222_v32, %v995_v59  ;;  %v1530_v37 = vld [vmem:[#allocation2 + $0xea] sm:$0xff]  ;;  %v915_v7 = vpop.f32.mrb[68].mxu0  ;;  %v1232_v32 = vpop.permute.xlu1 %1231 }
 0x192   : > { %v12472_v60 = vpack.c.bf16 %v1981_v2, %v1980_v21  ;;  %v1640_v0 = vld [vmem:[#allocation2 + $0x7b] sm:$0xff]  ;;  %v1887_v44 = vmax.f32 %v13651_v15, %v13665_v42  ;;  %v13673_v40 = vld [vmem:[#allocation2 + $0x84] sm:$0xff]  ;;  %v1819_v48 = vmax.f32 %v1775_v39, %v13667_v63  ;;  %v1860_v27 = vld [vmem:[#allocation2 + $0xed] sm:$0xff]  ;;  %v1776_v51 = vmax.f32 %v1694_v58, %v13648_v13  ;;  %v917_v22 = vpop.f32.mrb[69].mxu0 }
 0x193   : > { %v13671_v43 = vmax.f32 %v1599_v31, %v1640_v0  ;;  %v1448_v6 = vld [vmem:[#allocation2 + $0xe9] sm:$0xff]  ;;  %v1613_v61 = vmax.f32 %v1569_v11, %v1530_v37  ;;  %v13681_v15 = vld [vmem:[#allocation2 + $0xf4] sm:$0xff]  ;;  %v1570_v16 = vmax.f32 %v1488_v56, %v1529_v28  ;;  %1364 = vst.msk [vmem:[#allocation2 + $0x108] sm:$0xff] %vm1330_vm3, %v1317_v49  ;;  %v916_v45 = vadd.f32 %v13612_v54, %v915_v7  ;;  %v918_v21 = vpop.f32.mrb[70].mxu0  ;;  %v1928_v39 = vld [vmem:[#allocation2 + $0x7e] sm:$0xff] }
 0x194   : > { %12473 = vmatprep.subr.bf16.mxu0 %v12472_v60  ;;  %12607 = vmatprep.subr.bf16.mxu1 %v12472_v60  ;;  %v1901_v14 = vmax.f32 %v1819_v48, %v1860_v27  ;;  %v1654_v17 = vld [vmem:[#allocation2 + $0xeb] sm:$0xff]  ;;  %v1557_v20 = vmax.f32 %v1475_v3, %v13637_v24  ;;  %v1820_v34 = vmax.f32 %v1776_v51, %v13681_v15  ;;  %v920_v2 = vpop.f32.mrb[71].mxu0  ;;  %v1655_v24 = vld [vmem:[#allocation2 + $0xf3] sm:$0xff] }
 0x195   : > { %12475 = vmatpush3.bf16.msra.mxu0 %v13542_v10  ;;  %12615 = vmatpush3.bf16.msra.mxu1 %v13542_v10  ;;  %v1407_v31 = vld [vmem:[#allocation2 + $0xe8] sm:$0xff]  ;;  %v1531_v9 = vld [vmem:[#allocation2 + $0xf2] sm:$0xff]  ;;  %v13690_v10 = vmax.f32 %v1762_v41, %v13673_v40  ;;  %v1695_v33 = vmax.f32 %v1613_v61, %v1654_v17  ;;  %v996_v23 = vmax.f32 %v916_v45, 0.0  ;;  %v919_v55 = vadd.f32 %v13612_v54, %v918_v21 }
 0x196   : > { %v1941_v13 = vld [vmem:[#allocation2 + $0xe6] sm:$0xff]  ;;  %v1942_v28 = vld [vmem:[#allocation2 + $0xee] sm:$0xff]  ;;  %v1489_v35 = vmax.f32 %v1407_v31, %v1448_v6  ;;  %v1614_v36 = vmax.f32 %v1570_v16, %v1531_v9  ;;  %v1763_v52 = vmax.f32 %v13671_v43, %v13628_v50  ;;  %v1601_v56 = vmax.f32 %v1557_v20, %v13477_v12  ;;  %v1409_v21 = vld [vmem:[#allocation2 + $0xf8] sm:$0xff] }
 0x197   : > { %v1449_v1 = vld [vmem:[#allocation2 + $0xf1] sm:$0xff]  ;;  %v1982_v19 = vmax.f32 %v1900_v47, %v1941_v13  ;;  %v1983_v62 = vmax.f32 %v1901_v14, %v1942_v28  ;;  %v1777_v41 = vmax.f32 %v1695_v33, %v13667_v63  ;;  %v1318_v3 = vmul.f32 %v1227_v26, %v996_v23  ;;  %v13701_v0 = vld [vmem:[#allocation2 + $0x85] sm:$0xff] }
 0x198   : > { %v1408_v8 = vld [vmem:[#allocation2 + $0xf0] sm:$0xff]  ;;  %v997_v53 = vmax.f32 %v919_v55, 0.0  ;;  %v1696_v42 = vmax.f32 %v1614_v36, %v1655_v24  ;;  %v13703_v25 = vld [vmem:[#allocation2 + $0xfc] sm:$0xff]  ;;  %v1969_v11 = vmax.f32 %v1887_v44, %v1928_v39  ;;  %v1571_v49 = vmax.f32 %v1489_v35, %v1530_v37 }
 0x199   : > { %v13696_v4 = vld [vmem:[#allocation2 + $0x8c] sm:$0xff]  ;;  %v1490_v58 = vmax.f32 %v1408_v8, %v1449_v1  ;;  %v12476_v59 = vpack.c.bf16 %v1983_v62, %v1982_v19  ;;  %v1861_v60 = vld [vmem:[#allocation2 + $0xf5] sm:$0xff]  ;;  %v1888_v50 = vmax.f32 %v13690_v10, %v13701_v0  ;;  %v1641_v43 = vld [vmem:[#allocation2 + $0x83] sm:$0xff]  ;;  %1365 = vst.msk [vmem:[#allocation2 + $0x110] sm:$0xff] %vm1330_vm3, %v1318_v3  ;;  %v1821_v48 = vmax.f32 %v1777_v41, %v13703_v25  ;;  %v923_v61 = vpop.f32.mrb[72].mxu0 }
 0x19a   : > { %v1902_v63 = vmax.f32 %v1820_v34, %v1861_v60  ;;  %v1319_v12 = vmul.f32 %v1232_v32, %v997_v53  ;;  %v1532_v47 = vld [vmem:[#allocation2 + $0xfa] sm:$0xff]  ;;  %v13710_v6 = vmax.f32 %v1763_v52, %v13696_v4  ;;  %v1642_v27 = vld [vmem:[#allocation2 + $0x8b] sm:$0xff]  ;;  %v924_v14 = vadd.f32 %v13612_v54, %v923_v61  ;;  %v925_v17 = vpop.f32.mrb[73].mxu0  ;;  %v1533_v13 = vld [vmem:[#allocation2 + $0x102] sm:$0xff] }
 0x19b   : > { %12477 = vmatprep.subr.bf16.mxu0 %v12476_v59  ;;  %12608 = vmatprep.subr.bf16.mxu1 %v12476_v59  ;;  %v1450_v7 = vld [vmem:[#allocation2 + $0xf9] sm:$0xff]  ;;  %v1615_v51 = vmax.f32 %v1571_v49, %v1532_v47  ;;  %v13714_v16 = vld [vmem:[#allocation2 + $0x104] sm:$0xff]  ;;  %v1572_v45 = vmax.f32 %v1490_v58, %v1531_v9  ;;  %v1683_v22 = vmax.f32 %v1601_v56, %v1642_v27  ;;  %v926_v28 = vpop.f32.mrb[74].mxu0  ;;  %v1848_v62 = vld [vmem:[#allocation2 + $0x8d] sm:$0xff]  ;;  %v1242_v59 = vpop.permute.xlu1 %1241 }
 0x19c   : > { %12479 = vmatpush3.bf16.msra.mxu0 %v13633_v57  ;;  %12616 = vmatpush3.bf16.msra.mxu1 %v13633_v57  ;;  %v1862_v44 = vld [vmem:[#allocation2 + $0xfd] sm:$0xff]  ;;  %1366 = vst.msk [vmem:[#allocation2 + $0x118] sm:$0xff] %vm1330_vm3, %v1319_v12  ;;  %v1778_v20 = vmax.f32 %v1696_v42, %v13681_v15  ;;  %v13722_v57 = vmax.f32 %v1600_v38, %v1641_v43  ;;  %v998_v23 = vmax.f32 %v924_v14, 0.0  ;;  %v928_v2 = vpop.f32.mrb[75].mxu0  ;;  %v1929_v53 = vld [vmem:[#allocation2 + $0x86] sm:$0xff] }
 0x19d   : > { %v1943_v37 = vld [vmem:[#allocation2 + $0xf6] sm:$0xff]  ;;  %v1903_v31 = vmax.f32 %v1821_v48, %v1862_v44  ;;  %v1944_v33 = vld [vmem:[#allocation2 + $0xfe] sm:$0xff]  ;;  %v1491_v35 = vmax.f32 %v1409_v21, %v1450_v7  ;;  %v1616_v36 = vmax.f32 %v1572_v45, %v1533_v13  ;;  %v927_v55 = vadd.f32 %v13612_v54, %v926_v28  ;;  %v1411_v45 = vld [vmem:[#allocation2 + $0x108] sm:$0xff] }
 0x19e   : > { %v1656_v10 = vld [vmem:[#allocation2 + $0xfb] sm:$0xff]  ;;  %v1984_v9 = vmax.f32 %v1902_v63, %v1943_v37  ;;  %v1822_v15 = vmax.f32 %v1778_v20, %v13714_v16  ;;  %v1657_v8 = vld [vmem:[#allocation2 + $0x103] sm:$0xff]  ;;  %v1889_v30 = vmax.f32 %v13710_v6, %v1848_v62  ;;  %v1765_v41 = vmax.f32 %v1683_v22, %v13696_v4 }
 0x19f   : > { %v1697_v34 = vmax.f32 %v1615_v51, %v1656_v10  ;;  %v1451_v1 = vld [vmem:[#allocation2 + $0x101] sm:$0xff]  ;;  %v1985_v19 = vmax.f32 %v1903_v31, %v1944_v33  ;;  %v1698_v38 = vmax.f32 %v1616_v36, %v1657_v8  ;;  %v1320_v52 = vmul.f32 %v1237_v29, %v998_v23 }
 0x1a0   : > { %v1410_v26 = vld [vmem:[#allocation2 + $0x100] sm:$0xff]  ;;  %v999_v58 = vmax.f32 %v927_v55, 0.0  ;;  %v12482_v60 = vpack.c.bf16 %v1969_v11, %v13635_v5  ;;  %v13730_v39 = vld [vmem:[#allocation2 + $0x10c] sm:$0xff]  ;;  %v1970_v0 = vmax.f32 %v1888_v50, %v1929_v53  ;;  %v1573_v32 = vmax.f32 %v1491_v35, %v1532_v47 }
 0x1a1   : > { %v1492_v24 = vmax.f32 %v1410_v26, %v1451_v1  ;;  %v12480_v56 = vpack.c.bf16 %v1985_v19, %v1984_v9  ;;  %v1779_v3 = vmax.f32 %v1697_v34, %v13703_v25  ;;  %v1863_v42 = vld [vmem:[#allocation2 + $0x105] sm:$0xff]  ;;  %v13733_v63 = vmax.f32 %v1765_v41, %v13515_v18  ;;  %1367 = vst.msk [vmem:[#allocation2 + $0x120] sm:$0xff] %vm1330_vm3, %v1320_v52  ;;  %v931_v48 = vpop.f32.mrb[76].mxu0  ;;  %v1864_v5 = vld [vmem:[#allocation2 + $0x10d] sm:$0xff]  ;;  %v1850_v36 = vld [vmem:[#allocation2 + $0x9d] sm:$0xff] }
 0x1a2   : > { %v1321_v4 = vmul.f32 %v1242_v59, %v999_v58  ;;  %v1904_v25 = vmax.f32 %v1822_v15, %v1863_v42  ;;  %v1534_v43 = vld [vmem:[#allocation2 + $0x10a] sm:$0xff]  ;;  %v1780_v18 = vmax.f32 %v1698_v38, %v13714_v16  ;;  %v932_v7 = vadd.f32 %v13612_v54, %v931_v48  ;;  %v933_v27 = vpop.f32.mrb[77].mxu0  ;;  %v1849_v52 = vld [vmem:[#allocation2 + $0x95] sm:$0xff] }
 0x1a3   : > { %12481 = vmatprep.subr.bf16.mxu0 %v12480_v56  ;;  %12609 = vmatprep.subr.bf16.mxu1 %v12480_v56  ;;  %v1823_v49 = vmax.f32 %v1779_v3, %v13730_v39  ;;  %v1452_v12 = vld [vmem:[#allocation2 + $0x109] sm:$0xff]  ;;  %v1617_v50 = vmax.f32 %v1573_v32, %v1534_v43  ;;  %v13737_v47 = vld [vmem:[#allocation2 + $0x114] sm:$0xff]  ;;  %v1574_v6 = vmax.f32 %v1492_v24, %v1533_v13  ;;  %v934_v14 = vpop.f32.mrb[78].mxu0  ;;  %v1932_v3 = vld [vmem:[#allocation2 + $0x9e] sm:$0xff] }
 0x1a4   : > { %12483 = vmatpush3.bf16.msra.mxu0 %v12482_v60  ;;  %12617 = vmatpush3.bf16.msra.mxu1 %v12482_v60  ;;  %v1930_v11 = vld [vmem:[#allocation2 + $0x8e] sm:$0xff]  ;;  %1368 = vst.msk [vmem:[#allocation2 + $0x128] sm:$0xff] %vm1330_vm3, %v1321_v4  ;;  %v1764_v51 = vmax.f32 %v13722_v57, %v13673_v40  ;;  %v1945_v17 = vld [vmem:[#allocation2 + $0x106] sm:$0xff]  ;;  %v1824_v16 = vmax.f32 %v1780_v18, %v13737_v47  ;;  %v1000_v28 = vmax.f32 %v932_v7, 0.0  ;;  %v936_v9 = vpop.f32.mrb[79].mxu0  ;;  %v1247_v40 = vpop.permute.xlu0 %1246  ;;  %v1947_v42 = vld [vmem:[#allocation2 + $0x116] sm:$0xff] }
 0x1a5   : > { %v1905_v61 = vmax.f32 %v1823_v49, %v1864_v5  ;;  %v1971_v44 = vmax.f32 %v1889_v30, %v1930_v11  ;;  %v1658_v37 = vld [vmem:[#allocation2 + $0x10b] sm:$0xff]  ;;  %v1493_v20 = vmax.f32 %v1411_v45, %v1452_v12  ;;  %v935_v33 = vadd.f32 %v13612_v54, %v934_v14  ;;  %v1659_v2 = vld [vmem:[#allocation2 + $0x113] sm:$0xff]  ;;  %v1252_v30 = vpop.permute.xlu1 %1251 }
 0x1a6   : > { %v1535_v22 = vld [vmem:[#allocation2 + $0x112] sm:$0xff]  ;;  %v1699_v10 = vmax.f32 %v1617_v50, %v1658_v37  ;;  %v1986_v34 = vmax.f32 %v1904_v25, %v1945_v17  ;;  %v1808_v23 = vmax.f32 %v1764_v51, %v13495_v46  ;;  %v1891_v55 = vmax.f32 %v13733_v63, %v1850_v36 }
 0x1a7   : > { %v1946_v31 = vld [vmem:[#allocation2 + $0x10e] sm:$0xff]  ;;  %v1618_v21 = vmax.f32 %v1574_v6, %v1535_v22  ;;  %v1322_v15 = vmul.f32 %v1247_v40, %v1000_v28  ;;  %v1001_v62 = vmax.f32 %v935_v33, 0.0  ;;  %v12486_v38 = vpack.c.bf16 %v1971_v44, %v1970_v0  ;;  %v1413_v11 = vld [vmem:[#allocation2 + $0x118] sm:$0xff] }
 0x1a8   : > { %v1453_v13 = vld [vmem:[#allocation2 + $0x111] sm:$0xff]  ;;  %v1987_v35 = vmax.f32 %v1905_v61, %v1946_v31  ;;  %v1781_v57 = vmax.f32 %v1699_v10, %v13730_v39  ;;  %v13749_v41 = vld [vmem:[#allocation2 + $0x11c] sm:$0xff]  ;;  %v1575_v58 = vmax.f32 %v1493_v20, %v1534_v43  ;;  %v1890_v0 = vmax.f32 %v1808_v23, %v1849_v52 }
 0x1a9   : > { %v1412_v1 = vld [vmem:[#allocation2 + $0x110] sm:$0xff]  ;;  %v1700_v29 = vmax.f32 %v1618_v21, %v1659_v2  ;;  %1369 = vst.msk [vmem:[#allocation2 + $0x130] sm:$0xff] %vm1330_vm3, %v1322_v15  ;;  %v1323_v56 = vmul.f32 %v1252_v30, %v1001_v62  ;;  %v1536_v53 = vld [vmem:[#allocation2 + $0x11a] sm:$0xff]  ;;  %v939_v60 = vpop.f32.mrb[80].mxu0  ;;  %v1973_v12 = vmax.f32 %v1891_v55, %v1932_v3 }
 0x1aa   : > { %v1494_v19 = vmax.f32 %v1412_v1, %v1453_v13  ;;  %v12484_v8 = vpack.c.bf16 %v1987_v35, %v1986_v34  ;;  %v1865_v26 = vld [vmem:[#allocation2 + $0x115] sm:$0xff]  ;;  %v1825_v46 = vmax.f32 %v1781_v57, %v13749_v41  ;;  %v1866_v39 = vld [vmem:[#allocation2 + $0x11d] sm:$0xff]  ;;  %v1619_v32 = vmax.f32 %v1575_v58, %v1536_v53  ;;  %v941_v25 = vpop.f32.mrb[81].mxu0  ;;  %v1262_v35 = vpop.permute.xlu1 %1261 }
 0x1ab   : > { %v1906_v24 = vmax.f32 %v1824_v16, %v1865_v26  ;;  %v1454_v59 = vld [vmem:[#allocation2 + $0x119] sm:$0xff]  ;;  %v13753_v63 = vld [vmem:[#allocation2 + $0x124] sm:$0xff]  ;;  %1370 = vst.msk [vmem:[#allocation2 + $0x138] sm:$0xff] %vm1330_vm3, %v1323_v56  ;;  %v940_v49 = vadd.f32 %v13612_v54, %v939_v60  ;;  %v1782_v5 = vmax.f32 %v1700_v29, %v13737_v47  ;;  %v942_v18 = vpop.f32.mrb[82].mxu0  ;;  %v1257_v47 = vpop.permute.xlu0 %1256 }
 0x1ac   : > { %12485 = vmatprep.subr.bf16.mxu0 %v12484_v8  ;;  %12610 = vmatprep.subr.bf16.mxu1 %v12484_v8  ;;  %v1576_v4 = vmax.f32 %v1494_v19, %v1535_v22  ;;  %v1907_v43 = vmax.f32 %v1825_v46, %v1866_v39  ;;  %v1660_v48 = vld [vmem:[#allocation2 + $0x11b] sm:$0xff]  ;;  %v1495_v61 = vmax.f32 %v1413_v11, %v1454_v59  ;;  %v944_v22 = vpop.f32.mrb[83].mxu0  ;;  %v1661_v10 = vld [vmem:[#allocation2 + $0x123] sm:$0xff] }
 0x1ad   : > { %12487 = vmatpush3.bf16.msra.mxu0 %v12486_v38  ;;  %12618 = vmatpush3.bf16.msra.mxu1 %v12486_v38  ;;  %v1537_v50 = vld [vmem:[#allocation2 + $0x122] sm:$0xff]  ;;  %v1988_v7 = vmax.f32 %v1906_v24, %v1947_v42  ;;  %v1701_v27 = vmax.f32 %v1619_v32, %v1660_v48  ;;  %v1002_v51 = vmax.f32 %v940_v49, 0.0  ;;  %v943_v45 = vadd.f32 %v13612_v54, %v942_v18  ;;  %v1931_v17 = vld [vmem:[#allocation2 + $0x96] sm:$0xff] }
 0x1ae   : > { %v1948_v6 = vld [vmem:[#allocation2 + $0x11e] sm:$0xff]  ;;  %v1620_v44 = vmax.f32 %v1576_v4, %v1537_v50  ;;  %v1826_v31 = vmax.f32 %v1782_v5, %v13753_v63  ;;  %v1972_v20 = vmax.f32 %v1890_v0, %v1931_v17  ;;  %v1577_v23 = vmax.f32 %v1495_v61, %v1536_v53  ;;  %v1415_v59 = vld [vmem:[#allocation2 + $0x128] sm:$0xff]  ;;  %v1272_v17 = vpop.permute.xlu1 %1271 }
 0x1af   : > { %v1455_v37 = vld [vmem:[#allocation2 + $0x121] sm:$0xff]  ;;  %v1989_v14 = vmax.f32 %v1907_v43, %v1948_v6  ;;  %v1324_v28 = vmul.f32 %v1257_v47, %v1002_v51  ;;  %v1003_v33 = vmax.f32 %v943_v45, 0.0  ;;  %v1783_v34 = vmax.f32 %v1701_v27, %v13749_v41  ;;  %v1267_v18 = vpop.permute.xlu0 %1266  ;;  %v2014_v6 = vld [vmem:[%s16723_s6 + $0x78] sm:$0xff] }
 0x1b0   : > { %v1414_v16 = vld [vmem:[#allocation2 + $0x120] sm:$0xff]  ;;  %v1702_v21 = vmax.f32 %v1620_v44, %v1661_v10  ;;  %v12490_v36 = vpack.c.bf16 %v1973_v12, %v1972_v20  ;;  %v13764_v40 = vld [vmem:[#allocation2 + $0x12c] sm:$0xff]  ;;  %v2018_v45 = vld [vmem:[%s16723_s6 + $0x98] sm:$0xff] }
 0x1b1   : > { %v1496_v13 = vmax.f32 %v1414_v16, %v1455_v37  ;;  %v12488_v9 = vpack.c.bf16 %v1989_v14, %v1988_v7  ;;  %v2011_v1 = vld [vmem:[%s16723_s6 + $0x60] sm:$0xff]  ;;  %1371 = vst.msk [vmem:[#allocation2 + $0x140] sm:$0xff] %vm1330_vm3, %v1324_v28  ;;  %v1325_v55 = vmul.f32 %v1262_v35, %v1003_v33  ;;  %v1827_v19 = vmax.f32 %v1783_v34, %v13764_v40  ;;  %v1538_v62 = vld [vmem:[#allocation2 + $0x12a] sm:$0xff]  ;;  %v947_v29 = vpop.f32.mrb[84].mxu0  ;;  %v2002_v20 = vld [vmem:[%s16723_s6 + $0x18] sm:$0xff] }
 0x1b2   : > { %v1867_v57 = vld [vmem:[#allocation2 + $0x125] sm:$0xff]  ;;  %v1868_v30 = vld [vmem:[#allocation2 + $0x12d] sm:$0xff]  ;;  %v1621_v38 = vmax.f32 %v1577_v23, %v1538_v62  ;;  %v1784_v24 = vmax.f32 %v1702_v21, %v13753_v63  ;;  %v948_v56 = vadd.f32 %v13612_v54, %v947_v29  ;;  %v949_v46 = vpop.f32.mrb[85].mxu0  ;;  %v1869_v22 = vld [vmem:[#allocation2 + $0x135] sm:$0xff] }
 0x1b3   : > { %12489 = vmatprep.subr.bf16.mxu0 %v12488_v9  ;;  %12611 = vmatprep.subr.bf16.mxu1 %v12488_v9  ;;  %v2015_v2 = vld [vmem:[%s16723_s6 + $0x80] sm:$0xff]  ;;  %v1908_v15 = vmax.f32 %v1826_v31, %v1867_v57  ;;  %v1456_v8 = vld [vmem:[#allocation2 + $0x129] sm:$0xff]  ;;  %v13774_v41 = vld [vmem:[#allocation2 + $0x134] sm:$0xff]  ;;  %v1578_v52 = vmax.f32 %v1496_v13, %v1537_v50  ;;  %1372 = vst.msk [vmem:[#allocation2 + $0x148] sm:$0xff] %vm1330_vm3, %v1325_v55  ;;  %v950_v39 = vpop.f32.mrb[86].mxu0 }
 0x1b4   : > { %v1999_v26 = vld [vmem:[%s16723_s6] sm:$0xff]  ;;  %12491 = vmatpush3.bf16.msra.mxu0 %v12490_v36  ;;  %12619 = vmatpush3.bf16.msra.mxu1 %v12490_v36  ;;  %v1909_v3 = vmax.f32 %v1827_v19, %v1868_v30  ;;  %v1662_v53 = vld [vmem:[#allocation2 + $0x12b] sm:$0xff]  ;;  %v1828_v63 = vmax.f32 %v1784_v24, %v13774_v41  ;;  %v1497_v4 = vmax.f32 %v1415_v59, %v1456_v8  ;;  %v1004_v43 = vmax.f32 %v948_v56, 0.0  ;;  %v952_v48 = vpop.f32.mrb[87].mxu0  ;;  %v1663_v27 = vld [vmem:[#allocation2 + $0x133] sm:$0xff] }
 0x1b5   : > { %v2003_v58 = vld [vmem:[%s16723_s6 + $0x20] sm:$0xff]  ;;  %v1539_v60 = vld [vmem:[#allocation2 + $0x132] sm:$0xff]  ;;  %v1703_v32 = vmax.f32 %v1621_v38, %v1662_v53  ;;  %v951_v12 = vadd.f32 %v13612_v54, %v950_v39 }
 0x1b6   : > { %v1949_v42 = vld [vmem:[#allocation2 + $0x126] sm:$0xff]  ;;  %v1950_v0 = vld [vmem:[#allocation2 + $0x12e] sm:$0xff]  ;;  %v1622_v49 = vmax.f32 %v1578_v52, %v1539_v60  ;;  %v1326_v44 = vmul.f32 %v1267_v18, %v1004_v43  ;;  %v1910_v16 = vmax.f32 %v1828_v63, %v1869_v22  ;;  %v1579_v47 = vmax.f32 %v1497_v4, %v1538_v62  ;;  %v2006_v21 = vld [vmem:[%s16723_s6 + $0x38] sm:$0xff] }
 0x1b7   : > { %v1457_v25 = vld [vmem:[#allocation2 + $0x131] sm:$0xff]  ;;  %2185 = vmatmul.mubr.f32.vlgmr.msra.gmra.mrb[0].mxu1 %v2011_v1  ;;  %v1990_v5 = vmax.f32 %v1908_v15, %v1949_v42  ;;  %v1991_v11 = vmax.f32 %v1909_v3, %v1950_v0  ;;  %2165 = vmatmul.mubr.f32.vlgmr.msra.gmra.mrb[92].mxu0 %v1999_v26  ;;  %v1785_v7 = vmax.f32 %v1703_v32, %v13764_v40  ;;  %v1005_v37 = vmax.f32 %v951_v12, 0.0  ;;  %v1277_v0 = vpop.permute.xlu0 %1276  ;;  %v2020_v32 = vld [vmem:[%s16723_s6 + $0xa8] sm:$0xff]  ;;  %v2023_v22 = vld [vmem:[%s16723_s6 + $0xc0] sm:$0xff] }
 0x1b8   : > { %v1416_v50 = vld [vmem:[#allocation2 + $0x130] sm:$0xff]  ;;  %2189 = vmatprep.mubr.f32.mxu1 %v2015_v2  ;;  %2169 = vmatprep.mubr.f32.mxu0 %v2003_v58  ;;  %v1704_v14 = vmax.f32 %v1622_v49, %v1663_v27  ;;  %v13794_v10 = vld [vmem:[#allocation2 + $0x13c] sm:$0xff]  ;;  %1373 = vst.msk [vmem:[#allocation2 + $0x150] sm:$0xff] %vm1330_vm3, %v1326_v44  ;;  %v2024_v12 = vld [vmem:[%s16723_s6 + $0xc8] sm:$0xff] }
 0x1b9   : > { %v1498_v61 = vmax.f32 %v1416_v50, %v1457_v25  ;;  %v12492_v51 = vpack.c.bf16 %v1991_v11, %v1990_v5  ;;  %v2017_v31 = vld [vmem:[%s16723_s6 + $0x90] sm:$0xff]  ;;  %v1327_v13 = vmul.f32 %v1272_v17, %v1005_v37  ;;  %v1829_v33 = vmax.f32 %v1785_v7, %v13794_v10  ;;  %v1540_v34 = vld [vmem:[#allocation2 + $0x13a] sm:$0xff]  ;;  %v955_v36 = vpop.f32.mrb[88].mxu0  ;;  %v1541_v5 = vld [vmem:[#allocation2 + $0x142] sm:$0xf]  ;;  %v1282_v11 = vpop.permute.xlu1 %1281 }
 0x1ba   : > { %v2021_v28 = vld [vmem:[%s16723_s6 + $0xb0] sm:$0xff]  ;;  %v1458_v35 = vld [vmem:[#allocation2 + $0x139] sm:$0xff]  ;;  %v1623_v40 = vmax.f32 %v1579_v47, %v1540_v34  ;;  %v13807_v57 = vld [vmem:[#allocation2 + $0x144] sm:$0xff]  ;;  %v956_v2 = vadd.f32 %v13612_v54, %v955_v36  ;;  %v957_v19 = vpop.f32.mrb[89].mxu0  ;;  %v1786_v8 = vmax.f32 %v1704_v14, %v13774_v41 }
 0x1bb   : > { %2190 = vmatmul.mubr.f32.gmra.mrb[2].mxu1 %v2014_v6  ;;  %12493 = vmatprep.subr.bf16.mxu1 %v12492_v51  ;;  %v1951_v9 = vld [vmem:[#allocation2 + $0x136] sm:$0xff]  ;;  %v1580_v55 = vmax.f32 %v1498_v61, %v1539_v60  ;;  %1374 = vst.msk [vmem:[#allocation2 + $0x158] sm:$0xff] %vm1330_vm3, %v1327_v13  ;;  %v1583_v26 = vld [vmem:[#allocation2 + $0x142] sm:$0xff]  ;;  %v958_v30 = vpop.f32.mrb[90].mxu0 }
 0x1bc   : > { %12495 = vmatpush3.bf16.msra.mxu1 %v12492_v51  ;;  %2194 = vmatprep.mubr.f32.mxu1 %v2018_v45  ;;  %v1870_v1 = vld [vmem:[#allocation2 + $0x13d] sm:$0xff]  ;;  %v1992_v24 = vmax.f32 %v1910_v16, %v1951_v9  ;;  %v2005_v3 = vld [vmem:[%s16723_s6 + $0x30] sm:$0xff]  ;;  %v1006_v53 = vmax.f32 %v956_v2, 0.0  ;;  %v959_v59 = vadd.f32 %v13612_v54, %v958_v30  ;;  %v1830_v60 = vmax.f32 %v1786_v8, %v13807_v57  ;;  %v960_v42 = vpop.f32.mrb[91].mxu0  ;;  %v1871_v18 = vld [vmem:[#allocation2 + $0x145] sm:$0xff] }
 0x1bd   : > { %v1417_v23 = vld [vmem:[#allocation2 + $0x138] sm:$0xff]  ;;  %v1911_v15 = vmax.f32 %v1829_v33, %v1870_v1  ;;  %v1418_v29 = vld [vmem:[#allocation2 + $0x140] sm:$0xf]  ;;  %2170 = vmatmul.mubr.f32.gmra.mrb[94].mxu0 %v2002_v20  ;;  %v1624_v56 = vmax.f32 %v1580_v55, %v1583_v26  ;;  %v2009_v39 = vld [vmem:[%s16723_s6 + $0x50] sm:$0xff] }
 0x1be   : > { %v1664_v62 = vld [vmem:[#allocation2 + $0x13b] sm:$0xff]  ;;  %v1499_v58 = vmax.f32 %v1417_v23, %v1458_v35  ;;  %2174 = vmatprep.mubr.f32.mxu0 %v2006_v21  ;;  %v1665_v4 = vld [vmem:[#allocation2 + $0x143] sm:$0xff]  ;;  %v1328_v54 = vmul.f32 %v1277_v0, %v1006_v53  ;;  %v1007_v25 = vmax.f32 %v959_v59, 0.0  ;;  %v1912_v37 = vmax.f32 %v1830_v60, %v1871_v18  ;;  %v2029_v30 = vld [vmem:[%s16723_s6 + $0xf0] sm:$0xff] }
 0x1bf   : > { %v1952_v38 = vld [vmem:[#allocation2 + $0x13e] sm:$0xff]  ;;  %v1705_v52 = vmax.f32 %v1623_v40, %v1664_v62  ;;  %2195 = vmatmul.mubr.f32.gmra.mrb[4].mxu1 %v2017_v31  ;;  %v1706_v48 = vmax.f32 %v1624_v56, %v1665_v4  ;;  %v1748_v50 = vld [vmem:[#allocation2 + $0x14c] sm:$0xff]  ;;  %v1749_v2 = vld [vmem:[#allocation2 + $0x154] sm:$0xf] }
 0x1c0   : > { %v1459_v46 = vld [vmem:[#allocation2 + $0x141] sm:$0xf]  ;;  %v1993_v41 = vmax.f32 %v1911_v15, %v1952_v38  ;;  %2199 = vmatprep.mubr.f32.mxu1 %v2021_v28  ;;  %v1581_v6 = vmax.f32 %v1499_v58, %v1540_v34  ;;  %v2008_v27 = vld [vmem:[%s16723_s6 + $0x48] sm:$0xff]  ;;  %1375 = vst.msk [vmem:[#allocation2 + $0x160] sm:$0xff] %vm1330_vm3, %v1328_v54  ;;  %v1329_v61 = vmul.f32 %v1282_v11, %v1007_v25  ;;  %v1585_v45 = vld [vmem:[#allocation2 + $0x152] sm:$0xf] }
 0x1c1   : > { %v1787_v63 = vmax.f32 %v1705_v52, %v13794_v10  ;;  %v1500_v49 = vmax.f32 %v1418_v29, %v1459_v46  ;;  %2175 = vmatmul.mubr.f32.gmra.mrb[96].mxu0 %v2005_v3  ;;  %v1584_v51 = vld [vmem:[#allocation2 + $0x14a] sm:$0xff]  ;;  %v2027_v16 = vld [vmem:[%s16723_s6 + $0xe0] sm:$0xff]  ;;  %v1788_v21 = vmax.f32 %v1706_v48, %v13807_v57  ;;  %v1667_v13 = vld [vmem:[#allocation2 + $0x153] sm:$0xf] }
 0x1c2   : > { %v12496_v43 = vpack.c.bf16 %v1993_v41, %v1992_v24  ;;  %2179 = vmatprep.mubr.f32.mxu0 %v2009_v39  ;;  %v1872_v14 = vld [vmem:[#allocation2 + $0x14d] sm:$0xff]  ;;  %v1625_v17 = vmax.f32 %v1581_v6, %v1584_v51  ;;  %1377 = vst.msk [vmem:[#allocation2 + $0x168] sm:$0x3] %vm1376_vm4, %v1329_v61  ;;  %v2026_v40 = vld [vmem:[%s16723_s6 + $0xd8] sm:$0xff]  ;;  %v2039_v4 = vld [vmem:[%s16723_s6 + $0x140] sm:$0xff] }
 0x1c3   : > { %v1582_v7 = vmax.f32 %v1500_v49, %v1541_v5  ;;  %2200 = vmatmul.mubr.f32.gmra.mrb[6].mxu1 %v2020_v32  ;;  %v1831_v44 = vmax.f32 %v1787_v63, %v1748_v50  ;;  %v1791_v31 = vld [vmem:[#allocation2 + $0x154] sm:$0xff]  ;;  %v1666_v20 = vld [vmem:[#allocation2 + $0x14b] sm:$0xff]  ;;  %v2035_v63 = vld [vmem:[%s16723_s6 + $0x120] sm:$0xff] }
 0x1c4   : > { %12497 = vmatprep.subr.bf16.mxu1 %v12496_v43  ;;  %2204 = vmatprep.mubr.f32.mxu1 %v2024_v12  ;;  %v1953_v28 = vld [vmem:[#allocation2 + $0x146] sm:$0xff]  ;;  %v1954_v33 = vld [vmem:[#allocation2 + $0x14e] sm:$0xff]  ;;  %v1707_v9 = vmax.f32 %v1625_v17, %v1666_v20  ;;  %v1832_v1 = vmax.f32 %v1788_v21, %v1791_v31  ;;  %v2030_v57 = vld [vmem:[%s16723_s6 + $0xf8] sm:$0xff]  ;;  %v12990_v31 = vmov 0.0  }
 0x1c5   : > { %12499 = vmatpush3.bf16.msra.mxu1 %v12496_v43  ;;  %v1626_v10 = vmax.f32 %v1582_v7, %v1585_v45  ;;  %v1913_v47 = vmax.f32 %v1831_v44, %v1872_v14  ;;  %2180 = vmatmul.mubr.f32.gmra.mrb[98].mxu0 %v2008_v27  ;;  %v1994_v35 = vmax.f32 %v1912_v37, %v1953_v28  ;;  %v1873_v15 = vld [vmem:[#allocation2 + $0x155] sm:$0xff]  ;;  %v2032_v60 = vld [vmem:[%s16723_s6 + $0x108] sm:$0xff]  ;;  %v2045_v43 = vld [vmem:[%s16723_s6 + $0x170] sm:$0x3] }
 0x1c6   : > { %v1789_v55 = vmax.f32 %v1707_v9, %v1748_v50  ;;  %v1914_v26 = vmax.f32 %v1832_v1, %v1873_v15  ;;  %v2033_v58 = vld [vmem:[%s16723_s6 + $0x110] sm:$0xff]  ;;  %v2036_v42 = vld [vmem:[%s16723_s6 + $0x128] sm:$0xff]  ;;  %v2038_v49 = vld [vmem:[%s16723_s6 + $0x138] sm:$0xff]  ;;  %11048 = vmatprep.subr.bf16.mxu0 %v12990_v31  ;;  %11056 = vmatprep.mubr.msk.bf16.mxu0 %vm12991_vm7, %v12990_v31 }
 0x1c7   : > { %v1708_v34 = vmax.f32 %v1626_v10, %v1667_v13  ;;  %2205 = vmatmul.mubr.f32.gmra.mrb[8].mxu1 %v2023_v22  ;;  %v1995_v36 = vmax.f32 %v1913_v47, %v1954_v33  ;;  %v1792_v19 = vld [vmem:[#allocation2 + $0x15c] sm:$0xff]  ;;  %v1793_v29 = vld [vmem:[#allocation2 + $0x164] sm:$0xf]  ;;  %v2041_v25 = vld [vmem:[%s16723_s6 + $0x150] sm:$0xff] }
 0x1c8   : > { %2209 = vmatprep.mubr.f32.mxu1 %v2027_v16  ;;  %v1833_v8 = vmax.f32 %v1789_v55, %v1792_v19  ;;  %v1874_v38 = vld [vmem:[#allocation2 + $0x15d] sm:$0xff]  ;;  %v2044_v12 = vld [vmem:[%s16723_s6 + $0x168] sm:$0x3]  ;;  %v2001_v48 = vld [vmem:[%s16723_s6 + $0x10] sm:$0xff] }
 0x1c9   : > { %v12500_v23 = vpack.c.bf16 %v1995_v36, %v1994_v35  ;;  %v1790_v62 = vmax.f32 %v1708_v34, %v1749_v2  ;;  %v1875_v52 = vld [vmem:[#allocation2 + $0x165] sm:$0xf]  ;;  %v1955_v46 = vld [vmem:[#allocation2 + $0x156] sm:$0xff] }
 0x1ca   : > { %v1915_v56 = vmax.f32 %v1833_v8, %v1874_v38  ;;  %v1956_v3 = vld [vmem:[#allocation2 + $0x15e] sm:$0xff]  ;;  %v1996_v53 = vmax.f32 %v1914_v26, %v1955_v46  ;;  %v1957_v0 = vld [vmem:[#allocation2 + $0x166] sm:$0xf]  ;;  %v2013_v18 = vld [vmem:[%s16723_s6 + $0x70] sm:$0xff] }
 0x1cb   : > { %2210 = vmatmul.mubr.f32.gmra.mrb[10].mxu1 %v2026_v40  ;;  %12501 = vmatprep.subr.bf16.mxu1 %v12500_v23  ;;  %v1834_v24 = vmax.f32 %v1790_v62, %v1793_v29  ;;  %v2042_v54 = vld [vmem:[%s16723_s6 + $0x158] sm:$0xff]  ;;  %v2004_v5 = vld [vmem:[%s16723_s6 + $0x28] sm:$0xff]  ;;  %v2007_v11 = vld [vmem:[%s16723_s6 + $0x40] sm:$0xff] }
 0x1cc   : > { %12503 = vmatpush3.bf16.msra.mxu1 %v12500_v23  ;;  %2214 = vmatprep.mubr.f32.mxu1 %v2030_v57  ;;  %v1997_v59 = vmax.f32 %v1915_v56, %v1956_v3  ;;  %v2010_v50 = vld [vmem:[%s16723_s6 + $0x58] sm:$0xff]  ;;  %v2016_v6 = vld [vmem:[%s16723_s6 + $0x88] sm:$0xff]  ;;  %v2019_v7 = vld [vmem:[%s16723_s6 + $0xa0] sm:$0xff] }
 0x1cd   : > { %v1916_v41 = vmax.f32 %v1834_v24, %v1875_v52  ;;  %v2022_v27 = vld [vmem:[%s16723_s6 + $0xb8] sm:$0xff]  ;;  %v2025_v61 = vld [vmem:[%s16723_s6 + $0xd0] sm:$0xff]  ;;  %v2028_v44 = vld [vmem:[%s16723_s6 + $0xe8] sm:$0xff] }
 0x1ce   : > { %v12504_v39 = vpack.c.bf16 %v1997_v59, %v1996_v53  ;;  %v2031_v37 = vld [vmem:[%s16723_s6 + $0x100] sm:$0xff]  ;;  %v2034_v51 = vld [vmem:[%s16723_s6 + $0x118] sm:$0xff]  ;;  %v2037_v45 = vld [vmem:[%s16723_s6 + $0x130] sm:$0xff] }
 0x1cf   : > { %2215 = vmatmul.mubr.f32.gmra.mrb[12].mxu1 %v2029_v30  ;;  %v1998_v32 = vmax.f32 %v1916_v41, %v1957_v0  ;;  %v2040_v22 = vld [vmem:[%s16723_s6 + $0x148] sm:$0xff]  ;;  %v2043_v14 = vld [vmem:[%s16723_s6 + $0x160] sm:$0xff]  ;;  %v2046_v17 = vld [vmem:[%s16723_s6 + $0x178] sm:$0x3] }
 0x1d0   : > { %2219 = vmatprep.mubr.f32.mxu1 %v2033_v58  ;;  %12505 = vmatprep.subr.bf16.mxu1 %v12504_v39  ;;  %v12747_v10 = vld [vmem:[%s16721_s4 + $0x20] sm:$0xff]   ;;  %v12749_v47 = vld [vmem:[%s16721_s4 + $0x28] sm:$0xff]   ;;  %v12751_v21 = vld [vmem:[%s16721_s4 + $0x30] sm:$0xff]  }
 0x1d1   : > { %12507 = vmatpush3.bf16.msra.mxu1 %v12504_v39  ;;  %v12748_v16 = vld [vmem:[%s16721_s4 + $0x40] sm:$0xff]   ;;  %v12750_v20 = vld [vmem:[%s16721_s4 + $0x48] sm:$0xff]   ;;  %v12752_v13 = vld [vmem:[%s16721_s4 + $0x50] sm:$0xff]  }
 0x1d2   : > { %10950 = vmatprep.subr.msk.mxu1 %vm2096_vm5, %v1998_v32  ;;  %11049 = vmatpush3.bf16.msra.mxu0 %v12748_v16  ;;  %v12753_v28 = vld [vmem:[%s16721_s4 + $0x38] sm:$0xff]  }
 0x1d3   : > { %2220 = vmatmul.mubr.f32.gmra.mrb[14].mxu1 %v2032_v60  ;;  %11050 = vmatprep.subr.bf16.mxu0 %v12990_v31  ;;  %v12754_v33 = vld [vmem:[%s16721_s4 + $0x58] sm:$0xff]  }
 0x1d4   : > { %2224 = vmatprep.mubr.f32.mxu1 %v2036_v42 }
 0x1d5   : > { %10951 = vmatpush3.msk.msra.mxu1 %vm2096_vm5, %v1998_v32 }
 0x1d6   : > { %10976 = vmatprep.subr.bf16.mxu1 %v12990_v31  ;;  %11051 = vmatpush3.bf16.msra.mxu0 %v12750_v20 }
 0x1d7   : > { %2225 = vmatmul.mubr.f32.gmra.mrb[16].mxu1 %v2035_v63  ;;  %11052 = vmatprep.subr.bf16.mxu0 %v12990_v31 }
 0x1d8   : > { %2229 = vmatprep.mubr.f32.mxu1 %v2039_v4 }
 0x1da   : > { %11053 = vmatpush3.bf16.msra.mxu0 %v12752_v13 }
 0x1db   : > { %2230 = vmatmul.mubr.f32.gmra.mrb[18].mxu1 %v2038_v49  ;;  %11054 = vmatprep.subr.bf16.mxu0 %v12990_v31 }
 0x1dc   : > { %2234 = vmatprep.mubr.f32.mxu1 %v2042_v54 }
 0x1de   : > { %11055 = vmatpush3.bf16.msra.mxu0 %v12754_v33 }
 0x1df   : > { %2235 = vmatmul.mubr.f32.gmra.mrb[20].mxu1 %v2041_v25  ;;  %11120 = vmatprep.subr.bf16.mxu0 %v12990_v31 }
 0x1e0   : > { %2239 = vmatprep.mubr.f32.mxu1 %v2045_v43 }
 0x1e3   : > { %2240 = vmatmul.mubr.f32.gmra.mrb[22].mxu1 %v2044_v12 }
 0x1e4   : > { %10952 = vmatprep.mubr.msk.f32.mxu1 %vm2047_vm6, %v2001_v48 }
 0x1e7   : > { %10953 = vmatmul.mubr.msk.f32.vlgmr.msra.gmra.mrb[24].mxu1 %vm2047_vm6, %v2004_v5 }
 0x1e8   : > { %10955 = vmatprep.mubr.msk.f32.mxu1 %vm2047_vm6, %v2007_v11  ;;  %10977 = vmatpush3.bf16.msra.mxu1 %v12747_v10 }
 0x1e9   : > { %10978 = vmatprep.subr.bf16.mxu1 %v12990_v31 }
 0x1eb   : > { %10956 = vmatmul.mubr.msk.f32.gmra.mrb[26].mxu1 %vm2047_vm6, %v2010_v50 }
 0x1ec   : > { %10958 = vmatprep.mubr.msk.f32.mxu1 %vm2047_vm6, %v2013_v18  ;;  %10979 = vmatpush3.bf16.msra.mxu1 %v12749_v47 }
 0x1ed   : > { %10980 = vmatprep.subr.bf16.mxu1 %v12990_v31 }
 0x1ef   : > { %10959 = vmatmul.mubr.msk.f32.gmra.mrb[28].mxu1 %vm2047_vm6, %v2016_v6 }
 0x1f0   : > { %10961 = vmatprep.mubr.msk.f32.mxu1 %vm2047_vm6, %v2019_v7  ;;  %10981 = vmatpush3.bf16.msra.mxu1 %v12751_v21 }
 0x1f1   : > { %10982 = vmatprep.subr.bf16.mxu1 %v12990_v31 }
 0x1f3   : > { %10962 = vmatmul.mubr.msk.f32.gmra.mrb[30].mxu1 %vm2047_vm6, %v2022_v27 }
 0x1f4   : > { %10964 = vmatprep.mubr.msk.f32.mxu1 %vm2047_vm6, %v2025_v61  ;;  %10983 = vmatpush3.bf16.msra.mxu1 %v12753_v28 }
 0x1f5   : > { %11012 = vmatprep.subr.bf16.mxu1 %v12990_v31 }
 0x1f7   : > { %10965 = vmatmul.mubr.msk.f32.gmra.mrb[32].mxu1 %vm2047_vm6, %v2028_v44 }
 0x1f8   : > { %10967 = vmatprep.mubr.msk.f32.mxu1 %vm2047_vm6, %v2031_v37 }
 0x1fb   : > { %10968 = vmatmul.mubr.msk.f32.gmra.mrb[34].mxu1 %vm2047_vm6, %v2034_v51 }
 0x1fc   : > { %10970 = vmatprep.mubr.msk.f32.mxu1 %vm2047_vm6, %v2037_v45 }
 0x1ff   : > { %10971 = vmatmul.mubr.msk.f32.gmra.mrb[36].mxu1 %vm2047_vm6, %v2040_v22 }
 0x200   : > { %10973 = vmatprep.mubr.msk.f32.mxu1 %vm2047_vm6, %v2043_v14 }
 0x203   : > { %10974 = vmatmul.mubr.msk.f32.gmra.mrb[38].mxu1 %vm2047_vm6, %v2046_v17 }
 0x204   : > { %10984 = vmatprep.mubr.msk.bf16.mxu1 %vm12991_vm7, %v12990_v31 }
 0x28a   : > { %v10369_v9 = vpop.f32.mrb[0].mxu1  ;;  %v10357_v34 = vpop.f32.mrb[92].mxu0 }
 0x28b   : > { %v10370_v35 = vpop.f32.mrb[1].mxu1  ;;  %v10358_v36 = vpop.f32.mrb[93].mxu0 }
 0x28c   : > { %v10371_v1 = vadd.f32 %v10370_v35, %v10369_v9  ;;  %v10359_v40 = vadd.f32 %v10358_v36, %v10357_v34 }
 0x28e   : > { %v10372_v23 = vpop.f32.mrb[2].mxu1 }
 0x28f   : > { %v10373_v57 = vpop.f32.mrb[3].mxu1 }
 0x290   : > { %v10374_v55 = vadd.f32 %v10373_v57, %v10372_v23  ;;  %v10360_v2 = vpop.f32.mrb[94].mxu0 }
 0x291   : > { %v10361_v19 = vpop.f32.mrb[95].mxu0 }
 0x292   : > { %v10375_v15 = vpop.f32.mrb[4].mxu1  ;;  %v10362_v62 = vadd.f32 %v10361_v19, %v10360_v2  ;;  %v12756_v2 = vld [vmem:[%s16721_s4 + $0x80] sm:$0xff]  }
 0x293   : > { %v10376_v8 = vpop.f32.mrb[5].mxu1 }
 0x294   : > { %v10377_v26 = vadd.f32 %v10376_v8, %v10375_v15  ;;  %v10363_v29 = vpop.f32.mrb[96].mxu0 }
 0x295   : > { %v10364_v30 = vpop.f32.mrb[97].mxu0 }
 0x296   : > { %v10378_v38 = vpop.f32.mrb[6].mxu1  ;;  %v10365_v24 = vadd.f32 %v10364_v30, %v10363_v29  ;;  %v12758_v29 = vld [vmem:[%s16721_s4 + $0x88] sm:$0xff]  }
 0x297   : > { %v10379_v52 = vpop.f32.mrb[7].mxu1 }
 0x298   : > { %v10380_v58 = vadd.f32 %v10379_v52, %v10378_v38  ;;  %v10366_v56 = vpop.f32.mrb[98].mxu0 }
 0x299   : > { %v10367_v46 = vpop.f32.mrb[99].mxu0 }
 0x29a   : > { %v10381_v3 = vpop.f32.mrb[8].mxu1  ;;  %v10368_v53 = vadd.f32 %v10367_v46, %v10366_v56 }
 0x29b   : > { %v10382_v59 = vpop.f32.mrb[9].mxu1 }
 0x29c   : > { %v10383_v41 = vadd.f32 %v10382_v59, %v10381_v3 }
 0x29e   : > { %v10384_v60 = vpop.f32.mrb[10].mxu1 }
 0x29f   : > { %v10385_v39 = vpop.f32.mrb[11].mxu1 }
 0x2a0   : > { %v10386_v42 = vadd.f32 %v10385_v39, %v10384_v60  ;;  %v12760_v60 = vld [vmem:[%s16721_s4 + $0x90] sm:$0xff]  }
 0x2a2   : > { %v10387_v0 = vpop.f32.mrb[12].mxu1 }
 0x2a3   : > { %v10388_v32 = vpop.f32.mrb[13].mxu1 }
 0x2a4   : > { %v13982_v63 = vadd.f32 %v10388_v32, %v10387_v0 }
 0x2a6   : > { %v10390_v4 = vpop.f32.mrb[14].mxu1 }
 0x2a7   : > { %v10391_v49 = vpop.f32.mrb[15].mxu1 }
 0x2a8   : > { %v10392_v54 = vadd.f32 %v10391_v49, %v10390_v4  ;;  %v12762_v4 = vld [vmem:[%s16721_s4 + $0x98] sm:$0xff]  }
 0x2aa   : > { %v10393_v25 = vpop.f32.mrb[16].mxu1 }
 0x2ab   : > { %v10394_v43 = vpop.f32.mrb[17].mxu1 }
 0x2ac   : > { %v13984_v12 = vadd.f32 %v10394_v43, %v10393_v25 }
 0x2ae   : > { %v10396_v48 = vpop.f32.mrb[18].mxu1 }
 0x2af   : > { %v10397_v5 = vpop.f32.mrb[19].mxu1 }
 0x2b0   : > { %v13986_v11 = vadd.f32 %v10397_v5, %v10396_v48 }
 0x2b2   : > { %v10399_v50 = vpop.f32.mrb[20].mxu1 }
 0x2b3   : > { %v10400_v18 = vpop.f32.mrb[21].mxu1 }
 0x2b4   : > { %v13988_v6 = vadd.f32 %v10400_v18, %v10399_v50 }
 0x2b6   : > { %v10402_v7 = vpop.f32.mrb[22].mxu1 }
 0x2b7   : > { %v10403_v27 = vpop.f32.mrb[23].mxu1 }
 0x2b8   : > { %v13990_v61 = vadd.f32 %v10403_v27, %v10402_v7 }
 0x2ba   : > { %v10954_v44 = vpop.f32.mrb[24].mxu1 }
 0x2bb   : > { %v2317_v37 = vadd.f32 %v10954_v44, %v10362_v62  ;;  %v2311_v51 = vpop.f32.mrb[25].mxu1 }
 0x2bc   : > { %v2312_v45 = vadd.f32 %v10359_v40, %v2311_v51 }
 0x2bd   : > { %2391 = vst.msk [vmem:[#allocation3 + $0x8] sm:$0xff] %vm1330_vm3, %v2317_v37 }
 0x2be   : > { %2390 = vst.msk [vmem:[#allocation3] sm:$0xff] %vm1330_vm3, %v2312_v45  ;;  %v10957_v22 = vpop.f32.mrb[26].mxu1 }
 0x2bf   : > { %v2321_v14 = vpop.f32.mrb[27].mxu1  ;;  %v2327_v17 = vadd.f32 %v10957_v22, %v10368_v53 }
 0x2c0   : > { %v2322_v10 = vadd.f32 %v10365_v24, %v2321_v14 }
 0x2c1   : > { %2393 = vst.msk [vmem:[#allocation3 + $0x18] sm:$0xff] %vm1330_vm3, %v2327_v17 }
 0x2c2   : > { %2392 = vst.msk [vmem:[#allocation3 + $0x10] sm:$0xff] %vm1330_vm3, %v2322_v10  ;;  %v10960_v16 = vpop.f32.mrb[28].mxu1 }
 0x2c3   : > { %v2337_v47 = vadd.f32 %v10960_v16, %v10374_v55  ;;  %v2331_v20 = vpop.f32.mrb[29].mxu1  ;;  %v12755_v55 = vld [vmem:[%s16721_s4] sm:$0xff]  }
 0x2c4   : > { %v2332_v21 = vadd.f32 %v10371_v1, %v2331_v20 }
 0x2c5   : > { %2395 = vst.msk [vmem:[#allocation3 + $0x28] sm:$0xff] %vm1330_vm3, %v2337_v47  ;;  %v2514_v9 = vld [vmem:[#allocation3 + $0x1] sm:$0xff] }
 0x2c6   : > { %2394 = vst.msk [vmem:[#allocation3 + $0x20] sm:$0xff] %vm1330_vm3, %v2332_v21  ;;  %v10963_v13 = vpop.f32.mrb[30].mxu1  ;;  %v2800_v36 = vld [vmem:[#allocation3 + $0x2] sm:$0xff] }
 0x2c7   : > { %v2347_v28 = vadd.f32 %v10963_v13, %v10380_v58  ;;  %v2341_v33 = vpop.f32.mrb[31].mxu1 }
 0x2c8   : > { %v2342_v34 = vadd.f32 %v10377_v26, %v2341_v33  ;;  %v12757_v26 = vld [vmem:[%s16721_s4 + $0x8] sm:$0xff]  }
 0x2c9   : > { %v2515_v35 = vld [vmem:[#allocation3 + $0x9] sm:$0xff]  ;;  %2397 = vst.msk [vmem:[#allocation3 + $0x38] sm:$0xff] %vm1330_vm3, %v2347_v28  ;;  %v2516_v56 = vld [vmem:[#allocation3 + $0x11] sm:$0xff] }
 0x2ca   : > { %v13998_v40 = vld [vmem:[#allocation3 + $0xa] sm:$0xff]  ;;  %v2527_v23 = vpack.c.bf16 %v2515_v35, %v2514_v9  ;;  %2396 = vst.msk [vmem:[#allocation3 + $0x30] sm:$0xff] %vm1330_vm3, %v2342_v34  ;;  %v10966_v1 = vpop.f32.mrb[32].mxu1  ;;  %v14028_v46 = vld [vmem:[#allocation3 + $0x12] sm:$0xff] }
 0x2cb   : > { %v2813_v57 = vpack.c.bf16 %v13998_v40, %v2800_v36  ;;  %v2357_v19 = vadd.f32 %v10966_v1, %v10386_v42  ;;  %v2351_v15 = vpop.f32.mrb[33].mxu1  ;;  %v2495_v35 = vld [vmem:[#allocation3 + $0x8] sm:$0xff]  ;;  %v2494_v36 = vld [vmem:[#allocation3] sm:$0xff] }
 0x2cc   : > { %10985 = vmatmul.mubr.msk.bf16.vlgmr.msra.gmra.mrb[40].mxu1 %vm1330_vm3, %v2527_v23  ;;  %v2352_v62 = vadd.f32 %v10383_v41, %v2351_v15  ;;  %v12759_v41 = vld [vmem:[%s16721_s4 + $0x10] sm:$0xff]   ;;  %v3132_v23 = vld [vmem:[#allocation3 + $0xb] sm:$0xff]  ;;  %v2507_v1 = vpack.c.bf16 %v2495_v35, %v2494_v36  ;;  %v2497_v15 = vld [vmem:[#allocation3 + $0x18] sm:$0xff] }
 0x2cd   : > { %11057 = vmatmul.mubr.msk.bf16.vlgmr.msra.gmra.mrb[100].mxu0 %vm1330_vm3, %v2813_v57  ;;  %10988 = vmatprep.mubr.msk.bf16.mxu1 %vm12991_vm7, %v12990_v31  ;;  %2399 = vst.msk [vmem:[#allocation3 + $0x48] sm:$0xff] %vm1330_vm3, %v2357_v19  ;;  %v2517_v30 = vld [vmem:[#allocation3 + $0x19] sm:$0xff]  ;;  %v2518_v48 = vld [vmem:[#allocation3 + $0x21] sm:$0xff]  ;;  %v12764_v19 = vld [vmem:[%s16721_s4 + $0xc0] sm:$0xff]  }
 0x2ce   : > { %11060 = vmatprep.mubr.msk.bf16.mxu0 %vm12991_vm7, %v12990_v31  ;;  %2398 = vst.msk [vmem:[#allocation3 + $0x40] sm:$0xff] %vm1330_vm3, %v2352_v62  ;;  %v10969_v8 = vpop.f32.mrb[34].mxu1  ;;  %11013 = vmatpush3.bf16.msra.mxu1 %v12755_v55  ;;  %v14023_v38 = vld [vmem:[#allocation3 + $0x1a] sm:$0xff]  ;;  %v2528_v3 = vpack.c.bf16 %v2517_v30, %v2516_v56  ;;  %v14064_v5 = vld [vmem:[#allocation3 + $0x22] sm:$0xff]  ;;  %v12771_v35 = vld [vmem:[%s16721_s4 + $0xa0] sm:$0xff]  }
 0x2cf   : > { %11121 = vmatpush3.bf16.msra.mxu0 %v12756_v2  ;;  %v2367_v24 = vadd.f32 %v10969_v8, %v10392_v54  ;;  %v2361_v52 = vpop.f32.mrb[35].mxu1  ;;  %11014 = vmatprep.subr.bf16.mxu1 %v12990_v31  ;;  %v2814_v53 = vpack.c.bf16 %v14023_v38, %v14028_v46  ;;  %v3133_v57 = vld [vmem:[#allocation3 + $0x13] sm:$0xff]  ;;  %v3135_v30 = vld [vmem:[#allocation3 + $0x23] sm:$0xff] }
 0x2d0   : > { %11122 = vmatprep.subr.bf16.mxu0 %v12990_v31  ;;  %v2362_v58 = vadd.f32 %v13982_v63, %v2361_v52  ;;  %v12761_v63 = vld [vmem:[%s16721_s4 + $0x18] sm:$0xff]   ;;  %v3145_v55 = vpack.c.bf16 %v3133_v57, %v3132_v23  ;;  %v12763_v2 = vld [vmem:[%s16721_s4 + $0x60] sm:$0xff]   ;;  %v12765_v62 = vld [vmem:[%s16721_s4 + $0x68] sm:$0xff]  }
 0x2d1   : > { %2401 = vst.msk [vmem:[#allocation3 + $0x58] sm:$0xff] %vm1330_vm3, %v2367_v24  ;;  %v2519_v49 = vld [vmem:[#allocation3 + $0x29] sm:$0xff]  ;;  %v2520_v7 = vld [vmem:[#allocation3 + $0x31] sm:$0xff]  ;;  %v12768_v56 = vld [vmem:[%s16721_s4 + $0xd0] sm:$0xff]  }
 0x2d2   : > { %2400 = vst.msk [vmem:[#allocation3 + $0x50] sm:$0xff] %vm1330_vm3, %v2362_v58  ;;  %v10972_v59 = vpop.f32.mrb[36].mxu1  ;;  %11015 = vmatpush3.bf16.msra.mxu1 %v12757_v26  ;;  %v14058_v54 = vld [vmem:[#allocation3 + $0x2a] sm:$0xff]  ;;  %v14080_v27 = vld [vmem:[#allocation3 + $0x32] sm:$0xff]  ;;  %v12767_v58 = vld [vmem:[%s16721_s4 + $0x70] sm:$0xff]  }
 0x2d3   : > { %11123 = vmatpush3.bf16.msra.mxu0 %v12758_v29  ;;  %v2377_v39 = vadd.f32 %v10972_v59, %v13986_v11  ;;  %v2371_v42 = vpop.f32.mrb[37].mxu1  ;;  %11016 = vmatprep.subr.bf16.mxu1 %v12990_v31  ;;  %v2529_v11 = vpack.c.bf16 %v2519_v49, %v2518_v48  ;;  %v2815_v50 = vpack.c.bf16 %v14058_v54, %v14064_v5  ;;  %v12766_v8 = vld [vmem:[%s16721_s4 + $0xc8] sm:$0xff]   ;;  %v2496_v26 = vld [vmem:[#allocation3 + $0x10] sm:$0xff]  ;;  %v12770_v59 = vld [vmem:[%s16721_s4 + $0xd8] sm:$0xff]  }
 0x2d4   : > { %11124 = vmatprep.subr.bf16.mxu0 %v12990_v31  ;;  %10989 = vmatmul.mubr.msk.bf16.gmra.mrb[44].mxu1 %vm1330_vm3, %v2528_v3  ;;  %v2372_v0 = vadd.f32 %v13984_v12, %v2371_v42  ;;  %v3134_v29 = vld [vmem:[#allocation3 + $0x1b] sm:$0xff]  ;;  %v2508_v24 = vpack.c.bf16 %v2497_v15, %v2496_v26  ;;  %v2499_v3 = vld [vmem:[#allocation3 + $0x28] sm:$0xff]  ;;  %v12772_v36 = vld [vmem:[%s16721_s4 + $0x100] sm:$0xff]  }
 0x2d5   : > { %11061 = vmatmul.mubr.msk.bf16.gmra.mrb[104].mxu0 %vm1330_vm3, %v2814_v53  ;;  %10992 = vmatprep.mubr.msk.bf16.mxu1 %vm12991_vm7, %v12990_v31  ;;  %2403 = vst.msk [vmem:[#allocation3 + $0x68] sm:$0xff] %vm1330_vm3, %v2377_v39  ;;  %v2521_v18 = vld [vmem:[#allocation3 + $0x39] sm:$0xff]  ;;  %v2522_v45 = vld [vmem:[#allocation3 + $0x41] sm:$0xff]  ;;  %v3146_v52 = vpack.c.bf16 %v3135_v30, %v3134_v29  ;;  %v14220_v23 = vld [vmem:[#allocation3 + $0x2c] sm:$0xff] }
 0x2d6   : > { %11064 = vmatprep.mubr.msk.bf16.mxu0 %vm12991_vm7, %v12990_v31  ;;  %2402 = vst.msk [vmem:[#allocation3 + $0x60] sm:$0xff] %vm1330_vm3, %v2372_v0  ;;  %v10975_v32 = vpop.f32.mrb[38].mxu1  ;;  %11017 = vmatpush3.bf16.msra.mxu1 %v12759_v41  ;;  %v14092_v22 = vld [vmem:[#allocation3 + $0x42] sm:$0xff]  ;;  %v3137_v39 = vld [vmem:[#allocation3 + $0x33] sm:$0xff] }
 0x2d7   : > { %11125 = vmatpush3.bf16.msra.mxu0 %v12760_v60  ;;  %v2387_v25 = vadd.f32 %v10975_v32, %v13990_v61  ;;  %v2381_v43 = vpop.f32.mrb[39].mxu1  ;;  %11018 = vmatprep.subr.bf16.mxu1 %v12990_v31  ;;  %v2530_v61 = vpack.c.bf16 %v2521_v18, %v2520_v7  ;;  %v12769_v53 = vld [vmem:[%s16721_s4 + $0x78] sm:$0xff]   ;;  %v2498_v41 = vld [vmem:[#allocation3 + $0x20] sm:$0xff]  ;;  %v2501_v32 = vld [vmem:[#allocation3 + $0x38] sm:$0xff] }
 0x2d8   : > { %11126 = vmatprep.subr.bf16.mxu0 %v12990_v31  ;;  %v2382_v12 = vadd.f32 %v13988_v6, %v2381_v43  ;;  %v14078_v6 = vld [vmem:[#allocation3 + $0x3a] sm:$0xff]  ;;  %v3136_v60 = vld [vmem:[#allocation3 + $0x2b] sm:$0xff]  ;;  %v2509_v42 = vpack.c.bf16 %v2499_v3, %v2498_v41  ;;  %v3139_v49 = vld [vmem:[#allocation3 + $0x43] sm:$0xff] }
 0x2d9   : > { %2405 = vst.msk [vmem:[#allocation3 + $0x78] sm:$0x3] %vm1376_vm4, %v2387_v25  ;;  %v2816_v44 = vpack.c.bf16 %v14078_v6, %v14080_v27  ;;  %v2523_v37 = vld [vmem:[#allocation3 + $0x49] sm:$0xff]  ;;  %v2524_v47 = vld [vmem:[#allocation3 + $0x51] sm:$0xff]  ;;  %v3147_v0 = vpack.c.bf16 %v3137_v39, %v3136_v60  ;;  %v2502_v48 = vld [vmem:[#allocation3 + $0x40] sm:$0xff]  ;;  %v2982_v29 = vpack.c.bf16 %v14092_v22, %v14078_v6 }
 0x2da   : > { %2404 = vst.msk [vmem:[#allocation3 + $0x70] sm:$0xff] %vm1330_vm3, %v2382_v12  ;;  %11019 = vmatpush3.bf16.msra.mxu1 %v12761_v63  ;;  %v14090_v51 = vld [vmem:[#allocation3 + $0x4a] sm:$0xff]  ;;  %v2531_v14 = vpack.c.bf16 %v2523_v37, %v2522_v45  ;;  %v14104_v20 = vld [vmem:[#allocation3 + $0x52] sm:$0xff]  ;;  %v14250_v15 = vld [vmem:[#allocation3 + $0x3c] sm:$0xff] }
 0x2db   : > { %11127 = vmatpush3.bf16.msra.mxu0 %v12762_v4  ;;  %11084 = vmatprep.subr.bf16.mxu1 %v12990_v31  ;;  %v2817_v17 = vpack.c.bf16 %v14090_v51, %v14092_v22  ;;  %v2500_v63 = vld [vmem:[#allocation3 + $0x30] sm:$0xff]  ;;  %v3138_v4 = vld [vmem:[#allocation3 + $0x3b] sm:$0xff]  ;;  %v2503_v12 = vld [vmem:[#allocation3 + $0x48] sm:$0xff]  ;;  %v2983_v6 = vpack.c.bf16 %v14104_v20, %v14090_v51 }
 0x2dc   : > { %11192 = vmatprep.subr.bf16.mxu0 %v12990_v31  ;;  %10993 = vmatmul.mubr.msk.bf16.gmra.mrb[48].mxu1 %vm1330_vm3, %v2529_v11  ;;  %v2510_v25 = vpack.c.bf16 %v2501_v32, %v2500_v63  ;;  %v3148_v43 = vpack.c.bf16 %v3139_v49, %v3138_v4  ;;  %v3140_v11 = vld [vmem:[#allocation3 + $0x4b] sm:$0xff]  ;;  %v2511_v18 = vpack.c.bf16 %v2503_v12, %v2502_v48  ;;  %v3797_v39 = vld [vmem:[#allocation3 + $0x1e] sm:$0xff] }
 0x2dd   : > { %11065 = vmatmul.mubr.msk.bf16.gmra.mrb[108].mxu0 %vm1330_vm3, %v2815_v50  ;;  %10996 = vmatprep.mubr.msk.bf16.mxu1 %vm12991_vm7, %v12990_v31  ;;  %v2525_v10 = vld [vmem:[#allocation3 + $0x59] sm:$0xff]  ;;  %v2526_v28 = vld [vmem:[#allocation3 + $0x61] sm:$0xf]  ;;  %v12779_v63 = vld [vmem:[%s16721_s4 + $0xe0] sm:$0xff]  }
 0x2de   : > { %11068 = vmatprep.mubr.msk.bf16.mxu0 %vm12991_vm7, %v12990_v31  ;;  %v14102_v16 = vld [vmem:[#allocation3 + $0x5a] sm:$0xff]  ;;  %v2532_v21 = vpack.c.bf16 %v2525_v10, %v2524_v47  ;;  %v2812_v33 = vld [vmem:[#allocation3 + $0x62] sm:$0xf]  ;;  %v2533_v9 = vpack.c.bf16 %v2526_v28, %v2526_v28  ;;  %v3144_v47 = vld [vmem:[#allocation3 + $0x6b] sm:$0xf] }
 0x2df   : > { %v2818_v13 = vpack.c.bf16 %v14102_v16, %v14104_v20  ;;  %v2819_v34 = vpack.c.bf16 %v2812_v33, %v2812_v33  ;;  %v3141_v50 = vld [vmem:[#allocation3 + $0x53] sm:$0xff]  ;;  %v3142_v37 = vld [vmem:[#allocation3 + $0x5b] sm:$0xff]  ;;  %v3143_v45 = vld [vmem:[#allocation3 + $0x63] sm:$0xff] }
 0x2e0   : > { %v3149_v7 = vpack.c.bf16 %v3141_v50, %v3140_v11  ;;  %v2506_v10 = vld [vmem:[#allocation3 + $0x60] sm:$0xf]  ;;  %v14196_v33 = vld [vmem:[#allocation3 + $0x14] sm:$0xff]  ;;  %v14224_v57 = vld [vmem:[#allocation3 + $0x24] sm:$0xff] }
 0x2e1   : > { %v14194_v28 = vld [vmem:[#allocation3 + $0x1c] sm:$0xff]  ;;  %v14296_v3 = vld [vmem:[#allocation3 + $0x64] sm:$0xff]  ;;  %v3799_v49 = vld [vmem:[#allocation3 + $0x2e] sm:$0xff] }
 0x2e2   : > { %v2978_v20 = vld [vmem:[#allocation3 + $0x6a] sm:$0xf]  ;;  %v12780_v4 = vld [vmem:[%s16721_s4 + $0xe8] sm:$0xff]   ;;  %v12781_v48 = vld [vmem:[%s16721_s4 + $0xf0] sm:$0xff]  }
 0x2e3   : > { %v2985_v41 = vpack.c.bf16 %v2978_v20, %v2978_v20  ;;  %v12782_v11 = vld [vmem:[%s16721_s4 + $0xf8] sm:$0xff]   ;;  %v3801_v50 = vld [vmem:[#allocation3 + $0x3e] sm:$0xff] }
 0x2e4   : > { %10997 = vmatmul.mubr.msk.bf16.gmra.mrb[52].mxu1 %vm1330_vm3, %v2530_v61  ;;  %v2505_v61 = vld [vmem:[#allocation3 + $0x58] sm:$0xff]  ;;  %v3632_v20 = vld [vmem:[#allocation3 + $0x25] sm:$0xff] }
 0x2e5   : > { %11069 = vmatmul.mubr.msk.bf16.gmra.mrb[112].mxu0 %vm1330_vm3, %v2816_v44  ;;  %11000 = vmatprep.mubr.msk.bf16.mxu1 %vm12991_vm7, %v12990_v31  ;;  %v2504_v44 = vld [vmem:[#allocation3 + $0x50] sm:$0xff] }
 0x2e6   : > { %11072 = vmatprep.mubr.msk.bf16.mxu0 %vm12991_vm7, %v12990_v31 }
 0x2ec   : > { %11001 = vmatmul.mubr.msk.bf16.gmra.mrb[56].mxu1 %vm1330_vm3, %v2531_v14  ;;  %v2512_v14 = vpack.c.bf16 %v2505_v61, %v2504_v44  ;;  %v3803_v44 = vld [vmem:[#allocation3 + $0x4e] sm:$0xff] }
 0x2ed   : > { %11073 = vmatmul.mubr.msk.bf16.gmra.mrb[116].mxu0 %vm1330_vm3, %v2817_v17  ;;  %11004 = vmatprep.mubr.msk.bf16.mxu1 %vm12991_vm7, %v12990_v31  ;;  %v3150_v17 = vpack.c.bf16 %v3143_v45, %v3142_v37  ;;  %v3802_v37 = vld [vmem:[#allocation3 + $0x46] sm:$0xff] }
 0x2ee   : > { %11076 = vmatprep.mubr.msk.bf16.mxu0 %vm12991_vm7, %v12990_v31 }
 0x2f4   : > { %11005 = vmatmul.mubr.msk.bf16.gmra.mrb[60].mxu1 %vm1330_vm3, %v2532_v21  ;;  %v2513_v21 = vpack.c.bf16 %v2506_v10, %v2506_v10  ;;  %v3804_v10 = vld [vmem:[#allocation3 + $0x56] sm:$0xff] }
 0x2f5   : > { %11077 = vmatmul.mubr.msk.bf16.gmra.mrb[120].mxu0 %vm1330_vm3, %v2818_v13  ;;  %11008 = vmatprep.mubr.msk.bf16.mxu1 %vm12991_vm7, %v12990_v31  ;;  %v3151_v13 = vpack.c.bf16 %v3144_v47, %v3144_v47 }
 0x2f6   : > { %11080 = vmatprep.mubr.msk.bf16.mxu0 %vm12991_vm7, %v12990_v31 }
 0x2fc   : > { %11009 = vmatmul.mubr.msk.bf16.gmra.mrb[64].mxu1 %vm1330_vm3, %v2533_v9  ;;  %v2979_v9 = vpack.c.bf16 %v14028_v46, %v13998_v40  ;;  %v12773_v40 = vld [vmem:[%s16721_s4 + $0xa8] sm:$0xff]  }
 0x2fd   : > { %11081 = vmatmul.mubr.msk.bf16.gmra.mrb[124].mxu0 %vm1330_vm3, %v2819_v34  ;;  %11020 = vmatprep.mubr.msk.bf16.mxu1 %vm12991_vm7, %v12990_v31  ;;  %v3477_v34 = vpack.c.bf16 %v14194_v28, %v14196_v33  ;;  %v12774_v46 = vld [vmem:[%s16721_s4 + $0x108] sm:$0xff]  }
 0x2fe   : > { %11128 = vmatprep.mubr.msk.bf16.mxu0 %vm12991_vm7, %v12990_v31 }
 0x304   : > { %11021 = vmatmul.mubr.msk.bf16.vlgmr.msra.gmra.mrb[68].mxu1 %vm1330_vm3, %v2507_v1  ;;  %v2980_v1 = vpack.c.bf16 %v14064_v5, %v14023_v38  ;;  %v12777_v38 = vld [vmem:[%s16721_s4 + $0xb8] sm:$0xff]  }
 0x305   : > { %11129 = vmatmul.mubr.msk.bf16.vlgmr.msra.gmra.mrb[128].mxu0 %vm1330_vm3, %v3145_v55  ;;  %11024 = vmatprep.mubr.msk.bf16.mxu1 %vm12991_vm7, %v12990_v31  ;;  %v3478_v55 = vpack.c.bf16 %v14220_v23, %v14224_v57  ;;  %v12778_v5 = vld [vmem:[%s16721_s4 + $0x118] sm:$0xff]  }
 0x306   : > { %11132 = vmatprep.mubr.msk.bf16.mxu0 %vm12991_vm7, %v12990_v31  ;;  %11085 = vmatpush3.bf16.msra.mxu1 %v12763_v2  ;;  %v12775_v2 = vld [vmem:[%s16721_s4 + $0xb0] sm:$0xff]  }
 0x307   : > { %11193 = vmatpush3.bf16.msra.mxu0 %v12764_v19  ;;  %11086 = vmatprep.subr.bf16.mxu1 %v12990_v31  ;;  %v12776_v19 = vld [vmem:[%s16721_s4 + $0x110] sm:$0xff]  }
 0x308   : > { %11194 = vmatprep.subr.bf16.mxu0 %v12990_v31 }
 0x30a   : > { %11087 = vmatpush3.bf16.msra.mxu1 %v12765_v62  ;;  %v14254_v62 = vld [vmem:[#allocation3 + $0x34] sm:$0xff] }
 0x30b   : > { %11195 = vmatpush3.bf16.msra.mxu0 %v12766_v8  ;;  %11088 = vmatprep.subr.bf16.mxu1 %v12990_v31  ;;  %v2981_v8 = vpack.c.bf16 %v14080_v27, %v14058_v54  ;;  %v3479_v26 = vpack.c.bf16 %v14250_v15, %v14254_v62  ;;  %v14268_v54 = vld [vmem:[#allocation3 + $0x4c] sm:$0xff]  ;;  %v14270_v27 = vld [vmem:[#allocation3 + $0x44] sm:$0xff] }
 0x30c   : > { %11196 = vmatprep.subr.bf16.mxu0 %v12990_v31  ;;  %11025 = vmatmul.mubr.msk.bf16.gmra.mrb[72].mxu1 %vm1330_vm3, %v2508_v24  ;;  %v3480_v30 = vpack.c.bf16 %v14268_v54, %v14270_v27  ;;  %v14282_v24 = vld [vmem:[#allocation3 + $0x5c] sm:$0xff]  ;;  %v3314_v45 = vpack.c.bf16 %v14270_v27, %v14250_v15 }
 0x30d   : > { %11133 = vmatmul.mubr.msk.bf16.gmra.mrb[132].mxu0 %vm1330_vm3, %v3146_v52  ;;  %11028 = vmatprep.mubr.msk.bf16.mxu1 %vm12991_vm7, %v12990_v31  ;;  %v14284_v52 = vld [vmem:[#allocation3 + $0x54] sm:$0xff] }
 0x30e   : > { %11136 = vmatprep.mubr.msk.bf16.mxu0 %vm12991_vm7, %v12990_v31  ;;  %11089 = vmatpush3.bf16.msra.mxu1 %v12767_v58  ;;  %v3481_v22 = vpack.c.bf16 %v14282_v24, %v14284_v52  ;;  %v2977_v58 = vld [vmem:[#allocation3 + $0x62] sm:$0xff]  ;;  %v3315_v47 = vpack.c.bf16 %v14284_v52, %v14268_v54  ;;  %v3630_v54 = vld [vmem:[#allocation3 + $0x15] sm:$0xff] }
 0x30f   : > { %11197 = vmatpush3.bf16.msra.mxu0 %v12768_v56  ;;  %11090 = vmatprep.subr.bf16.mxu1 %v12990_v31  ;;  %v3475_v56 = vld [vmem:[#allocation3 + $0x6c] sm:$0xff] }
 0x310   : > { %11198 = vmatprep.subr.bf16.mxu0 %v12990_v31  ;;  %v3482_v51 = vpack.c.bf16 %v3475_v56, %v14296_v3 }
 0x312   : > { %11091 = vmatpush3.bf16.msra.mxu1 %v12769_v53  ;;  %v2984_v53 = vpack.c.bf16 %v2977_v58, %v14102_v16  ;;  %v3298_v16 = vld [vmem:[#allocation3 + $0xc] sm:$0xff] }
 0x313   : > { %11199 = vmatpush3.bf16.msra.mxu0 %v12770_v59  ;;  %11156 = vmatprep.subr.bf16.mxu1 %v12990_v31  ;;  %v3476_v59 = vld [vmem:[#allocation3 + $0x74] sm:$0xf] }
 0x314   : > { %11264 = vmatprep.subr.bf16.mxu0 %v12990_v31  ;;  %11029 = vmatmul.mubr.msk.bf16.gmra.mrb[76].mxu1 %vm1330_vm3, %v2509_v42  ;;  %v3483_v60 = vpack.c.bf16 %v3476_v59, %v3476_v59  ;;  %v3796_v42 = vld [vmem:[#allocation3 + $0x16] sm:$0xff]  ;;  %v3633_v58 = vld [vmem:[#allocation3 + $0x2d] sm:$0xff] }
 0x315   : > { %11137 = vmatmul.mubr.msk.bf16.gmra.mrb[136].mxu0 %vm1330_vm3, %v3147_v0  ;;  %11032 = vmatprep.mubr.msk.bf16.mxu1 %vm12991_vm7, %v12990_v31  ;;  %v3311_v0 = vpack.c.bf16 %v14196_v33, %v3298_v16  ;;  %v3809_v32 = vpack.c.bf16 %v3797_v39, %v3796_v42  ;;  %v3316_v33 = vpack.c.bf16 %v14296_v3, %v14282_v24  ;;  %v3635_v42 = vld [vmem:[#allocation3 + $0x3d] sm:$0xff] }
 0x316   : > { %11140 = vmatprep.mubr.msk.bf16.mxu0 %vm12991_vm7, %v12990_v31 }
 0x31c   : > { %11033 = vmatmul.mubr.msk.bf16.gmra.mrb[80].mxu1 %vm1330_vm3, %v2510_v25  ;;  %v3798_v25 = vld [vmem:[#allocation3 + $0x26] sm:$0xff] }
 0x31d   : > { %11141 = vmatmul.mubr.msk.bf16.gmra.mrb[140].mxu0 %vm1330_vm3, %v3148_v43  ;;  %11036 = vmatprep.mubr.msk.bf16.mxu1 %vm12991_vm7, %v12990_v31  ;;  %v3312_v43 = vpack.c.bf16 %v14224_v57, %v14194_v28  ;;  %v3810_v12 = vpack.c.bf16 %v3799_v49, %v3798_v25  ;;  %v3806_v28 = vld [vmem:[#allocation3 + $0x66] sm:$0xff]  ;;  %v3634_v49 = vld [vmem:[#allocation3 + $0x35] sm:$0xff] }
 0x31e   : > { %11144 = vmatprep.mubr.msk.bf16.mxu0 %vm12991_vm7, %v12990_v31 }
 0x324   : > { %11037 = vmatmul.mubr.msk.bf16.gmra.mrb[84].mxu1 %vm1330_vm3, %v2511_v18  ;;  %v3800_v18 = vld [vmem:[#allocation3 + $0x36] sm:$0xff] }
 0x325   : > { %11145 = vmatmul.mubr.msk.bf16.gmra.mrb[144].mxu0 %vm1330_vm3, %v3149_v7  ;;  %11040 = vmatprep.mubr.msk.bf16.mxu1 %vm12991_vm7, %v12990_v31  ;;  %v3313_v7 = vpack.c.bf16 %v14254_v62, %v14220_v23  ;;  %v3811_v61 = vpack.c.bf16 %v3801_v50, %v3800_v18  ;;  %v3637_v50 = vld [vmem:[#allocation3 + $0x4d] sm:$0xff] }
 0x326   : > { %11148 = vmatprep.mubr.msk.bf16.mxu0 %vm12991_vm7, %v12990_v31 }
 0x32c   : > { %11041 = vmatmul.mubr.msk.bf16.gmra.mrb[88].mxu1 %vm1330_vm3, %v2512_v14  ;;  %v3812_v14 = vpack.c.bf16 %v3803_v44, %v3802_v37  ;;  %v3636_v37 = vld [vmem:[#allocation3 + $0x45] sm:$0xff] }
 0x32d   : > { %11149 = vmatmul.mubr.msk.bf16.gmra.mrb[148].mxu0 %vm1330_vm3, %v3150_v17  ;;  %11044 = vmatprep.mubr.msk.bf16.mxu1 %vm12991_vm7, %v12990_v31  ;;  %v3805_v17 = vld [vmem:[#allocation3 + $0x5e] sm:$0xff] }
 0x32e   : > { %11152 = vmatprep.mubr.msk.bf16.mxu0 %vm12991_vm7, %v12990_v31 }
 0x334   : > { %11045 = vmatmul.mubr.msk.bf16.gmra.mrb[92].mxu1 %vm1330_vm3, %v2513_v21  ;;  %v3813_v21 = vpack.c.bf16 %v3805_v17, %v3804_v10  ;;  %v3646_v17 = vpack.c.bf16 %v3637_v50, %v3636_v37 }
 0x335   : > { %11153 = vmatmul.mubr.msk.bf16.gmra.mrb[152].mxu0 %vm1330_vm3, %v3151_v13  ;;  %11092 = vmatprep.mubr.msk.bf16.mxu1 %vm12991_vm7, %v12990_v31  ;;  %v3807_v13 = vld [vmem:[#allocation3 + $0x6e] sm:$0xff] }
 0x336   : > { %11200 = vmatprep.mubr.msk.bf16.mxu0 %vm12991_vm7, %v12990_v31 }
 0x33c   : > { %11093 = vmatmul.mubr.msk.bf16.vlgmr.msra.gmra.mrb[96].mxu1 %vm1330_vm3, %v2979_v9  ;;  %v3814_v9 = vpack.c.bf16 %v3807_v13, %v3806_v28 }
 0x33d   : > { %11201 = vmatmul.mubr.msk.bf16.vlgmr.msra.gmra.mrb[156].mxu0 %vm1330_vm3, %v3477_v34  ;;  %11096 = vmatprep.mubr.msk.bf16.mxu1 %vm12991_vm7, %v12990_v31  ;;  %v3310_v34 = vld [vmem:[#allocation3 + $0x6c] sm:$0xf] }
 0x33e   : > { %11204 = vmatprep.mubr.msk.bf16.mxu0 %vm12991_vm7, %v12990_v31  ;;  %11157 = vmatpush3.bf16.msra.mxu1 %v12771_v35  ;;  %v3808_v35 = vld [vmem:[#allocation3 + $0x76] sm:$0xf] }
 0x33f   : > { %11265 = vmatpush3.bf16.msra.mxu0 %v12772_v36  ;;  %11158 = vmatprep.subr.bf16.mxu1 %v12990_v31 }
 0x340   : > { %11266 = vmatprep.subr.bf16.mxu0 %v12990_v31 }
 0x342   : > { %11159 = vmatpush3.bf16.msra.mxu1 %v12773_v40 }
 0x343   : > { %11267 = vmatpush3.bf16.msra.mxu0 %v12774_v46  ;;  %11160 = vmatprep.subr.bf16.mxu1 %v12990_v31 }
 0x344   : > { %11268 = vmatprep.subr.bf16.mxu0 %v12990_v31  ;;  %11097 = vmatmul.mubr.msk.bf16.gmra.mrb[100].mxu1 %vm1330_vm3, %v2980_v1 }
 0x345   : > { %11205 = vmatmul.mubr.msk.bf16.gmra.mrb[160].mxu0 %vm1330_vm3, %v3478_v55  ;;  %11100 = vmatprep.mubr.msk.bf16.mxu1 %vm12991_vm7, %v12990_v31  ;;  %v3317_v55 = vpack.c.bf16 %v3310_v34, %v3310_v34  ;;  %v3638_v34 = vld [vmem:[#allocation3 + $0x55] sm:$0xff] }
 0x346   : > { %11208 = vmatprep.mubr.msk.bf16.mxu0 %vm12991_vm7, %v12990_v31  ;;  %11161 = vmatpush3.bf16.msra.mxu1 %v12775_v2  ;;  %v3815_v2 = vpack.c.bf16 %v3808_v35, %v3808_v35 }
 0x347   : > { %11269 = vmatpush3.bf16.msra.mxu0 %v12776_v19  ;;  %11162 = vmatprep.subr.bf16.mxu1 %v12990_v31 }
 0x348   : > { %11270 = vmatprep.subr.bf16.mxu0 %v12990_v31 }
 0x34a   : > { %11163 = vmatpush3.bf16.msra.mxu1 %v12777_v38 }
 0x34b   : > { %11271 = vmatpush3.bf16.msra.mxu0 %v12778_v5  ;;  %11228 = vmatprep.subr.bf16.mxu1 %v12990_v31  ;;  %v3631_v5 = vld [vmem:[#allocation3 + $0x1d] sm:$0xff] }
 0x34c   : > { %11386 = vmatprep.subr.bf16.mxu0 %v12990_v31  ;;  %11101 = vmatmul.mubr.msk.bf16.gmra.mrb[104].mxu1 %vm1330_vm3, %v2981_v8 }
 0x34d   : > { %11209 = vmatmul.mubr.msk.bf16.gmra.mrb[164].mxu0 %vm1330_vm3, %v3479_v26  ;;  %11104 = vmatprep.mubr.msk.bf16.mxu1 %vm12991_vm7, %v12990_v31 }
 0x34e   : > { %11212 = vmatprep.mubr.msk.bf16.mxu0 %vm12991_vm7, %v12990_v31 }
 0x354   : > { %11105 = vmatmul.mubr.msk.bf16.gmra.mrb[108].mxu1 %vm1330_vm3, %v2982_v29 }
 0x355   : > { %11213 = vmatmul.mubr.msk.bf16.gmra.mrb[168].mxu0 %vm1330_vm3, %v3480_v30  ;;  %11108 = vmatprep.mubr.msk.bf16.mxu1 %vm12991_vm7, %v12990_v31  ;;  %v3643_v30 = vpack.c.bf16 %v3631_v5, %v3630_v54  ;;  %v3640_v54 = vld [vmem:[#allocation3 + $0x65] sm:$0xff] }
 0x356   : > { %11216 = vmatprep.mubr.msk.bf16.mxu0 %vm12991_vm7, %v12990_v31 }
 0x35c   : > { %11109 = vmatmul.mubr.msk.bf16.gmra.mrb[112].mxu1 %vm1330_vm3, %v2983_v6 }
 0x35d   : > { %11217 = vmatmul.mubr.msk.bf16.gmra.mrb[172].mxu0 %vm1330_vm3, %v3481_v22  ;;  %11112 = vmatprep.mubr.msk.bf16.mxu1 %vm12991_vm7, %v12990_v31 }
 0x35e   : > { %11220 = vmatprep.mubr.msk.bf16.mxu0 %vm12991_vm7, %v12990_v31 }
 0x364   : > { %11113 = vmatmul.mubr.msk.bf16.gmra.mrb[116].mxu1 %vm1330_vm3, %v2984_v53 }
 0x365   : > { %11221 = vmatmul.mubr.msk.bf16.gmra.mrb[176].mxu0 %vm1330_vm3, %v3482_v51  ;;  %11116 = vmatprep.mubr.msk.bf16.mxu1 %vm12991_vm7, %v12990_v31 }
 0x366   : > { %11224 = vmatprep.mubr.msk.bf16.mxu0 %vm12991_vm7, %v12990_v31 }
 0x36c   : > { %11117 = vmatmul.mubr.msk.bf16.gmra.mrb[120].mxu1 %vm1330_vm3, %v2985_v41 }
 0x36d   : > { %11225 = vmatmul.mubr.msk.bf16.gmra.mrb[180].mxu0 %vm1330_vm3, %v3483_v60  ;;  %11164 = vmatprep.mubr.msk.bf16.mxu1 %vm12991_vm7, %v12990_v31  ;;  %v3644_v60 = vpack.c.bf16 %v3633_v58, %v3632_v20 }
 0x36e   : > { %11272 = vmatprep.mubr.msk.bf16.mxu0 %vm12991_vm7, %v12990_v31 }
 0x374   : > { %11165 = vmatmul.mubr.msk.bf16.vlgmr.msra.gmra.mrb[124].mxu1 %vm1330_vm3, %v3311_v0 }
 0x375   : > { %11273 = vmatmul.mubr.msk.bf16.vlgmr.msra.gmra.mrb[184].mxu0 %vm1330_vm3, %v3809_v32  ;;  %11168 = vmatprep.mubr.msk.bf16.mxu1 %vm12991_vm7, %v12990_v31 }
 0x376   : > { %11276 = vmatprep.mubr.msk.bf16.mxu0 %vm12991_vm7, %v12990_v31  ;;  %11229 = vmatpush3.bf16.msra.mxu1 %v12779_v63 }
 0x377   : > { %11230 = vmatprep.subr.bf16.mxu1 %v12990_v31 }
 0x37a   : > { %11231 = vmatpush3.bf16.msra.mxu1 %v12780_v4 }
 0x37b   : > { %11232 = vmatprep.subr.bf16.mxu1 %v12990_v31 }
 0x37c   : > { %11169 = vmatmul.mubr.msk.bf16.gmra.mrb[128].mxu1 %vm1330_vm3, %v3312_v43 }
 0x37d   : > { %11277 = vmatmul.mubr.msk.bf16.gmra.mrb[188].mxu0 %vm1330_vm3, %v3810_v12  ;;  %11172 = vmatprep.mubr.msk.bf16.mxu1 %vm12991_vm7, %v12990_v31  ;;  %v3645_v12 = vpack.c.bf16 %v3635_v42, %v3634_v49 }
 0x37e   : > { %11280 = vmatprep.mubr.msk.bf16.mxu0 %vm12991_vm7, %v12990_v31  ;;  %11233 = vmatpush3.bf16.msra.mxu1 %v12781_v48 }
 0x37f   : > { %11234 = vmatprep.subr.bf16.mxu1 %v12990_v31 }
 0x382   : > { %11235 = vmatpush3.bf16.msra.mxu1 %v12782_v11 }
 0x384   : > { %11173 = vmatmul.mubr.msk.bf16.gmra.mrb[132].mxu1 %vm1330_vm3, %v3313_v7 }
 0x385   : > { %11281 = vmatmul.mubr.msk.bf16.gmra.mrb[192].mxu0 %vm1330_vm3, %v3811_v61  ;;  %11176 = vmatprep.mubr.msk.bf16.mxu1 %vm12991_vm7, %v12990_v31 }
 0x386   : > { %11284 = vmatprep.mubr.msk.bf16.mxu0 %vm12991_vm7, %v12990_v31 }
 0x38c   : > { %11177 = vmatmul.mubr.msk.bf16.gmra.mrb[136].mxu1 %vm1330_vm3, %v3314_v45 }
 0x38d   : > { %11285 = vmatmul.mubr.msk.bf16.gmra.mrb[196].mxu0 %vm1330_vm3, %v3812_v14  ;;  %11180 = vmatprep.mubr.msk.bf16.mxu1 %vm12991_vm7, %v12990_v31 }
 0x38e   : > { %11288 = vmatprep.mubr.msk.bf16.mxu0 %vm12991_vm7, %v12990_v31 }
 0x394   : > { %11181 = vmatmul.mubr.msk.bf16.gmra.mrb[140].mxu1 %vm1330_vm3, %v3315_v47 }
 0x395   : > { %11289 = vmatmul.mubr.msk.bf16.gmra.mrb[200].mxu0 %vm1330_vm3, %v3813_v21  ;;  %11184 = vmatprep.mubr.msk.bf16.mxu1 %vm12991_vm7, %v12990_v31  ;;  %v3639_v21 = vld [vmem:[#allocation3 + $0x5d] sm:$0xff] }
 0x396   : > { %11292 = vmatprep.mubr.msk.bf16.mxu0 %vm12991_vm7, %v12990_v31 }
 0x39c   : > { %11185 = vmatmul.mubr.msk.bf16.gmra.mrb[144].mxu1 %vm1330_vm3, %v3316_v33 }
 0x39d   : > { %11293 = vmatmul.mubr.msk.bf16.gmra.mrb[204].mxu0 %vm1330_vm3, %v3814_v9  ;;  %11188 = vmatprep.mubr.msk.bf16.mxu1 %vm12991_vm7, %v12990_v31 }
 0x39e   : > { %11296 = vmatprep.mubr.msk.bf16.mxu0 %vm12991_vm7, %v12990_v31 }
 0x39f   : > { %v14374_v36 = vpop.f32.mrb[40].mxu1 }
 0x3a0   : > { %v14376_v40 = vpop.f32.mrb[100].mxu0  ;;  %v10986_v46 = vpop.f32.mrb[41].mxu1 }
 0x3a1   : > { %v11058_v23 = vpop.f32.mrb[101].mxu0  ;;  %v14378_v57 = vpop.f32.mrb[42].mxu1 }
 0x3a2   : > { %v14380_v1 = vpop.f32.mrb[102].mxu0  ;;  %v10987_v19 = vpop.f32.mrb[43].mxu1  ;;  %v3647_v23 = vpack.c.bf16 %v3639_v21, %v3638_v34 }
 0x3a3   : > { %v11059_v38 = vpop.f32.mrb[103].mxu0  ;;  %v3641_v19 = vld [vmem:[#allocation3 + $0x6d] sm:$0xff] }
 0x3a4   : > { %11189 = vmatmul.mubr.msk.bf16.gmra.mrb[148].mxu1 %vm1330_vm3, %v3317_v55 }
 0x3a5   : > { %11297 = vmatmul.mubr.msk.bf16.gmra.mrb[208].mxu0 %vm1330_vm3, %v3815_v2  ;;  %11236 = vmatprep.mubr.msk.bf16.mxu1 %vm12991_vm7, %v12990_v31 }
 0x3a6   : > { %11394 = vmatprep.mubr.msk.bf16.mxu0 %vm12991_vm7, %v12990_v31 }
 0x3a7   : > { %v14388_v15 = vpop.f32.mrb[44].mxu1 }
 0x3a8   : > { %v14390_v62 = vpop.f32.mrb[104].mxu0  ;;  %v10990_v8 = vpop.f32.mrb[45].mxu1 }
 0x3a9   : > { %v11062_v26 = vpop.f32.mrb[105].mxu0  ;;  %v14392_v27 = vpop.f32.mrb[46].mxu1 }
 0x3aa   : > { %v14394_v29 = vpop.f32.mrb[106].mxu0  ;;  %v10991_v24 = vpop.f32.mrb[47].mxu1 }
 0x3ab   : > { %v11063_v52 = vpop.f32.mrb[107].mxu0 }
 0x3ac   : > { %11237 = vmatmul.mubr.msk.bf16.vlgmr.msra.gmra.mrb[152].mxu1 %vm1330_vm3, %v3643_v30  ;;  %v3648_v52 = vpack.c.bf16 %v3641_v19, %v3640_v54 }
 0x3ad   : > { %11240 = vmatprep.mubr.msk.bf16.mxu1 %vm12991_vm7, %v12990_v31 }
 0x3af   : > { %v14399_v6 = vpop.f32.mrb[48].mxu1 }
 0x3b0   : > { %v14401_v22 = vpop.f32.mrb[108].mxu0  ;;  %v10994_v56 = vpop.f32.mrb[49].mxu1 }
 0x3b1   : > { %v11066_v3 = vpop.f32.mrb[109].mxu0  ;;  %v14403_v53 = vpop.f32.mrb[50].mxu1 }
 0x3b2   : > { %v14405_v51 = vpop.f32.mrb[110].mxu0  ;;  %v10995_v59 = vpop.f32.mrb[51].mxu1  ;;  %v3642_v3 = vld [vmem:[#allocation3 + $0x75] sm:$0xf] }
 0x3b3   : > { %v11067_v41 = vpop.f32.mrb[111].mxu0 }
 0x3b4   : > { %11241 = vmatmul.mubr.msk.bf16.gmra.mrb[156].mxu1 %vm1330_vm3, %v3644_v60 }
 0x3b5   : > { %11244 = vmatprep.mubr.msk.bf16.mxu1 %vm12991_vm7, %v12990_v31 }
 0x3b7   : > { %v14410_v16 = vpop.f32.mrb[52].mxu1 }
 0x3b8   : > { %v14412_v39 = vpop.f32.mrb[112].mxu0  ;;  %v10998_v0 = vpop.f32.mrb[53].mxu1 }
 0x3b9   : > { %v11070_v32 = vpop.f32.mrb[113].mxu0  ;;  %v14414_v63 = vpop.f32.mrb[54].mxu1 }
 0x3ba   : > { %v14416_v4 = vpop.f32.mrb[114].mxu0  ;;  %v10999_v25 = vpop.f32.mrb[55].mxu1  ;;  %v3649_v32 = vpack.c.bf16 %v3642_v3, %v3642_v3 }
 0x3bb   : > { %v11071_v43 = vpop.f32.mrb[115].mxu0 }
 0x3bc   : > { %11245 = vmatmul.mubr.msk.bf16.gmra.mrb[160].mxu1 %vm1330_vm3, %v3645_v12 }
 0x3bd   : > { %11248 = vmatprep.mubr.msk.bf16.mxu1 %vm12991_vm7, %v12990_v31 }
 0x3bf   : > { %v14421_v48 = vpop.f32.mrb[56].mxu1 }
 0x3c0   : > { %v14423_v11 = vpop.f32.mrb[116].mxu0  ;;  %v11002_v18 = vpop.f32.mrb[57].mxu1 }
 0x3c1   : > { %v11074_v7 = vpop.f32.mrb[117].mxu0  ;;  %v14425_v61 = vpop.f32.mrb[58].mxu1 }
 0x3c2   : > { %v14427_v44 = vpop.f32.mrb[118].mxu0  ;;  %v11003_v45 = vpop.f32.mrb[59].mxu1 }
 0x3c3   : > { %v11075_v14 = vpop.f32.mrb[119].mxu0 }
 0x3c4   : > { %11249 = vmatmul.mubr.msk.bf16.gmra.mrb[164].mxu1 %vm1330_vm3, %v3646_v17 }
 0x3c5   : > { %11252 = vmatprep.mubr.msk.bf16.mxu1 %vm12991_vm7, %v12990_v31 }
 0x3c7   : > { %v14432_v10 = vpop.f32.mrb[60].mxu1 }
 0x3c8   : > { %v14434_v47 = vpop.f32.mrb[120].mxu0  ;;  %v11006_v13 = vpop.f32.mrb[61].mxu1 }
 0x3c9   : > { %v11078_v28 = vpop.f32.mrb[121].mxu0  ;;  %v14436_v33 = vpop.f32.mrb[62].mxu1 }
 0x3ca   : > { %v14438_v9 = vpop.f32.mrb[122].mxu0  ;;  %v11007_v35 = vpop.f32.mrb[63].mxu1 }
 0x3cb   : > { %v11079_v46 = vpop.f32.mrb[123].mxu0 }
 0x3cc   : > { %11253 = vmatmul.mubr.msk.bf16.gmra.mrb[168].mxu1 %vm1330_vm3, %v3647_v23 }
 0x3cd   : > { %11256 = vmatprep.mubr.msk.bf16.mxu1 %vm12991_vm7, %v12990_v31 }
 0x3cf   : > { %v14443_v55 = vpop.f32.mrb[64].mxu1 }
 0x3d0   : > { %v14445_v2 = vpop.f32.mrb[124].mxu0  ;;  %v11010_v38 = vpop.f32.mrb[65].mxu1 }
 0x3d1   : > { %v11082_v5 = vpop.f32.mrb[125].mxu0  ;;  %v2664_v8 = vpop.f32.mrb[66].mxu1 }
 0x3d2   : > { %v2950_v26 = vpop.f32.mrb[126].mxu0  ;;  %v11011_v30 = vpop.f32.mrb[67].mxu1 }
 0x3d3   : > { %v11083_v24 = vpop.f32.mrb[127].mxu0 }
 0x3d4   : > { %11257 = vmatmul.mubr.msk.bf16.gmra.mrb[172].mxu1 %vm1330_vm3, %v3648_v52 }
 0x3d5   : > { %11260 = vmatprep.mubr.msk.bf16.mxu1 %vm12991_vm7, %v12990_v31 }
 0x3d7   : > { %v2746_v58 = vpop.f32.mrb[68].mxu1 }
 0x3d8   : > { %v14450_v56 = vpop.f32.mrb[128].mxu0  ;;  %v2747_v20 = vadd.f32 %v2746_v58, %v14374_v36  ;;  %v11022_v59 = vpop.f32.mrb[69].mxu1 }
 0x3d9   : > { %v11130_v41 = vpop.f32.mrb[129].mxu0  ;;  %v2749_v60 = vpop.f32.mrb[70].mxu1 }
 0x3da   : > { %v14453_v42 = vpop.f32.mrb[130].mxu0  ;;  %v2750_v0 = vadd.f32 %v2749_v60, %v14378_v57  ;;  %v11023_v49 = vpop.f32.mrb[71].mxu1  ;;  %v14457_v43 = vadd.f32 %v14376_v40, %v2747_v20 }
 0x3db   : > { %v11131_v25 = vpop.f32.mrb[131].mxu0 }
 0x3dc   : > { %11261 = vmatmul.mubr.msk.bf16.gmra.mrb[176].mxu1 %vm1330_vm3, %v3649_v32  ;;  %v14461_v12 = vadd.f32 %v14380_v1, %v2750_v0 }
 0x3df   : > { %v2754_v50 = vpop.f32.mrb[72].mxu1 }
 0x3e0   : > { %v14463_v36 = vpop.f32.mrb[132].mxu0  ;;  %v2755_v18 = vadd.f32 %v2754_v50, %v14388_v15  ;;  %v11026_v7 = vpop.f32.mrb[73].mxu1 }
 0x3e1   : > { %v11134_v37 = vpop.f32.mrb[133].mxu0  ;;  %v2757_v45 = vpop.f32.mrb[74].mxu1 }
 0x3e2   : > { %v14466_v57 = vpop.f32.mrb[134].mxu0  ;;  %v2758_v14 = vadd.f32 %v2757_v45, %v14392_v27  ;;  %v11027_v40 = vpop.f32.mrb[75].mxu1  ;;  %v14470_v21 = vadd.f32 %v14390_v62, %v2755_v18 }
 0x3e3   : > { %v11135_v17 = vpop.f32.mrb[135].mxu0 }
 0x3e4   : > { %v14473_v1 = vadd.f32 %v14394_v29, %v2758_v14 }
 0x3e7   : > { %v2762_v13 = vpop.f32.mrb[76].mxu1 }
 0x3e8   : > { %v14475_v28 = vpop.f32.mrb[136].mxu0  ;;  %v2763_v15 = vadd.f32 %v2762_v13, %v14399_v6  ;;  %v11030_v34 = vpop.f32.mrb[77].mxu1 }
 0x3e9   : > { %v11138_v35 = vpop.f32.mrb[137].mxu0  ;;  %v2765_v46 = vpop.f32.mrb[78].mxu1 }
 0x3ea   : > { %v14478_v23 = vpop.f32.mrb[138].mxu0  ;;  %v2766_v27 = vadd.f32 %v2765_v46, %v14403_v53  ;;  %v11031_v19 = vpop.f32.mrb[79].mxu1  ;;  %v14482_v62 = vadd.f32 %v14401_v22, %v2763_v15 }
 0x3eb   : > { %v11139_v38 = vpop.f32.mrb[139].mxu0 }
 0x3ec   : > { %v14485_v29 = vadd.f32 %v14405_v51, %v2766_v27 }
 0x3ef   : > { %v2770_v5 = vpop.f32.mrb[80].mxu1 }
 0x3f0   : > { %v14487_v8 = vpop.f32.mrb[140].mxu0  ;;  %v2771_v6 = vadd.f32 %v2770_v5, %v14410_v16  ;;  %v11034_v26 = vpop.f32.mrb[81].mxu1 }
 0x3f1   : > { %v11142_v54 = vpop.f32.mrb[141].mxu0  ;;  %v2773_v30 = vpop.f32.mrb[82].mxu1 }
 0x3f2   : > { %v14490_v24 = vpop.f32.mrb[142].mxu0  ;;  %v2774_v53 = vadd.f32 %v2773_v30, %v14414_v63  ;;  %v11035_v52 = vpop.f32.mrb[83].mxu1  ;;  %v14494_v22 = vadd.f32 %v14412_v39, %v2771_v6 }
 0x3f3   : > { %v11143_v58 = vpop.f32.mrb[143].mxu0 }
 0x3f4   : > { %v14497_v51 = vadd.f32 %v14416_v4, %v2774_v53 }
 0x3f7   : > { %v2778_v3 = vpop.f32.mrb[84].mxu1 }
 0x3f8   : > { %v14499_v20 = vpop.f32.mrb[144].mxu0  ;;  %v2779_v16 = vadd.f32 %v2778_v3, %v14421_v48  ;;  %v11038_v59 = vpop.f32.mrb[85].mxu1 }
 0x3f9   : > { %v11146_v41 = vpop.f32.mrb[145].mxu0  ;;  %v2781_v60 = vpop.f32.mrb[86].mxu1 }
 0x3fa   : > { %v14502_v0 = vpop.f32.mrb[146].mxu0  ;;  %v2782_v63 = vadd.f32 %v2781_v60, %v14425_v61  ;;  %v11039_v32 = vpop.f32.mrb[87].mxu1  ;;  %v14506_v39 = vadd.f32 %v14423_v11, %v2779_v16 }
 0x3fb   : > { %v11147_v49 = vpop.f32.mrb[147].mxu0 }
 0x3fc   : > { %v14509_v4 = vadd.f32 %v14427_v44, %v2782_v63 }
 0x3ff   : > { %v2786_v25 = vpop.f32.mrb[88].mxu1 }
 0x400   : > { %v14511_v50 = vpop.f32.mrb[148].mxu0  ;;  %v2787_v48 = vadd.f32 %v2786_v25, %v14432_v10  ;;  %v11042_v18 = vpop.f32.mrb[89].mxu1 }
 0x401   : > { %v11150_v7 = vpop.f32.mrb[149].mxu0  ;;  %v2789_v37 = vpop.f32.mrb[90].mxu1 }
 0x402   : > { %v14514_v45 = vpop.f32.mrb[150].mxu0  ;;  %v2790_v61 = vadd.f32 %v2789_v37, %v14436_v33  ;;  %v11043_v14 = vpop.f32.mrb[91].mxu1  ;;  %v14518_v11 = vadd.f32 %v14434_v47, %v2787_v48 }
 0x403   : > { %v11151_v17 = vpop.f32.mrb[151].mxu0 }
 0x404   : > { %v14521_v44 = vadd.f32 %v14438_v9, %v2790_v61 }
 0x407   : > { %v2794_v40 = vpop.f32.mrb[92].mxu1 }
 0x408   : > { %v14523_v13 = vpop.f32.mrb[152].mxu0  ;;  %v2795_v10 = vadd.f32 %v2794_v40, %v14443_v55  ;;  %v11046_v15 = vpop.f32.mrb[93].mxu1 }
 0x409   : > { %v11154_v34 = vpop.f32.mrb[153].mxu0  ;;  %v2797_v35 = vpop.f32.mrb[94].mxu1 }
 0x40a   : > { %v3282_v46 = vpop.f32.mrb[154].mxu0  ;;  %v11047_v27 = vpop.f32.mrb[95].mxu1  ;;  %v14527_v33 = vadd.f32 %v14445_v2, %v2795_v10 }
 0x40b   : > { %v11155_v19 = vpop.f32.mrb[155].mxu0 }
 0x40f   : > { %v3065_v38 = vpop.f32.mrb[96].mxu1 }
 0x410   : > { %v14529_v47 = vpop.f32.mrb[156].mxu0  ;;  %v3119_v9 = vadd.f32 %v3065_v38, %v14457_v43  ;;  %v11094_v5 = vpop.f32.mrb[97].mxu1 }
 0x411   : > { %v11202_v6 = vpop.f32.mrb[157].mxu0  ;;  %v3068_v26 = vpop.f32.mrb[98].mxu1 }
 0x412   : > { %v14532_v54 = vpop.f32.mrb[158].mxu0  ;;  %v3120_v55 = vadd.f32 %v3068_v26, %v14461_v12  ;;  %v11095_v30 = vpop.f32.mrb[99].mxu1  ;;  %v14536_v52 = vadd.f32 %v14450_v56, %v3119_v9 }
 0x413   : > { %v11203_v53 = vpop.f32.mrb[159].mxu0 }
 0x414   : > { %v14539_v2 = vadd.f32 %v14453_v42, %v3120_v55 }
 0x417   : > { %v3073_v58 = vpop.f32.mrb[100].mxu1 }
 0x418   : > { %v14541_v3 = vpop.f32.mrb[160].mxu0  ;;  %v3121_v43 = vadd.f32 %v3073_v58, %v14470_v21  ;;  %v11098_v16 = vpop.f32.mrb[101].mxu1 }
 0x419   : > { %v11206_v59 = vpop.f32.mrb[161].mxu0  ;;  %v3076_v41 = vpop.f32.mrb[102].mxu1 }
 0x41a   : > { %v14544_v60 = vpop.f32.mrb[162].mxu0  ;;  %v3122_v12 = vadd.f32 %v3076_v41, %v14473_v1  ;;  %v11099_v63 = vpop.f32.mrb[103].mxu1  ;;  %v14548_v56 = vadd.f32 %v14463_v36, %v3121_v43 }
 0x41b   : > { %v11207_v32 = vpop.f32.mrb[163].mxu0 }
 0x41c   : > { %v14551_v42 = vadd.f32 %v14466_v57, %v3122_v12 }
 0x41f   : > { %v3081_v49 = vpop.f32.mrb[104].mxu1 }
 0x420   : > { %v14553_v25 = vpop.f32.mrb[164].mxu0  ;;  %v3123_v21 = vadd.f32 %v3081_v49, %v14482_v62  ;;  %v11102_v48 = vpop.f32.mrb[105].mxu1 }
 0x421   : > { %v11210_v18 = vpop.f32.mrb[165].mxu0  ;;  %v3084_v7 = vpop.f32.mrb[106].mxu1 }
 0x422   : > { %v14556_v37 = vpop.f32.mrb[166].mxu0  ;;  %v3124_v1 = vadd.f32 %v3084_v7, %v14485_v29  ;;  %v11103_v61 = vpop.f32.mrb[107].mxu1  ;;  %v14560_v36 = vadd.f32 %v14475_v28, %v3123_v21 }
 0x423   : > { %v11211_v14 = vpop.f32.mrb[167].mxu0 }
 0x424   : > { %v14563_v57 = vadd.f32 %v14478_v23, %v3124_v1 }
 0x427   : > { %v3089_v17 = vpop.f32.mrb[108].mxu1 }
 0x428   : > { %v14565_v40 = vpop.f32.mrb[168].mxu0  ;;  %v3125_v62 = vadd.f32 %v3089_v17, %v14494_v22  ;;  %v11106_v10 = vpop.f32.mrb[109].mxu1 }
 0x429   : > { %v11214_v15 = vpop.f32.mrb[169].mxu0  ;;  %v3092_v34 = vpop.f32.mrb[110].mxu1 }
 0x42a   : > { %v14568_v35 = vpop.f32.mrb[170].mxu0  ;;  %v3126_v29 = vadd.f32 %v3092_v34, %v14497_v51  ;;  %v11107_v46 = vpop.f32.mrb[111].mxu1  ;;  %v14572_v28 = vadd.f32 %v14487_v8, %v3125_v62 }
 0x42b   : > { %v11215_v27 = vpop.f32.mrb[171].mxu0 }
 0x42c   : > { %v14575_v23 = vadd.f32 %v14490_v24, %v3126_v29 }
 0x42f   : > { %v3097_v19 = vpop.f32.mrb[112].mxu1 }
 0x430   : > { %v14577_v38 = vpop.f32.mrb[172].mxu0  ;;  %v3127_v22 = vadd.f32 %v3097_v19, %v14506_v39  ;;  %v11110_v9 = vpop.f32.mrb[113].mxu1 }
 0x431   : > { %v11218_v5 = vpop.f32.mrb[173].mxu0  ;;  %v3100_v6 = vpop.f32.mrb[114].mxu1 }
 0x432   : > { %v14580_v26 = vpop.f32.mrb[174].mxu0  ;;  %v3128_v51 = vadd.f32 %v3100_v6, %v14509_v4  ;;  %v11111_v55 = vpop.f32.mrb[115].mxu1  ;;  %v14584_v8 = vadd.f32 %v14499_v20, %v3127_v22  ;;  %v2406_v4 = vld [vmem:[%s16724_s7] sm:$0xff] }
 0x433   : > { %v11219_v30 = vpop.f32.mrb[175].mxu0  ;;  %11326 = vmatprep.mubr.msk.f32.mxu1 %vm3995_vm8, %v2406_v4 }
 0x434   : > { %v14587_v24 = vadd.f32 %v14502_v0, %v3128_v51 }
 0x437   : > { %v3105_v53 = vpop.f32.mrb[116].mxu1 }
 0x438   : > { %v14589_v58 = vpop.f32.mrb[176].mxu0  ;;  %v3129_v39 = vadd.f32 %v3105_v53, %v14518_v11  ;;  %v11114_v43 = vpop.f32.mrb[117].mxu1  ;;  %v12783_v53 = vld [vmem:[%s16721_s4 + $0x120] sm:$0xff]  }
 0x439   : > { %v11222_v16 = vpop.f32.mrb[177].mxu0  ;;  %v3108_v59 = vpop.f32.mrb[118].mxu1  ;;  %11387 = vmatpush3.bf16.msra.mxu0 %v12783_v53 }
 0x43a   : > { %v14592_v41 = vpop.f32.mrb[178].mxu0  ;;  %v3130_v20 = vadd.f32 %v3108_v59, %v14521_v44  ;;  %v11115_v12 = vpop.f32.mrb[119].mxu1  ;;  %v14599_v63 = vadd.f32 %v14511_v50, %v3129_v39  ;;  %11388 = vmatprep.subr.bf16.mxu0 %v12990_v31 }
 0x43b   : > { %v11223_v0 = vpop.f32.mrb[179].mxu0 }
 0x43c   : > { %v14603_v11 = vadd.f32 %v14514_v45, %v3130_v20 }
 0x43f   : > { %v3113_v32 = vpop.f32.mrb[120].mxu1 }
 0x440   : > { %v14605_v49 = vpop.f32.mrb[180].mxu0  ;;  %v3131_v21 = vadd.f32 %v3113_v32, %v14527_v33  ;;  %v11118_v48 = vpop.f32.mrb[121].mxu1 }
 0x441   : > { %v11226_v18 = vpop.f32.mrb[181].mxu0  ;;  %v3116_v7 = vpop.f32.mrb[122].mxu1 }
 0x442   : > { %v3614_v1 = vpop.f32.mrb[182].mxu0  ;;  %v11119_v44 = vpop.f32.mrb[123].mxu1  ;;  %v14609_v14 = vadd.f32 %v14523_v13, %v3131_v21 }
 0x443   : > { %v11227_v61 = vpop.f32.mrb[183].mxu0 }
 0x447   : > { %v3397_v50 = vpop.f32.mrb[124].mxu1 }
 0x448   : > { %v14611_v17 = vpop.f32.mrb[184].mxu0  ;;  %v3451_v45 = vadd.f32 %v3397_v50, %v14536_v52  ;;  %v11166_v62 = vpop.f32.mrb[125].mxu1 }
 0x449   : > { %v11274_v10 = vpop.f32.mrb[185].mxu0  ;;  %v3400_v15 = vpop.f32.mrb[126].mxu1 }
 0x44a   : > { %v14614_v34 = vpop.f32.mrb[186].mxu0  ;;  %v3452_v33 = vadd.f32 %v3400_v15, %v14539_v2  ;;  %v11167_v29 = vpop.f32.mrb[127].mxu1  ;;  %v14618_v27 = vadd.f32 %v14529_v47, %v3451_v45 }
 0x44b   : > { %v11275_v46 = vpop.f32.mrb[187].mxu0 }
 0x44c   : > { %v14621_v13 = vadd.f32 %v14532_v54, %v3452_v33 }
 0x44f   : > { %v3405_v19 = vpop.f32.mrb[128].mxu1 }
 0x450   : > { %v14623_v22 = vpop.f32.mrb[188].mxu0  ;;  %v3453_v52 = vadd.f32 %v3405_v19, %v14548_v56  ;;  %v11170_v9 = vpop.f32.mrb[129].mxu1 }
 0x451   : > { %v11278_v5 = vpop.f32.mrb[189].mxu0  ;;  %v3408_v6 = vpop.f32.mrb[130].mxu1 }
 0x452   : > { %v14626_v51 = vpop.f32.mrb[190].mxu0  ;;  %v3454_v2 = vadd.f32 %v3408_v6, %v14551_v42  ;;  %v11171_v55 = vpop.f32.mrb[131].mxu1  ;;  %v14630_v47 = vadd.f32 %v14541_v3, %v3453_v52 }
 0x453   : > { %v11279_v30 = vpop.f32.mrb[191].mxu0 }
 0x454   : > { %v14633_v54 = vadd.f32 %v14544_v60, %v3454_v2 }
 0x457   : > { %v3413_v56 = vpop.f32.mrb[132].mxu1 }
 0x458   : > { %v14638_v39 = vpop.f32.mrb[192].mxu0  ;;  %v3455_v43 = vadd.f32 %v3413_v56, %v14560_v36  ;;  %v11174_v16 = vpop.f32.mrb[133].mxu1 }
 0x459   : > { %v11282_v59 = vpop.f32.mrb[193].mxu0  ;;  %v3416_v42 = vpop.f32.mrb[134].mxu1 }
 0x45a   : > { %v14641_v4 = vpop.f32.mrb[194].mxu0  ;;  %v3456_v3 = vadd.f32 %v3416_v42, %v14563_v57  ;;  %v11175_v60 = vpop.f32.mrb[135].mxu1  ;;  %v14646_v12 = vadd.f32 %v14553_v25, %v3455_v43 }
 0x45b   : > { %v11283_v20 = vpop.f32.mrb[195].mxu0 }
 0x45c   : > { %v14649_v0 = vadd.f32 %v14556_v37, %v3456_v3 }
 0x45f   : > { %v3421_v32 = vpop.f32.mrb[136].mxu1 }
 0x460   : > { %v14651_v36 = vpop.f32.mrb[196].mxu0  ;;  %v3457_v21 = vadd.f32 %v3421_v32, %v14572_v28  ;;  %v11178_v48 = vpop.f32.mrb[137].mxu1 }
 0x461   : > { %v11286_v18 = vpop.f32.mrb[197].mxu0  ;;  %v3424_v7 = vpop.f32.mrb[138].mxu1 }
 0x462   : > { %v14654_v1 = vpop.f32.mrb[198].mxu0  ;;  %v3458_v57 = vadd.f32 %v3424_v7, %v14575_v23  ;;  %v11179_v44 = vpop.f32.mrb[139].mxu1  ;;  %v14658_v25 = vadd.f32 %v14565_v40, %v3457_v21  ;;  %v14697_v21 = vld [vmem:[%s16722_s5] ss:$0 sm:$0xff] }
 0x463   : > { %v11287_v61 = vpop.f32.mrb[199].mxu0 }
 0x464   : > { %v14661_v37 = vadd.f32 %v14568_v35, %v3458_v57 }
 0x467   : > { %v3429_v50 = vpop.f32.mrb[140].mxu1 }
 0x468   : > { %v14663_v45 = vpop.f32.mrb[200].mxu0  ;;  %v3459_v28 = vadd.f32 %v3429_v50, %v14584_v8  ;;  %v11182_v62 = vpop.f32.mrb[141].mxu1 }
 0x469   : > { %v11290_v10 = vpop.f32.mrb[201].mxu0  ;;  %v3432_v15 = vpop.f32.mrb[142].mxu1 }
 0x46a   : > { %v14666_v33 = vpop.f32.mrb[202].mxu0  ;;  %v3460_v23 = vadd.f32 %v3432_v15, %v14587_v24  ;;  %v11183_v29 = vpop.f32.mrb[143].mxu1  ;;  %v14670_v40 = vadd.f32 %v14577_v38, %v3459_v28 }
 0x46b   : > { %v11291_v46 = vpop.f32.mrb[203].mxu0 }
 0x46c   : > { %v14673_v35 = vadd.f32 %v14580_v26, %v3460_v23 }
 0x46f   : > { %v3437_v19 = vpop.f32.mrb[144].mxu1 }
 0x470   : > { %v14675_v52 = vpop.f32.mrb[204].mxu0  ;;  %v3461_v8 = vadd.f32 %v3437_v19, %v14599_v63  ;;  %v11186_v9 = vpop.f32.mrb[145].mxu1 }
 0x471   : > { %v11294_v5 = vpop.f32.mrb[205].mxu0  ;;  %v3440_v6 = vpop.f32.mrb[146].mxu1 }
 0x472   : > { %v14678_v2 = vpop.f32.mrb[206].mxu0  ;;  %v3462_v24 = vadd.f32 %v3440_v6, %v14603_v11  ;;  %v11187_v55 = vpop.f32.mrb[147].mxu1  ;;  %v14682_v38 = vadd.f32 %v14589_v58, %v3461_v8 }
 0x473   : > { %v11295_v30 = vpop.f32.mrb[207].mxu0 }
 0x474   : > { %v14685_v26 = vadd.f32 %v14592_v41, %v3462_v24 }
 0x477   : > { %v3445_v53 = vpop.f32.mrb[148].mxu1 }
 0x478   : > { %v14687_v56 = vpop.f32.mrb[208].mxu0  ;;  %v3463_v63 = vadd.f32 %v3445_v53, %v14609_v14  ;;  %v11190_v43 = vpop.f32.mrb[149].mxu1 }
 0x479   : > { %v11298_v16 = vpop.f32.mrb[209].mxu0  ;;  %v3448_v59 = vpop.f32.mrb[150].mxu1 }
 0x47a   : > { %v3946_v42 = vpop.f32.mrb[210].mxu0  ;;  %v11191_v3 = vpop.f32.mrb[151].mxu1  ;;  %v14691_v11 = vadd.f32 %v14605_v49, %v3463_v63 }
 0x47b   : > { %v11299_v60 = vpop.f32.mrb[211].mxu0 }
 0x47f   : > { %v3729_v20 = vpop.f32.mrb[152].mxu1 }
 0x480   : > { %v3783_v58 = vadd.f32 %v3729_v20, %v14618_v27  ;;  %v11238_v32 = vpop.f32.mrb[153].mxu1 }
 0x481   : > { %v3732_v41 = vpop.f32.mrb[154].mxu1 }
 0x482   : > { %v3949_v14 = vadd.f32 %v14611_v17, %v3783_v58  ;;  %v3784_v48 = vadd.f32 %v3732_v41, %v14621_v13  ;;  %v11239_v18 = vpop.f32.mrb[155].mxu1 }
 0x484   : > { %v3950_v7 = vadd.f32 %v14614_v34, %v3784_v48  ;;  %v3969_v49 = vadd.f32 %v14697_v21, %v3949_v14 }
 0x486   : > { %v3970_v57 = vadd.f32 %v14697_v21, %v3950_v7  ;;  %v3982_v50 = vmax.f32 %v3969_v49, 0.0 }
 0x487   : > { %v3737_v44 = vpop.f32.mrb[156].mxu1 }
 0x488   : > { %v3785_v27 = vadd.f32 %v3737_v44, %v14630_v47  ;;  %v11242_v61 = vpop.f32.mrb[157].mxu1  ;;  %v3983_v28 = vmax.f32 %v3970_v57, 0.0 }
 0x489   : > { %v3740_v62 = vpop.f32.mrb[158].mxu1 }
 0x48a   : > { %v3951_v10 = vadd.f32 %v14623_v22, %v3785_v27  ;;  %v3786_v17 = vadd.f32 %v3740_v62, %v14633_v54  ;;  %v11243_v15 = vpop.f32.mrb[159].mxu1  ;;  %v12508_v13 = vpack.c.bf16 %v3983_v28, %v3982_v50 }
 0x48c   : > { %v3952_v23 = vadd.f32 %v14626_v51, %v3786_v17  ;;  %12509 = vmatprep.subr.bf16.mxu1 %v12508_v13  ;;  %v3971_v34 = vadd.f32 %v14697_v21, %v3951_v10 }
 0x48d   : > { %12511 = vmatpush3.bf16.msra.mxu1 %v12508_v13 }
 0x48e   : > { %v3972_v29 = vadd.f32 %v14697_v21, %v3952_v23  ;;  %v3984_v8 = vmax.f32 %v3971_v34, 0.0 }
 0x48f   : > { %v3745_v46 = vpop.f32.mrb[160].mxu1 }
 0x490   : > { %v3787_v47 = vadd.f32 %v3745_v46, %v14646_v12  ;;  %v11246_v19 = vpop.f32.mrb[161].mxu1  ;;  %v3985_v9 = vmax.f32 %v3972_v29, 0.0 }
 0x491   : > { %v3748_v5 = vpop.f32.mrb[162].mxu1 }
 0x492   : > { %v3953_v22 = vadd.f32 %v14638_v39, %v3787_v47  ;;  %v3788_v54 = vadd.f32 %v3748_v5, %v14649_v0  ;;  %v11247_v6 = vpop.f32.mrb[163].mxu1  ;;  %v12512_v24 = vpack.c.bf16 %v3985_v9, %v3984_v8  ;;  %v2407_v8 = vld [vmem:[%s16724_s7 + $0x8] sm:$0xff]  ;;  %v2412_v5 = vld [vmem:[%s16724_s7 + $0x30] sm:$0xff] }
 0x493   : > { %v2411_v9 = vld [vmem:[%s16724_s7 + $0x28] sm:$0xff] }
 0x494   : > { %v3954_v51 = vadd.f32 %v14641_v4, %v3788_v54  ;;  %12513 = vmatprep.subr.bf16.mxu1 %v12512_v24  ;;  %v3973_v55 = vadd.f32 %v14697_v21, %v3953_v22  ;;  %v2413_v22 = vld [vmem:[%s16724_s7 + $0x38] sm:$0xff]  ;;  %v2414_v54 = vld [vmem:[%s16724_s7 + $0x40] sm:$0xff]  ;;  %v2415_v6 = vld [vmem:[%s16724_s7 + $0x48] sm:$0xff] }
 0x495   : > { %12515 = vmatpush3.bf16.msra.mxu1 %v12512_v24  ;;  %v2416_v24 = vld [vmem:[%s16724_s7 + $0x50] sm:$0xff] }
 0x496   : > { %v3974_v30 = vadd.f32 %v14697_v21, %v3954_v51  ;;  %v3986_v43 = vmax.f32 %v3973_v55, 0.0  ;;  %v2417_v51 = vld [vmem:[%s16724_s7 + $0x58] sm:$0xff]  ;;  %v2418_v55 = vld [vmem:[%s16724_s7 + $0x60] sm:$0xff] }
 0x497   : > { %v3753_v53 = vpop.f32.mrb[164].mxu1 }
 0x498   : > { %v3789_v12 = vadd.f32 %v3753_v53, %v14658_v25  ;;  %v11250_v63 = vpop.f32.mrb[165].mxu1  ;;  %v3987_v16 = vmax.f32 %v3974_v30, 0.0  ;;  %v2419_v30 = vld [vmem:[%s16724_s7 + $0x68] sm:$0xff]  ;;  %v2420_v53 = vld [vmem:[%s16724_s7 + $0x70] sm:$0xff] }
 0x499   : > { %v3756_v59 = vpop.f32.mrb[166].mxu1  ;;  %v12784_v63 = vld [vmem:[%s16721_s4 + $0x140] sm:$0xff]  }
 0x49a   : > { %v3955_v39 = vadd.f32 %v14651_v36, %v3789_v12  ;;  %v3790_v0 = vadd.f32 %v3756_v59, %v14661_v37  ;;  %v11251_v42 = vpop.f32.mrb[167].mxu1  ;;  %v12516_v3 = vpack.c.bf16 %v3987_v16, %v3986_v43  ;;  %v2421_v12 = vld [vmem:[%s16724_s7 + $0x78] sm:$0x3]  ;;  %v12785_v43 = vld [vmem:[%s16721_s4 + $0x128] sm:$0xff]   ;;  %v12787_v59 = vld [vmem:[%s16721_s4 + $0x130] sm:$0xff]  }
 0x49b   : > { %11389 = vmatpush3.bf16.msra.mxu0 %v12785_v43  ;;  %v12786_v16 = vld [vmem:[%s16721_s4 + $0x148] sm:$0xff]   ;;  %v12790_v42 = vld [vmem:[%s16721_s4 + $0x158] sm:$0xff]  }
 0x49c   : > { %v3956_v4 = vadd.f32 %v14654_v1, %v3790_v0  ;;  %12517 = vmatprep.subr.bf16.mxu1 %v12516_v3  ;;  %v3975_v60 = vadd.f32 %v14697_v21, %v3955_v39  ;;  %11390 = vmatprep.subr.bf16.mxu0 %v12990_v31  ;;  %v12788_v39 = vld [vmem:[%s16721_s4 + $0x150] sm:$0xff]   ;;  %v12789_v0 = vld [vmem:[%s16721_s4 + $0x138] sm:$0xff]  }
 0x49d   : > { %12519 = vmatpush3.bf16.msra.mxu1 %v12516_v3 }
 0x49e   : > { %v3976_v20 = vadd.f32 %v14697_v21, %v3956_v4  ;;  %v3988_v41 = vmax.f32 %v3975_v60, 0.0 }
 0x49f   : > { %v3761_v58 = vpop.f32.mrb[168].mxu1  ;;  %11391 = vmatpush3.bf16.msra.mxu0 %v12787_v59 }
 0x4a0   : > { %v3791_v25 = vadd.f32 %v3761_v58, %v14670_v40  ;;  %v11254_v32 = vpop.f32.mrb[169].mxu1  ;;  %v3989_v14 = vmax.f32 %v3976_v20, 0.0  ;;  %11392 = vmatprep.subr.bf16.mxu0 %v12990_v31 }
 0x4a1   : > { %v3764_v48 = vpop.f32.mrb[170].mxu1 }
 0x4a2   : > { %v3957_v36 = vadd.f32 %v14663_v45, %v3791_v25  ;;  %v3792_v37 = vadd.f32 %v3764_v48, %v14673_v35  ;;  %v11255_v18 = vpop.f32.mrb[171].mxu1  ;;  %v12520_v7 = vpack.c.bf16 %v3989_v14, %v3988_v41  ;;  %v12791_v14 = vld [vmem:[%s16721_s4 + $0x180] sm:$0xff]  }
 0x4a3   : > { %11393 = vmatpush3.bf16.msra.mxu0 %v12789_v0  ;;  %v12793_v18 = vld [vmem:[%s16721_s4 + $0x188] sm:$0xff]  }
 0x4a4   : > { %v3958_v1 = vadd.f32 %v14666_v33, %v3792_v37  ;;  %12521 = vmatprep.subr.bf16.mxu1 %v12520_v7  ;;  %v3977_v49 = vadd.f32 %v14697_v21, %v3957_v36  ;;  %11458 = vmatprep.subr.bf16.mxu0 %v12990_v31 }
 0x4a5   : > { %12523 = vmatpush3.bf16.msra.mxu1 %v12520_v7 }
 0x4a6   : > { %v3978_v57 = vadd.f32 %v14697_v21, %v3958_v1  ;;  %v3990_v61 = vmax.f32 %v3977_v49, 0.0  ;;  %v12792_v49 = vld [vmem:[%s16721_s4 + $0x160] sm:$0xff]  }
 0x4a7   : > { %v3769_v44 = vpop.f32.mrb[172].mxu1 }
 0x4a8   : > { %v3793_v40 = vadd.f32 %v3769_v44, %v14682_v38  ;;  %v11258_v27 = vpop.f32.mrb[173].mxu1  ;;  %v3991_v50 = vmax.f32 %v3978_v57, 0.0 }
 0x4a9   : > { %v3772_v28 = vpop.f32.mrb[174].mxu1 }
 0x4aa   : > { %v3959_v45 = vadd.f32 %v14675_v52, %v3793_v40  ;;  %v3794_v35 = vadd.f32 %v3772_v28, %v14685_v26  ;;  %v11259_v62 = vpop.f32.mrb[175].mxu1  ;;  %v12524_v10 = vpack.c.bf16 %v3991_v50, %v3990_v61  ;;  %v12795_v50 = vld [vmem:[%s16721_s4 + $0x190] sm:$0xff]  }
 0x4ac   : > { %v3960_v33 = vadd.f32 %v14678_v2, %v3794_v35  ;;  %12525 = vmatprep.subr.bf16.mxu1 %v12524_v10  ;;  %v3979_v17 = vadd.f32 %v14697_v21, %v3959_v45  ;;  %v12794_v45 = vld [vmem:[%s16721_s4 + $0x168] sm:$0xff]  }
 0x4ad   : > { %12527 = vmatpush3.bf16.msra.mxu1 %v12524_v10 }
 0x4ae   : > { %v3980_v15 = vadd.f32 %v14697_v21, %v3960_v33  ;;  %v3992_v34 = vmax.f32 %v3979_v17, 0.0  ;;  %v12797_v33 = vld [vmem:[%s16721_s4 + $0x198] sm:$0xff]  }
 0x4af   : > { %v3777_v13 = vpop.f32.mrb[176].mxu1 }
 0x4b0   : > { %v3795_v38 = vadd.f32 %v3777_v13, %v14691_v11  ;;  %v11262_v23 = vpop.f32.mrb[177].mxu1  ;;  %v3993_v29 = vmax.f32 %v3980_v15, 0.0  ;;  %v2408_v11 = vld [vmem:[%s16724_s7 + $0x10] sm:$0xff] }
 0x4b1   : > { %v3780_v46 = vpop.f32.mrb[178].mxu1  ;;  %v12796_v15 = vld [vmem:[%s16721_s4 + $0x170] sm:$0xff]  }
 0x4b2   : > { %v3961_v52 = vadd.f32 %v14687_v56, %v3795_v38  ;;  %v11263_v26 = vpop.f32.mrb[179].mxu1  ;;  %v12528_v47 = vpack.c.bf16 %v3993_v29, %v3992_v34  ;;  %v2409_v56 = vld [vmem:[%s16724_s7 + $0x18] sm:$0xff] }
 0x4b4   : > { %v3981_v19 = vadd.f32 %v14697_v21, %v3961_v52  ;;  %12529 = vmatprep.subr.bf16.mxu1 %v12528_v47  ;;  %v2410_v21 = vld [vmem:[%s16724_s7 + $0x20] sm:$0xff]  ;;  %v12798_v52 = vld [vmem:[%s16721_s4 + $0x178] sm:$0xff]  }
 0x4b5   : > { %12531 = vmatpush3.bf16.msra.mxu1 %v12528_v47 }
 0x4b6   : > { %v3994_v2 = vmax.f32 %v3981_v19, 0.0 }
 0x4b8   : > { %11324 = vmatprep.subr.msk.mxu1 %vm2096_vm5, %v3994_v2 }
 0x4b9   : > { %11325 = vmatpush3.msk.msra.mxu1 %vm2096_vm5, %v3994_v2 }
 0x4ba   : > { %11327 = vmatmul.mubr.msk.f32.vlgmr.msra.gmra.mrb[180].mxu1 %vm3995_vm8, %v2407_v8  ;;  %11350 = vmatprep.subr.bf16.mxu1 %v12990_v31 }
 0x4bb   : > { %11329 = vmatprep.mubr.msk.f32.mxu1 %vm3995_vm8, %v2408_v11  ;;  %11351 = vmatpush3.bf16.msra.mxu1 %v12784_v63 }
 0x4bc   : > { %11352 = vmatprep.subr.bf16.mxu1 %v12990_v31 }
 0x4be   : > { %11330 = vmatmul.mubr.msk.f32.gmra.mrb[182].mxu1 %vm3995_vm8, %v2409_v56 }
 0x4bf   : > { %11332 = vmatprep.mubr.msk.f32.mxu1 %vm3995_vm8, %v2410_v21  ;;  %11353 = vmatpush3.bf16.msra.mxu1 %v12786_v16 }
 0x4c0   : > { %11354 = vmatprep.subr.bf16.mxu1 %v12990_v31 }
 0x4c2   : > { %11333 = vmatmul.mubr.msk.f32.gmra.mrb[184].mxu1 %vm3995_vm8, %v2411_v9 }
 0x4c3   : > { %11335 = vmatprep.mubr.msk.f32.mxu1 %vm3995_vm8, %v2412_v5  ;;  %11355 = vmatpush3.bf16.msra.mxu1 %v12788_v39 }
 0x4c4   : > { %11356 = vmatprep.subr.bf16.mxu1 %v12990_v31 }
 0x4c6   : > { %11336 = vmatmul.mubr.msk.f32.gmra.mrb[186].mxu1 %vm3995_vm8, %v2413_v22 }
 0x4c7   : > { %11338 = vmatprep.mubr.msk.f32.mxu1 %vm3995_vm8, %v2414_v54  ;;  %11357 = vmatpush3.bf16.msra.mxu1 %v12790_v42 }
 0x4c8   : > { %11422 = vmatprep.subr.bf16.mxu1 %v12990_v31 }
 0x4ca   : > { %11339 = vmatmul.mubr.msk.f32.gmra.mrb[188].mxu1 %vm3995_vm8, %v2415_v6 }
 0x4cb   : > { %11341 = vmatprep.mubr.msk.f32.mxu1 %vm3995_vm8, %v2416_v24 }
 0x4ce   : > { %11342 = vmatmul.mubr.msk.f32.gmra.mrb[190].mxu1 %vm3995_vm8, %v2417_v51 }
 0x4cf   : > { %11344 = vmatprep.mubr.msk.f32.mxu1 %vm3995_vm8, %v2418_v55 }
 0x4d2   : > { %11345 = vmatmul.mubr.msk.f32.gmra.mrb[192].mxu1 %vm3995_vm8, %v2419_v30 }
 0x4d3   : > { %11347 = vmatprep.mubr.msk.f32.mxu1 %vm3995_vm8, %v2420_v53 }
 0x4d6   : > { %11348 = vmatmul.mubr.msk.f32.gmra.mrb[194].mxu1 %vm3995_vm8, %v2421_v12 }
 0x4d7   : > { %11358 = vmatprep.mubr.msk.bf16.mxu1 %vm12991_vm7, %v12990_v31 }
 0x58d   : > { %v11328_v3 = vpop.f32.mrb[180].mxu1 }
 0x58e   : > { %4193 = vst.msk [vmem:[#allocation4 + $0x8] sm:$0xff] %vm1330_vm3, %v11328_v3  ;;  %v4113_v4 = vpop.f32.mrb[181].mxu1 }
 0x58f   : > { %4192 = vst.msk [vmem:[#allocation4] sm:$0xff] %vm1330_vm3, %v4113_v4 }
 0x591   : > { %v11331_v60 = vpop.f32.mrb[182].mxu1 }
 0x592   : > { %4195 = vst.msk [vmem:[#allocation4 + $0x18] sm:$0xff] %vm1330_vm3, %v11331_v60  ;;  %v4123_v20 = vpop.f32.mrb[183].mxu1 }
 0x593   : > { %4194 = vst.msk [vmem:[#allocation4 + $0x10] sm:$0xff] %vm1330_vm3, %v4123_v20  ;;  %v12799_v20 = vld [vmem:[%s16721_s4 + $0x1c0] sm:$0xff]  }
 0x595   : > { %v11334_v58 = vpop.f32.mrb[184].mxu1  ;;  %v4295_v25 = vld [vmem:[#allocation4 + $0x8] sm:$0xff] }
 0x596   : > { %4197 = vst.msk [vmem:[#allocation4 + $0x28] sm:$0xff] %vm1330_vm3, %v11334_v58  ;;  %v4294_v32 = vld [vmem:[#allocation4] sm:$0xff]  ;;  %v4133_v41 = vpop.f32.mrb[185].mxu1 }
 0x597   : > { %v4307_v48 = vpack.c.bf16 %v4295_v25, %v4294_v32  ;;  %4196 = vst.msk [vmem:[#allocation4 + $0x20] sm:$0xff] %vm1330_vm3, %v4133_v41  ;;  %v4314_v7 = vld [vmem:[#allocation4 + $0x1] sm:$0xff]  ;;  %v12801_v25 = vld [vmem:[%s16721_s4 + $0x1c8] sm:$0xff]   ;;  %v12800_v41 = vld [vmem:[%s16721_s4 + $0x1a0] sm:$0xff]  }
 0x598   : > { %v4600_v32 = vld [vmem:[#allocation4 + $0x2] sm:$0xff] }
 0x599   : > { %11395 = vmatmul.mubr.msk.bf16.vlgmr.msra.gmra.mrb[212].mxu0 %vm1330_vm3, %v4307_v48  ;;  %v11337_v36 = vpop.f32.mrb[186].mxu1  ;;  %v4297_v40 = vld [vmem:[#allocation4 + $0x18] sm:$0xff] }
 0x59a   : > { %11398 = vmatprep.mubr.msk.bf16.mxu0 %vm12991_vm7, %v12990_v31  ;;  %4199 = vst.msk [vmem:[#allocation4 + $0x38] sm:$0xff] %vm1330_vm3, %v11337_v36  ;;  %v4143_v37 = vpop.f32.mrb[187].mxu1  ;;  %11459 = vmatpush3.bf16.msra.mxu0 %v12791_v14  ;;  %v4315_v1 = vld [vmem:[#allocation4 + $0x9] sm:$0xff]  ;;  %v4316_v17 = vld [vmem:[#allocation4 + $0x11] sm:$0xff] }
 0x59b   : > { %4198 = vst.msk [vmem:[#allocation4 + $0x30] sm:$0xff] %vm1330_vm3, %v4143_v37  ;;  %11460 = vmatprep.subr.bf16.mxu0 %v12990_v31  ;;  %v4327_v57 = vpack.c.bf16 %v4315_v1, %v4314_v7  ;;  %v4296_v44 = vld [vmem:[#allocation4 + $0x10] sm:$0xff]  ;;  %v12803_v37 = vld [vmem:[%s16721_s4 + $0x1d0] sm:$0xff]   ;;  %v12802_v7 = vld [vmem:[%s16721_s4 + $0x1a8] sm:$0xff]  }
 0x59c   : > { %v4308_v28 = vpack.c.bf16 %v4297_v40, %v4296_v44  ;;  %v4766_v4 = vld [vmem:[#allocation4 + $0xa] sm:$0xff]  ;;  %v4767_v60 = vld [vmem:[#allocation4 + $0x12] sm:$0xff] }
 0x59d   : > { %v11340_v27 = vpop.f32.mrb[188].mxu1  ;;  %11359 = vmatmul.mubr.msk.bf16.vlgmr.msra.gmra.mrb[196].mxu1 %vm1330_vm3, %v4327_v57  ;;  %v4299_v23 = vld [vmem:[#allocation4 + $0x28] sm:$0xff]  ;;  %v4779_v58 = vpack.c.bf16 %v4767_v60, %v4766_v4  ;;  %v4613_v14 = vpack.c.bf16 %v4766_v4, %v4600_v32 }
 0x59e   : > { %4201 = vst.msk [vmem:[#allocation4 + $0x48] sm:$0xff] %vm1330_vm3, %v11340_v27  ;;  %v4153_v61 = vpop.f32.mrb[189].mxu1  ;;  %11461 = vmatpush3.bf16.msra.mxu0 %v12793_v18  ;;  %11362 = vmatprep.mubr.msk.bf16.mxu1 %vm12991_vm7, %v12990_v31  ;;  %v4317_v35 = vld [vmem:[#allocation4 + $0x19] sm:$0xff]  ;;  %v4318_v26 = vld [vmem:[#allocation4 + $0x21] sm:$0xff] }
 0x59f   : > { %4200 = vst.msk [vmem:[#allocation4 + $0x40] sm:$0xff] %vm1330_vm3, %v4153_v61  ;;  %11423 = vmatpush3.bf16.msra.mxu1 %v12792_v49  ;;  %11462 = vmatprep.subr.bf16.mxu0 %v12990_v31  ;;  %v4328_v13 = vpack.c.bf16 %v4317_v35, %v4316_v17  ;;  %v4298_v38 = vld [vmem:[#allocation4 + $0x20] sm:$0xff]  ;;  %v12805_v1 = vld [vmem:[%s16721_s4 + $0x1d8] sm:$0xff]  }
 0x5a0   : > { %11424 = vmatprep.subr.bf16.mxu1 %v12990_v31  ;;  %v4309_v46 = vpack.c.bf16 %v4299_v23, %v4298_v38  ;;  %v4768_v48 = vld [vmem:[#allocation4 + $0x1a] sm:$0xff]  ;;  %v4769_v36 = vld [vmem:[#allocation4 + $0x22] sm:$0xff] }
 0x5a1   : > { %11399 = vmatmul.mubr.msk.bf16.gmra.mrb[216].mxu0 %vm1330_vm3, %v4308_v28  ;;  %v11343_v62 = vpop.f32.mrb[190].mxu1  ;;  %v4301_v56 = vld [vmem:[#allocation4 + $0x38] sm:$0xff]  ;;  %v4780_v18 = vpack.c.bf16 %v4769_v36, %v4768_v48  ;;  %v12804_v49 = vld [vmem:[%s16721_s4 + $0x1b0] sm:$0xff]   ;;  %v4614_v57 = vpack.c.bf16 %v4768_v48, %v4767_v60  ;;  %v12806_v61 = vld [vmem:[%s16721_s4 + $0x1b8] sm:$0xff]  }
 0x5a2   : > { %11402 = vmatprep.mubr.msk.bf16.mxu0 %vm12991_vm7, %v12990_v31  ;;  %4203 = vst.msk [vmem:[#allocation4 + $0x58] sm:$0xff] %vm1330_vm3, %v11343_v62  ;;  %v4163_v10 = vpop.f32.mrb[191].mxu1  ;;  %11463 = vmatpush3.bf16.msra.mxu0 %v12795_v50  ;;  %v4319_v47 = vld [vmem:[#allocation4 + $0x29] sm:$0xff]  ;;  %v4320_v9 = vld [vmem:[#allocation4 + $0x31] sm:$0xff] }
 0x5a3   : > { %4202 = vst.msk [vmem:[#allocation4 + $0x50] sm:$0xff] %vm1330_vm3, %v4163_v10  ;;  %11425 = vmatpush3.bf16.msra.mxu1 %v12794_v45  ;;  %11464 = vmatprep.subr.bf16.mxu0 %v12990_v31  ;;  %v4329_v8 = vpack.c.bf16 %v4319_v47, %v4318_v26  ;;  %v4300_v11 = vld [vmem:[#allocation4 + $0x30] sm:$0xff] }
 0x5a4   : > { %11426 = vmatprep.subr.bf16.mxu1 %v12990_v31  ;;  %v4310_v21 = vpack.c.bf16 %v4301_v56, %v4300_v11  ;;  %v4770_v44 = vld [vmem:[#allocation4 + $0x2a] sm:$0xff]  ;;  %v4771_v40 = vld [vmem:[#allocation4 + $0x32] sm:$0xff] }
 0x5a5   : > { %v11346_v34 = vpop.f32.mrb[192].mxu1  ;;  %11363 = vmatmul.mubr.msk.bf16.gmra.mrb[200].mxu1 %vm1330_vm3, %v4328_v13  ;;  %v4303_v6 = vld [vmem:[#allocation4 + $0x48] sm:$0xff]  ;;  %v4781_v27 = vpack.c.bf16 %v4771_v40, %v4770_v44  ;;  %v4615_v50 = vpack.c.bf16 %v4770_v44, %v4769_v36  ;;  %v14991_v47 = vld [vmem:[#allocation4 + $0x14] sm:$0xff] }
 0x5a6   : > { %4205 = vst.msk [vmem:[#allocation4 + $0x68] sm:$0xff] %vm1330_vm3, %v11346_v34  ;;  %v4173_v29 = vpop.f32.mrb[193].mxu1  ;;  %11465 = vmatpush3.bf16.msra.mxu0 %v12797_v33  ;;  %11366 = vmatprep.mubr.msk.bf16.mxu1 %vm12991_vm7, %v12990_v31  ;;  %v4321_v5 = vld [vmem:[#allocation4 + $0x39] sm:$0xff]  ;;  %v4322_v51 = vld [vmem:[#allocation4 + $0x41] sm:$0xff]  ;;  %v5098_v26 = vld [vmem:[#allocation4 + $0xc] sm:$0xff] }
 0x5a7   : > { %4204 = vst.msk [vmem:[#allocation4 + $0x60] sm:$0xff] %vm1330_vm3, %v4173_v29  ;;  %11427 = vmatpush3.bf16.msra.mxu1 %v12796_v15  ;;  %11530 = vmatprep.subr.bf16.mxu0 %v12990_v31  ;;  %v4330_v22 = vpack.c.bf16 %v4321_v5, %v4320_v9  ;;  %v4302_v54 = vld [vmem:[#allocation4 + $0x40] sm:$0xff]  ;;  %v4932_v11 = vld [vmem:[#allocation4 + $0xb] sm:$0xff]  ;;  %v4933_v56 = vld [vmem:[#allocation4 + $0x13] sm:$0xff] }
 0x5a8   : > { %11428 = vmatprep.subr.bf16.mxu1 %v12990_v31  ;;  %v4311_v24 = vpack.c.bf16 %v4303_v6, %v4302_v54  ;;  %v4772_v28 = vld [vmem:[#allocation4 + $0x3a] sm:$0xff]  ;;  %v4773_v45 = vld [vmem:[#allocation4 + $0x42] sm:$0xff]  ;;  %v12808_v9 = vld [vmem:[%s16721_s4 + $0x1e0] sm:$0xff]  }
 0x5a9   : > { %11403 = vmatmul.mubr.msk.bf16.gmra.mrb[220].mxu0 %vm1330_vm3, %v4309_v46  ;;  %v11349_v19 = vpop.f32.mrb[194].mxu1  ;;  %v4305_v12 = vld [vmem:[#allocation4 + $0x58] sm:$0xff]  ;;  %v4782_v35 = vpack.c.bf16 %v4773_v45, %v4772_v28  ;;  %v4616_v62 = vpack.c.bf16 %v4772_v28, %v4771_v40  ;;  %v15012_v54 = vld [vmem:[#allocation4 + $0x24] sm:$0xff] }
 0x5aa   : > { %11406 = vmatprep.mubr.msk.bf16.mxu0 %vm12991_vm7, %v12990_v31  ;;  %4207 = vst.msk [vmem:[#allocation4 + $0x78] sm:$0x3] %vm1376_vm4, %v11349_v19  ;;  %v4183_v2 = vpop.f32.mrb[195].mxu1  ;;  %v4323_v55 = vld [vmem:[#allocation4 + $0x49] sm:$0xff]  ;;  %v4324_v43 = vld [vmem:[#allocation4 + $0x51] sm:$0xff]  ;;  %v15010_v5 = vld [vmem:[#allocation4 + $0x1c] sm:$0xff] }
 0x5ab   : > { %11429 = vmatpush3.bf16.msra.mxu1 %v12798_v52  ;;  %4206 = vst.msk [vmem:[#allocation4 + $0x70] sm:$0xff] %vm1330_vm3, %v4183_v2  ;;  %v4331_v30 = vpack.c.bf16 %v4323_v55, %v4322_v51  ;;  %v4304_v53 = vld [vmem:[#allocation4 + $0x50] sm:$0xff]  ;;  %v12811_v6 = vld [vmem:[%s16721_s4 + $0x210] sm:$0xff]   ;;  %v12810_v51 = vld [vmem:[%s16721_s4 + $0x1e8] sm:$0xff]  }
 0x5ac   : > { %11494 = vmatprep.subr.bf16.mxu1 %v12990_v31  ;;  %v4312_v63 = vpack.c.bf16 %v4305_v12, %v4304_v53  ;;  %v4774_v10 = vld [vmem:[#allocation4 + $0x4a] sm:$0xff]  ;;  %v4775_v33 = vld [vmem:[#allocation4 + $0x52] sm:$0xff]  ;;  %v4934_v55 = vld [vmem:[#allocation4 + $0x1b] sm:$0xff] }
 0x5ad   : > { %11367 = vmatmul.mubr.msk.bf16.gmra.mrb[204].mxu1 %vm1330_vm3, %v4329_v8  ;;  %v4783_v17 = vpack.c.bf16 %v4775_v33, %v4774_v10  ;;  %v4617_v15 = vpack.c.bf16 %v4774_v10, %v4773_v45  ;;  %v4778_v29 = vld [vmem:[#allocation4 + $0x6a] sm:$0xf]  ;;  %v12807_v2 = vld [vmem:[%s16721_s4 + $0x200] sm:$0xff]   ;;  %v5111_v8 = vpack.c.bf16 %v14991_v47, %v5098_v26  ;;  %v12812_v12 = vld [vmem:[%s16721_s4 + $0x1f0] sm:$0xff]  }
 0x5ae   : > { %11370 = vmatprep.mubr.msk.bf16.mxu1 %vm12991_vm7, %v12990_v31  ;;  %v4325_v16 = vld [vmem:[#allocation4 + $0x59] sm:$0xff]  ;;  %v4326_v42 = vld [vmem:[#allocation4 + $0x61] sm:$0xf]  ;;  %v4785_v46 = vpack.c.bf16 %v4778_v29, %v4778_v29  ;;  %v12813_v53 = vld [vmem:[%s16721_s4 + $0x218] sm:$0xff]  }
 0x5af   : > { %v4332_v59 = vpack.c.bf16 %v4325_v16, %v4324_v43  ;;  %v4306_v39 = vld [vmem:[#allocation4 + $0x60] sm:$0xf]  ;;  %v4333_v3 = vpack.c.bf16 %v4326_v42, %v4326_v42  ;;  %v15037_v43 = vld [vmem:[#allocation4 + $0x2c] sm:$0xff]  ;;  %v15039_v16 = vld [vmem:[#allocation4 + $0x34] sm:$0xff] }
 0x5b0   : > { %v4313_v0 = vpack.c.bf16 %v4306_v39, %v4306_v39  ;;  %v4776_v13 = vld [vmem:[#allocation4 + $0x5a] sm:$0xff]  ;;  %v4777_v38 = vld [vmem:[#allocation4 + $0x62] sm:$0xff]  ;;  %v4940_v36 = vld [vmem:[#allocation4 + $0x4b] sm:$0xff] }
 0x5b1   : > { %11407 = vmatmul.mubr.msk.bf16.gmra.mrb[224].mxu0 %vm1330_vm3, %v4310_v21  ;;  %v4784_v23 = vpack.c.bf16 %v4777_v38, %v4776_v13  ;;  %v4618_v34 = vpack.c.bf16 %v4776_v13, %v4775_v33  ;;  %v4612_v52 = vld [vmem:[#allocation4 + $0x62] sm:$0xf]  ;;  %v12809_v21 = vld [vmem:[%s16721_s4 + $0x208] sm:$0xff]   ;;  %v12814_v39 = vld [vmem:[%s16721_s4 + $0x1f8] sm:$0xff]   ;;  %v5277_v33 = vpack.c.bf16 %v15010_v5, %v14991_v47 }
 0x5b2   : > { %11410 = vmatprep.mubr.msk.bf16.mxu0 %vm12991_vm7, %v12990_v31  ;;  %v4619_v19 = vpack.c.bf16 %v4612_v52, %v4612_v52  ;;  %v4937_v42 = vld [vmem:[#allocation4 + $0x33] sm:$0xff]  ;;  %v15054_v4 = vld [vmem:[#allocation4 + $0x3c] sm:$0xff]  ;;  %v15056_v60 = vld [vmem:[#allocation4 + $0x44] sm:$0xff] }
 0x5b3   : > { %v4943_v44 = vld [vmem:[#allocation4 + $0x63] sm:$0xff]  ;;  %v12815_v10 = vld [vmem:[%s16721_s4 + $0x220] sm:$0xff]   ;;  %v12816_v38 = vld [vmem:[%s16721_s4 + $0x228] sm:$0xff]   ;;  %v5279_v47 = vpack.c.bf16 %v15054_v4, %v15039_v16 }
 0x5b4   : > { %v5431_v28 = vld [vmem:[#allocation4 + $0x1d] sm:$0xff]  ;;  %v5434_v29 = vld [vmem:[#allocation4 + $0x35] sm:$0xff]  ;;  %v12818_v26 = vld [vmem:[%s16721_s4 + $0x238] sm:$0xff]  }
 0x5b5   : > { %11371 = vmatmul.mubr.msk.bf16.gmra.mrb[208].mxu1 %vm1330_vm3, %v4330_v22  ;;  %v4945_v22 = vpack.c.bf16 %v4933_v56, %v4932_v11  ;;  %v5438_v56 = vld [vmem:[#allocation4 + $0x55] sm:$0xff] }
 0x5b6   : > { %11374 = vmatprep.mubr.msk.bf16.mxu1 %vm12991_vm7, %v12990_v31 }
 0x5b9   : > { %11411 = vmatmul.mubr.msk.bf16.gmra.mrb[228].mxu0 %vm1330_vm3, %v4311_v24  ;;  %v5112_v24 = vpack.c.bf16 %v15012_v54, %v15010_v5 }
 0x5ba   : > { %11414 = vmatprep.mubr.msk.bf16.mxu0 %vm12991_vm7, %v12990_v31 }
 0x5bd   : > { %11375 = vmatmul.mubr.msk.bf16.gmra.mrb[212].mxu1 %vm1330_vm3, %v4331_v30  ;;  %v4935_v30 = vld [vmem:[#allocation4 + $0x23] sm:$0xff] }
 0x5be   : > { %11378 = vmatprep.mubr.msk.bf16.mxu1 %vm12991_vm7, %v12990_v31 }
 0x5c1   : > { %11415 = vmatmul.mubr.msk.bf16.gmra.mrb[232].mxu0 %vm1330_vm3, %v4312_v63  ;;  %v4946_v63 = vpack.c.bf16 %v4935_v30, %v4934_v55  ;;  %v5442_v55 = vld [vmem:[#allocation4 + $0x75] sm:$0xf] }
 0x5c2   : > { %11418 = vmatprep.mubr.msk.bf16.mxu0 %vm12991_vm7, %v12990_v31 }
 0x5c5   : > { %11379 = vmatmul.mubr.msk.bf16.gmra.mrb[216].mxu1 %vm1330_vm3, %v4332_v59  ;;  %v5113_v59 = vpack.c.bf16 %v15039_v16, %v15037_v43  ;;  %v5276_v16 = vld [vmem:[#allocation4 + $0x74] sm:$0xf] }
 0x5c6   : > { %11382 = vmatprep.mubr.msk.bf16.mxu1 %vm12991_vm7, %v12990_v31 }
 0x5c9   : > { %11419 = vmatmul.mubr.msk.bf16.gmra.mrb[236].mxu0 %vm1330_vm3, %v4313_v0  ;;  %v4936_v0 = vld [vmem:[#allocation4 + $0x2b] sm:$0xff] }
 0x5ca   : > { %11466 = vmatprep.mubr.msk.bf16.mxu0 %vm12991_vm7, %v12990_v31 }
 0x5cd   : > { %11383 = vmatmul.mubr.msk.bf16.gmra.mrb[220].mxu1 %vm1330_vm3, %v4333_v3  ;;  %v4947_v3 = vpack.c.bf16 %v4937_v42, %v4936_v0  ;;  %v12892_v42 = vld [vmem:[%s16724_s7] sm:$0xff] }
 0x5ce   : > { %11430 = vmatprep.mubr.msk.bf16.mxu1 %vm12991_vm7, %v12990_v31 }
 0x5d1   : > { %11467 = vmatmul.mubr.msk.bf16.vlgmr.msra.gmra.mrb[240].mxu0 %vm1330_vm3, %v4779_v58  ;;  %v4938_v58 = vld [vmem:[#allocation4 + $0x3b] sm:$0xff] }
 0x5d2   : > { %11470 = vmatprep.mubr.msk.bf16.mxu0 %vm12991_vm7, %v12990_v31  ;;  %11531 = vmatpush3.bf16.msra.mxu0 %v12799_v20  ;;  %v5114_v20 = vpack.c.bf16 %v15056_v60, %v15054_v4  ;;  %v5283_v4 = vpack.c.bf16 %v5276_v16, %v5276_v16 }
 0x5d3   : > { %11532 = vmatprep.subr.bf16.mxu0 %v12990_v31 }
 0x5d5   : > { %11431 = vmatmul.mubr.msk.bf16.vlgmr.msra.gmra.mrb[224].mxu1 %vm1330_vm3, %v4613_v14  ;;  %v15069_v14 = vld [vmem:[#allocation4 + $0x54] sm:$0xff] }
 0x5d6   : > { %11533 = vmatpush3.bf16.msra.mxu0 %v12801_v25  ;;  %11434 = vmatprep.mubr.msk.bf16.mxu1 %vm12991_vm7, %v12990_v31  ;;  %v4939_v25 = vld [vmem:[#allocation4 + $0x43] sm:$0xff] }
 0x5d7   : > { %11495 = vmatpush3.bf16.msra.mxu1 %v12800_v41  ;;  %11534 = vmatprep.subr.bf16.mxu0 %v12990_v31  ;;  %v4948_v32 = vpack.c.bf16 %v4939_v25, %v4938_v58  ;;  %v15067_v41 = vld [vmem:[#allocation4 + $0x4c] sm:$0xff] }
 0x5d8   : > { %11496 = vmatprep.subr.bf16.mxu1 %v12990_v31  ;;  %v5115_v48 = vpack.c.bf16 %v15069_v14, %v15067_v41  ;;  %v5280_v11 = vpack.c.bf16 %v15067_v41, %v15056_v60 }
 0x5d9   : > { %11471 = vmatmul.mubr.msk.bf16.gmra.mrb[244].mxu0 %vm1330_vm3, %v4780_v18 }
 0x5da   : > { %11474 = vmatprep.mubr.msk.bf16.mxu0 %vm12991_vm7, %v12990_v31  ;;  %11535 = vmatpush3.bf16.msra.mxu0 %v12803_v37  ;;  %v4941_v37 = vld [vmem:[#allocation4 + $0x53] sm:$0xff] }
 0x5db   : > { %11497 = vmatpush3.bf16.msra.mxu1 %v12802_v7  ;;  %11536 = vmatprep.subr.bf16.mxu0 %v12990_v31  ;;  %v4949_v18 = vpack.c.bf16 %v4941_v37, %v4940_v36  ;;  %v15079_v7 = vld [vmem:[#allocation4 + $0x5c] sm:$0xff] }
 0x5dc   : > { %11498 = vmatprep.subr.bf16.mxu1 %v12990_v31  ;;  %v5281_v5 = vpack.c.bf16 %v15079_v7, %v15069_v14  ;;  %v5597_v14 = vld [vmem:[#allocation4 + $0x1e] sm:$0xff] }
 0x5dd   : > { %11435 = vmatmul.mubr.msk.bf16.gmra.mrb[228].mxu1 %vm1330_vm3, %v4614_v57  ;;  %v4942_v57 = vld [vmem:[#allocation4 + $0x5b] sm:$0xff] }
 0x5de   : > { %11537 = vmatpush3.bf16.msra.mxu0 %v12805_v1  ;;  %11438 = vmatprep.mubr.msk.bf16.mxu1 %vm12991_vm7, %v12990_v31  ;;  %v15081_v1 = vld [vmem:[#allocation4 + $0x64] sm:$0xff]  ;;  %v4950_v40 = vpack.c.bf16 %v4943_v44, %v4942_v57 }
 0x5df   : > { %11499 = vmatpush3.bf16.msra.mxu1 %v12804_v49  ;;  %11602 = vmatprep.subr.bf16.mxu0 %v12990_v31  ;;  %v5116_v49 = vpack.c.bf16 %v15081_v1, %v15079_v7 }
 0x5e0   : > { %11500 = vmatprep.subr.bf16.mxu1 %v12990_v31 }
 0x5e1   : > { %11475 = vmatmul.mubr.msk.bf16.gmra.mrb[248].mxu0 %vm1330_vm3, %v4781_v27  ;;  %v5110_v27 = vld [vmem:[#allocation4 + $0x6c] sm:$0xf] }
 0x5e2   : > { %11478 = vmatprep.mubr.msk.bf16.mxu0 %vm12991_vm7, %v12990_v31 }
 0x5e3   : > { %11501 = vmatpush3.bf16.msra.mxu1 %v12806_v61  ;;  %v5117_v61 = vpack.c.bf16 %v5110_v27, %v5110_v27 }
 0x5e4   : > { %11566 = vmatprep.subr.bf16.mxu1 %v12990_v31 }
 0x5e5   : > { %11439 = vmatmul.mubr.msk.bf16.gmra.mrb[232].mxu1 %vm1330_vm3, %v4615_v50  ;;  %v4944_v50 = vld [vmem:[#allocation4 + $0x6b] sm:$0xf] }
 0x5e6   : > { %11442 = vmatprep.mubr.msk.bf16.mxu1 %vm12991_vm7, %v12990_v31  ;;  %v4951_v45 = vpack.c.bf16 %v4944_v50, %v4944_v50  ;;  %v5598_v50 = vld [vmem:[#allocation4 + $0x26] sm:$0xff] }
 0x5e9   : > { %11479 = vmatmul.mubr.msk.bf16.gmra.mrb[252].mxu0 %vm1330_vm3, %v4782_v35  ;;  %v5430_v35 = vld [vmem:[#allocation4 + $0x15] sm:$0xff] }
 0x5ea   : > { %11482 = vmatprep.mubr.msk.bf16.mxu0 %vm12991_vm7, %v12990_v31 }
 0x5ed   : > { %11443 = vmatmul.mubr.msk.bf16.gmra.mrb[236].mxu1 %vm1330_vm3, %v4616_v62  ;;  %v5443_v62 = vpack.c.bf16 %v5431_v28, %v5430_v35  ;;  %v5599_v28 = vld [vmem:[#allocation4 + $0x2e] sm:$0xff] }
 0x5ee   : > { %11446 = vmatprep.mubr.msk.bf16.mxu1 %vm12991_vm7, %v12990_v31 }
 0x5f1   : > { %11483 = vmatmul.mubr.msk.bf16.gmra.mrb[0].mxu0 %vm1330_vm3, %v4783_v17  ;;  %v5432_v17 = vld [vmem:[#allocation4 + $0x25] sm:$0xff] }
 0x5f2   : > { %11486 = vmatprep.mubr.msk.bf16.mxu0 %vm12991_vm7, %v12990_v31 }
 0x5f5   : > { %11447 = vmatmul.mubr.msk.bf16.gmra.mrb[240].mxu1 %vm1330_vm3, %v4617_v15  ;;  %v5433_v15 = vld [vmem:[#allocation4 + $0x2d] sm:$0xff] }
 0x5f6   : > { %11450 = vmatprep.mubr.msk.bf16.mxu1 %vm12991_vm7, %v12990_v31  ;;  %v5444_v13 = vpack.c.bf16 %v5433_v15, %v5432_v17 }
 0x5f9   : > { %11487 = vmatmul.mubr.msk.bf16.gmra.mrb[4].mxu0 %vm1330_vm3, %v4784_v23  ;;  %v12817_v23 = vld [vmem:[%s16721_s4 + $0x230] sm:$0xff]  }
 0x5fa   : > { %11490 = vmatprep.mubr.msk.bf16.mxu0 %vm12991_vm7, %v12990_v31 }
 0x5fd   : > { %11451 = vmatmul.mubr.msk.bf16.gmra.mrb[244].mxu1 %vm1330_vm3, %v4618_v34  ;;  %v5278_v34 = vpack.c.bf16 %v15037_v43, %v15012_v54  ;;  %v5441_v54 = vld [vmem:[#allocation4 + $0x6d] sm:$0xff] }
 0x5fe   : > { %11454 = vmatprep.mubr.msk.bf16.mxu1 %vm12991_vm7, %v12990_v31 }
 0x601   : > { %11491 = vmatmul.mubr.msk.bf16.gmra.mrb[8].mxu0 %vm1330_vm3, %v4785_v46  ;;  %v5435_v46 = vld [vmem:[#allocation4 + $0x3d] sm:$0xff] }
 0x602   : > { %11538 = vmatprep.mubr.msk.bf16.mxu0 %vm12991_vm7, %v12990_v31  ;;  %v5445_v52 = vpack.c.bf16 %v5435_v46, %v5434_v29  ;;  %v5600_v29 = vld [vmem:[#allocation4 + $0x36] sm:$0xff]  ;;  %v5601_v46 = vld [vmem:[#allocation4 + $0x3e] sm:$0xff] }
 0x605   : > { %11455 = vmatmul.mubr.msk.bf16.gmra.mrb[248].mxu1 %vm1330_vm3, %v4619_v19  ;;  %v5436_v19 = vld [vmem:[#allocation4 + $0x45] sm:$0xff] }
 0x606   : > { %11502 = vmatprep.mubr.msk.bf16.mxu1 %vm12991_vm7, %v12990_v31 }
 0x609   : > { %11539 = vmatmul.mubr.msk.bf16.vlgmr.msra.gmra.mrb[12].mxu0 %vm1330_vm3, %v5111_v8 }
 0x60a   : > { %11542 = vmatprep.mubr.msk.bf16.mxu0 %vm12991_vm7, %v12990_v31  ;;  %11603 = vmatpush3.bf16.msra.mxu0 %v12807_v2  ;;  %v5437_v2 = vld [vmem:[#allocation4 + $0x4d] sm:$0xff] }
 0x60b   : > { %11604 = vmatprep.subr.bf16.mxu0 %v12990_v31  ;;  %v5446_v8 = vpack.c.bf16 %v5437_v2, %v5436_v19  ;;  %v5611_v2 = vpack.c.bf16 %v5601_v46, %v5600_v29 }
 0x60d   : > { %11503 = vmatmul.mubr.msk.bf16.vlgmr.msra.gmra.mrb[252].mxu1 %vm1330_vm3, %v4945_v22  ;;  %v5440_v22 = vld [vmem:[#allocation4 + $0x65] sm:$0xff] }
 0x60e   : > { %11605 = vmatpush3.bf16.msra.mxu0 %v12809_v21  ;;  %11506 = vmatprep.mubr.msk.bf16.mxu1 %vm12991_vm7, %v12990_v31  ;;  %v5439_v21 = vld [vmem:[#allocation4 + $0x5d] sm:$0xff] }
 0x60f   : > { %11567 = vmatpush3.bf16.msra.mxu1 %v12808_v9  ;;  %11606 = vmatprep.subr.bf16.mxu0 %v12990_v31  ;;  %v5447_v9 = vpack.c.bf16 %v5439_v21, %v5438_v56 }
 0x610   : > { %11568 = vmatprep.subr.bf16.mxu1 %v12990_v31 }
 0x611   : > { %11543 = vmatmul.mubr.msk.bf16.gmra.mrb[16].mxu0 %vm1330_vm3, %v5112_v24  ;;  %v5275_v24 = vld [vmem:[#allocation4 + $0x6c] sm:$0xff] }
 0x612   : > { %11546 = vmatprep.mubr.msk.bf16.mxu0 %vm12991_vm7, %v12990_v31  ;;  %11607 = vmatpush3.bf16.msra.mxu0 %v12811_v6  ;;  %v5448_v6 = vpack.c.bf16 %v5441_v54, %v5440_v22  ;;  %v5602_v22 = vld [vmem:[#allocation4 + $0x46] sm:$0xff]  ;;  %v5603_v54 = vld [vmem:[#allocation4 + $0x4e] sm:$0xff] }
 0x613   : > { %11569 = vmatpush3.bf16.msra.mxu1 %v12810_v51  ;;  %11608 = vmatprep.subr.bf16.mxu0 %v12990_v31  ;;  %v5282_v51 = vpack.c.bf16 %v5275_v24, %v15081_v1 }
 0x614   : > { %11570 = vmatprep.subr.bf16.mxu1 %v12990_v31 }
 0x615   : > { %11507 = vmatmul.mubr.msk.bf16.gmra.mrb[0].mxu1 %vm1330_vm3, %v4946_v63  ;;  %v5449_v63 = vpack.c.bf16 %v5442_v55, %v5442_v55 }
 0x616   : > { %11609 = vmatpush3.bf16.msra.mxu0 %v12813_v53  ;;  %11510 = vmatprep.mubr.msk.bf16.mxu1 %vm12991_vm7, %v12990_v31 }
 0x617   : > { %11571 = vmatpush3.bf16.msra.mxu1 %v12812_v12 }
 0x618   : > { %11572 = vmatprep.subr.bf16.mxu1 %v12990_v31 }
 0x619   : > { %11547 = vmatmul.mubr.msk.bf16.gmra.mrb[20].mxu0 %vm1330_vm3, %v5113_v59 }
 0x61a   : > { %11550 = vmatprep.mubr.msk.bf16.mxu0 %vm12991_vm7, %v12990_v31 }
 0x61b   : > { %11573 = vmatpush3.bf16.msra.mxu1 %v12814_v39 }
 0x61c   : > { %11638 = vmatprep.subr.bf16.mxu1 %v12990_v31 }
 0x61d   : > { %11511 = vmatmul.mubr.msk.bf16.gmra.mrb[4].mxu1 %vm1330_vm3, %v4947_v3 }
 0x61e   : > { %11514 = vmatprep.mubr.msk.bf16.mxu1 %vm12991_vm7, %v12990_v31 }
 0x621   : > { %11551 = vmatmul.mubr.msk.bf16.gmra.mrb[24].mxu0 %vm1330_vm3, %v5114_v20 }
 0x622   : > { %11554 = vmatprep.mubr.msk.bf16.mxu0 %vm12991_vm7, %v12990_v31 }
 0x625   : > { %11515 = vmatmul.mubr.msk.bf16.gmra.mrb[8].mxu1 %vm1330_vm3, %v4948_v32 }
 0x626   : > { %11518 = vmatprep.mubr.msk.bf16.mxu1 %vm12991_vm7, %v12990_v31 }
 0x629   : > { %11555 = vmatmul.mubr.msk.bf16.gmra.mrb[28].mxu0 %vm1330_vm3, %v5115_v48 }
 0x62a   : > { %11558 = vmatprep.mubr.msk.bf16.mxu0 %vm12991_vm7, %v12990_v31 }
 0x62d   : > { %11519 = vmatmul.mubr.msk.bf16.gmra.mrb[12].mxu1 %vm1330_vm3, %v4949_v18  ;;  %v5596_v18 = vld [vmem:[#allocation4 + $0x16] sm:$0xff] }
 0x62e   : > { %11522 = vmatprep.mubr.msk.bf16.mxu1 %vm12991_vm7, %v12990_v31  ;;  %v5609_v1 = vpack.c.bf16 %v5597_v14, %v5596_v18 }
 0x631   : > { %11559 = vmatmul.mubr.msk.bf16.gmra.mrb[32].mxu0 %vm1330_vm3, %v5116_v49 }
 0x632   : > { %11562 = vmatprep.mubr.msk.bf16.mxu0 %vm12991_vm7, %v12990_v31 }
 0x635   : > { %11523 = vmatmul.mubr.msk.bf16.gmra.mrb[16].mxu1 %vm1330_vm3, %v4950_v40 }
 0x636   : > { %11526 = vmatprep.mubr.msk.bf16.mxu1 %vm12991_vm7, %v12990_v31 }
 0x639   : > { %11563 = vmatmul.mubr.msk.bf16.gmra.mrb[36].mxu0 %vm1330_vm3, %v5117_v61 }
 0x63a   : > { %11610 = vmatprep.mubr.msk.bf16.mxu0 %vm12991_vm7, %v12990_v31 }
 0x63d   : > { %11527 = vmatmul.mubr.msk.bf16.gmra.mrb[20].mxu1 %vm1330_vm3, %v4951_v45 }
 0x63e   : > { %11574 = vmatprep.mubr.msk.bf16.mxu1 %vm12991_vm7, %v12990_v31 }
 0x641   : > { %11611 = vmatmul.mubr.msk.bf16.vlgmr.msra.gmra.mrb[40].mxu0 %vm1330_vm3, %v5443_v62 }
 0x642   : > { %11614 = vmatprep.mubr.msk.bf16.mxu0 %vm12991_vm7, %v12990_v31 }
 0x645   : > { %11575 = vmatmul.mubr.msk.bf16.vlgmr.msra.gmra.mrb[24].mxu1 %vm1330_vm3, %v5277_v33  ;;  %v5610_v33 = vpack.c.bf16 %v5599_v28, %v5598_v50 }
 0x646   : > { %11578 = vmatprep.mubr.msk.bf16.mxu1 %vm12991_vm7, %v12990_v31  ;;  %11639 = vmatpush3.bf16.msra.mxu1 %v12815_v10 }
 0x647   : > { %11640 = vmatprep.subr.bf16.mxu1 %v12990_v31 }
 0x649   : > { %11615 = vmatmul.mubr.msk.bf16.gmra.mrb[44].mxu0 %vm1330_vm3, %v5444_v13 }
 0x64a   : > { %11618 = vmatprep.mubr.msk.bf16.mxu0 %vm12991_vm7, %v12990_v31  ;;  %11641 = vmatpush3.bf16.msra.mxu1 %v12816_v38 }
 0x64b   : > { %11642 = vmatprep.subr.bf16.mxu1 %v12990_v31 }
 0x64d   : > { %11579 = vmatmul.mubr.msk.bf16.gmra.mrb[28].mxu1 %vm1330_vm3, %v5278_v34 }
 0x64e   : > { %11582 = vmatprep.mubr.msk.bf16.mxu1 %vm12991_vm7, %v12990_v31  ;;  %11643 = vmatpush3.bf16.msra.mxu1 %v12817_v23 }
 0x64f   : > { %11644 = vmatprep.subr.bf16.mxu1 %v12990_v31 }
 0x651   : > { %11619 = vmatmul.mubr.msk.bf16.gmra.mrb[48].mxu0 %vm1330_vm3, %v5445_v52 }
 0x652   : > { %11622 = vmatprep.mubr.msk.bf16.mxu0 %vm12991_vm7, %v12990_v31  ;;  %11645 = vmatpush3.bf16.msra.mxu1 %v12818_v26 }
 0x653   : > { %11760 = vmatprep.subr.bf16.mxu1 %v12990_v31 }
 0x655   : > { %11583 = vmatmul.mubr.msk.bf16.gmra.mrb[32].mxu1 %vm1330_vm3, %v5279_v47 }
 0x656   : > { %11586 = vmatprep.mubr.msk.bf16.mxu1 %vm12991_vm7, %v12990_v31 }
 0x659   : > { %11623 = vmatmul.mubr.msk.bf16.gmra.mrb[52].mxu0 %vm1330_vm3, %v5446_v8 }
 0x65a   : > { %11626 = vmatprep.mubr.msk.bf16.mxu0 %vm12991_vm7, %v12990_v31 }
 0x65d   : > { %11587 = vmatmul.mubr.msk.bf16.gmra.mrb[36].mxu1 %vm1330_vm3, %v5280_v11 }
 0x65e   : > { %11590 = vmatprep.mubr.msk.bf16.mxu1 %vm12991_vm7, %v12990_v31 }
 0x661   : > { %11627 = vmatmul.mubr.msk.bf16.gmra.mrb[56].mxu0 %vm1330_vm3, %v5447_v9 }
 0x662   : > { %11630 = vmatprep.mubr.msk.bf16.mxu0 %vm12991_vm7, %v12990_v31 }
 0x665   : > { %11591 = vmatmul.mubr.msk.bf16.gmra.mrb[40].mxu1 %vm1330_vm3, %v5281_v5 }
 0x666   : > { %11594 = vmatprep.mubr.msk.bf16.mxu1 %vm12991_vm7, %v12990_v31 }
 0x669   : > { %11631 = vmatmul.mubr.msk.bf16.gmra.mrb[60].mxu0 %vm1330_vm3, %v5448_v6 }
 0x66a   : > { %11634 = vmatprep.mubr.msk.bf16.mxu0 %vm12991_vm7, %v12990_v31 }
 0x66c   : > { %v4546_v30 = vpop.f32.mrb[212].mxu0 }
 0x66d   : > { %v11396_v53 = vpop.f32.mrb[213].mxu0  ;;  %11595 = vmatmul.mubr.msk.bf16.gmra.mrb[44].mxu1 %vm1330_vm3, %v5282_v51 }
 0x66e   : > { %v4549_v12 = vpop.f32.mrb[214].mxu0  ;;  %11598 = vmatprep.mubr.msk.bf16.mxu1 %vm12991_vm7, %v12990_v31 }
 0x66f   : > { %v11397_v43 = vpop.f32.mrb[215].mxu0 }
 0x670   : > { %v4413_v59 = vpop.f32.mrb[196].mxu1 }
 0x671   : > { %11635 = vmatmul.mubr.msk.bf16.gmra.mrb[64].mxu0 %vm1330_vm3, %v5449_v63  ;;  %v11360_v39 = vpop.f32.mrb[197].mxu1  ;;  %v15164_v0 = vadd.f32 %v4546_v30, %v4413_v59  ;;  %v5612_v30 = vpack.c.bf16 %v5603_v54, %v5602_v22 }
 0x672   : > { %11700 = vmatprep.mubr.msk.f32.mxu0 %vm3995_vm8, %v12892_v42  ;;  %v4416_v3 = vpop.f32.mrb[198].mxu1  ;;  %v5604_v39 = vld [vmem:[#allocation4 + $0x56] sm:$0xff]  ;;  %v5605_v42 = vld [vmem:[#allocation4 + $0x5e] sm:$0xff] }
 0x673   : > { %v11361_v60 = vpop.f32.mrb[199].mxu1  ;;  %v15170_v20 = vadd.f32 %v4549_v12, %v4416_v3 }
 0x674   : > { %v4554_v58 = vpop.f32.mrb[216].mxu0 }
 0x675   : > { %v11400_v25 = vpop.f32.mrb[217].mxu0  ;;  %11599 = vmatmul.mubr.msk.bf16.gmra.mrb[48].mxu1 %vm1330_vm3, %v5283_v4 }
 0x676   : > { %v4557_v32 = vpop.f32.mrb[218].mxu0  ;;  %11646 = vmatprep.mubr.msk.bf16.mxu1 %vm12991_vm7, %v12990_v31  ;;  %v5613_v25 = vpack.c.bf16 %v5605_v42, %v5604_v39 }
 0x677   : > { %v11401_v41 = vpop.f32.mrb[219].mxu0 }
 0x678   : > { %v4421_v48 = vpop.f32.mrb[200].mxu1 }
 0x679   : > { %v11364_v36 = vpop.f32.mrb[201].mxu1  ;;  %v15175_v37 = vadd.f32 %v4554_v58, %v4421_v48 }
 0x67a   : > { %v4424_v7 = vpop.f32.mrb[202].mxu1 }
 0x67b   : > { %v11365_v49 = vpop.f32.mrb[203].mxu1  ;;  %v15177_v57 = vadd.f32 %v4557_v32, %v4424_v7  ;;  %v5606_v7 = vld [vmem:[#allocation4 + $0x66] sm:$0xff] }
 0x67c   : > { %v4562_v44 = vpop.f32.mrb[220].mxu0 }
 0x67d   : > { %v11404_v40 = vpop.f32.mrb[221].mxu0  ;;  %11647 = vmatmul.mubr.msk.bf16.vlgmr.msra.gmra.mrb[52].mxu1 %vm1330_vm3, %v5609_v1  ;;  %v5607_v1 = vld [vmem:[#allocation4 + $0x6e] sm:$0xff] }
 0x67e   : > { %v4565_v27 = vpop.f32.mrb[222].mxu0  ;;  %11650 = vmatprep.mubr.msk.bf16.mxu1 %vm12991_vm7, %v12990_v31 }
 0x67f   : > { %v11405_v61 = vpop.f32.mrb[223].mxu0 }
 0x680   : > { %v4429_v45 = vpop.f32.mrb[204].mxu1  ;;  %v5614_v61 = vpack.c.bf16 %v5607_v1, %v5606_v7 }
 0x681   : > { %v11368_v35 = vpop.f32.mrb[205].mxu1  ;;  %v15182_v62 = vadd.f32 %v4562_v44, %v4429_v45 }
 0x682   : > { %v4432_v10 = vpop.f32.mrb[206].mxu1 }
 0x683   : > { %v11369_v17 = vpop.f32.mrb[207].mxu1  ;;  %v15184_v15 = vadd.f32 %v4565_v27, %v4432_v10 }
 0x684   : > { %v4570_v13 = vpop.f32.mrb[224].mxu0 }
 0x685   : > { %v11408_v38 = vpop.f32.mrb[225].mxu0  ;;  %11651 = vmatmul.mubr.msk.bf16.gmra.mrb[56].mxu1 %vm1330_vm3, %v5610_v33  ;;  %v5608_v33 = vld [vmem:[#allocation4 + $0x76] sm:$0xf] }
 0x686   : > { %v4573_v23 = vpop.f32.mrb[226].mxu0  ;;  %11654 = vmatprep.mubr.msk.bf16.mxu1 %vm12991_vm7, %v12990_v31 }
 0x687   : > { %v11409_v34 = vpop.f32.mrb[227].mxu0 }
 0x688   : > { %v4437_v52 = vpop.f32.mrb[208].mxu1  ;;  %v5615_v34 = vpack.c.bf16 %v5608_v33, %v5608_v33 }
 0x689   : > { %v11372_v26 = vpop.f32.mrb[209].mxu1  ;;  %v15189_v47 = vadd.f32 %v4570_v13, %v4437_v52 }
 0x68a   : > { %v4440_v19 = vpop.f32.mrb[210].mxu1 }
 0x68b   : > { %v11373_v8 = vpop.f32.mrb[211].mxu1  ;;  %v15191_v11 = vadd.f32 %v4573_v23, %v4440_v19 }
 0x68c   : > { %v4578_v56 = vpop.f32.mrb[228].mxu0 }
 0x68d   : > { %v11412_v21 = vpop.f32.mrb[229].mxu0  ;;  %11655 = vmatmul.mubr.msk.bf16.gmra.mrb[60].mxu1 %vm1330_vm3, %v5611_v2 }
 0x68e   : > { %v4581_v9 = vpop.f32.mrb[230].mxu0  ;;  %11658 = vmatprep.mubr.msk.bf16.mxu1 %vm12991_vm7, %v12990_v31 }
 0x68f   : > { %v11413_v5 = vpop.f32.mrb[231].mxu0 }
 0x690   : > { %v4445_v6 = vpop.f32.mrb[212].mxu1 }
 0x691   : > { %v11376_v24 = vpop.f32.mrb[213].mxu1  ;;  %v15196_v51 = vadd.f32 %v4578_v56, %v4445_v6 }
 0x692   : > { %v4448_v55 = vpop.f32.mrb[214].mxu1 }
 0x693   : > { %v11377_v53 = vpop.f32.mrb[215].mxu1  ;;  %v15198_v12 = vadd.f32 %v4581_v9, %v4448_v55 }
 0x694   : > { %v4586_v63 = vpop.f32.mrb[232].mxu0 }
 0x695   : > { %v11416_v43 = vpop.f32.mrb[233].mxu0  ;;  %11659 = vmatmul.mubr.msk.bf16.gmra.mrb[64].mxu1 %vm1330_vm3, %v5612_v30 }
 0x696   : > { %v4589_v16 = vpop.f32.mrb[234].mxu0  ;;  %11662 = vmatprep.mubr.msk.bf16.mxu1 %vm12991_vm7, %v12990_v31 }
 0x697   : > { %v11417_v59 = vpop.f32.mrb[235].mxu0 }
 0x698   : > { %v4453_v3 = vpop.f32.mrb[216].mxu1 }
 0x699   : > { %v11380_v4 = vpop.f32.mrb[217].mxu1  ;;  %v15203_v60 = vadd.f32 %v4586_v63, %v4453_v3 }
 0x69a   : > { %v4456_v58 = vpop.f32.mrb[218].mxu1 }
 0x69b   : > { %v11381_v32 = vpop.f32.mrb[219].mxu1  ;;  %v15205_v41 = vadd.f32 %v4589_v16, %v4456_v58 }
 0x69c   : > { %v4594_v14 = vpop.f32.mrb[236].mxu0 }
 0x69d   : > { %v11420_v48 = vpop.f32.mrb[237].mxu0  ;;  %11663 = vmatmul.mubr.msk.bf16.gmra.mrb[68].mxu1 %vm1330_vm3, %v5613_v25 }
 0x69e   : > { %v4597_v36 = vpop.f32.mrb[238].mxu0  ;;  %11666 = vmatprep.mubr.msk.bf16.mxu1 %vm12991_vm7, %v12990_v31 }
 0x69f   : > { %v11421_v18 = vpop.f32.mrb[239].mxu0 }
 0x6a0   : > { %v4461_v49 = vpop.f32.mrb[220].mxu1 }
 0x6a1   : > { %v11384_v44 = vpop.f32.mrb[221].mxu1  ;;  %v15210_v40 = vadd.f32 %v4594_v14, %v4461_v49 }
 0x6a2   : > { %v4464_v27 = vpop.f32.mrb[222].mxu1 }
 0x6a3   : > { %v11385_v50 = vpop.f32.mrb[223].mxu1 }
 0x6a4   : > { %v4865_v28 = vpop.f32.mrb[240].mxu0 }
 0x6a5   : > { %v11468_v45 = vpop.f32.mrb[241].mxu0  ;;  %11667 = vmatmul.mubr.msk.bf16.gmra.mrb[72].mxu1 %vm1330_vm3, %v5614_v61 }
 0x6a6   : > { %v4868_v35 = vpop.f32.mrb[242].mxu0  ;;  %11670 = vmatprep.mubr.msk.bf16.mxu1 %vm12991_vm7, %v12990_v31 }
 0x6a7   : > { %v11469_v10 = vpop.f32.mrb[243].mxu0 }
 0x6a8   : > { %v4699_v17 = vpop.f32.mrb[224].mxu1 }
 0x6a9   : > { %v4753_v13 = vadd.f32 %v4699_v17, %v15164_v0  ;;  %v11432_v38 = vpop.f32.mrb[225].mxu1 }
 0x6aa   : > { %v4702_v23 = vpop.f32.mrb[226].mxu1 }
 0x6ab   : > { %v15216_v29 = vadd.f32 %v4865_v28, %v4753_v13  ;;  %v4754_v46 = vadd.f32 %v4702_v23, %v15170_v20  ;;  %v11433_v52 = vpop.f32.mrb[227].mxu1 }
 0x6ac   : > { %v4873_v26 = vpop.f32.mrb[244].mxu0 }
 0x6ad   : > { %v11472_v19 = vpop.f32.mrb[245].mxu0  ;;  %11671 = vmatmul.mubr.msk.bf16.gmra.mrb[76].mxu1 %vm1330_vm3, %v5615_v34  ;;  %v15220_v2 = vadd.f32 %v4868_v35, %v4754_v46 }
 0x6ae   : > { %v4876_v8 = vpop.f32.mrb[246].mxu0  ;;  %11768 = vmatprep.mubr.msk.bf16.mxu1 %vm12991_vm7, %v12990_v31 }
 0x6af   : > { %v11473_v56 = vpop.f32.mrb[247].mxu0 }
 0x6b0   : > { %v4707_v0 = vpop.f32.mrb[228].mxu1 }
 0x6b1   : > { %v4755_v21 = vadd.f32 %v4707_v0, %v15175_v37  ;;  %v11436_v9 = vpop.f32.mrb[229].mxu1 }
 0x6b2   : > { %v4710_v5 = vpop.f32.mrb[230].mxu1 }
 0x6b3   : > { %v15225_v22 = vadd.f32 %v4873_v26, %v4755_v21  ;;  %v4756_v20 = vadd.f32 %v4710_v5, %v15177_v57  ;;  %v11437_v54 = vpop.f32.mrb[231].mxu1 }
 0x6b4   : > { %v4881_v6 = vpop.f32.mrb[248].mxu0 }
 0x6b5   : > { %v11476_v24 = vpop.f32.mrb[249].mxu0  ;;  %v15228_v55 = vadd.f32 %v4876_v8, %v4756_v20 }
 0x6b6   : > { %v4884_v30 = vpop.f32.mrb[250].mxu0 }
 0x6b7   : > { %v11477_v53 = vpop.f32.mrb[251].mxu0 }
 0x6b8   : > { %v4715_v63 = vpop.f32.mrb[232].mxu1 }
 0x6b9   : > { %v4757_v43 = vadd.f32 %v4715_v63, %v15182_v62  ;;  %v11440_v16 = vpop.f32.mrb[233].mxu1 }
 0x6ba   : > { %v4718_v59 = vpop.f32.mrb[234].mxu1 }
 0x6bb   : > { %v15231_v39 = vadd.f32 %v4881_v6, %v4757_v43  ;;  %v4758_v37 = vadd.f32 %v4718_v59, %v15184_v15  ;;  %v11441_v42 = vpop.f32.mrb[235].mxu1 }
 0x6bc   : > { %v4889_v3 = vpop.f32.mrb[252].mxu0 }
 0x6bd   : > { %v11480_v4 = vpop.f32.mrb[253].mxu0  ;;  %v15234_v57 = vadd.f32 %v4884_v30, %v4758_v37 }
 0x6be   : > { %v4892_v58 = vpop.f32.mrb[254].mxu0 }
 0x6bf   : > { %v11481_v25 = vpop.f32.mrb[255].mxu0 }
 0x6c0   : > { %v4723_v32 = vpop.f32.mrb[236].mxu1 }
 0x6c1   : > { %v4759_v14 = vadd.f32 %v4723_v32, %v15189_v47  ;;  %v11444_v48 = vpop.f32.mrb[237].mxu1 }
 0x6c2   : > { %v4726_v36 = vpop.f32.mrb[238].mxu1 }
 0x6c3   : > { %v15237_v18 = vadd.f32 %v4889_v3, %v4759_v14  ;;  %v4760_v62 = vadd.f32 %v4726_v36, %v15191_v11  ;;  %v11445_v7 = vpop.f32.mrb[239].mxu1 }
 0x6c4   : > { %v4897_v1 = vpop.f32.mrb[0].mxu0 }
 0x6c5   : > { %v11484_v49 = vpop.f32.mrb[1].mxu0  ;;  %v15240_v15 = vadd.f32 %v4892_v58, %v4760_v62 }
 0x6c6   : > { %v4900_v44 = vpop.f32.mrb[2].mxu0 }
 0x6c7   : > { %v11485_v27 = vpop.f32.mrb[3].mxu0 }
 0x6c8   : > { %v4731_v61 = vpop.f32.mrb[240].mxu1 }
 0x6c9   : > { %v4761_v50 = vadd.f32 %v4731_v61, %v15196_v51  ;;  %v11448_v28 = vpop.f32.mrb[241].mxu1 }
 0x6ca   : > { %v4734_v45 = vpop.f32.mrb[242].mxu1 }
 0x6cb   : > { %v15243_v35 = vadd.f32 %v4897_v1, %v4761_v50  ;;  %v4762_v47 = vadd.f32 %v4734_v45, %v15198_v12  ;;  %v11449_v10 = vpop.f32.mrb[243].mxu1 }
 0x6cc   : > { %v4905_v33 = vpop.f32.mrb[4].mxu0 }
 0x6cd   : > { %v11488_v17 = vpop.f32.mrb[5].mxu0  ;;  %v15246_v11 = vadd.f32 %v4900_v44, %v4762_v47 }
 0x6ce   : > { %v4908_v13 = vpop.f32.mrb[6].mxu0 }
 0x6cf   : > { %v11489_v38 = vpop.f32.mrb[7].mxu0 }
 0x6d0   : > { %v4739_v23 = vpop.f32.mrb[244].mxu1 }
 0x6d1   : > { %v4763_v34 = vadd.f32 %v4739_v23, %v15203_v60  ;;  %v11452_v46 = vpop.f32.mrb[245].mxu1 }
 0x6d2   : > { %v4742_v52 = vpop.f32.mrb[246].mxu1 }
 0x6d3   : > { %v15249_v26 = vadd.f32 %v4905_v33, %v4763_v34  ;;  %v4764_v51 = vadd.f32 %v4742_v52, %v15205_v41  ;;  %v11453_v19 = vpop.f32.mrb[247].mxu1 }
 0x6d4   : > { %v4913_v8 = vpop.f32.mrb[8].mxu0 }
 0x6d5   : > { %v11492_v56 = vpop.f32.mrb[9].mxu0  ;;  %v15252_v12 = vadd.f32 %v4908_v13, %v4764_v51 }
 0x6d6   : > { %v4916_v0 = vpop.f32.mrb[10].mxu0 }
 0x6d7   : > { %v11493_v21 = vpop.f32.mrb[11].mxu0 }
 0x6d8   : > { %v4747_v9 = vpop.f32.mrb[248].mxu1 }
 0x6d9   : > { %v4765_v5 = vadd.f32 %v4747_v9, %v15210_v40  ;;  %v11456_v20 = vpop.f32.mrb[249].mxu1 }
 0x6da   : > { %v4750_v54 = vpop.f32.mrb[250].mxu1 }
 0x6db   : > { %v11457_v60 = vpop.f32.mrb[251].mxu1  ;;  %v15255_v24 = vadd.f32 %v4913_v8, %v4765_v5 }
 0x6dc   : > { %v5197_v6 = vpop.f32.mrb[12].mxu0 }
 0x6dd   : > { %v11540_v30 = vpop.f32.mrb[13].mxu0 }
 0x6de   : > { %v5200_v53 = vpop.f32.mrb[14].mxu0 }
 0x6df   : > { %v11541_v63 = vpop.f32.mrb[15].mxu0 }
 0x6e0   : > { %v5031_v41 = vpop.f32.mrb[252].mxu1 }
 0x6e1   : > { %v5085_v43 = vadd.f32 %v5031_v41, %v15216_v29  ;;  %v11504_v16 = vpop.f32.mrb[253].mxu1 }
 0x6e2   : > { %v5034_v59 = vpop.f32.mrb[254].mxu1 }
 0x6e3   : > { %v5086_v37 = vadd.f32 %v5034_v59, %v15220_v2  ;;  %v11505_v42 = vpop.f32.mrb[255].mxu1  ;;  %v15259_v4 = vadd.f32 %v5197_v6, %v5085_v43 }
 0x6e4   : > { %v5205_v3 = vpop.f32.mrb[16].mxu0 }
 0x6e5   : > { %v11544_v40 = vpop.f32.mrb[17].mxu0  ;;  %v15261_v25 = vadd.f32 %v5200_v53, %v5086_v37 }
 0x6e6   : > { %v5208_v58 = vpop.f32.mrb[18].mxu0 }
 0x6e7   : > { %v11545_v32 = vpop.f32.mrb[19].mxu0 }
 0x6e8   : > { %v5039_v14 = vpop.f32.mrb[0].mxu1 }
 0x6e9   : > { %v5087_v48 = vadd.f32 %v5039_v14, %v15225_v22  ;;  %v11508_v36 = vpop.f32.mrb[1].mxu1 }
 0x6ea   : > { %v5042_v62 = vpop.f32.mrb[2].mxu1 }
 0x6eb   : > { %v5088_v29 = vadd.f32 %v5042_v62, %v15228_v55  ;;  %v11509_v7 = vpop.f32.mrb[3].mxu1  ;;  %v15265_v49 = vadd.f32 %v5205_v3, %v5087_v48 }
 0x6ec   : > { %v5213_v1 = vpop.f32.mrb[20].mxu0 }
 0x6ed   : > { %v11548_v2 = vpop.f32.mrb[21].mxu0  ;;  %v15267_v27 = vadd.f32 %v5208_v58, %v5088_v29 }
 0x6ee   : > { %v5216_v44 = vpop.f32.mrb[22].mxu0 }
 0x6ef   : > { %v11549_v61 = vpop.f32.mrb[23].mxu0 }
 0x6f0   : > { %v5047_v50 = vpop.f32.mrb[4].mxu1 }
 0x6f1   : > { %v5089_v28 = vadd.f32 %v5047_v50, %v15231_v39  ;;  %v11512_v45 = vpop.f32.mrb[5].mxu1 }
 0x6f2   : > { %v5050_v47 = vpop.f32.mrb[6].mxu1 }
 0x6f3   : > { %v5090_v22 = vadd.f32 %v5050_v47, %v15234_v57  ;;  %v11513_v10 = vpop.f32.mrb[7].mxu1  ;;  %v15271_v17 = vadd.f32 %v5213_v1, %v5089_v28 }
 0x6f4   : > { %v5221_v33 = vpop.f32.mrb[24].mxu0 }
 0x6f5   : > { %v11552_v55 = vpop.f32.mrb[25].mxu0  ;;  %v15273_v38 = vadd.f32 %v5216_v44, %v5090_v22 }
 0x6f6   : > { %v5224_v13 = vpop.f32.mrb[26].mxu0 }
 0x6f7   : > { %v11553_v23 = vpop.f32.mrb[27].mxu0 }
 0x6f8   : > { %v5055_v34 = vpop.f32.mrb[8].mxu1 }
 0x6f9   : > { %v5091_v46 = vadd.f32 %v5055_v34, %v15237_v18  ;;  %v11516_v52 = vpop.f32.mrb[9].mxu1 }
 0x6fa   : > { %v5058_v51 = vpop.f32.mrb[10].mxu1 }
 0x6fb   : > { %v5092_v39 = vadd.f32 %v5058_v51, %v15240_v15  ;;  %v11517_v19 = vpop.f32.mrb[11].mxu1  ;;  %v15277_v56 = vadd.f32 %v5221_v33, %v5091_v46 }
 0x6fc   : > { %v5229_v8 = vpop.f32.mrb[28].mxu0 }
 0x6fd   : > { %v11556_v57 = vpop.f32.mrb[29].mxu0  ;;  %v15279_v21 = vadd.f32 %v5224_v13, %v5092_v39 }
 0x6fe   : > { %v5232_v0 = vpop.f32.mrb[30].mxu0 }
 0x6ff   : > { %v11557_v9 = vpop.f32.mrb[31].mxu0 }
 0x700   : > { %v5063_v5 = vpop.f32.mrb[12].mxu1 }
 0x701   : > { %v5093_v20 = vadd.f32 %v5063_v5, %v15243_v35  ;;  %v11520_v54 = vpop.f32.mrb[13].mxu1 }
 0x702   : > { %v5066_v6 = vpop.f32.mrb[14].mxu1 }
 0x703   : > { %v5094_v18 = vadd.f32 %v5066_v6, %v15246_v11  ;;  %v11521_v60 = vpop.f32.mrb[15].mxu1  ;;  %v15283_v53 = vadd.f32 %v5229_v8, %v5093_v20  ;;  %v12819_v20 = vld [vmem:[%s16721_s4 + $0x240] sm:$0xff]  }
 0x704   : > { %v5237_v30 = vpop.f32.mrb[32].mxu0  ;;  %11761 = vmatpush3.bf16.msra.mxu1 %v12819_v20 }
 0x705   : > { %v11560_v15 = vpop.f32.mrb[33].mxu0  ;;  %v15285_v41 = vadd.f32 %v5232_v0, %v5094_v18  ;;  %11762 = vmatprep.subr.bf16.mxu1 %v12990_v31 }
 0x706   : > { %v5240_v63 = vpop.f32.mrb[34].mxu0 }
 0x707   : > { %v11561_v43 = vpop.f32.mrb[35].mxu0 }
 0x708   : > { %v5071_v16 = vpop.f32.mrb[16].mxu1 }
 0x709   : > { %v5095_v59 = vadd.f32 %v5071_v16, %v15249_v26  ;;  %v11524_v37 = vpop.f32.mrb[17].mxu1 }
 0x70a   : > { %v5074_v42 = vpop.f32.mrb[18].mxu1 }
 0x70b   : > { %v5096_v35 = vadd.f32 %v5074_v42, %v15252_v12  ;;  %v11525_v3 = vpop.f32.mrb[19].mxu1  ;;  %v15289_v58 = vadd.f32 %v5237_v30, %v5095_v59 }
 0x70c   : > { %v5245_v40 = vpop.f32.mrb[36].mxu0 }
 0x70d   : > { %v11564_v11 = vpop.f32.mrb[37].mxu0  ;;  %v15291_v14 = vadd.f32 %v5240_v63, %v5096_v35 }
 0x70e   : > { %v5248_v32 = vpop.f32.mrb[38].mxu0 }
 0x70f   : > { %v11565_v48 = vpop.f32.mrb[39].mxu0 }
 0x710   : > { %v5079_v36 = vpop.f32.mrb[20].mxu1 }
 0x711   : > { %v5097_v62 = vadd.f32 %v5079_v36, %v15255_v24  ;;  %v11528_v29 = vpop.f32.mrb[21].mxu1 }
 0x712   : > { %v5082_v7 = vpop.f32.mrb[22].mxu1 }
 0x713   : > { %v11529_v1 = vpop.f32.mrb[23].mxu1  ;;  %v15294_v2 = vadd.f32 %v5245_v40, %v5097_v62 }
 0x714   : > { %v5529_v26 = vpop.f32.mrb[40].mxu0 }
 0x715   : > { %v11612_v44 = vpop.f32.mrb[41].mxu0 }
 0x716   : > { %v5532_v12 = vpop.f32.mrb[42].mxu0 }
 0x717   : > { %v11613_v61 = vpop.f32.mrb[43].mxu0 }
 0x718   : > { %v5363_v50 = vpop.f32.mrb[24].mxu1 }
 0x719   : > { %v5417_v28 = vadd.f32 %v5363_v50, %v15259_v4  ;;  %v11576_v45 = vpop.f32.mrb[25].mxu1 }
 0x71a   : > { %v5366_v47 = vpop.f32.mrb[26].mxu1 }
 0x71b   : > { %v5418_v22 = vadd.f32 %v5366_v47, %v15261_v25  ;;  %v11577_v10 = vpop.f32.mrb[27].mxu1  ;;  %v15298_v55 = vadd.f32 %v5529_v26, %v5417_v28 }
 0x71c   : > { %v5537_v33 = vpop.f32.mrb[44].mxu0 }
 0x71d   : > { %v11616_v24 = vpop.f32.mrb[45].mxu0  ;;  %v15300_v23 = vadd.f32 %v5532_v12, %v5418_v22 }
 0x71e   : > { %v5540_v13 = vpop.f32.mrb[46].mxu0 }
 0x71f   : > { %v11617_v34 = vpop.f32.mrb[47].mxu0 }
 0x720   : > { %v5371_v46 = vpop.f32.mrb[28].mxu1 }
 0x721   : > { %v5419_v52 = vadd.f32 %v5371_v46, %v15265_v49  ;;  %v11580_v51 = vpop.f32.mrb[29].mxu1 }
 0x722   : > { %v5374_v39 = vpop.f32.mrb[30].mxu1 }
 0x723   : > { %v5420_v4 = vadd.f32 %v5374_v39, %v15267_v27  ;;  %v11581_v19 = vpop.f32.mrb[31].mxu1  ;;  %v15304_v57 = vadd.f32 %v5537_v33, %v5419_v52 }
 0x724   : > { %v5545_v8 = vpop.f32.mrb[48].mxu0 }
 0x725   : > { %v11620_v25 = vpop.f32.mrb[49].mxu0  ;;  %v15306_v9 = vadd.f32 %v5540_v13, %v5420_v4 }
 0x726   : > { %v5548_v0 = vpop.f32.mrb[50].mxu0 }
 0x727   : > { %v11621_v5 = vpop.f32.mrb[51].mxu0 }
 0x728   : > { %v5379_v54 = vpop.f32.mrb[32].mxu1 }
 0x729   : > { %v5421_v49 = vadd.f32 %v5379_v54, %v15271_v17  ;;  %v11584_v6 = vpop.f32.mrb[33].mxu1 }
 0x72a   : > { %v5382_v18 = vpop.f32.mrb[34].mxu1 }
 0x72b   : > { %v5422_v27 = vadd.f32 %v5382_v18, %v15273_v38  ;;  %v11585_v60 = vpop.f32.mrb[35].mxu1  ;;  %v15314_v15 = vadd.f32 %v5545_v8, %v5421_v49  ;;  %v4208_v18 = vld [vmem:[#allocation3 + $0xb] sm:$0xff] }
 0x72c   : > { %v5553_v30 = vpop.f32.mrb[52].mxu0 }
 0x72d   : > { %v11624_v63 = vpop.f32.mrb[53].mxu0  ;;  %v15316_v16 = vadd.f32 %v5548_v0, %v5422_v27 }
 0x72e   : > { %v5556_v43 = vpop.f32.mrb[54].mxu0 }
 0x72f   : > { %v11625_v59 = vpop.f32.mrb[55].mxu0 }
 0x730   : > { %v5387_v37 = vpop.f32.mrb[36].mxu1 }
 0x731   : > { %v5423_v42 = vadd.f32 %v5387_v37, %v15277_v56  ;;  %v11588_v17 = vpop.f32.mrb[37].mxu1 }
 0x732   : > { %v5390_v35 = vpop.f32.mrb[38].mxu1 }
 0x733   : > { %v5424_v3 = vadd.f32 %v5390_v35, %v15279_v21  ;;  %v11589_v40 = vpop.f32.mrb[39].mxu1  ;;  %v15320_v32 = vadd.f32 %v5553_v30, %v5423_v42  ;;  %v4209_v30 = vld [vmem:[#allocation3 + $0x13] sm:$0xff] }
 0x734   : > { %v5561_v11 = vpop.f32.mrb[56].mxu0 }
 0x735   : > { %v11628_v38 = vpop.f32.mrb[57].mxu0  ;;  %v15322_v36 = vadd.f32 %v5556_v43, %v5424_v3 }
 0x736   : > { %v5564_v48 = vpop.f32.mrb[58].mxu0 }
 0x737   : > { %v11629_v62 = vpop.f32.mrb[59].mxu0 }
 0x738   : > { %v5395_v29 = vpop.f32.mrb[40].mxu1  ;;  %v4211_v62 = vld [vmem:[#allocation3 + $0x23] sm:$0xff] }
 0x739   : > { %v5425_v7 = vadd.f32 %v5395_v29, %v15283_v53  ;;  %v11592_v1 = vpop.f32.mrb[41].mxu1 }
 0x73a   : > { %v5398_v26 = vpop.f32.mrb[42].mxu1 }
 0x73b   : > { %v5426_v56 = vadd.f32 %v5398_v26, %v15285_v41  ;;  %v11593_v44 = vpop.f32.mrb[43].mxu1  ;;  %v15326_v61 = vadd.f32 %v5561_v11, %v5425_v7  ;;  %v4210_v11 = vld [vmem:[#allocation3 + $0x1b] sm:$0xff] }
 0x73c   : > { %v5569_v12 = vpop.f32.mrb[60].mxu0 }
 0x73d   : > { %v11632_v21 = vpop.f32.mrb[61].mxu0  ;;  %v15328_v28 = vadd.f32 %v5564_v48, %v5426_v56 }
 0x73e   : > { %v5572_v50 = vpop.f32.mrb[62].mxu0 }
 0x73f   : > { %v11633_v45 = vpop.f32.mrb[63].mxu0 }
 0x740   : > { %v5403_v47 = vpop.f32.mrb[44].mxu1  ;;  %v4212_v45 = vld [vmem:[#allocation3 + $0x2b] sm:$0xff] }
 0x741   : > { %v5427_v22 = vadd.f32 %v5403_v47, %v15289_v58  ;;  %v11596_v10 = vpop.f32.mrb[45].mxu1 }
 0x742   : > { %v5406_v33 = vpop.f32.mrb[46].mxu1  ;;  %v4213_v10 = vld [vmem:[#allocation3 + $0x33] sm:$0xff] }
 0x743   : > { %v5428_v53 = vadd.f32 %v5406_v33, %v15291_v14  ;;  %v11597_v24 = vpop.f32.mrb[47].mxu1  ;;  %v15332_v34 = vadd.f32 %v5569_v12, %v5427_v22  ;;  %v15342_v14 = vld [vmem:[%s16722_s5 + $0x1] ss:$0 sm:$0xff] }
 0x744   : > { %v5577_v13 = vpop.f32.mrb[64].mxu0 }
 0x745   : > { %v11636_v41 = vpop.f32.mrb[65].mxu0  ;;  %v15334_v46 = vadd.f32 %v5572_v50, %v5428_v53 }
 0x746   : > { %v5580_v52 = vpop.f32.mrb[66].mxu0 }
 0x747   : > { %v11637_v51 = vpop.f32.mrb[67].mxu0 }
 0x748   : > { %v5411_v39 = vpop.f32.mrb[48].mxu1 }
 0x749   : > { %v5429_v4 = vadd.f32 %v5411_v39, %v15294_v2  ;;  %v11600_v19 = vpop.f32.mrb[49].mxu1 }
 0x74a   : > { %v5414_v8 = vpop.f32.mrb[50].mxu1  ;;  %v4214_v19 = vld [vmem:[#allocation3 + $0x3b] sm:$0xff] }
 0x74b   : > { %v15337_v25 = vadd.f32 %v5577_v13, %v5429_v4  ;;  %v11601_v58 = vpop.f32.mrb[51].mxu1 }
 0x750   : > { %v5695_v0 = vpop.f32.mrb[52].mxu1 }
 0x751   : > { %v5749_v5 = vadd.f32 %v5695_v0, %v15298_v55  ;;  %v11648_v20 = vpop.f32.mrb[53].mxu1  ;;  %v4215_v0 = vld [vmem:[#allocation3 + $0x43] sm:$0xff] }
 0x752   : > { %v5698_v54 = vpop.f32.mrb[54].mxu1 }
 0x753   : > { %v5770_v49 = vadd.f32 %v15342_v14, %v5749_v5  ;;  %v5750_v6 = vadd.f32 %v5698_v54, %v15300_v23  ;;  %v11649_v2 = vpop.f32.mrb[55].mxu1 }
 0x755   : > { %v5771_v27 = vadd.f32 %v15342_v14, %v5750_v6  ;;  %v5783_v60 = vadd.f32 %v5770_v49, %v4208_v18 }
 0x757   : > { %v5784_v63 = vadd.f32 %v5771_v27, %v4209_v30  ;;  %v5796_v42 = vmax.f32 %v5783_v60, 0.0  ;;  %v4216_v30 = vld [vmem:[#allocation3 + $0x4b] sm:$0xff] }
 0x758   : > { %v5703_v43 = vpop.f32.mrb[56].mxu1 }
 0x759   : > { %v5751_v59 = vadd.f32 %v5703_v43, %v15304_v57  ;;  %v11652_v37 = vpop.f32.mrb[57].mxu1  ;;  %v5797_v17 = vmax.f32 %v5784_v63, 0.0 }
 0x75a   : > { %v5706_v55 = vpop.f32.mrb[58].mxu1 }
 0x75b   : > { %v5772_v35 = vadd.f32 %v15342_v14, %v5751_v59  ;;  %v5752_v3 = vadd.f32 %v5706_v55, %v15306_v9  ;;  %v11653_v40 = vpop.f32.mrb[59].mxu1  ;;  %v12532_v23 = vpack.c.bf16 %v5797_v17, %v5796_v42  ;;  %v4217_v59 = vld [vmem:[#allocation3 + $0x53] sm:$0xff] }
 0x75d   : > { %v5773_v38 = vadd.f32 %v15342_v14, %v5752_v3  ;;  %12533 = vmatprep.subr.bf16.mxu0 %v12532_v23  ;;  %v5785_v48 = vadd.f32 %v5772_v35, %v4210_v11 }
 0x75e   : > { %12535 = vmatpush3.bf16.msra.mxu0 %v12532_v23 }
 0x75f   : > { %v5786_v29 = vadd.f32 %v5773_v38, %v4211_v62  ;;  %v5798_v26 = vmax.f32 %v5785_v48, 0.0  ;;  %v4218_v38 = vld [vmem:[#allocation3 + $0x5b] sm:$0xff] }
 0x760   : > { %v5711_v7 = vpop.f32.mrb[60].mxu1 }
 0x761   : > { %v5753_v57 = vadd.f32 %v5711_v7, %v15314_v15  ;;  %v11656_v1 = vpop.f32.mrb[61].mxu1  ;;  %v5799_v56 = vmax.f32 %v5786_v29, 0.0  ;;  %v4219_v29 = vld [vmem:[#allocation3 + $0x63] sm:$0xff] }
 0x762   : > { %v5714_v44 = vpop.f32.mrb[62].mxu1 }
 0x763   : > { %v5774_v12 = vadd.f32 %v15342_v14, %v5753_v57  ;;  %v5754_v9 = vadd.f32 %v5714_v44, %v15316_v16  ;;  %v11657_v21 = vpop.f32.mrb[63].mxu1  ;;  %v12536_v50 = vpack.c.bf16 %v5799_v56, %v5798_v26 }
 0x764   : > { %v4220_v21 = vld [vmem:[#allocation3 + $0x6b] sm:$0xf] }
 0x765   : > { %v5775_v47 = vadd.f32 %v15342_v14, %v5754_v9  ;;  %12537 = vmatprep.subr.bf16.mxu0 %v12536_v50  ;;  %v5787_v22 = vadd.f32 %v5774_v12, %v4212_v45 }
 0x766   : > { %12539 = vmatpush3.bf16.msra.mxu0 %v12536_v50 }
 0x767   : > { %v5788_v33 = vadd.f32 %v5775_v47, %v4213_v10  ;;  %v5800_v13 = vmax.f32 %v5787_v22, 0.0  ;;  %v12895_v47 = vld [vmem:[%s16724_s7 + $0x18] sm:$0xff]  ;;  %v12896_v22 = vld [vmem:[%s16724_s7 + $0x20] sm:$0xff]  ;;  %v12897_v10 = vld [vmem:[%s16724_s7 + $0x28] sm:$0xff] }
 0x768   : > { %v5719_v53 = vpop.f32.mrb[64].mxu1 }
 0x769   : > { %v5755_v15 = vadd.f32 %v5719_v53, %v15320_v32  ;;  %v11660_v24 = vpop.f32.mrb[65].mxu1  ;;  %v5801_v41 = vmax.f32 %v5788_v33, 0.0  ;;  %v12898_v33 = vld [vmem:[%s16724_s7 + $0x30] sm:$0xff]  ;;  %v12899_v53 = vld [vmem:[%s16724_s7 + $0x38] sm:$0xff] }
 0x76a   : > { %v5722_v52 = vpop.f32.mrb[66].mxu1  ;;  %v12901_v24 = vld [vmem:[%s16724_s7 + $0x48] sm:$0xff] }
 0x76b   : > { %v5776_v51 = vadd.f32 %v15342_v14, %v5755_v15  ;;  %v5756_v16 = vadd.f32 %v5722_v52, %v15322_v36  ;;  %v11661_v39 = vpop.f32.mrb[67].mxu1  ;;  %v12540_v4 = vpack.c.bf16 %v5801_v41, %v5800_v13  ;;  %v12900_v15 = vld [vmem:[%s16724_s7 + $0x40] sm:$0xff]  ;;  %v12902_v13 = vld [vmem:[%s16724_s7 + $0x50] sm:$0xff]  ;;  %v12903_v41 = vld [vmem:[%s16724_s7 + $0x58] sm:$0xff] }
 0x76c   : > { %v12904_v52 = vld [vmem:[%s16724_s7 + $0x60] sm:$0xff]  ;;  %v12907_v39 = vld [vmem:[%s16724_s7 + $0x78] sm:$0x3] }
 0x76d   : > { %v5777_v8 = vadd.f32 %v15342_v14, %v5756_v16  ;;  %12541 = vmatprep.subr.bf16.mxu0 %v12540_v4  ;;  %v5789_v58 = vadd.f32 %v5776_v51, %v4214_v19  ;;  %v12905_v51 = vld [vmem:[%s16724_s7 + $0x68] sm:$0xff]  ;;  %v12906_v16 = vld [vmem:[%s16724_s7 + $0x70] sm:$0xff] }
 0x76e   : > { %12543 = vmatpush3.bf16.msra.mxu0 %v12540_v4  ;;  %v12820_v4 = vld [vmem:[%s16721_s4 + $0x260] sm:$0xff]   ;;  %v12821_v19 = vld [vmem:[%s16721_s4 + $0x248] sm:$0xff]  }
 0x76f   : > { %v5790_v5 = vadd.f32 %v5777_v8, %v4215_v0  ;;  %v5802_v49 = vmax.f32 %v5789_v58, 0.0  ;;  %11763 = vmatpush3.bf16.msra.mxu1 %v12821_v19  ;;  %v12822_v8 = vld [vmem:[%s16721_s4 + $0x268] sm:$0xff]   ;;  %v12823_v58 = vld [vmem:[%s16721_s4 + $0x250] sm:$0xff]  }
 0x770   : > { %v5727_v20 = vpop.f32.mrb[68].mxu1  ;;  %11764 = vmatprep.subr.bf16.mxu1 %v12990_v31  ;;  %v12824_v0 = vld [vmem:[%s16721_s4 + $0x270] sm:$0xff]  }
 0x771   : > { %v5757_v32 = vadd.f32 %v5727_v20, %v15326_v61  ;;  %v11664_v54 = vpop.f32.mrb[69].mxu1  ;;  %v5803_v6 = vmax.f32 %v5790_v5, 0.0  ;;  %v12825_v5 = vld [vmem:[%s16721_s4 + $0x258] sm:$0xff]  }
 0x772   : > { %v5730_v2 = vpop.f32.mrb[70].mxu1  ;;  %v12826_v20 = vld [vmem:[%s16721_s4 + $0x278] sm:$0xff]  }
 0x773   : > { %v5778_v18 = vadd.f32 %v15342_v14, %v5757_v32  ;;  %v5758_v36 = vadd.f32 %v5730_v2, %v15328_v28  ;;  %v11665_v27 = vpop.f32.mrb[71].mxu1  ;;  %v12544_v60 = vpack.c.bf16 %v5803_v6, %v5802_v49  ;;  %11765 = vmatpush3.bf16.msra.mxu1 %v12823_v58 }
 0x774   : > { %11766 = vmatprep.subr.bf16.mxu1 %v12990_v31 }
 0x775   : > { %v5779_v63 = vadd.f32 %v15342_v14, %v5758_v36  ;;  %12545 = vmatprep.subr.bf16.mxu0 %v12544_v60  ;;  %v5791_v43 = vadd.f32 %v5778_v18, %v4216_v30 }
 0x776   : > { %12547 = vmatpush3.bf16.msra.mxu0 %v12544_v60  ;;  %v12827_v60 = vld [vmem:[%s16721_s4 + $0x2a0] sm:$0xff]  }
 0x777   : > { %v5792_v37 = vadd.f32 %v5779_v63, %v4217_v59  ;;  %v5804_v55 = vmax.f32 %v5791_v43, 0.0  ;;  %11767 = vmatpush3.bf16.msra.mxu1 %v12825_v5 }
 0x778   : > { %v5735_v42 = vpop.f32.mrb[72].mxu1  ;;  %11832 = vmatprep.subr.bf16.mxu1 %v12990_v31 }
 0x779   : > { %v5759_v61 = vadd.f32 %v5735_v42, %v15332_v34  ;;  %v11668_v17 = vpop.f32.mrb[73].mxu1  ;;  %v5805_v35 = vmax.f32 %v5792_v37, 0.0  ;;  %v12828_v42 = vld [vmem:[%s16721_s4 + $0x280] sm:$0xff]  }
 0x77a   : > { %v5738_v3 = vpop.f32.mrb[74].mxu1  ;;  %v12829_v17 = vld [vmem:[%s16721_s4 + $0x2a8] sm:$0xff]  }
 0x77b   : > { %v5780_v40 = vadd.f32 %v15342_v14, %v5759_v61  ;;  %v5760_v28 = vadd.f32 %v5738_v3, %v15334_v46  ;;  %v11669_v23 = vpop.f32.mrb[75].mxu1  ;;  %v12548_v11 = vpack.c.bf16 %v5805_v35, %v5804_v55 }
 0x77d   : > { %v5781_v48 = vadd.f32 %v15342_v14, %v5760_v28  ;;  %12549 = vmatprep.subr.bf16.mxu0 %v12548_v11  ;;  %v5793_v62 = vadd.f32 %v5780_v40, %v4218_v38  ;;  %v12830_v28 = vld [vmem:[%s16721_s4 + $0x288] sm:$0xff]  }
 0x77e   : > { %12551 = vmatpush3.bf16.msra.mxu0 %v12548_v11  ;;  %v12831_v11 = vld [vmem:[%s16721_s4 + $0x2b0] sm:$0xff]  }
 0x77f   : > { %v5794_v7 = vadd.f32 %v5781_v48, %v4219_v29  ;;  %v5806_v26 = vmax.f32 %v5793_v62, 0.0 }
 0x780   : > { %v5743_v57 = vpop.f32.mrb[76].mxu1 }
 0x781   : > { %v5761_v34 = vadd.f32 %v5743_v57, %v15337_v25  ;;  %v11672_v1 = vpop.f32.mrb[77].mxu1  ;;  %v5807_v56 = vmax.f32 %v5794_v7, 0.0  ;;  %v12893_v25 = vld [vmem:[%s16724_s7 + $0x8] sm:$0xff]  ;;  %v12832_v7 = vld [vmem:[%s16721_s4 + $0x290] sm:$0xff]  }
 0x782   : > { %v5746_v44 = vpop.f32.mrb[78].mxu1 }
 0x783   : > { %v5782_v12 = vadd.f32 %v15342_v14, %v5761_v34  ;;  %v12552_v46 = vpack.c.bf16 %v5807_v56, %v5806_v26  ;;  %v11673_v9 = vpop.f32.mrb[79].mxu1  ;;  %v12894_v14 = vld [vmem:[%s16724_s7 + $0x10] sm:$0xff]  ;;  %v12833_v34 = vld [vmem:[%s16721_s4 + $0x2b8] sm:$0xff]  }
 0x785   : > { %v5795_v50 = vadd.f32 %v5782_v12, %v4220_v21  ;;  %12553 = vmatprep.subr.bf16.mxu0 %v12552_v46  ;;  %v12834_v12 = vld [vmem:[%s16721_s4 + $0x298] sm:$0xff]  }
 0x786   : > { %12555 = vmatpush3.bf16.msra.mxu0 %v12552_v46 }
 0x787   : > { %v5808_v45 = vmax.f32 %v5795_v50, 0.0 }
 0x789   : > { %11698 = vmatprep.subr.msk.mxu0 %vm2096_vm5, %v5808_v45 }
 0x78a   : > { %11699 = vmatpush3.msk.msra.mxu0 %vm2096_vm5, %v5808_v45 }
 0x78b   : > { %11701 = vmatmul.mubr.msk.f32.vlgmr.msra.gmra.mrb[68].mxu0 %vm3995_vm8, %v12893_v25  ;;  %11724 = vmatprep.subr.bf16.mxu0 %v12990_v31 }
 0x78c   : > { %11703 = vmatprep.mubr.msk.f32.mxu0 %vm3995_vm8, %v12894_v14  ;;  %11725 = vmatpush3.bf16.msra.mxu0 %v12820_v4 }
 0x78d   : > { %11726 = vmatprep.subr.bf16.mxu0 %v12990_v31 }
 0x78f   : > { %11704 = vmatmul.mubr.msk.f32.gmra.mrb[70].mxu0 %vm3995_vm8, %v12895_v47 }
 0x790   : > { %11706 = vmatprep.mubr.msk.f32.mxu0 %vm3995_vm8, %v12896_v22  ;;  %11727 = vmatpush3.bf16.msra.mxu0 %v12822_v8 }
 0x791   : > { %11728 = vmatprep.subr.bf16.mxu0 %v12990_v31 }
 0x793   : > { %11707 = vmatmul.mubr.msk.f32.gmra.mrb[72].mxu0 %vm3995_vm8, %v12897_v10 }
 0x794   : > { %11709 = vmatprep.mubr.msk.f32.mxu0 %vm3995_vm8, %v12898_v33  ;;  %11729 = vmatpush3.bf16.msra.mxu0 %v12824_v0 }
 0x795   : > { %11730 = vmatprep.subr.bf16.mxu0 %v12990_v31 }
 0x797   : > { %11710 = vmatmul.mubr.msk.f32.gmra.mrb[74].mxu0 %vm3995_vm8, %v12899_v53 }
 0x798   : > { %11712 = vmatprep.mubr.msk.f32.mxu0 %vm3995_vm8, %v12900_v15  ;;  %11731 = vmatpush3.bf16.msra.mxu0 %v12826_v20 }
 0x799   : > { %11796 = vmatprep.subr.bf16.mxu0 %v12990_v31 }
 0x79b   : > { %11713 = vmatmul.mubr.msk.f32.gmra.mrb[76].mxu0 %vm3995_vm8, %v12901_v24 }
 0x79c   : > { %11715 = vmatprep.mubr.msk.f32.mxu0 %vm3995_vm8, %v12902_v13 }
 0x79f   : > { %11716 = vmatmul.mubr.msk.f32.gmra.mrb[78].mxu0 %vm3995_vm8, %v12903_v41 }
 0x7a0   : > { %11718 = vmatprep.mubr.msk.f32.mxu0 %vm3995_vm8, %v12904_v52 }
 0x7a3   : > { %11719 = vmatmul.mubr.msk.f32.gmra.mrb[80].mxu0 %vm3995_vm8, %v12905_v51 }
 0x7a4   : > { %11721 = vmatprep.mubr.msk.f32.mxu0 %vm3995_vm8, %v12906_v16 }
 0x7a7   : > { %11722 = vmatmul.mubr.msk.f32.gmra.mrb[82].mxu0 %vm3995_vm8, %v12907_v39 }
 0x7a8   : > { %11732 = vmatprep.mubr.msk.bf16.mxu0 %vm12991_vm7, %v12990_v31 }
 0x85e   : > { %v11702_v32 = vpop.f32.mrb[68].mxu0 }
 0x85f   : > { %5958 = vst.msk [vmem:[#allocation3 + $0x8] sm:$0xff] %vm1330_vm3, %v11702_v32  ;;  %v5878_v54 = vpop.f32.mrb[69].mxu0 }
 0x860   : > { %5957 = vst.msk [vmem:[#allocation3] sm:$0xff] %vm1330_vm3, %v5878_v54 }
 0x862   : > { %v11705_v49 = vpop.f32.mrb[70].mxu0 }
 0x863   : > { %5960 = vst.msk [vmem:[#allocation3 + $0x18] sm:$0xff] %vm1330_vm3, %v11705_v49  ;;  %v5888_v6 = vpop.f32.mrb[71].mxu0 }
 0x864   : > { %5959 = vst.msk [vmem:[#allocation3 + $0x10] sm:$0xff] %vm1330_vm3, %v5888_v6  ;;  %v12835_v6 = vld [vmem:[%s16721_s4 + $0x2e0] sm:$0xff]  }
 0x866   : > { %v6047_v2 = vld [vmem:[#allocation3 + $0x8] sm:$0xff]  ;;  %v11708_v18 = vpop.f32.mrb[72].mxu0 }
 0x867   : > { %v6046_v36 = vld [vmem:[#allocation3] sm:$0xff]  ;;  %5962 = vst.msk [vmem:[#allocation3 + $0x28] sm:$0xff] %vm1330_vm3, %v11708_v18  ;;  %v5898_v27 = vpop.f32.mrb[73].mxu0 }
 0x868   : > { %v6059_v30 = vpack.c.bf16 %v6047_v2, %v6046_v36  ;;  %5961 = vst.msk [vmem:[#allocation3 + $0x20] sm:$0xff] %vm1330_vm3, %v5898_v27  ;;  %v6066_v43 = vld [vmem:[#allocation3 + $0x1] sm:$0xff]  ;;  %v12836_v36 = vld [vmem:[%s16721_s4 + $0x2c0] sm:$0xff]  }
 0x869   : > { %v6352_v18 = vld [vmem:[#allocation3 + $0x2] sm:$0xff] }
 0x86a   : > { %11769 = vmatmul.mubr.msk.bf16.vlgmr.msra.gmra.mrb[80].mxu1 %vm1330_vm3, %v6059_v30  ;;  %v11711_v63 = vpop.f32.mrb[74].mxu0  ;;  %v6049_v35 = vld [vmem:[#allocation3 + $0x18] sm:$0xff] }
 0x86b   : > { %v6067_v59 = vld [vmem:[#allocation3 + $0x9] sm:$0xff]  ;;  %11772 = vmatprep.mubr.msk.bf16.mxu1 %vm12991_vm7, %v12990_v31  ;;  %5964 = vst.msk [vmem:[#allocation3 + $0x38] sm:$0xff] %vm1330_vm3, %v11711_v63  ;;  %v5908_v37 = vpop.f32.mrb[75].mxu0  ;;  %11833 = vmatpush3.bf16.msra.mxu1 %v12827_v60  ;;  %v6068_v62 = vld [vmem:[#allocation3 + $0x11] sm:$0xff] }
 0x86c   : > { %v6079_v61 = vpack.c.bf16 %v6067_v59, %v6066_v43  ;;  %5963 = vst.msk [vmem:[#allocation3 + $0x30] sm:$0xff] %vm1330_vm3, %v5908_v37  ;;  %11834 = vmatprep.subr.bf16.mxu1 %v12990_v31  ;;  %v6048_v55 = vld [vmem:[#allocation3 + $0x10] sm:$0xff]  ;;  %v12837_v60 = vld [vmem:[%s16721_s4 + $0x2e8] sm:$0xff]   ;;  %v12839_v37 = vld [vmem:[%s16721_s4 + $0x2f0] sm:$0xff]  }
 0x86d   : > { %v6060_v23 = vpack.c.bf16 %v6049_v35, %v6048_v55  ;;  %v6518_v54 = vld [vmem:[#allocation3 + $0xa] sm:$0xff]  ;;  %v6519_v49 = vld [vmem:[#allocation3 + $0x12] sm:$0xff] }
 0x86e   : > { %11733 = vmatmul.mubr.msk.bf16.vlgmr.msra.gmra.mrb[84].mxu0 %vm1330_vm3, %v6079_v61  ;;  %v11714_v3 = vpop.f32.mrb[76].mxu0  ;;  %v6051_v26 = vld [vmem:[#allocation3 + $0x28] sm:$0xff]  ;;  %v6531_v2 = vpack.c.bf16 %v6519_v49, %v6518_v54  ;;  %v6365_v27 = vpack.c.bf16 %v6518_v54, %v6352_v18  ;;  %v12838_v43 = vld [vmem:[%s16721_s4 + $0x2c8] sm:$0xff]  }
 0x86f   : > { %11736 = vmatprep.mubr.msk.bf16.mxu0 %vm12991_vm7, %v12990_v31  ;;  %5966 = vst.msk [vmem:[#allocation3 + $0x48] sm:$0xff] %vm1330_vm3, %v11714_v3  ;;  %v5918_v40 = vpop.f32.mrb[77].mxu0  ;;  %11797 = vmatpush3.bf16.msra.mxu0 %v12828_v42  ;;  %v6069_v38 = vld [vmem:[#allocation3 + $0x19] sm:$0xff]  ;;  %v6070_v9 = vld [vmem:[#allocation3 + $0x21] sm:$0xff] }
 0x870   : > { %5965 = vst.msk [vmem:[#allocation3 + $0x40] sm:$0xff] %vm1330_vm3, %v5918_v40  ;;  %11835 = vmatpush3.bf16.msra.mxu1 %v12829_v17  ;;  %11798 = vmatprep.subr.bf16.mxu0 %v12990_v31  ;;  %v6080_v57 = vpack.c.bf16 %v6069_v38, %v6068_v62  ;;  %v6050_v1 = vld [vmem:[#allocation3 + $0x20] sm:$0xff]  ;;  %v12841_v17 = vld [vmem:[%s16721_s4 + $0x2f8] sm:$0xff]  }
 0x871   : > { %11836 = vmatprep.subr.bf16.mxu1 %v12990_v31  ;;  %v6061_v46 = vpack.c.bf16 %v6051_v26, %v6050_v1  ;;  %v6520_v30 = vld [vmem:[#allocation3 + $0x1a] sm:$0xff]  ;;  %v6521_v63 = vld [vmem:[#allocation3 + $0x22] sm:$0xff] }
 0x872   : > { %11773 = vmatmul.mubr.msk.bf16.gmra.mrb[84].mxu1 %vm1330_vm3, %v6060_v23  ;;  %v11717_v48 = vpop.f32.mrb[78].mxu0  ;;  %v6053_v47 = vld [vmem:[#allocation3 + $0x38] sm:$0xff]  ;;  %v6532_v59 = vpack.c.bf16 %v6521_v63, %v6520_v30  ;;  %v12840_v42 = vld [vmem:[%s16721_s4 + $0x2d0] sm:$0xff]   ;;  %v6366_v61 = vpack.c.bf16 %v6520_v30, %v6519_v49  ;;  %v12842_v3 = vld [vmem:[%s16721_s4 + $0x2d8] sm:$0xff]  }
 0x873   : > { %11776 = vmatprep.mubr.msk.bf16.mxu1 %vm12991_vm7, %v12990_v31  ;;  %5968 = vst.msk [vmem:[#allocation3 + $0x58] sm:$0xff] %vm1330_vm3, %v11717_v48  ;;  %v5928_v29 = vpop.f32.mrb[79].mxu0  ;;  %11799 = vmatpush3.bf16.msra.mxu0 %v12830_v28  ;;  %v6071_v21 = vld [vmem:[#allocation3 + $0x29] sm:$0xff]  ;;  %v6072_v10 = vld [vmem:[#allocation3 + $0x31] sm:$0xff] }
 0x874   : > { %5967 = vst.msk [vmem:[#allocation3 + $0x50] sm:$0xff] %vm1330_vm3, %v5928_v29  ;;  %11837 = vmatpush3.bf16.msra.mxu1 %v12831_v11  ;;  %11800 = vmatprep.subr.bf16.mxu0 %v12990_v31  ;;  %v6081_v25 = vpack.c.bf16 %v6071_v21, %v6070_v9  ;;  %v6052_v14 = vld [vmem:[#allocation3 + $0x30] sm:$0xff] }
 0x875   : > { %11838 = vmatprep.subr.bf16.mxu1 %v12990_v31  ;;  %v6062_v22 = vpack.c.bf16 %v6053_v47, %v6052_v14  ;;  %v6522_v55 = vld [vmem:[#allocation3 + $0x2a] sm:$0xff]  ;;  %v6523_v35 = vld [vmem:[#allocation3 + $0x32] sm:$0xff] }
 0x876   : > { %11737 = vmatmul.mubr.msk.bf16.gmra.mrb[88].mxu0 %vm1330_vm3, %v6080_v57  ;;  %v11720_v56 = vpop.f32.mrb[80].mxu0  ;;  %v6055_v24 = vld [vmem:[#allocation3 + $0x48] sm:$0xff]  ;;  %v6533_v40 = vpack.c.bf16 %v6523_v35, %v6522_v55  ;;  %v6367_v28 = vpack.c.bf16 %v6522_v55, %v6521_v63  ;;  %v6685_v47 = vld [vmem:[#allocation3 + $0x13] sm:$0xff] }
 0x877   : > { %11740 = vmatprep.mubr.msk.bf16.mxu0 %vm12991_vm7, %v12990_v31  ;;  %5970 = vst.msk [vmem:[#allocation3 + $0x68] sm:$0xff] %vm1330_vm3, %v11720_v56  ;;  %v5938_v44 = vpop.f32.mrb[81].mxu0  ;;  %11801 = vmatpush3.bf16.msra.mxu0 %v12832_v7  ;;  %v6073_v33 = vld [vmem:[#allocation3 + $0x39] sm:$0xff]  ;;  %v6074_v41 = vld [vmem:[#allocation3 + $0x41] sm:$0xff]  ;;  %v6850_v21 = vld [vmem:[#allocation3 + $0xc] sm:$0xff] }
 0x878   : > { %5969 = vst.msk [vmem:[#allocation3 + $0x60] sm:$0xff] %vm1330_vm3, %v5938_v44  ;;  %11839 = vmatpush3.bf16.msra.mxu1 %v12833_v34  ;;  %11802 = vmatprep.subr.bf16.mxu0 %v12990_v31  ;;  %v6082_v53 = vpack.c.bf16 %v6073_v33, %v6072_v10  ;;  %v6054_v15 = vld [vmem:[#allocation3 + $0x40] sm:$0xff]  ;;  %v6684_v14 = vld [vmem:[#allocation3 + $0xb] sm:$0xff]  ;;  %v12845_v33 = vld [vmem:[%s16721_s4 + $0x328] sm:$0xff]  }
 0x879   : > { %11904 = vmatprep.subr.bf16.mxu1 %v12990_v31  ;;  %v6063_v13 = vpack.c.bf16 %v6055_v24, %v6054_v15  ;;  %v6524_v23 = vld [vmem:[#allocation3 + $0x3a] sm:$0xff]  ;;  %v6525_v11 = vld [vmem:[#allocation3 + $0x42] sm:$0xff]  ;;  %v6697_v10 = vpack.c.bf16 %v6685_v47, %v6684_v14 }
 0x87a   : > { %11777 = vmatmul.mubr.msk.bf16.gmra.mrb[88].mxu1 %vm1330_vm3, %v6061_v46  ;;  %v11723_v50 = vpop.f32.mrb[82].mxu0  ;;  %v6057_v39 = vld [vmem:[#allocation3 + $0x58] sm:$0xff]  ;;  %v6534_v38 = vpack.c.bf16 %v6525_v11, %v6524_v23  ;;  %v6368_v48 = vpack.c.bf16 %v6524_v23, %v6523_v35  ;;  %v15645_v15 = vld [vmem:[#allocation3 + $0x24] sm:$0xff] }
 0x87b   : > { %11780 = vmatprep.mubr.msk.bf16.mxu1 %vm12991_vm7, %v12990_v31  ;;  %11803 = vmatpush3.bf16.msra.mxu0 %v12834_v12  ;;  %5972 = vst.msk [vmem:[#allocation3 + $0x78] sm:$0x3] %vm1376_vm4, %v11723_v50  ;;  %v5948_v45 = vpop.f32.mrb[83].mxu0  ;;  %v6075_v52 = vld [vmem:[#allocation3 + $0x49] sm:$0xff]  ;;  %v6076_v19 = vld [vmem:[#allocation3 + $0x51] sm:$0xff]  ;;  %v15688_v54 = vld [vmem:[#allocation3 + $0x3c] sm:$0xff] }
 0x87c   : > { %11868 = vmatprep.subr.bf16.mxu0 %v12990_v31  ;;  %5971 = vst.msk [vmem:[#allocation3 + $0x70] sm:$0xff] %vm1330_vm3, %v5948_v45  ;;  %v6083_v51 = vpack.c.bf16 %v6075_v52, %v6074_v41  ;;  %v6056_v16 = vld [vmem:[#allocation3 + $0x50] sm:$0xff]  ;;  %v12846_v24 = vld [vmem:[%s16721_s4 + $0x308] sm:$0xff]   ;;  %v12847_v41 = vld [vmem:[%s16721_s4 + $0x330] sm:$0xff]  }
 0x87d   : > { %v6064_v4 = vpack.c.bf16 %v6057_v39, %v6056_v16  ;;  %v6526_v62 = vld [vmem:[#allocation3 + $0x4a] sm:$0xff]  ;;  %v6527_v29 = vld [vmem:[#allocation3 + $0x52] sm:$0xff]  ;;  %v6686_v52 = vld [vmem:[#allocation3 + $0x1b] sm:$0xff] }
 0x87e   : > { %11741 = vmatmul.mubr.msk.bf16.gmra.mrb[92].mxu0 %vm1330_vm3, %v6081_v25  ;;  %v6535_v7 = vpack.c.bf16 %v6527_v29, %v6526_v62  ;;  %v6369_v57 = vpack.c.bf16 %v6526_v62, %v6525_v11  ;;  %v6530_v44 = vld [vmem:[#allocation3 + $0x6a] sm:$0xf]  ;;  %v15624_v50 = vld [vmem:[#allocation3 + $0x14] sm:$0xff]  ;;  %v12848_v16 = vld [vmem:[%s16721_s4 + $0x310] sm:$0xff]  }
 0x87f   : > { %11744 = vmatprep.mubr.msk.bf16.mxu0 %vm12991_vm7, %v12990_v31  ;;  %v6077_v8 = vld [vmem:[#allocation3 + $0x59] sm:$0xff]  ;;  %v6078_v20 = vld [vmem:[#allocation3 + $0x61] sm:$0xf]  ;;  %v6537_v12 = vpack.c.bf16 %v6530_v44, %v6530_v44  ;;  %v12843_v45 = vld [vmem:[%s16721_s4 + $0x320] sm:$0xff]   ;;  %v6863_v25 = vpack.c.bf16 %v15624_v50, %v6850_v21 }
 0x880   : > { %v6084_v58 = vpack.c.bf16 %v6077_v8, %v6076_v19  ;;  %v6058_v0 = vld [vmem:[#allocation3 + $0x60] sm:$0xf]  ;;  %v6085_v32 = vpack.c.bf16 %v6078_v20, %v6078_v20  ;;  %v15670_v19 = vld [vmem:[#allocation3 + $0x2c] sm:$0xff]  ;;  %v15672_v8 = vld [vmem:[#allocation3 + $0x34] sm:$0xff] }
 0x881   : > { %v6065_v5 = vpack.c.bf16 %v6058_v0, %v6058_v0  ;;  %v6528_v34 = vld [vmem:[#allocation3 + $0x5a] sm:$0xff]  ;;  %v6529_v1 = vld [vmem:[#allocation3 + $0x62] sm:$0xff]  ;;  %v6865_v0 = vpack.c.bf16 %v15672_v8, %v15670_v19  ;;  %v6692_v63 = vld [vmem:[#allocation3 + $0x4b] sm:$0xff]  ;;  %v7031_v21 = vpack.c.bf16 %v15688_v54, %v15672_v8 }
 0x882   : > { %11781 = vmatmul.mubr.msk.bf16.gmra.mrb[92].mxu1 %vm1330_vm3, %v6062_v22  ;;  %v6536_v26 = vpack.c.bf16 %v6529_v1, %v6528_v34  ;;  %v6370_v56 = vpack.c.bf16 %v6528_v34, %v6527_v29  ;;  %v6364_v46 = vld [vmem:[#allocation3 + $0x62] sm:$0xf]  ;;  %v12844_v22 = vld [vmem:[%s16721_s4 + $0x300] sm:$0xff]   ;;  %v12852_v34 = vld [vmem:[%s16721_s4 + $0x348] sm:$0xff]  }
 0x883   : > { %11784 = vmatprep.mubr.msk.bf16.mxu1 %vm12991_vm7, %v12990_v31  ;;  %v6371_v9 = vpack.c.bf16 %v6364_v46, %v6364_v46  ;;  %v6689_v20 = vld [vmem:[#allocation3 + $0x33] sm:$0xff]  ;;  %v15690_v49 = vld [vmem:[#allocation3 + $0x44] sm:$0xff] }
 0x884   : > { %v6691_v18 = vld [vmem:[#allocation3 + $0x43] sm:$0xff]  ;;  %v12851_v62 = vld [vmem:[%s16721_s4 + $0x340] sm:$0xff]  }
 0x885   : > { %v6695_v55 = vld [vmem:[#allocation3 + $0x63] sm:$0xff]  ;;  %v7186_v44 = vld [vmem:[#allocation3 + $0x35] sm:$0xff] }
 0x886   : > { %11745 = vmatmul.mubr.msk.bf16.gmra.mrb[96].mxu0 %vm1330_vm3, %v6082_v53  ;;  %v15643_v53 = vld [vmem:[#allocation3 + $0x1c] sm:$0xff]  ;;  %v12854_v46 = vld [vmem:[%s16721_s4 + $0x358] sm:$0xff]   ;;  %v7028_v8 = vld [vmem:[#allocation3 + $0x74] sm:$0xf] }
 0x887   : > { %11748 = vmatprep.mubr.msk.bf16.mxu0 %vm12991_vm7, %v12990_v31  ;;  %v7183_v11 = vld [vmem:[#allocation3 + $0x1d] sm:$0xff]  ;;  %v7029_v29 = vpack.c.bf16 %v15643_v53, %v15624_v50  ;;  %v7188_v50 = vld [vmem:[#allocation3 + $0x45] sm:$0xff]  ;;  %v7190_v47 = vld [vmem:[#allocation3 + $0x55] sm:$0xff] }
 0x88a   : > { %11785 = vmatmul.mubr.msk.bf16.gmra.mrb[96].mxu1 %vm1330_vm3, %v6063_v13  ;;  %v6864_v13 = vpack.c.bf16 %v15645_v15, %v15643_v53  ;;  %v7192_v53 = vld [vmem:[#allocation3 + $0x65] sm:$0xff] }
 0x88b   : > { %11788 = vmatprep.mubr.msk.bf16.mxu1 %vm12991_vm7, %v12990_v31 }
 0x88e   : > { %11749 = vmatmul.mubr.msk.bf16.gmra.mrb[100].mxu0 %vm1330_vm3, %v6083_v51  ;;  %v6687_v51 = vld [vmem:[#allocation3 + $0x23] sm:$0xff] }
 0x88f   : > { %11752 = vmatprep.mubr.msk.bf16.mxu0 %vm12991_vm7, %v12990_v31  ;;  %v6698_v39 = vpack.c.bf16 %v6687_v51, %v6686_v52  ;;  %v7194_v52 = vld [vmem:[#allocation3 + $0x75] sm:$0xf] }
 0x892   : > { %11789 = vmatmul.mubr.msk.bf16.gmra.mrb[100].mxu1 %vm1330_vm3, %v6064_v4  ;;  %v12849_v4 = vld [vmem:[%s16721_s4 + $0x338] sm:$0xff]  }
 0x893   : > { %11792 = vmatprep.mubr.msk.bf16.mxu1 %vm12991_vm7, %v12990_v31 }
 0x896   : > { %11753 = vmatmul.mubr.msk.bf16.gmra.mrb[104].mxu0 %vm1330_vm3, %v6084_v58  ;;  %v12850_v58 = vld [vmem:[%s16721_s4 + $0x318] sm:$0xff]  }
 0x897   : > { %11756 = vmatprep.mubr.msk.bf16.mxu0 %vm12991_vm7, %v12990_v31 }
 0x89a   : > { %11793 = vmatmul.mubr.msk.bf16.gmra.mrb[104].mxu1 %vm1330_vm3, %v6065_v5  ;;  %v6688_v5 = vld [vmem:[#allocation3 + $0x2b] sm:$0xff] }
 0x89b   : > { %11840 = vmatprep.mubr.msk.bf16.mxu1 %vm12991_vm7, %v12990_v31 }
 0x89e   : > { %11757 = vmatmul.mubr.msk.bf16.gmra.mrb[108].mxu0 %vm1330_vm3, %v6085_v32  ;;  %v6699_v32 = vpack.c.bf16 %v6689_v20, %v6688_v5 }
 0x89f   : > { %11804 = vmatprep.mubr.msk.bf16.mxu0 %vm12991_vm7, %v12990_v31 }
 0x8a2   : > { %11841 = vmatmul.mubr.msk.bf16.vlgmr.msra.gmra.mrb[108].mxu1 %vm1330_vm3, %v6531_v2  ;;  %v6690_v2 = vld [vmem:[#allocation3 + $0x3b] sm:$0xff] }
 0x8a3   : > { %11844 = vmatprep.mubr.msk.bf16.mxu1 %vm12991_vm7, %v12990_v31  ;;  %11905 = vmatpush3.bf16.msra.mxu1 %v12835_v6  ;;  %v6866_v6 = vpack.c.bf16 %v15690_v49, %v15688_v54  ;;  %v7035_v54 = vpack.c.bf16 %v7028_v8, %v7028_v8 }
 0x8a4   : > { %11906 = vmatprep.subr.bf16.mxu1 %v12990_v31 }
 0x8a6   : > { %11805 = vmatmul.mubr.msk.bf16.vlgmr.msra.gmra.mrb[112].mxu0 %vm1330_vm3, %v6365_v27  ;;  %v15700_v27 = vld [vmem:[#allocation3 + $0x4c] sm:$0xff] }
 0x8a7   : > { %11808 = vmatprep.mubr.msk.bf16.mxu0 %vm12991_vm7, %v12990_v31  ;;  %11869 = vmatpush3.bf16.msra.mxu0 %v12836_v36  ;;  %v6700_v36 = vpack.c.bf16 %v6691_v18, %v6690_v2  ;;  %v7032_v14 = vpack.c.bf16 %v15700_v27, %v15690_v49 }
 0x8a8   : > { %11907 = vmatpush3.bf16.msra.mxu1 %v12837_v60  ;;  %11870 = vmatprep.subr.bf16.mxu0 %v12990_v31  ;;  %v15702_v60 = vld [vmem:[#allocation3 + $0x54] sm:$0xff] }
 0x8a9   : > { %11908 = vmatprep.subr.bf16.mxu1 %v12990_v31  ;;  %v6867_v30 = vpack.c.bf16 %v15702_v60, %v15700_v27 }
 0x8aa   : > { %11845 = vmatmul.mubr.msk.bf16.gmra.mrb[112].mxu1 %vm1330_vm3, %v6532_v59 }
 0x8ab   : > { %11848 = vmatprep.mubr.msk.bf16.mxu1 %vm12991_vm7, %v12990_v31  ;;  %11871 = vmatpush3.bf16.msra.mxu0 %v12838_v43  ;;  %v6693_v43 = vld [vmem:[#allocation3 + $0x53] sm:$0xff] }
 0x8ac   : > { %11909 = vmatpush3.bf16.msra.mxu1 %v12839_v37  ;;  %11872 = vmatprep.subr.bf16.mxu0 %v12990_v31  ;;  %v6701_v59 = vpack.c.bf16 %v6693_v43, %v6692_v63  ;;  %v15712_v37 = vld [vmem:[#allocation3 + $0x5c] sm:$0xff] }
 0x8ad   : > { %11910 = vmatprep.subr.bf16.mxu1 %v12990_v31 }
 0x8ae   : > { %11809 = vmatmul.mubr.msk.bf16.gmra.mrb[116].mxu0 %vm1330_vm3, %v6366_v61 }
 0x8af   : > { %11812 = vmatprep.mubr.msk.bf16.mxu0 %vm12991_vm7, %v12990_v31  ;;  %11873 = vmatpush3.bf16.msra.mxu0 %v12840_v42  ;;  %v15714_v42 = vld [vmem:[#allocation3 + $0x64] sm:$0xff] }
 0x8b0   : > { %11911 = vmatpush3.bf16.msra.mxu1 %v12841_v17  ;;  %11874 = vmatprep.subr.bf16.mxu0 %v12990_v31  ;;  %v6868_v61 = vpack.c.bf16 %v15714_v42, %v15712_v37  ;;  %v6694_v17 = vld [vmem:[#allocation3 + $0x5b] sm:$0xff] }
 0x8b1   : > { %11976 = vmatprep.subr.bf16.mxu1 %v12990_v31  ;;  %v6702_v35 = vpack.c.bf16 %v6695_v55, %v6694_v17 }
 0x8b2   : > { %11849 = vmatmul.mubr.msk.bf16.gmra.mrb[116].mxu1 %vm1330_vm3, %v6533_v40 }
 0x8b3   : > { %11852 = vmatprep.mubr.msk.bf16.mxu1 %vm12991_vm7, %v12990_v31  ;;  %11875 = vmatpush3.bf16.msra.mxu0 %v12842_v3  ;;  %v6862_v3 = vld [vmem:[#allocation3 + $0x6c] sm:$0xf] }
 0x8b4   : > { %11940 = vmatprep.subr.bf16.mxu0 %v12990_v31  ;;  %v6869_v40 = vpack.c.bf16 %v6862_v3, %v6862_v3 }
 0x8b6   : > { %11813 = vmatmul.mubr.msk.bf16.gmra.mrb[120].mxu0 %vm1330_vm3, %v6367_v28  ;;  %v6696_v28 = vld [vmem:[#allocation3 + $0x6b] sm:$0xf] }
 0x8b7   : > { %11816 = vmatprep.mubr.msk.bf16.mxu0 %vm12991_vm7, %v12990_v31  ;;  %v6703_v23 = vpack.c.bf16 %v6696_v28, %v6696_v28  ;;  %v7350_v28 = vld [vmem:[#allocation3 + $0x26] sm:$0xff] }
 0x8ba   : > { %11853 = vmatmul.mubr.msk.bf16.gmra.mrb[120].mxu1 %vm1330_vm3, %v6534_v38  ;;  %v7182_v38 = vld [vmem:[#allocation3 + $0x15] sm:$0xff] }
 0x8bb   : > { %11856 = vmatprep.mubr.msk.bf16.mxu1 %vm12991_vm7, %v12990_v31 }
 0x8be   : > { %11817 = vmatmul.mubr.msk.bf16.gmra.mrb[124].mxu0 %vm1330_vm3, %v6368_v48  ;;  %v7195_v48 = vpack.c.bf16 %v7183_v11, %v7182_v38 }
 0x8bf   : > { %11820 = vmatprep.mubr.msk.bf16.mxu0 %vm12991_vm7, %v12990_v31 }
 0x8c2   : > { %11857 = vmatmul.mubr.msk.bf16.gmra.mrb[124].mxu1 %vm1330_vm3, %v6535_v7  ;;  %v7184_v7 = vld [vmem:[#allocation3 + $0x25] sm:$0xff] }
 0x8c3   : > { %11860 = vmatprep.mubr.msk.bf16.mxu1 %vm12991_vm7, %v12990_v31 }
 0x8c6   : > { %11821 = vmatmul.mubr.msk.bf16.gmra.mrb[128].mxu0 %vm1330_vm3, %v6369_v57  ;;  %v7185_v57 = vld [vmem:[#allocation3 + $0x2d] sm:$0xff] }
 0x8c7   : > { %11824 = vmatprep.mubr.msk.bf16.mxu0 %vm12991_vm7, %v12990_v31  ;;  %v7196_v1 = vpack.c.bf16 %v7185_v57, %v7184_v7 }
 0x8ca   : > { %11861 = vmatmul.mubr.msk.bf16.gmra.mrb[128].mxu1 %vm1330_vm3, %v6536_v26  ;;  %v12853_v26 = vld [vmem:[%s16721_s4 + $0x350] sm:$0xff]  }
 0x8cb   : > { %11864 = vmatprep.mubr.msk.bf16.mxu1 %vm12991_vm7, %v12990_v31 }
 0x8ce   : > { %11825 = vmatmul.mubr.msk.bf16.gmra.mrb[132].mxu0 %vm1330_vm3, %v6370_v56  ;;  %v7030_v56 = vpack.c.bf16 %v15670_v19, %v15645_v15  ;;  %v7193_v15 = vld [vmem:[#allocation3 + $0x6d] sm:$0xff] }
 0x8cf   : > { %11828 = vmatprep.mubr.msk.bf16.mxu0 %vm12991_vm7, %v12990_v31 }
 0x8d2   : > { %11865 = vmatmul.mubr.msk.bf16.gmra.mrb[132].mxu1 %vm1330_vm3, %v6537_v12  ;;  %v7187_v12 = vld [vmem:[#allocation3 + $0x3d] sm:$0xff] }
 0x8d3   : > { %11912 = vmatprep.mubr.msk.bf16.mxu1 %vm12991_vm7, %v12990_v31 }
 0x8d6   : > { %11829 = vmatmul.mubr.msk.bf16.gmra.mrb[136].mxu0 %vm1330_vm3, %v6371_v9  ;;  %v7197_v9 = vpack.c.bf16 %v7187_v12, %v7186_v44  ;;  %v7352_v44 = vld [vmem:[#allocation3 + $0x36] sm:$0xff]  ;;  %v7353_v12 = vld [vmem:[#allocation3 + $0x3e] sm:$0xff] }
 0x8d7   : > { %11876 = vmatprep.mubr.msk.bf16.mxu0 %vm12991_vm7, %v12990_v31 }
 0x8da   : > { %11913 = vmatmul.mubr.msk.bf16.vlgmr.msra.gmra.mrb[136].mxu1 %vm1330_vm3, %v6863_v25 }
 0x8db   : > { %11916 = vmatprep.mubr.msk.bf16.mxu1 %vm12991_vm7, %v12990_v31  ;;  %11977 = vmatpush3.bf16.msra.mxu1 %v12843_v45  ;;  %v7189_v45 = vld [vmem:[#allocation3 + $0x4d] sm:$0xff] }
 0x8dc   : > { %11978 = vmatprep.subr.bf16.mxu1 %v12990_v31  ;;  %v7198_v25 = vpack.c.bf16 %v7189_v45, %v7188_v50  ;;  %v7363_v45 = vpack.c.bf16 %v7353_v12, %v7352_v44 }
 0x8de   : > { %11877 = vmatmul.mubr.msk.bf16.vlgmr.msra.gmra.mrb[140].mxu0 %vm1330_vm3, %v6697_v10 }
 0x8df   : > { %11880 = vmatprep.mubr.msk.bf16.mxu0 %vm12991_vm7, %v12990_v31  ;;  %11941 = vmatpush3.bf16.msra.mxu0 %v12844_v22  ;;  %v7191_v22 = vld [vmem:[#allocation3 + $0x5d] sm:$0xff] }
 0x8e0   : > { %11979 = vmatpush3.bf16.msra.mxu1 %v12845_v33  ;;  %11942 = vmatprep.subr.bf16.mxu0 %v12990_v31  ;;  %v7199_v10 = vpack.c.bf16 %v7191_v22, %v7190_v47  ;;  %v7033_v33 = vpack.c.bf16 %v15712_v37, %v15702_v60  ;;  %v7349_v60 = vld [vmem:[#allocation3 + $0x1e] sm:$0xff] }
 0x8e1   : > { %11980 = vmatprep.subr.bf16.mxu1 %v12990_v31 }
 0x8e2   : > { %11917 = vmatmul.mubr.msk.bf16.gmra.mrb[140].mxu1 %vm1330_vm3, %v6864_v13  ;;  %v7027_v13 = vld [vmem:[#allocation3 + $0x6c] sm:$0xff] }
 0x8e3   : > { %11920 = vmatprep.mubr.msk.bf16.mxu1 %vm12991_vm7, %v12990_v31  ;;  %11943 = vmatpush3.bf16.msra.mxu0 %v12846_v24  ;;  %v7200_v24 = vpack.c.bf16 %v7193_v15, %v7192_v53  ;;  %v7354_v53 = vld [vmem:[#allocation3 + $0x46] sm:$0xff]  ;;  %v7355_v15 = vld [vmem:[#allocation3 + $0x4e] sm:$0xff] }
 0x8e4   : > { %11981 = vmatpush3.bf16.msra.mxu1 %v12847_v41  ;;  %11944 = vmatprep.subr.bf16.mxu0 %v12990_v31  ;;  %v7034_v41 = vpack.c.bf16 %v7027_v13, %v15714_v42 }
 0x8e5   : > { %11982 = vmatprep.subr.bf16.mxu1 %v12990_v31 }
 0x8e6   : > { %11881 = vmatmul.mubr.msk.bf16.gmra.mrb[144].mxu0 %vm1330_vm3, %v6698_v39 }
 0x8e7   : > { %11884 = vmatprep.mubr.msk.bf16.mxu0 %vm12991_vm7, %v12990_v31  ;;  %11945 = vmatpush3.bf16.msra.mxu0 %v12848_v16 }
 0x8e8   : > { %11983 = vmatpush3.bf16.msra.mxu1 %v12849_v4  ;;  %11946 = vmatprep.subr.bf16.mxu0 %v12990_v31  ;;  %v7201_v4 = vpack.c.bf16 %v7194_v52, %v7194_v52 }
 0x8ea   : > { %11921 = vmatmul.mubr.msk.bf16.gmra.mrb[144].mxu1 %vm1330_vm3, %v6865_v0 }
 0x8eb   : > { %11924 = vmatprep.mubr.msk.bf16.mxu1 %vm12991_vm7, %v12990_v31  ;;  %11947 = vmatpush3.bf16.msra.mxu0 %v12850_v58 }
 0x8ec   : > { %12012 = vmatprep.subr.bf16.mxu0 %v12990_v31 }
 0x8ee   : > { %11885 = vmatmul.mubr.msk.bf16.gmra.mrb[148].mxu0 %vm1330_vm3, %v6699_v32  ;;  %v12908_v32 = vld [vmem:[%s16724_s7] sm:$0xff] }
 0x8ef   : > { %11888 = vmatprep.mubr.msk.bf16.mxu0 %vm12991_vm7, %v12990_v31 }
 0x8f2   : > { %11925 = vmatmul.mubr.msk.bf16.gmra.mrb[148].mxu1 %vm1330_vm3, %v6866_v6 }
 0x8f3   : > { %11928 = vmatprep.mubr.msk.bf16.mxu1 %vm12991_vm7, %v12990_v31 }
 0x8f6   : > { %11889 = vmatmul.mubr.msk.bf16.gmra.mrb[152].mxu0 %vm1330_vm3, %v6700_v36 }
 0x8f7   : > { %11892 = vmatprep.mubr.msk.bf16.mxu0 %vm12991_vm7, %v12990_v31 }
 0x8fa   : > { %11929 = vmatmul.mubr.msk.bf16.gmra.mrb[152].mxu1 %vm1330_vm3, %v6867_v30 }
 0x8fb   : > { %11932 = vmatprep.mubr.msk.bf16.mxu1 %vm12991_vm7, %v12990_v31 }
 0x8fe   : > { %11893 = vmatmul.mubr.msk.bf16.gmra.mrb[156].mxu0 %vm1330_vm3, %v6701_v59  ;;  %v7348_v59 = vld [vmem:[#allocation3 + $0x16] sm:$0xff] }
 0x8ff   : > { %11896 = vmatprep.mubr.msk.bf16.mxu0 %vm12991_vm7, %v12990_v31  ;;  %v7361_v42 = vpack.c.bf16 %v7349_v60, %v7348_v59 }
 0x902   : > { %11933 = vmatmul.mubr.msk.bf16.gmra.mrb[156].mxu1 %vm1330_vm3, %v6868_v61 }
 0x903   : > { %11936 = vmatprep.mubr.msk.bf16.mxu1 %vm12991_vm7, %v12990_v31 }
 0x906   : > { %11897 = vmatmul.mubr.msk.bf16.gmra.mrb[160].mxu0 %vm1330_vm3, %v6702_v35 }
 0x907   : > { %11900 = vmatprep.mubr.msk.bf16.mxu0 %vm12991_vm7, %v12990_v31 }
 0x90a   : > { %11937 = vmatmul.mubr.msk.bf16.gmra.mrb[160].mxu1 %vm1330_vm3, %v6869_v40 }
 0x90b   : > { %11984 = vmatprep.mubr.msk.bf16.mxu1 %vm12991_vm7, %v12990_v31 }
 0x90e   : > { %11901 = vmatmul.mubr.msk.bf16.gmra.mrb[164].mxu0 %vm1330_vm3, %v6703_v23  ;;  %v7351_v23 = vld [vmem:[#allocation3 + $0x2e] sm:$0xff] }
 0x90f   : > { %11948 = vmatprep.mubr.msk.bf16.mxu0 %vm12991_vm7, %v12990_v31 }
 0x912   : > { %11985 = vmatmul.mubr.msk.bf16.vlgmr.msra.gmra.mrb[164].mxu1 %vm1330_vm3, %v7195_v48 }
 0x913   : > { %11988 = vmatprep.mubr.msk.bf16.mxu1 %vm12991_vm7, %v12990_v31 }
 0x916   : > { %11949 = vmatmul.mubr.msk.bf16.vlgmr.msra.gmra.mrb[168].mxu0 %vm1330_vm3, %v7029_v29  ;;  %v7362_v29 = vpack.c.bf16 %v7351_v23, %v7350_v28 }
 0x917   : > { %11952 = vmatprep.mubr.msk.bf16.mxu0 %vm12991_vm7, %v12990_v31  ;;  %12013 = vmatpush3.bf16.msra.mxu0 %v12851_v62 }
 0x918   : > { %12014 = vmatprep.subr.bf16.mxu0 %v12990_v31 }
 0x91a   : > { %11989 = vmatmul.mubr.msk.bf16.gmra.mrb[168].mxu1 %vm1330_vm3, %v7196_v1 }
 0x91b   : > { %11992 = vmatprep.mubr.msk.bf16.mxu1 %vm12991_vm7, %v12990_v31  ;;  %12015 = vmatpush3.bf16.msra.mxu0 %v12852_v34 }
 0x91c   : > { %12016 = vmatprep.subr.bf16.mxu0 %v12990_v31 }
 0x91e   : > { %11953 = vmatmul.mubr.msk.bf16.gmra.mrb[172].mxu0 %vm1330_vm3, %v7030_v56 }
 0x91f   : > { %11956 = vmatprep.mubr.msk.bf16.mxu0 %vm12991_vm7, %v12990_v31  ;;  %12017 = vmatpush3.bf16.msra.mxu0 %v12853_v26 }
 0x920   : > { %12018 = vmatprep.subr.bf16.mxu0 %v12990_v31 }
 0x922   : > { %11993 = vmatmul.mubr.msk.bf16.gmra.mrb[172].mxu1 %vm1330_vm3, %v7197_v9 }
 0x923   : > { %11996 = vmatprep.mubr.msk.bf16.mxu1 %vm12991_vm7, %v12990_v31  ;;  %12019 = vmatpush3.bf16.msra.mxu0 %v12854_v46 }
 0x924   : > { %12134 = vmatprep.subr.bf16.mxu0 %v12990_v31 }
 0x926   : > { %11957 = vmatmul.mubr.msk.bf16.gmra.mrb[176].mxu0 %vm1330_vm3, %v7031_v21 }
 0x927   : > { %11960 = vmatprep.mubr.msk.bf16.mxu0 %vm12991_vm7, %v12990_v31 }
 0x92a   : > { %11997 = vmatmul.mubr.msk.bf16.gmra.mrb[176].mxu1 %vm1330_vm3, %v7198_v25 }
 0x92b   : > { %12000 = vmatprep.mubr.msk.bf16.mxu1 %vm12991_vm7, %v12990_v31 }
 0x92e   : > { %11961 = vmatmul.mubr.msk.bf16.gmra.mrb[180].mxu0 %vm1330_vm3, %v7032_v14 }
 0x92f   : > { %11964 = vmatprep.mubr.msk.bf16.mxu0 %vm12991_vm7, %v12990_v31 }
 0x932   : > { %12001 = vmatmul.mubr.msk.bf16.gmra.mrb[180].mxu1 %vm1330_vm3, %v7199_v10 }
 0x933   : > { %12004 = vmatprep.mubr.msk.bf16.mxu1 %vm12991_vm7, %v12990_v31 }
 0x936   : > { %11965 = vmatmul.mubr.msk.bf16.gmra.mrb[184].mxu0 %vm1330_vm3, %v7033_v33 }
 0x937   : > { %11968 = vmatprep.mubr.msk.bf16.mxu0 %vm12991_vm7, %v12990_v31 }
 0x93a   : > { %12005 = vmatmul.mubr.msk.bf16.gmra.mrb[184].mxu1 %vm1330_vm3, %v7200_v24 }
 0x93b   : > { %12008 = vmatprep.mubr.msk.bf16.mxu1 %vm12991_vm7, %v12990_v31 }
 0x93d   : > { %v6298_v51 = vpop.f32.mrb[80].mxu1 }
 0x93e   : > { %11969 = vmatmul.mubr.msk.bf16.gmra.mrb[188].mxu0 %vm1330_vm3, %v7034_v41  ;;  %v11770_v16 = vpop.f32.mrb[81].mxu1 }
 0x93f   : > { %11972 = vmatprep.mubr.msk.bf16.mxu0 %vm12991_vm7, %v12990_v31  ;;  %v6301_v39 = vpop.f32.mrb[82].mxu1 }
 0x940   : > { %v11771_v19 = vpop.f32.mrb[83].mxu1 }
 0x941   : > { %v6165_v58 = vpop.f32.mrb[84].mxu0 }
 0x942   : > { %12009 = vmatmul.mubr.msk.bf16.gmra.mrb[188].mxu1 %vm1330_vm3, %v7201_v4  ;;  %v11734_v0 = vpop.f32.mrb[85].mxu0  ;;  %v15797_v5 = vadd.f32 %v6298_v51, %v6165_v58  ;;  %v7364_v51 = vpack.c.bf16 %v7355_v15, %v7354_v53 }
 0x943   : > { %v6168_v20 = vpop.f32.mrb[86].mxu0  ;;  %12074 = vmatprep.mubr.msk.f32.mxu1 %vm3995_vm8, %v12908_v32  ;;  %v7356_v0 = vld [vmem:[#allocation3 + $0x56] sm:$0xff] }
 0x944   : > { %v11735_v49 = vpop.f32.mrb[87].mxu0  ;;  %v15803_v6 = vadd.f32 %v6301_v39, %v6168_v20  ;;  %v7357_v20 = vld [vmem:[#allocation3 + $0x5e] sm:$0xff] }
 0x945   : > { %v6306_v2 = vpop.f32.mrb[84].mxu1 }
 0x946   : > { %11973 = vmatmul.mubr.msk.bf16.gmra.mrb[192].mxu0 %vm1330_vm3, %v7035_v54  ;;  %v11774_v18 = vpop.f32.mrb[85].mxu1 }
 0x947   : > { %12020 = vmatprep.mubr.msk.bf16.mxu0 %vm12991_vm7, %v12990_v31  ;;  %v6309_v36 = vpop.f32.mrb[86].mxu1  ;;  %v7365_v18 = vpack.c.bf16 %v7357_v20, %v7356_v0 }
 0x948   : > { %v11775_v27 = vpop.f32.mrb[87].mxu1 }
 0x949   : > { %v6173_v30 = vpop.f32.mrb[88].mxu0 }
 0x94a   : > { %v11738_v63 = vpop.f32.mrb[89].mxu0  ;;  %v15808_v43 = vadd.f32 %v6306_v2, %v6173_v30 }
 0x94b   : > { %v6176_v37 = vpop.f32.mrb[90].mxu0 }
 0x94c   : > { %v11739_v61 = vpop.f32.mrb[91].mxu0  ;;  %v15810_v17 = vadd.f32 %v6309_v36, %v6176_v37  ;;  %v7358_v37 = vld [vmem:[#allocation3 + $0x66] sm:$0xff] }
 0x94d   : > { %v6314_v55 = vpop.f32.mrb[88].mxu1 }
 0x94e   : > { %12021 = vmatmul.mubr.msk.bf16.vlgmr.msra.gmra.mrb[196].mxu0 %vm1330_vm3, %v7361_v42  ;;  %v11778_v35 = vpop.f32.mrb[89].mxu1  ;;  %v7359_v42 = vld [vmem:[#allocation3 + $0x6e] sm:$0xff] }
 0x94f   : > { %12024 = vmatprep.mubr.msk.bf16.mxu0 %vm12991_vm7, %v12990_v31  ;;  %v6317_v3 = vpop.f32.mrb[90].mxu1 }
 0x950   : > { %v11779_v40 = vpop.f32.mrb[91].mxu1 }
 0x951   : > { %v6181_v11 = vpop.f32.mrb[92].mxu0  ;;  %v7366_v40 = vpack.c.bf16 %v7359_v42, %v7358_v37 }
 0x952   : > { %v11742_v38 = vpop.f32.mrb[93].mxu0  ;;  %v15815_v48 = vadd.f32 %v6314_v55, %v6181_v11 }
 0x953   : > { %v6184_v62 = vpop.f32.mrb[94].mxu0 }
 0x954   : > { %v11743_v7 = vpop.f32.mrb[95].mxu0  ;;  %v15817_v57 = vadd.f32 %v6317_v3, %v6184_v62 }
 0x955   : > { %v6322_v34 = vpop.f32.mrb[92].mxu1 }
 0x956   : > { %12025 = vmatmul.mubr.msk.bf16.gmra.mrb[200].mxu0 %vm1330_vm3, %v7362_v29  ;;  %v11782_v1 = vpop.f32.mrb[93].mxu1  ;;  %v7360_v29 = vld [vmem:[#allocation3 + $0x76] sm:$0xf] }
 0x957   : > { %12028 = vmatprep.mubr.msk.bf16.mxu0 %vm12991_vm7, %v12990_v31  ;;  %v6325_v26 = vpop.f32.mrb[94].mxu1 }
 0x958   : > { %v11783_v56 = vpop.f32.mrb[95].mxu1 }
 0x959   : > { %v6189_v46 = vpop.f32.mrb[96].mxu0  ;;  %v7367_v56 = vpack.c.bf16 %v7360_v29, %v7360_v29 }
 0x95a   : > { %v11746_v9 = vpop.f32.mrb[97].mxu0  ;;  %v15822_v21 = vadd.f32 %v6322_v34, %v6189_v46 }
 0x95b   : > { %v6192_v50 = vpop.f32.mrb[98].mxu0 }
 0x95c   : > { %v11747_v25 = vpop.f32.mrb[99].mxu0  ;;  %v15824_v14 = vadd.f32 %v6325_v26, %v6192_v50 }
 0x95d   : > { %v6330_v47 = vpop.f32.mrb[96].mxu1 }
 0x95e   : > { %12029 = vmatmul.mubr.msk.bf16.gmra.mrb[204].mxu0 %vm1330_vm3, %v7363_v45  ;;  %v11786_v22 = vpop.f32.mrb[97].mxu1 }
 0x95f   : > { %12032 = vmatprep.mubr.msk.bf16.mxu0 %vm12991_vm7, %v12990_v31  ;;  %v6333_v10 = vpop.f32.mrb[98].mxu1 }
 0x960   : > { %v11787_v33 = vpop.f32.mrb[99].mxu1 }
 0x961   : > { %v6197_v24 = vpop.f32.mrb[100].mxu0 }
 0x962   : > { %v11750_v13 = vpop.f32.mrb[101].mxu0  ;;  %v15829_v41 = vadd.f32 %v6330_v47, %v6197_v24 }
 0x963   : > { %v6200_v52 = vpop.f32.mrb[102].mxu0 }
 0x964   : > { %v11751_v16 = vpop.f32.mrb[103].mxu0  ;;  %v15831_v39 = vadd.f32 %v6333_v10, %v6200_v52 }
 0x965   : > { %v6338_v4 = vpop.f32.mrb[100].mxu1 }
 0x966   : > { %12033 = vmatmul.mubr.msk.bf16.gmra.mrb[208].mxu0 %vm1330_vm3, %v7364_v51  ;;  %v11790_v19 = vpop.f32.mrb[101].mxu1 }
 0x967   : > { %12036 = vmatprep.mubr.msk.bf16.mxu0 %vm12991_vm7, %v12990_v31  ;;  %v6341_v8 = vpop.f32.mrb[102].mxu1 }
 0x968   : > { %v11791_v58 = vpop.f32.mrb[103].mxu1 }
 0x969   : > { %v6205_v32 = vpop.f32.mrb[104].mxu0 }
 0x96a   : > { %v11754_v54 = vpop.f32.mrb[105].mxu0  ;;  %v15836_v49 = vadd.f32 %v6338_v4, %v6205_v32 }
 0x96b   : > { %v6208_v2 = vpop.f32.mrb[106].mxu0 }
 0x96c   : > { %v11755_v36 = vpop.f32.mrb[107].mxu0  ;;  %v15838_v27 = vadd.f32 %v6341_v8, %v6208_v2 }
 0x96d   : > { %v6346_v60 = vpop.f32.mrb[104].mxu1 }
 0x96e   : > { %12037 = vmatmul.mubr.msk.bf16.gmra.mrb[212].mxu0 %vm1330_vm3, %v7365_v18  ;;  %v11794_v30 = vpop.f32.mrb[105].mxu1 }
 0x96f   : > { %12040 = vmatprep.mubr.msk.bf16.mxu0 %vm12991_vm7, %v12990_v31  ;;  %v6349_v63 = vpop.f32.mrb[106].mxu1 }
 0x970   : > { %v11795_v59 = vpop.f32.mrb[107].mxu1 }
 0x971   : > { %v6213_v61 = vpop.f32.mrb[108].mxu0 }
 0x972   : > { %v11758_v55 = vpop.f32.mrb[109].mxu0  ;;  %v15843_v35 = vadd.f32 %v6346_v60, %v6213_v61 }
 0x973   : > { %v6216_v3 = vpop.f32.mrb[110].mxu0 }
 0x974   : > { %v11759_v28 = vpop.f32.mrb[111].mxu0 }
 0x975   : > { %v6617_v23 = vpop.f32.mrb[108].mxu1 }
 0x976   : > { %12041 = vmatmul.mubr.msk.bf16.gmra.mrb[216].mxu0 %vm1330_vm3, %v7366_v40  ;;  %v11842_v11 = vpop.f32.mrb[109].mxu1 }
 0x977   : > { %12044 = vmatprep.mubr.msk.bf16.mxu0 %vm12991_vm7, %v12990_v31  ;;  %v6620_v38 = vpop.f32.mrb[110].mxu1 }
 0x978   : > { %v11843_v62 = vpop.f32.mrb[111].mxu1 }
 0x979   : > { %v6451_v7 = vpop.f32.mrb[112].mxu0 }
 0x97a   : > { %v6505_v34 = vadd.f32 %v6451_v7, %v15797_v5  ;;  %v11806_v1 = vpop.f32.mrb[113].mxu0 }
 0x97b   : > { %v6454_v26 = vpop.f32.mrb[114].mxu0 }
 0x97c   : > { %v15849_v44 = vadd.f32 %v6617_v23, %v6505_v34  ;;  %v6506_v12 = vadd.f32 %v6454_v26, %v15803_v6  ;;  %v11807_v46 = vpop.f32.mrb[115].mxu0 }
 0x97d   : > { %v6625_v9 = vpop.f32.mrb[112].mxu1 }
 0x97e   : > { %12045 = vmatmul.mubr.msk.bf16.gmra.mrb[220].mxu0 %vm1330_vm3, %v7367_v56  ;;  %v15853_v50 = vadd.f32 %v6620_v38, %v6506_v12  ;;  %v11846_v45 = vpop.f32.mrb[113].mxu1 }
 0x97f   : > { %v6628_v25 = vpop.f32.mrb[114].mxu1  ;;  %12142 = vmatprep.mubr.msk.bf16.mxu0 %vm12991_vm7, %v12990_v31 }
 0x980   : > { %v11847_v47 = vpop.f32.mrb[115].mxu1 }
 0x981   : > { %v6459_v5 = vpop.f32.mrb[116].mxu0 }
 0x982   : > { %v6507_v22 = vadd.f32 %v6459_v5, %v15808_v43  ;;  %v11810_v10 = vpop.f32.mrb[117].mxu0 }
 0x983   : > { %v6462_v33 = vpop.f32.mrb[118].mxu0 }
 0x984   : > { %v15858_v53 = vadd.f32 %v6625_v9, %v6507_v22  ;;  %v6508_v6 = vadd.f32 %v6462_v33, %v15810_v17  ;;  %v11811_v15 = vpop.f32.mrb[119].mxu0 }
 0x985   : > { %v6633_v24 = vpop.f32.mrb[116].mxu1 }
 0x986   : > { %v15861_v13 = vadd.f32 %v6628_v25, %v6508_v6  ;;  %v11850_v52 = vpop.f32.mrb[117].mxu1 }
 0x987   : > { %v6636_v51 = vpop.f32.mrb[118].mxu1 }
 0x988   : > { %v11851_v16 = vpop.f32.mrb[119].mxu1 }
 0x989   : > { %v6467_v4 = vpop.f32.mrb[120].mxu0 }
 0x98a   : > { %v6509_v19 = vadd.f32 %v6467_v4, %v15815_v48  ;;  %v11814_v8 = vpop.f32.mrb[121].mxu0 }
 0x98b   : > { %v6470_v58 = vpop.f32.mrb[122].mxu0 }
 0x98c   : > { %v15864_v0 = vadd.f32 %v6633_v24, %v6509_v19  ;;  %v6510_v43 = vadd.f32 %v6470_v58, %v15817_v57  ;;  %v11815_v20 = vpop.f32.mrb[123].mxu0 }
 0x98d   : > { %v6641_v32 = vpop.f32.mrb[120].mxu1 }
 0x98e   : > { %v15867_v54 = vadd.f32 %v6636_v51, %v6510_v43  ;;  %v11854_v17 = vpop.f32.mrb[121].mxu1 }
 0x98f   : > { %v6644_v2 = vpop.f32.mrb[122].mxu1 }
 0x990   : > { %v11855_v18 = vpop.f32.mrb[123].mxu1 }
 0x991   : > { %v6475_v36 = vpop.f32.mrb[124].mxu0 }
 0x992   : > { %v6511_v60 = vadd.f32 %v6475_v36, %v15822_v21  ;;  %v11818_v30 = vpop.f32.mrb[125].mxu0 }
 0x993   : > { %v6478_v63 = vpop.f32.mrb[126].mxu0 }
 0x994   : > { %v15870_v59 = vadd.f32 %v6641_v32, %v6511_v60  ;;  %v6512_v48 = vadd.f32 %v6478_v63, %v15824_v14  ;;  %v11819_v37 = vpop.f32.mrb[127].mxu0 }
 0x995   : > { %v6649_v42 = vpop.f32.mrb[124].mxu1 }
 0x996   : > { %v15873_v61 = vadd.f32 %v6644_v2, %v6512_v48  ;;  %v11858_v57 = vpop.f32.mrb[125].mxu1 }
 0x997   : > { %v6652_v55 = vpop.f32.mrb[126].mxu1 }
 0x998   : > { %v11859_v3 = vpop.f32.mrb[127].mxu1 }
 0x999   : > { %v6483_v40 = vpop.f32.mrb[128].mxu0 }
 0x99a   : > { %v6513_v28 = vadd.f32 %v6483_v40, %v15829_v41  ;;  %v11822_v23 = vpop.f32.mrb[129].mxu0 }
 0x99b   : > { %v6486_v11 = vpop.f32.mrb[130].mxu0 }
 0x99c   : > { %v15876_v38 = vadd.f32 %v6649_v42, %v6513_v28  ;;  %v6514_v21 = vadd.f32 %v6486_v11, %v15831_v39  ;;  %v11823_v62 = vpop.f32.mrb[131].mxu0 }
 0x99d   : > { %v6657_v29 = vpop.f32.mrb[128].mxu1 }
 0x99e   : > { %v15879_v7 = vadd.f32 %v6652_v55, %v6514_v21  ;;  %v11862_v14 = vpop.f32.mrb[129].mxu1 }
 0x99f   : > { %v6660_v34 = vpop.f32.mrb[130].mxu1 }
 0x9a0   : > { %v11863_v1 = vpop.f32.mrb[131].mxu1 }
 0x9a1   : > { %v6491_v26 = vpop.f32.mrb[132].mxu0 }
 0x9a2   : > { %v6515_v56 = vadd.f32 %v6491_v26, %v15836_v49  ;;  %v11826_v12 = vpop.f32.mrb[133].mxu0 }
 0x9a3   : > { %v6494_v46 = vpop.f32.mrb[134].mxu0 }
 0x9a4   : > { %v15882_v9 = vadd.f32 %v6657_v29, %v6515_v56  ;;  %v6516_v41 = vadd.f32 %v6494_v46, %v15838_v27  ;;  %v11827_v45 = vpop.f32.mrb[135].mxu0 }
 0x9a5   : > { %v6665_v25 = vpop.f32.mrb[132].mxu1 }
 0x9a6   : > { %v15885_v47 = vadd.f32 %v6660_v34, %v6516_v41  ;;  %v11866_v39 = vpop.f32.mrb[133].mxu1 }
 0x9a7   : > { %v6668_v5 = vpop.f32.mrb[134].mxu1 }
 0x9a8   : > { %v11867_v22 = vpop.f32.mrb[135].mxu1 }
 0x9a9   : > { %v6499_v10 = vpop.f32.mrb[136].mxu0 }
 0x9aa   : > { %v6517_v33 = vadd.f32 %v6499_v10, %v15843_v35  ;;  %v11830_v6 = vpop.f32.mrb[137].mxu0 }
 0x9ab   : > { %v6502_v15 = vpop.f32.mrb[138].mxu0 }
 0x9ac   : > { %v11831_v24 = vpop.f32.mrb[139].mxu0  ;;  %v15888_v49 = vadd.f32 %v6665_v25, %v6517_v33 }
 0x9ad   : > { %v6949_v52 = vpop.f32.mrb[136].mxu1 }
 0x9ae   : > { %v11914_v51 = vpop.f32.mrb[137].mxu1 }
 0x9af   : > { %v6952_v16 = vpop.f32.mrb[138].mxu1 }
 0x9b0   : > { %v11915_v4 = vpop.f32.mrb[139].mxu1 }
 0x9b1   : > { %v6783_v27 = vpop.f32.mrb[140].mxu0 }
 0x9b2   : > { %v6837_v19 = vadd.f32 %v6783_v27, %v15849_v44  ;;  %v11878_v8 = vpop.f32.mrb[141].mxu0 }
 0x9b3   : > { %v6786_v58 = vpop.f32.mrb[142].mxu0 }
 0x9b4   : > { %v6838_v43 = vadd.f32 %v6786_v58, %v15853_v50  ;;  %v11879_v20 = vpop.f32.mrb[143].mxu0  ;;  %v15892_v32 = vadd.f32 %v6949_v52, %v6837_v19 }
 0x9b5   : > { %v6957_v35 = vpop.f32.mrb[140].mxu1 }
 0x9b6   : > { %v11918_v17 = vpop.f32.mrb[141].mxu1  ;;  %v15894_v2 = vadd.f32 %v6952_v16, %v6838_v43 }
 0x9b7   : > { %v6960_v18 = vpop.f32.mrb[142].mxu1 }
 0x9b8   : > { %v11919_v36 = vpop.f32.mrb[143].mxu1 }
 0x9b9   : > { %v6791_v60 = vpop.f32.mrb[144].mxu0 }
 0x9ba   : > { %v6839_v30 = vadd.f32 %v6791_v60, %v15858_v53  ;;  %v11882_v63 = vpop.f32.mrb[145].mxu0 }
 0x9bb   : > { %v6794_v48 = vpop.f32.mrb[146].mxu0 }
 0x9bc   : > { %v6840_v44 = vadd.f32 %v6794_v48, %v15861_v13  ;;  %v11883_v37 = vpop.f32.mrb[147].mxu0  ;;  %v15898_v42 = vadd.f32 %v6957_v35, %v6839_v30 }
 0x9bd   : > { %v6965_v50 = vpop.f32.mrb[144].mxu1 }
 0x9be   : > { %v11922_v57 = vpop.f32.mrb[145].mxu1  ;;  %v15900_v55 = vadd.f32 %v6960_v18, %v6840_v44 }
 0x9bf   : > { %v6968_v3 = vpop.f32.mrb[146].mxu1 }
 0x9c0   : > { %v11923_v40 = vpop.f32.mrb[147].mxu1 }
 0x9c1   : > { %v6799_v28 = vpop.f32.mrb[148].mxu0 }
 0x9c2   : > { %v6841_v23 = vadd.f32 %v6799_v28, %v15864_v0  ;;  %v11886_v11 = vpop.f32.mrb[149].mxu0 }
 0x9c3   : > { %v6802_v21 = vpop.f32.mrb[150].mxu0 }
 0x9c4   : > { %v6842_v53 = vadd.f32 %v6802_v21, %v15867_v54  ;;  %v11887_v62 = vpop.f32.mrb[151].mxu0  ;;  %v15904_v29 = vadd.f32 %v6965_v50, %v6841_v23 }
 0x9c5   : > { %v6973_v13 = vpop.f32.mrb[148].mxu1 }
 0x9c6   : > { %v11926_v14 = vpop.f32.mrb[149].mxu1  ;;  %v15906_v34 = vadd.f32 %v6968_v3, %v6842_v53 }
 0x9c7   : > { %v6976_v1 = vpop.f32.mrb[150].mxu1 }
 0x9c8   : > { %v11927_v26 = vpop.f32.mrb[151].mxu1 }
 0x9c9   : > { %v6807_v56 = vpop.f32.mrb[152].mxu0 }
 0x9ca   : > { %v6843_v12 = vadd.f32 %v6807_v56, %v15870_v59  ;;  %v11890_v46 = vpop.f32.mrb[153].mxu0 }
 0x9cb   : > { %v6810_v41 = vpop.f32.mrb[154].mxu0 }
 0x9cc   : > { %v6844_v0 = vadd.f32 %v6810_v41, %v15873_v61  ;;  %v11891_v45 = vpop.f32.mrb[155].mxu0  ;;  %v15910_v25 = vadd.f32 %v6973_v13, %v6843_v12 }
 0x9cd   : > { %v6981_v54 = vpop.f32.mrb[152].mxu1 }
 0x9ce   : > { %v11930_v39 = vpop.f32.mrb[153].mxu1  ;;  %v15912_v5 = vadd.f32 %v6976_v1, %v6844_v0 }
 0x9cf   : > { %v6984_v22 = vpop.f32.mrb[154].mxu1 }
 0x9d0   : > { %v11931_v10 = vpop.f32.mrb[155].mxu1 }
 0x9d1   : > { %v6815_v33 = vpop.f32.mrb[156].mxu0  ;;  %v12855_v10 = vld [vmem:[%s16721_s4 + $0x360] sm:$0xff]  }
 0x9d2   : > { %v6845_v6 = vadd.f32 %v6815_v33, %v15876_v38  ;;  %v11894_v15 = vpop.f32.mrb[157].mxu0  ;;  %12135 = vmatpush3.bf16.msra.mxu0 %v12855_v10 }
 0x9d3   : > { %v6818_v24 = vpop.f32.mrb[158].mxu0  ;;  %12136 = vmatprep.subr.bf16.mxu0 %v12990_v31 }
 0x9d4   : > { %v6846_v59 = vadd.f32 %v6818_v24, %v15879_v7  ;;  %v11895_v52 = vpop.f32.mrb[159].mxu0  ;;  %v15916_v51 = vadd.f32 %v6981_v54, %v6845_v6 }
 0x9d5   : > { %v6989_v61 = vpop.f32.mrb[156].mxu1 }
 0x9d6   : > { %v11934_v16 = vpop.f32.mrb[157].mxu1  ;;  %v15918_v4 = vadd.f32 %v6984_v22, %v6846_v59 }
 0x9d7   : > { %v6992_v27 = vpop.f32.mrb[158].mxu1 }
 0x9d8   : > { %v11935_v19 = vpop.f32.mrb[159].mxu1 }
 0x9d9   : > { %v6823_v8 = vpop.f32.mrb[160].mxu0 }
 0x9da   : > { %v6847_v58 = vadd.f32 %v6823_v8, %v15882_v9  ;;  %v11898_v43 = vpop.f32.mrb[161].mxu0 }
 0x9db   : > { %v6826_v20 = vpop.f32.mrb[162].mxu0 }
 0x9dc   : > { %v6848_v38 = vadd.f32 %v6826_v20, %v15885_v47  ;;  %v11899_v35 = vpop.f32.mrb[163].mxu0  ;;  %v15922_v17 = vadd.f32 %v6989_v61, %v6847_v58 }
 0x9dd   : > { %v6997_v7 = vpop.f32.mrb[160].mxu1 }
 0x9de   : > { %v11938_v18 = vpop.f32.mrb[161].mxu1  ;;  %v15924_v36 = vadd.f32 %v6992_v27, %v6848_v38 }
 0x9df   : > { %v7000_v60 = vpop.f32.mrb[162].mxu1 }
 0x9e0   : > { %v11939_v30 = vpop.f32.mrb[163].mxu1 }
 0x9e1   : > { %v6831_v63 = vpop.f32.mrb[164].mxu0 }
 0x9e2   : > { %v6849_v48 = vadd.f32 %v6831_v63, %v15888_v49  ;;  %v11902_v44 = vpop.f32.mrb[165].mxu0 }
 0x9e3   : > { %v6834_v37 = vpop.f32.mrb[166].mxu0 }
 0x9e4   : > { %v11903_v50 = vpop.f32.mrb[167].mxu0  ;;  %v15927_v9 = vadd.f32 %v6997_v7, %v6849_v48 }
 0x9e5   : > { %v7281_v57 = vpop.f32.mrb[164].mxu1 }
 0x9e6   : > { %v11986_v3 = vpop.f32.mrb[165].mxu1 }
 0x9e7   : > { %v7284_v47 = vpop.f32.mrb[166].mxu1 }
 0x9e8   : > { %v11987_v40 = vpop.f32.mrb[167].mxu1 }
 0x9e9   : > { %v7115_v28 = vpop.f32.mrb[168].mxu0 }
 0x9ea   : > { %v7169_v23 = vadd.f32 %v7115_v28, %v15892_v32  ;;  %v11950_v11 = vpop.f32.mrb[169].mxu0 }
 0x9eb   : > { %v7118_v21 = vpop.f32.mrb[170].mxu0 }
 0x9ec   : > { %v7170_v53 = vadd.f32 %v7118_v21, %v15894_v2  ;;  %v11951_v62 = vpop.f32.mrb[171].mxu0  ;;  %v15931_v13 = vadd.f32 %v7281_v57, %v7169_v23 }
 0x9ed   : > { %v7289_v49 = vpop.f32.mrb[168].mxu1 }
 0x9ee   : > { %v11990_v14 = vpop.f32.mrb[169].mxu1  ;;  %v15933_v1 = vadd.f32 %v7284_v47, %v7170_v53 }
 0x9ef   : > { %v7292_v26 = vpop.f32.mrb[170].mxu1 }
 0x9f0   : > { %v11991_v56 = vpop.f32.mrb[171].mxu1 }
 0x9f1   : > { %v7123_v12 = vpop.f32.mrb[172].mxu0 }
 0x9f2   : > { %v7171_v46 = vadd.f32 %v7123_v12, %v15898_v42  ;;  %v11954_v41 = vpop.f32.mrb[173].mxu0 }
 0x9f3   : > { %v7126_v0 = vpop.f32.mrb[174].mxu0 }
 0x9f4   : > { %v7172_v32 = vadd.f32 %v7126_v0, %v15900_v55  ;;  %v11955_v45 = vpop.f32.mrb[175].mxu0  ;;  %v15937_v54 = vadd.f32 %v7289_v49, %v7171_v46 }
 0x9f5   : > { %v7297_v2 = vpop.f32.mrb[172].mxu1 }
 0x9f6   : > { %v11994_v39 = vpop.f32.mrb[173].mxu1  ;;  %v15939_v22 = vadd.f32 %v7292_v26, %v7172_v32 }
 0x9f7   : > { %v7300_v33 = vpop.f32.mrb[174].mxu1 }
 0x9f8   : > { %v11995_v6 = vpop.f32.mrb[175].mxu1 }
 0x9f9   : > { %v7131_v15 = vpop.f32.mrb[176].mxu0 }
 0x9fa   : > { %v7173_v42 = vadd.f32 %v7131_v15, %v15904_v29  ;;  %v11958_v55 = vpop.f32.mrb[177].mxu0 }
 0x9fb   : > { %v7134_v24 = vpop.f32.mrb[178].mxu0 }
 0x9fc   : > { %v7174_v59 = vadd.f32 %v7134_v24, %v15906_v34  ;;  %v11959_v52 = vpop.f32.mrb[179].mxu0  ;;  %v15947_v61 = vadd.f32 %v7297_v2, %v7173_v42 }
 0x9fd   : > { %v7305_v16 = vpop.f32.mrb[176].mxu1 }
 0x9fe   : > { %v11998_v27 = vpop.f32.mrb[177].mxu1  ;;  %v15949_v19 = vadd.f32 %v7300_v33, %v7174_v59 }
 0x9ff   : > { %v7308_v8 = vpop.f32.mrb[178].mxu1 }
 0xa00   : > { %v11999_v58 = vpop.f32.mrb[179].mxu1 }
 0xa01   : > { %v7139_v43 = vpop.f32.mrb[180].mxu0 }
 0xa02   : > { %v7175_v20 = vadd.f32 %v7139_v43, %v15910_v25  ;;  %v11962_v38 = vpop.f32.mrb[181].mxu0 }
 0xa03   : > { %v7142_v35 = vpop.f32.mrb[182].mxu0 }
 0xa04   : > { %v7176_v29 = vadd.f32 %v7142_v35, %v15912_v5  ;;  %v11963_v7 = vpop.f32.mrb[183].mxu0  ;;  %v15953_v18 = vadd.f32 %v7305_v16, %v7175_v20 }
 0xa05   : > { %v7313_v34 = vpop.f32.mrb[180].mxu1 }
 0xa06   : > { %v12002_v60 = vpop.f32.mrb[181].mxu1  ;;  %v15955_v30 = vadd.f32 %v7308_v8, %v7176_v29 }
 0xa07   : > { %v7316_v63 = vpop.f32.mrb[182].mxu1 }
 0xa08   : > { %v12003_v48 = vpop.f32.mrb[183].mxu1 }
 0xa09   : > { %v7147_v44 = vpop.f32.mrb[184].mxu0 }
 0xa0a   : > { %v7177_v37 = vadd.f32 %v7147_v44, %v15916_v51  ;;  %v11966_v50 = vpop.f32.mrb[185].mxu0 }
 0xa0b   : > { %v7150_v57 = vpop.f32.mrb[186].mxu0 }
 0xa0c   : > { %v7178_v25 = vadd.f32 %v7150_v57, %v15918_v4  ;;  %v11967_v3 = vpop.f32.mrb[187].mxu0  ;;  %v15959_v47 = vadd.f32 %v7313_v34, %v7177_v37 }
 0xa0d   : > { %v7321_v5 = vpop.f32.mrb[184].mxu1 }
 0xa0e   : > { %v12006_v40 = vpop.f32.mrb[185].mxu1  ;;  %v15961_v28 = vadd.f32 %v7316_v63, %v7178_v25 }
 0xa0f   : > { %v7324_v23 = vpop.f32.mrb[186].mxu1 }
 0xa10   : > { %v12007_v11 = vpop.f32.mrb[187].mxu1 }
 0xa11   : > { %v7155_v21 = vpop.f32.mrb[188].mxu0 }
 0xa12   : > { %v7179_v53 = vadd.f32 %v7155_v21, %v15922_v17  ;;  %v11970_v62 = vpop.f32.mrb[189].mxu0 }
 0xa13   : > { %v7158_v49 = vpop.f32.mrb[190].mxu0 }
 0xa14   : > { %v7180_v51 = vadd.f32 %v7158_v49, %v15924_v36  ;;  %v11971_v14 = vpop.f32.mrb[191].mxu0  ;;  %v15965_v26 = vadd.f32 %v7321_v5, %v7179_v53  ;;  %v15975_v36 = vld [vmem:[%s16722_s5 + $0x2] ss:$0 sm:$0xff] }
 0xa15   : > { %v7329_v4 = vpop.f32.mrb[188].mxu1 }
 0xa16   : > { %v15967_v56 = vadd.f32 %v7324_v23, %v7180_v51  ;;  %v12010_v12 = vpop.f32.mrb[189].mxu1 }
 0xa17   : > { %v7332_v46 = vpop.f32.mrb[190].mxu1 }
 0xa18   : > { %v12011_v41 = vpop.f32.mrb[191].mxu1 }
 0xa19   : > { %v7163_v0 = vpop.f32.mrb[192].mxu0 }
 0xa1a   : > { %v7181_v32 = vadd.f32 %v7163_v0, %v15927_v9  ;;  %v11974_v45 = vpop.f32.mrb[193].mxu0 }
 0xa1b   : > { %v7166_v2 = vpop.f32.mrb[194].mxu0 }
 0xa1c   : > { %v15970_v39 = vadd.f32 %v7329_v4, %v7181_v32  ;;  %v11975_v17 = vpop.f32.mrb[195].mxu0 }
 0xa21   : > { %v7447_v10 = vpop.f32.mrb[196].mxu0 }
 0xa22   : > { %v7501_v33 = vadd.f32 %v7447_v10, %v15931_v13  ;;  %v12022_v6 = vpop.f32.mrb[197].mxu0 }
 0xa23   : > { %v7450_v15 = vpop.f32.mrb[198].mxu0 }
 0xa24   : > { %v7522_v42 = vadd.f32 %v15975_v36, %v7501_v33  ;;  %v7502_v55 = vadd.f32 %v7450_v15, %v15933_v1  ;;  %v12023_v9 = vpop.f32.mrb[199].mxu0 }
 0xa26   : > { %v7523_v24 = vadd.f32 %v15975_v36, %v7502_v55  ;;  %v7535_v59 = vmax.f32 %v7522_v42, 0.0 }
 0xa28   : > { %v7536_v52 = vmax.f32 %v7523_v24, 0.0 }
 0xa29   : > { %v7455_v16 = vpop.f32.mrb[200].mxu0 }
 0xa2a   : > { %v7503_v27 = vadd.f32 %v7455_v16, %v15937_v54  ;;  %v12026_v8 = vpop.f32.mrb[201].mxu0  ;;  %v12556_v58 = vpack.c.bf16 %v7536_v52, %v7535_v59 }
 0xa2b   : > { %v7458_v43 = vpop.f32.mrb[202].mxu0 }
 0xa2c   : > { %v7524_v20 = vadd.f32 %v15975_v36, %v7503_v27  ;;  %v7504_v13 = vadd.f32 %v7458_v43, %v15939_v22  ;;  %v12027_v38 = vpop.f32.mrb[203].mxu0  ;;  %12557 = vmatprep.subr.bf16.mxu1 %v12556_v58  ;;  %v12913_v43 = vld [vmem:[%s16724_s7 + $0x28] sm:$0xff] }
 0xa2d   : > { %12559 = vmatpush3.bf16.msra.mxu1 %v12556_v58  ;;  %v12912_v58 = vld [vmem:[%s16724_s7 + $0x20] sm:$0xff] }
 0xa2e   : > { %v7525_v1 = vadd.f32 %v15975_v36, %v7504_v13  ;;  %v7537_v35 = vmax.f32 %v7524_v20, 0.0  ;;  %v12914_v20 = vld [vmem:[%s16724_s7 + $0x30] sm:$0xff]  ;;  %v12915_v13 = vld [vmem:[%s16724_s7 + $0x38] sm:$0xff]  ;;  %v12916_v38 = vld [vmem:[%s16724_s7 + $0x40] sm:$0xff] }
 0xa30   : > { %v7538_v29 = vmax.f32 %v7525_v1, 0.0  ;;  %v12917_v1 = vld [vmem:[%s16724_s7 + $0x48] sm:$0xff] }
 0xa31   : > { %v7463_v7 = vpop.f32.mrb[204].mxu0 }
 0xa32   : > { %v7505_v34 = vadd.f32 %v7463_v7, %v15947_v61  ;;  %v12030_v60 = vpop.f32.mrb[205].mxu0  ;;  %v12560_v63 = vpack.c.bf16 %v7538_v29, %v7537_v35  ;;  %v12918_v35 = vld [vmem:[%s16724_s7 + $0x50] sm:$0xff]  ;;  %v12919_v29 = vld [vmem:[%s16724_s7 + $0x58] sm:$0xff]  ;;  %v12920_v7 = vld [vmem:[%s16724_s7 + $0x60] sm:$0xff] }
 0xa33   : > { %v7466_v54 = vpop.f32.mrb[206].mxu0  ;;  %v12922_v60 = vld [vmem:[%s16724_s7 + $0x70] sm:$0xff] }
 0xa34   : > { %v7526_v48 = vadd.f32 %v15975_v36, %v7505_v34  ;;  %v7506_v44 = vadd.f32 %v7466_v54, %v15949_v19  ;;  %v12031_v37 = vpop.f32.mrb[207].mxu0  ;;  %12561 = vmatprep.subr.bf16.mxu1 %v12560_v63  ;;  %v12921_v34 = vld [vmem:[%s16724_s7 + $0x68] sm:$0xff]  ;;  %v12856_v54 = vld [vmem:[%s16721_s4 + $0x380] sm:$0xff]  }
 0xa35   : > { %12563 = vmatpush3.bf16.msra.mxu1 %v12560_v63  ;;  %v12923_v63 = vld [vmem:[%s16724_s7 + $0x78] sm:$0x3]  ;;  %v12859_v37 = vld [vmem:[%s16721_s4 + $0x370] sm:$0xff]  }
 0xa36   : > { %v7527_v22 = vadd.f32 %v15975_v36, %v7506_v44  ;;  %v7539_v50 = vmax.f32 %v7526_v48, 0.0  ;;  %v12857_v48 = vld [vmem:[%s16721_s4 + $0x368] sm:$0xff]  }
 0xa37   : > { %12137 = vmatpush3.bf16.msra.mxu0 %v12857_v48  ;;  %v12858_v44 = vld [vmem:[%s16721_s4 + $0x388] sm:$0xff]  }
 0xa38   : > { %v7540_v57 = vmax.f32 %v7527_v22, 0.0  ;;  %12138 = vmatprep.subr.bf16.mxu0 %v12990_v31  ;;  %v12860_v22 = vld [vmem:[%s16721_s4 + $0x390] sm:$0xff]  }
 0xa39   : > { %v7471_v25 = vpop.f32.mrb[208].mxu0 }
 0xa3a   : > { %v7507_v3 = vadd.f32 %v7471_v25, %v15953_v18  ;;  %v12034_v5 = vpop.f32.mrb[209].mxu0  ;;  %v12564_v40 = vpack.c.bf16 %v7540_v57, %v7539_v50  ;;  %v12861_v50 = vld [vmem:[%s16721_s4 + $0x378] sm:$0xff]  }
 0xa3b   : > { %v7474_v61 = vpop.f32.mrb[210].mxu0  ;;  %12139 = vmatpush3.bf16.msra.mxu0 %v12859_v37  ;;  %v12862_v57 = vld [vmem:[%s16721_s4 + $0x398] sm:$0xff]  }
 0xa3c   : > { %v7528_v23 = vadd.f32 %v15975_v36, %v7507_v3  ;;  %v7508_v11 = vadd.f32 %v7474_v61, %v15955_v30  ;;  %v12035_v21 = vpop.f32.mrb[211].mxu0  ;;  %12565 = vmatprep.subr.bf16.mxu1 %v12564_v40  ;;  %12140 = vmatprep.subr.bf16.mxu0 %v12990_v31 }
 0xa3d   : > { %12567 = vmatpush3.bf16.msra.mxu1 %v12564_v40 }
 0xa3e   : > { %v7529_v19 = vadd.f32 %v15975_v36, %v7508_v11  ;;  %v7541_v53 = vmax.f32 %v7528_v23, 0.0 }
 0xa3f   : > { %12141 = vmatpush3.bf16.msra.mxu0 %v12861_v50 }
 0xa40   : > { %v7542_v62 = vmax.f32 %v7529_v19, 0.0  ;;  %12206 = vmatprep.subr.bf16.mxu0 %v12990_v31  ;;  %v12863_v19 = vld [vmem:[%s16721_s4 + $0x3c0] sm:$0xff]  }
 0xa41   : > { %v7479_v49 = vpop.f32.mrb[212].mxu0 }
 0xa42   : > { %v7509_v51 = vadd.f32 %v7479_v49, %v15959_v47  ;;  %v12038_v14 = vpop.f32.mrb[213].mxu0  ;;  %v12568_v4 = vpack.c.bf16 %v7542_v62, %v7541_v53 }
 0xa43   : > { %v7482_v18 = vpop.f32.mrb[214].mxu0 }
 0xa44   : > { %v7530_v12 = vadd.f32 %v15975_v36, %v7509_v51  ;;  %v7510_v46 = vadd.f32 %v7482_v18, %v15961_v28  ;;  %v12039_v41 = vpop.f32.mrb[215].mxu0  ;;  %12569 = vmatprep.subr.bf16.mxu1 %v12568_v4 }
 0xa45   : > { %12571 = vmatpush3.bf16.msra.mxu1 %v12568_v4  ;;  %v12864_v4 = vld [vmem:[%s16721_s4 + $0x3a0] sm:$0xff]  }
 0xa46   : > { %v7531_v30 = vadd.f32 %v15975_v36, %v7510_v46  ;;  %v7543_v0 = vmax.f32 %v7530_v12, 0.0  ;;  %v12865_v12 = vld [vmem:[%s16721_s4 + $0x3c8] sm:$0xff]  }
 0xa48   : > { %v7544_v32 = vmax.f32 %v7531_v30, 0.0 }
 0xa49   : > { %v7487_v45 = vpop.f32.mrb[216].mxu0 }
 0xa4a   : > { %v7511_v2 = vadd.f32 %v7487_v45, %v15965_v26  ;;  %v12042_v17 = vpop.f32.mrb[217].mxu0  ;;  %v12572_v10 = vpack.c.bf16 %v7544_v32, %v7543_v0  ;;  %v12866_v32 = vld [vmem:[%s16721_s4 + $0x3a8] sm:$0xff]  }
 0xa4b   : > { %v7490_v47 = vpop.f32.mrb[218].mxu0 }
 0xa4c   : > { %v7532_v33 = vadd.f32 %v15975_v36, %v7511_v2  ;;  %v7512_v6 = vadd.f32 %v7490_v47, %v15967_v56  ;;  %v12043_v15 = vpop.f32.mrb[219].mxu0  ;;  %12573 = vmatprep.subr.bf16.mxu1 %v12572_v10  ;;  %v12909_v56 = vld [vmem:[%s16724_s7 + $0x8] sm:$0xff]  ;;  %v12867_v2 = vld [vmem:[%s16721_s4 + $0x3d0] sm:$0xff]  }
 0xa4d   : > { %12575 = vmatpush3.bf16.msra.mxu1 %v12572_v10 }
 0xa4e   : > { %v7533_v28 = vadd.f32 %v15975_v36, %v7512_v6  ;;  %v7545_v42 = vmax.f32 %v7532_v33, 0.0  ;;  %v12868_v6 = vld [vmem:[%s16721_s4 + $0x3b0] sm:$0xff]  }
 0xa50   : > { %v7546_v55 = vmax.f32 %v7533_v28, 0.0  ;;  %v12869_v28 = vld [vmem:[%s16721_s4 + $0x3d8] sm:$0xff]  }
 0xa51   : > { %v7495_v9 = vpop.f32.mrb[220].mxu0 }
 0xa52   : > { %v7513_v24 = vadd.f32 %v7495_v9, %v15970_v39  ;;  %v12576_v59 = vpack.c.bf16 %v7546_v55, %v7545_v42  ;;  %v12046_v52 = vpop.f32.mrb[221].mxu0  ;;  %v12910_v39 = vld [vmem:[%s16724_s7 + $0x10] sm:$0xff] }
 0xa53   : > { %v7498_v26 = vpop.f32.mrb[222].mxu0 }
 0xa54   : > { %v7534_v16 = vadd.f32 %v15975_v36, %v7513_v24  ;;  %12577 = vmatprep.subr.bf16.mxu1 %v12576_v59  ;;  %v12047_v27 = vpop.f32.mrb[223].mxu0  ;;  %v12911_v36 = vld [vmem:[%s16724_s7 + $0x18] sm:$0xff] }
 0xa55   : > { %12579 = vmatpush3.bf16.msra.mxu1 %v12576_v59  ;;  %v12870_v59 = vld [vmem:[%s16721_s4 + $0x3b8] sm:$0xff]  }
 0xa56   : > { %v7547_v8 = vmax.f32 %v7534_v16, 0.0 }
 0xa58   : > { %12072 = vmatprep.subr.msk.mxu1 %vm2096_vm5, %v7547_v8 }
 0xa59   : > { %12073 = vmatpush3.msk.msra.mxu1 %vm2096_vm5, %v7547_v8 }
 0xa5a   : > { %12075 = vmatmul.mubr.msk.f32.vlgmr.msra.gmra.mrb[192].mxu1 %vm3995_vm8, %v12909_v56  ;;  %12098 = vmatprep.subr.bf16.mxu1 %v12990_v31 }
 0xa5b   : > { %12077 = vmatprep.mubr.msk.f32.mxu1 %vm3995_vm8, %v12910_v39  ;;  %12099 = vmatpush3.bf16.msra.mxu1 %v12856_v54 }
 0xa5c   : > { %12100 = vmatprep.subr.bf16.mxu1 %v12990_v31 }
 0xa5e   : > { %12078 = vmatmul.mubr.msk.f32.gmra.mrb[194].mxu1 %vm3995_vm8, %v12911_v36 }
 0xa5f   : > { %12080 = vmatprep.mubr.msk.f32.mxu1 %vm3995_vm8, %v12912_v58  ;;  %12101 = vmatpush3.bf16.msra.mxu1 %v12858_v44 }
 0xa60   : > { %12102 = vmatprep.subr.bf16.mxu1 %v12990_v31 }
 0xa62   : > { %12081 = vmatmul.mubr.msk.f32.gmra.mrb[196].mxu1 %vm3995_vm8, %v12913_v43 }
 0xa63   : > { %12083 = vmatprep.mubr.msk.f32.mxu1 %vm3995_vm8, %v12914_v20  ;;  %12103 = vmatpush3.bf16.msra.mxu1 %v12860_v22 }
 0xa64   : > { %12104 = vmatprep.subr.bf16.mxu1 %v12990_v31 }
 0xa66   : > { %12084 = vmatmul.mubr.msk.f32.gmra.mrb[198].mxu1 %vm3995_vm8, %v12915_v13 }
 0xa67   : > { %12086 = vmatprep.mubr.msk.f32.mxu1 %vm3995_vm8, %v12916_v38  ;;  %12105 = vmatpush3.bf16.msra.mxu1 %v12862_v57 }
 0xa68   : > { %12170 = vmatprep.subr.bf16.mxu1 %v12990_v31 }
 0xa6a   : > { %12087 = vmatmul.mubr.msk.f32.gmra.mrb[200].mxu1 %vm3995_vm8, %v12917_v1 }
 0xa6b   : > { %12089 = vmatprep.mubr.msk.f32.mxu1 %vm3995_vm8, %v12918_v35 }
 0xa6e   : > { %12090 = vmatmul.mubr.msk.f32.gmra.mrb[202].mxu1 %vm3995_vm8, %v12919_v29 }
 0xa6f   : > { %12092 = vmatprep.mubr.msk.f32.mxu1 %vm3995_vm8, %v12920_v7 }
 0xa72   : > { %12093 = vmatmul.mubr.msk.f32.gmra.mrb[204].mxu1 %vm3995_vm8, %v12921_v34 }
 0xa73   : > { %12095 = vmatprep.mubr.msk.f32.mxu1 %vm3995_vm8, %v12922_v60 }
 0xa76   : > { %12096 = vmatmul.mubr.msk.f32.gmra.mrb[206].mxu1 %vm3995_vm8, %v12923_v63 }
 0xa77   : > { %12106 = vmatprep.mubr.msk.bf16.mxu1 %vm12991_vm7, %v12990_v31 }
 0xb2d   : > { %v12076_v25 = vpop.f32.mrb[192].mxu1 }
 0xb2e   : > { %7697 = vst.msk [vmem:[#allocation4 + $0x8] sm:$0xff] %vm1330_vm3, %v12076_v25  ;;  %v7617_v3 = vpop.f32.mrb[193].mxu1 }
 0xb2f   : > { %7696 = vst.msk [vmem:[#allocation4] sm:$0xff] %vm1330_vm3, %v7617_v3 }
 0xb31   : > { %v12079_v5 = vpop.f32.mrb[194].mxu1 }
 0xb32   : > { %7699 = vst.msk [vmem:[#allocation4 + $0x18] sm:$0xff] %vm1330_vm3, %v12079_v5  ;;  %v7627_v40 = vpop.f32.mrb[195].mxu1 }
 0xb33   : > { %7698 = vst.msk [vmem:[#allocation4 + $0x10] sm:$0xff] %vm1330_vm3, %v7627_v40  ;;  %v12871_v40 = vld [vmem:[%s16721_s4 + $0x400] sm:$0xff]  }
 0xb35   : > { %v7799_v61 = vld [vmem:[#allocation4 + $0x8] sm:$0xff]  ;;  %v12082_v23 = vpop.f32.mrb[196].mxu1 }
 0xb36   : > { %v7798_v11 = vld [vmem:[#allocation4] sm:$0xff]  ;;  %7701 = vst.msk [vmem:[#allocation4 + $0x28] sm:$0xff] %vm1330_vm3, %v12082_v23  ;;  %v7637_v21 = vpop.f32.mrb[197].mxu1 }
 0xb37   : > { %v7811_v53 = vpack.c.bf16 %v7799_v61, %v7798_v11  ;;  %7700 = vst.msk [vmem:[#allocation4 + $0x20] sm:$0xff] %vm1330_vm3, %v7637_v21  ;;  %v7818_v49 = vld [vmem:[#allocation4 + $0x1] sm:$0xff]  ;;  %v12872_v11 = vld [vmem:[%s16721_s4 + $0x3e0] sm:$0xff]  }
 0xb38   : > { %v8104_v23 = vld [vmem:[#allocation4 + $0x2] sm:$0xff] }
 0xb39   : > { %12143 = vmatmul.mubr.msk.bf16.vlgmr.msra.gmra.mrb[224].mxu0 %vm1330_vm3, %v7811_v53  ;;  %v12085_v62 = vpop.f32.mrb[198].mxu1  ;;  %v7801_v41 = vld [vmem:[#allocation4 + $0x18] sm:$0xff] }
 0xb3a   : > { %v7819_v51 = vld [vmem:[#allocation4 + $0x9] sm:$0xff]  ;;  %12146 = vmatprep.mubr.msk.bf16.mxu0 %vm12991_vm7, %v12990_v31  ;;  %7703 = vst.msk [vmem:[#allocation4 + $0x38] sm:$0xff] %vm1330_vm3, %v12085_v62  ;;  %v7647_v14 = vpop.f32.mrb[199].mxu1  ;;  %12207 = vmatpush3.bf16.msra.mxu0 %v12863_v19  ;;  %v7820_v47 = vld [vmem:[#allocation4 + $0x11] sm:$0xff] }
 0xb3b   : > { %v7831_v18 = vpack.c.bf16 %v7819_v51, %v7818_v49  ;;  %7702 = vst.msk [vmem:[#allocation4 + $0x30] sm:$0xff] %vm1330_vm3, %v7647_v14  ;;  %12208 = vmatprep.subr.bf16.mxu0 %v12990_v31  ;;  %v7800_v46 = vld [vmem:[#allocation4 + $0x10] sm:$0xff]  ;;  %v12873_v19 = vld [vmem:[%s16721_s4 + $0x408] sm:$0xff]   ;;  %v12875_v14 = vld [vmem:[%s16721_s4 + $0x410] sm:$0xff]  }
 0xb3c   : > { %v7812_v45 = vpack.c.bf16 %v7801_v41, %v7800_v46  ;;  %v8270_v3 = vld [vmem:[#allocation4 + $0xa] sm:$0xff]  ;;  %v8271_v5 = vld [vmem:[#allocation4 + $0x12] sm:$0xff] }
 0xb3d   : > { %12107 = vmatmul.mubr.msk.bf16.vlgmr.msra.gmra.mrb[208].mxu1 %vm1330_vm3, %v7831_v18  ;;  %v12088_v30 = vpop.f32.mrb[200].mxu1  ;;  %v7803_v55 = vld [vmem:[#allocation4 + $0x28] sm:$0xff]  ;;  %v8283_v61 = vpack.c.bf16 %v8271_v5, %v8270_v3  ;;  %v8117_v21 = vpack.c.bf16 %v8270_v3, %v8104_v23  ;;  %v12874_v49 = vld [vmem:[%s16721_s4 + $0x3e8] sm:$0xff]  }
 0xb3e   : > { %12110 = vmatprep.mubr.msk.bf16.mxu1 %vm12991_vm7, %v12990_v31  ;;  %7705 = vst.msk [vmem:[#allocation4 + $0x48] sm:$0xff] %vm1330_vm3, %v12088_v30  ;;  %v7657_v0 = vpop.f32.mrb[201].mxu1  ;;  %12171 = vmatpush3.bf16.msra.mxu1 %v12864_v4  ;;  %v7821_v17 = vld [vmem:[#allocation4 + $0x19] sm:$0xff]  ;;  %v7822_v26 = vld [vmem:[#allocation4 + $0x21] sm:$0xff] }
 0xb3f   : > { %7704 = vst.msk [vmem:[#allocation4 + $0x40] sm:$0xff] %vm1330_vm3, %v7657_v0  ;;  %12209 = vmatpush3.bf16.msra.mxu0 %v12865_v12  ;;  %12172 = vmatprep.subr.bf16.mxu1 %v12990_v31  ;;  %v7832_v15 = vpack.c.bf16 %v7821_v17, %v7820_v47  ;;  %v7802_v42 = vld [vmem:[#allocation4 + $0x20] sm:$0xff]  ;;  %v12877_v12 = vld [vmem:[%s16721_s4 + $0x418] sm:$0xff]  }
 0xb40   : > { %12210 = vmatprep.subr.bf16.mxu0 %v12990_v31  ;;  %v7813_v52 = vpack.c.bf16 %v7803_v55, %v7802_v42  ;;  %v8272_v53 = vld [vmem:[#allocation4 + $0x1a] sm:$0xff]  ;;  %v8273_v62 = vld [vmem:[#allocation4 + $0x22] sm:$0xff] }
 0xb41   : > { %12147 = vmatmul.mubr.msk.bf16.gmra.mrb[228].mxu0 %vm1330_vm3, %v7812_v45  ;;  %v12091_v10 = vpop.f32.mrb[202].mxu1  ;;  %v7805_v36 = vld [vmem:[#allocation4 + $0x38] sm:$0xff]  ;;  %v8284_v51 = vpack.c.bf16 %v8273_v62, %v8272_v53  ;;  %v12876_v4 = vld [vmem:[%s16721_s4 + $0x3f0] sm:$0xff]   ;;  %v8118_v18 = vpack.c.bf16 %v8272_v53, %v8271_v5  ;;  %v12878_v30 = vld [vmem:[%s16721_s4 + $0x3f8] sm:$0xff]  }
 0xb42   : > { %12150 = vmatprep.mubr.msk.bf16.mxu0 %vm12991_vm7, %v12990_v31  ;;  %7707 = vst.msk [vmem:[#allocation4 + $0x58] sm:$0xff] %vm1330_vm3, %v12091_v10  ;;  %v7667_v33 = vpop.f32.mrb[203].mxu1  ;;  %12173 = vmatpush3.bf16.msra.mxu1 %v12866_v32  ;;  %v7823_v16 = vld [vmem:[#allocation4 + $0x29] sm:$0xff]  ;;  %v7824_v43 = vld [vmem:[#allocation4 + $0x31] sm:$0xff] }
 0xb43   : > { %7706 = vst.msk [vmem:[#allocation4 + $0x50] sm:$0xff] %vm1330_vm3, %v7667_v33  ;;  %12211 = vmatpush3.bf16.msra.mxu0 %v12867_v2  ;;  %12174 = vmatprep.subr.bf16.mxu1 %v12990_v31  ;;  %v7833_v56 = vpack.c.bf16 %v7823_v16, %v7822_v26  ;;  %v7804_v39 = vld [vmem:[#allocation4 + $0x30] sm:$0xff] }
 0xb44   : > { %12212 = vmatprep.subr.bf16.mxu0 %v12990_v31  ;;  %v7814_v58 = vpack.c.bf16 %v7805_v36, %v7804_v39  ;;  %v8274_v46 = vld [vmem:[#allocation4 + $0x2a] sm:$0xff]  ;;  %v8275_v41 = vld [vmem:[#allocation4 + $0x32] sm:$0xff] }
 0xb45   : > { %12111 = vmatmul.mubr.msk.bf16.gmra.mrb[212].mxu1 %vm1330_vm3, %v7832_v15  ;;  %v12094_v9 = vpop.f32.mrb[204].mxu1  ;;  %v7807_v1 = vld [vmem:[#allocation4 + $0x48] sm:$0xff]  ;;  %v8285_v0 = vpack.c.bf16 %v8275_v41, %v8274_v46  ;;  %v8119_v32 = vpack.c.bf16 %v8274_v46, %v8273_v62  ;;  %v8437_v36 = vld [vmem:[#allocation4 + $0x13] sm:$0xff] }
 0xb46   : > { %12114 = vmatprep.mubr.msk.bf16.mxu1 %vm12991_vm7, %v12990_v31  ;;  %7709 = vst.msk [vmem:[#allocation4 + $0x68] sm:$0xff] %vm1330_vm3, %v12094_v9  ;;  %v7677_v24 = vpop.f32.mrb[205].mxu1  ;;  %12175 = vmatpush3.bf16.msra.mxu1 %v12868_v6  ;;  %v7825_v20 = vld [vmem:[#allocation4 + $0x39] sm:$0xff]  ;;  %v7826_v29 = vld [vmem:[#allocation4 + $0x41] sm:$0xff]  ;;  %v8602_v16 = vld [vmem:[#allocation4 + $0xc] sm:$0xff] }
 0xb47   : > { %7708 = vst.msk [vmem:[#allocation4 + $0x60] sm:$0xff] %vm1330_vm3, %v7677_v24  ;;  %12213 = vmatpush3.bf16.msra.mxu0 %v12869_v28  ;;  %12176 = vmatprep.subr.bf16.mxu1 %v12990_v31  ;;  %v7834_v13 = vpack.c.bf16 %v7825_v20, %v7824_v43  ;;  %v7806_v38 = vld [vmem:[#allocation4 + $0x40] sm:$0xff]  ;;  %v8436_v39 = vld [vmem:[#allocation4 + $0xb] sm:$0xff]  ;;  %v12881_v20 = vld [vmem:[%s16721_s4 + $0x448] sm:$0xff]  }
 0xb48   : > { %12278 = vmatprep.subr.bf16.mxu0 %v12990_v31  ;;  %v7815_v35 = vpack.c.bf16 %v7807_v1, %v7806_v38  ;;  %v8276_v45 = vld [vmem:[#allocation4 + $0x3a] sm:$0xff]  ;;  %v8277_v2 = vld [vmem:[#allocation4 + $0x42] sm:$0xff]  ;;  %v8449_v43 = vpack.c.bf16 %v8437_v36, %v8436_v39 }
 0xb49   : > { %12151 = vmatmul.mubr.msk.bf16.gmra.mrb[232].mxu0 %vm1330_vm3, %v7813_v52  ;;  %v12097_v27 = vpop.f32.mrb[206].mxu1  ;;  %v7809_v63 = vld [vmem:[#allocation4 + $0x58] sm:$0xff]  ;;  %v8286_v17 = vpack.c.bf16 %v8277_v2, %v8276_v45  ;;  %v8120_v10 = vpack.c.bf16 %v8276_v45, %v8275_v41  ;;  %v16278_v38 = vld [vmem:[#allocation4 + $0x24] sm:$0xff] }
 0xb4a   : > { %12154 = vmatprep.mubr.msk.bf16.mxu0 %vm12991_vm7, %v12990_v31  ;;  %12177 = vmatpush3.bf16.msra.mxu1 %v12870_v59  ;;  %7711 = vst.msk [vmem:[#allocation4 + $0x78] sm:$0x3] %vm1376_vm4, %v12097_v27  ;;  %v7687_v8 = vpop.f32.mrb[207].mxu1  ;;  %v7827_v7 = vld [vmem:[#allocation4 + $0x49] sm:$0xff]  ;;  %v7828_v48 = vld [vmem:[#allocation4 + $0x51] sm:$0xff]  ;;  %v16321_v3 = vld [vmem:[#allocation4 + $0x3c] sm:$0xff] }
 0xb4b   : > { %12242 = vmatprep.subr.bf16.mxu1 %v12990_v31  ;;  %7710 = vst.msk [vmem:[#allocation4 + $0x70] sm:$0xff] %vm1330_vm3, %v7687_v8  ;;  %v7835_v34 = vpack.c.bf16 %v7827_v7, %v7826_v29  ;;  %v7808_v60 = vld [vmem:[#allocation4 + $0x50] sm:$0xff]  ;;  %v12882_v1 = vld [vmem:[%s16721_s4 + $0x428] sm:$0xff]   ;;  %v12883_v29 = vld [vmem:[%s16721_s4 + $0x450] sm:$0xff]  }
 0xb4c   : > { %v7816_v54 = vpack.c.bf16 %v7809_v63, %v7808_v60  ;;  %v8278_v47 = vld [vmem:[#allocation4 + $0x4a] sm:$0xff]  ;;  %v8279_v33 = vld [vmem:[#allocation4 + $0x52] sm:$0xff]  ;;  %v8438_v7 = vld [vmem:[#allocation4 + $0x1b] sm:$0xff] }
 0xb4d   : > { %12115 = vmatmul.mubr.msk.bf16.gmra.mrb[216].mxu1 %vm1330_vm3, %v7833_v56  ;;  %v8287_v6 = vpack.c.bf16 %v8279_v33, %v8278_v47  ;;  %v8121_v15 = vpack.c.bf16 %v8278_v47, %v8277_v2  ;;  %v8282_v24 = vld [vmem:[#allocation4 + $0x6a] sm:$0xf]  ;;  %v16257_v27 = vld [vmem:[#allocation4 + $0x14] sm:$0xff]  ;;  %v12884_v60 = vld [vmem:[%s16721_s4 + $0x430] sm:$0xff]  }
 0xb4e   : > { %12118 = vmatprep.mubr.msk.bf16.mxu1 %vm12991_vm7, %v12990_v31  ;;  %v7829_v44 = vld [vmem:[#allocation4 + $0x59] sm:$0xff]  ;;  %v7830_v57 = vld [vmem:[#allocation4 + $0x61] sm:$0xf]  ;;  %v8289_v59 = vpack.c.bf16 %v8282_v24, %v8282_v24  ;;  %v12879_v8 = vld [vmem:[%s16721_s4 + $0x440] sm:$0xff]   ;;  %v8615_v56 = vpack.c.bf16 %v16257_v27, %v8602_v16 }
 0xb4f   : > { %v7836_v37 = vpack.c.bf16 %v7829_v44, %v7828_v48  ;;  %v7810_v22 = vld [vmem:[#allocation4 + $0x60] sm:$0xf]  ;;  %v7837_v25 = vpack.c.bf16 %v7830_v57, %v7830_v57  ;;  %v16303_v48 = vld [vmem:[#allocation4 + $0x2c] sm:$0xff]  ;;  %v16305_v44 = vld [vmem:[#allocation4 + $0x34] sm:$0xff] }
 0xb50   : > { %v7817_v50 = vpack.c.bf16 %v7810_v22, %v7810_v22  ;;  %v8280_v28 = vld [vmem:[#allocation4 + $0x5a] sm:$0xff]  ;;  %v8281_v42 = vld [vmem:[#allocation4 + $0x62] sm:$0xff]  ;;  %v8617_v22 = vpack.c.bf16 %v16305_v44, %v16303_v48  ;;  %v8444_v62 = vld [vmem:[#allocation4 + $0x4b] sm:$0xff]  ;;  %v8783_v16 = vpack.c.bf16 %v16321_v3, %v16305_v44 }
 0xb51   : > { %12155 = vmatmul.mubr.msk.bf16.gmra.mrb[236].mxu0 %vm1330_vm3, %v7814_v58  ;;  %v8288_v55 = vpack.c.bf16 %v8281_v42, %v8280_v28  ;;  %v8122_v9 = vpack.c.bf16 %v8280_v28, %v8279_v33  ;;  %v8116_v52 = vld [vmem:[#allocation4 + $0x62] sm:$0xf]  ;;  %v12880_v58 = vld [vmem:[%s16721_s4 + $0x420] sm:$0xff]   ;;  %v12888_v28 = vld [vmem:[%s16721_s4 + $0x468] sm:$0xff]  }
 0xb52   : > { %12158 = vmatprep.mubr.msk.bf16.mxu0 %vm12991_vm7, %v12990_v31  ;;  %v8123_v26 = vpack.c.bf16 %v8116_v52, %v8116_v52  ;;  %v8441_v57 = vld [vmem:[#allocation4 + $0x33] sm:$0xff]  ;;  %v16323_v5 = vld [vmem:[#allocation4 + $0x44] sm:$0xff] }
 0xb53   : > { %v8443_v23 = vld [vmem:[#allocation4 + $0x43] sm:$0xff]  ;;  %v12887_v47 = vld [vmem:[%s16721_s4 + $0x460] sm:$0xff]  }
 0xb54   : > { %v8447_v46 = vld [vmem:[#allocation4 + $0x63] sm:$0xff]  ;;  %v8938_v24 = vld [vmem:[#allocation4 + $0x35] sm:$0xff] }
 0xb55   : > { %12119 = vmatmul.mubr.msk.bf16.gmra.mrb[220].mxu1 %vm1330_vm3, %v7834_v13  ;;  %v16276_v13 = vld [vmem:[#allocation4 + $0x1c] sm:$0xff]  ;;  %v12890_v52 = vld [vmem:[%s16721_s4 + $0x478] sm:$0xff]   ;;  %v8780_v44 = vld [vmem:[#allocation4 + $0x74] sm:$0xf] }
 0xb56   : > { %12122 = vmatprep.mubr.msk.bf16.mxu1 %vm12991_vm7, %v12990_v31  ;;  %v8935_v2 = vld [vmem:[#allocation4 + $0x1d] sm:$0xff]  ;;  %v8781_v33 = vpack.c.bf16 %v16276_v13, %v16257_v27  ;;  %v8940_v27 = vld [vmem:[#allocation4 + $0x45] sm:$0xff]  ;;  %v8942_v36 = vld [vmem:[#allocation4 + $0x55] sm:$0xff] }
 0xb59   : > { %12159 = vmatmul.mubr.msk.bf16.gmra.mrb[240].mxu0 %vm1330_vm3, %v7815_v35  ;;  %v8616_v35 = vpack.c.bf16 %v16278_v38, %v16276_v13  ;;  %v8944_v13 = vld [vmem:[#allocation4 + $0x65] sm:$0xff] }
 0xb5a   : > { %12162 = vmatprep.mubr.msk.bf16.mxu0 %vm12991_vm7, %v12990_v31 }
 0xb5d   : > { %12123 = vmatmul.mubr.msk.bf16.gmra.mrb[224].mxu1 %vm1330_vm3, %v7835_v34  ;;  %v8439_v34 = vld [vmem:[#allocation4 + $0x23] sm:$0xff] }
 0xb5e   : > { %12126 = vmatprep.mubr.msk.bf16.mxu1 %vm12991_vm7, %v12990_v31  ;;  %v8450_v63 = vpack.c.bf16 %v8439_v34, %v8438_v7  ;;  %v8946_v7 = vld [vmem:[#allocation4 + $0x75] sm:$0xf] }
 0xb61   : > { %12163 = vmatmul.mubr.msk.bf16.gmra.mrb[244].mxu0 %vm1330_vm3, %v7816_v54  ;;  %v12885_v54 = vld [vmem:[%s16721_s4 + $0x458] sm:$0xff]  }
 0xb62   : > { %12166 = vmatprep.mubr.msk.bf16.mxu0 %vm12991_vm7, %v12990_v31 }
 0xb65   : > { %12127 = vmatmul.mubr.msk.bf16.gmra.mrb[228].mxu1 %vm1330_vm3, %v7836_v37  ;;  %v12886_v37 = vld [vmem:[%s16721_s4 + $0x438] sm:$0xff]  }
 0xb66   : > { %12130 = vmatprep.mubr.msk.bf16.mxu1 %vm12991_vm7, %v12990_v31 }
 0xb69   : > { %12167 = vmatmul.mubr.msk.bf16.gmra.mrb[248].mxu0 %vm1330_vm3, %v7817_v50  ;;  %v8440_v50 = vld [vmem:[#allocation4 + $0x2b] sm:$0xff] }
 0xb6a   : > { %12214 = vmatprep.mubr.msk.bf16.mxu0 %vm12991_vm7, %v12990_v31 }
 0xb6d   : > { %12131 = vmatmul.mubr.msk.bf16.gmra.mrb[232].mxu1 %vm1330_vm3, %v7837_v25  ;;  %v8451_v25 = vpack.c.bf16 %v8441_v57, %v8440_v50 }
 0xb6e   : > { %12178 = vmatprep.mubr.msk.bf16.mxu1 %vm12991_vm7, %v12990_v31 }
 0xb71   : > { %12215 = vmatmul.mubr.msk.bf16.vlgmr.msra.gmra.mrb[252].mxu0 %vm1330_vm3, %v8283_v61  ;;  %v8442_v61 = vld [vmem:[#allocation4 + $0x3b] sm:$0xff] }
 0xb72   : > { %12218 = vmatprep.mubr.msk.bf16.mxu0 %vm12991_vm7, %v12990_v31  ;;  %12279 = vmatpush3.bf16.msra.mxu0 %v12871_v40  ;;  %v8618_v40 = vpack.c.bf16 %v16323_v5, %v16321_v3 }
 0xb73   : > { %12280 = vmatprep.subr.bf16.mxu0 %v12990_v31 }
 0xb75   : > { %12179 = vmatmul.mubr.msk.bf16.vlgmr.msra.gmra.mrb[236].mxu1 %vm1330_vm3, %v8117_v21  ;;  %v16333_v21 = vld [vmem:[#allocation4 + $0x4c] sm:$0xff] }
 0xb76   : > { %12182 = vmatprep.mubr.msk.bf16.mxu1 %vm12991_vm7, %v12990_v31  ;;  %12243 = vmatpush3.bf16.msra.mxu1 %v12872_v11  ;;  %v8452_v11 = vpack.c.bf16 %v8443_v23, %v8442_v61  ;;  %v8784_v39 = vpack.c.bf16 %v16333_v21, %v16323_v5 }
 0xb77   : > { %12281 = vmatpush3.bf16.msra.mxu0 %v12873_v19  ;;  %12244 = vmatprep.subr.bf16.mxu1 %v12990_v31  ;;  %v16335_v19 = vld [vmem:[#allocation4 + $0x54] sm:$0xff] }
 0xb78   : > { %12282 = vmatprep.subr.bf16.mxu0 %v12990_v31  ;;  %v8619_v53 = vpack.c.bf16 %v16335_v19, %v16333_v21  ;;  %v9101_v21 = vld [vmem:[#allocation4 + $0x1e] sm:$0xff] }
 0xb79   : > { %12219 = vmatmul.mubr.msk.bf16.gmra.mrb[0].mxu0 %vm1330_vm3, %v8284_v51 }
 0xb7a   : > { %12222 = vmatprep.mubr.msk.bf16.mxu0 %vm12991_vm7, %v12990_v31  ;;  %12245 = vmatpush3.bf16.msra.mxu1 %v12874_v49  ;;  %v8445_v49 = vld [vmem:[#allocation4 + $0x53] sm:$0xff] }
 0xb7b   : > { %12283 = vmatpush3.bf16.msra.mxu0 %v12875_v14  ;;  %12246 = vmatprep.subr.bf16.mxu1 %v12990_v31  ;;  %v8453_v51 = vpack.c.bf16 %v8445_v49, %v8444_v62  ;;  %v16345_v14 = vld [vmem:[#allocation4 + $0x5c] sm:$0xff] }
 0xb7c   : > { %12284 = vmatprep.subr.bf16.mxu0 %v12990_v31  ;;  %v9100_v49 = vld [vmem:[#allocation4 + $0x16] sm:$0xff] }
 0xb7d   : > { %12183 = vmatmul.mubr.msk.bf16.gmra.mrb[240].mxu1 %vm1330_vm3, %v8118_v18 }
 0xb7e   : > { %12186 = vmatprep.mubr.msk.bf16.mxu1 %vm12991_vm7, %v12990_v31  ;;  %12247 = vmatpush3.bf16.msra.mxu1 %v12876_v4  ;;  %v16347_v4 = vld [vmem:[#allocation4 + $0x64] sm:$0xff] }
 0xb7f   : > { %12285 = vmatpush3.bf16.msra.mxu0 %v12877_v12  ;;  %12248 = vmatprep.subr.bf16.mxu1 %v12990_v31  ;;  %v8620_v18 = vpack.c.bf16 %v16347_v4, %v16345_v14  ;;  %v8446_v12 = vld [vmem:[#allocation4 + $0x5b] sm:$0xff] }
 0xb80   : > { %12350 = vmatprep.subr.bf16.mxu0 %v12990_v31  ;;  %v8454_v41 = vpack.c.bf16 %v8447_v46, %v8446_v12 }
 0xb81   : > { %12223 = vmatmul.mubr.msk.bf16.gmra.mrb[4].mxu0 %vm1330_vm3, %v8285_v0 }
 0xb82   : > { %12226 = vmatprep.mubr.msk.bf16.mxu0 %vm12991_vm7, %v12990_v31  ;;  %12249 = vmatpush3.bf16.msra.mxu1 %v12878_v30  ;;  %v8614_v30 = vld [vmem:[#allocation4 + $0x6c] sm:$0xf] }
 0xb83   : > { %12314 = vmatprep.subr.bf16.mxu1 %v12990_v31  ;;  %v8621_v0 = vpack.c.bf16 %v8614_v30, %v8614_v30 }
 0xb85   : > { %12187 = vmatmul.mubr.msk.bf16.gmra.mrb[244].mxu1 %vm1330_vm3, %v8119_v32  ;;  %v8448_v32 = vld [vmem:[#allocation4 + $0x6b] sm:$0xf] }
 0xb86   : > { %12190 = vmatprep.mubr.msk.bf16.mxu1 %vm12991_vm7, %v12990_v31  ;;  %v8455_v45 = vpack.c.bf16 %v8448_v32, %v8448_v32  ;;  %v9103_v32 = vld [vmem:[#allocation4 + $0x2e] sm:$0xff] }
 0xb89   : > { %12227 = vmatmul.mubr.msk.bf16.gmra.mrb[8].mxu0 %vm1330_vm3, %v8286_v17  ;;  %v8934_v17 = vld [vmem:[#allocation4 + $0x15] sm:$0xff] }
 0xb8a   : > { %12230 = vmatprep.mubr.msk.bf16.mxu0 %vm12991_vm7, %v12990_v31 }
 0xb8d   : > { %12191 = vmatmul.mubr.msk.bf16.gmra.mrb[248].mxu1 %vm1330_vm3, %v8120_v10  ;;  %v8947_v10 = vpack.c.bf16 %v8935_v2, %v8934_v17 }
 0xb8e   : > { %12194 = vmatprep.mubr.msk.bf16.mxu1 %vm12991_vm7, %v12990_v31 }
 0xb91   : > { %12231 = vmatmul.mubr.msk.bf16.gmra.mrb[12].mxu0 %vm1330_vm3, %v8287_v6  ;;  %v8936_v6 = vld [vmem:[#allocation4 + $0x25] sm:$0xff] }
 0xb92   : > { %12234 = vmatprep.mubr.msk.bf16.mxu0 %vm12991_vm7, %v12990_v31 }
 0xb95   : > { %12195 = vmatmul.mubr.msk.bf16.gmra.mrb[252].mxu1 %vm1330_vm3, %v8121_v15  ;;  %v8937_v15 = vld [vmem:[#allocation4 + $0x2d] sm:$0xff] }
 0xb96   : > { %12198 = vmatprep.mubr.msk.bf16.mxu1 %vm12991_vm7, %v12990_v31  ;;  %v8948_v42 = vpack.c.bf16 %v8937_v15, %v8936_v6 }
 0xb99   : > { %12235 = vmatmul.mubr.msk.bf16.gmra.mrb[16].mxu0 %vm1330_vm3, %v8288_v55  ;;  %v12889_v55 = vld [vmem:[%s16721_s4 + $0x470] sm:$0xff]  }
 0xb9a   : > { %12238 = vmatprep.mubr.msk.bf16.mxu0 %vm12991_vm7, %v12990_v31 }
 0xb9d   : > { %12199 = vmatmul.mubr.msk.bf16.gmra.mrb[0].mxu1 %vm1330_vm3, %v8122_v9  ;;  %v8782_v9 = vpack.c.bf16 %v16303_v48, %v16278_v38  ;;  %v8945_v38 = vld [vmem:[#allocation4 + $0x6d] sm:$0xff] }
 0xb9e   : > { %12202 = vmatprep.mubr.msk.bf16.mxu1 %vm12991_vm7, %v12990_v31 }
 0xba1   : > { %12239 = vmatmul.mubr.msk.bf16.gmra.mrb[20].mxu0 %vm1330_vm3, %v8289_v59  ;;  %v8939_v59 = vld [vmem:[#allocation4 + $0x3d] sm:$0xff] }
 0xba2   : > { %12286 = vmatprep.mubr.msk.bf16.mxu0 %vm12991_vm7, %v12990_v31 }
 0xba5   : > { %12203 = vmatmul.mubr.msk.bf16.gmra.mrb[4].mxu1 %vm1330_vm3, %v8123_v26  ;;  %v8949_v26 = vpack.c.bf16 %v8939_v59, %v8938_v24  ;;  %v9105_v24 = vld [vmem:[#allocation4 + $0x3e] sm:$0xff] }
 0xba6   : > { %12250 = vmatprep.mubr.msk.bf16.mxu1 %vm12991_vm7, %v12990_v31 }
 0xba9   : > { %12287 = vmatmul.mubr.msk.bf16.vlgmr.msra.gmra.mrb[24].mxu0 %vm1330_vm3, %v8615_v56 }
 0xbaa   : > { %12290 = vmatprep.mubr.msk.bf16.mxu0 %vm12991_vm7, %v12990_v31  ;;  %12351 = vmatpush3.bf16.msra.mxu0 %v12879_v8  ;;  %v8941_v8 = vld [vmem:[#allocation4 + $0x4d] sm:$0xff] }
 0xbab   : > { %12352 = vmatprep.subr.bf16.mxu0 %v12990_v31  ;;  %v8950_v56 = vpack.c.bf16 %v8941_v8, %v8940_v27 }
 0xbad   : > { %12251 = vmatmul.mubr.msk.bf16.vlgmr.msra.gmra.mrb[8].mxu1 %vm1330_vm3, %v8449_v43 }
 0xbae   : > { %12254 = vmatprep.mubr.msk.bf16.mxu1 %vm12991_vm7, %v12990_v31  ;;  %12315 = vmatpush3.bf16.msra.mxu1 %v12880_v58  ;;  %v8943_v58 = vld [vmem:[#allocation4 + $0x5d] sm:$0xff] }
 0xbaf   : > { %12353 = vmatpush3.bf16.msra.mxu0 %v12881_v20  ;;  %12316 = vmatprep.subr.bf16.mxu1 %v12990_v31  ;;  %v8951_v43 = vpack.c.bf16 %v8943_v58, %v8942_v36  ;;  %v8785_v20 = vpack.c.bf16 %v16345_v14, %v16335_v19  ;;  %v9113_v14 = vpack.c.bf16 %v9101_v21, %v9100_v49 }
 0xbb0   : > { %12354 = vmatprep.subr.bf16.mxu0 %v12990_v31 }
 0xbb1   : > { %12291 = vmatmul.mubr.msk.bf16.gmra.mrb[28].mxu0 %vm1330_vm3, %v8616_v35  ;;  %v8779_v35 = vld [vmem:[#allocation4 + $0x6c] sm:$0xff] }
 0xbb2   : > { %12294 = vmatprep.mubr.msk.bf16.mxu0 %vm12991_vm7, %v12990_v31  ;;  %12317 = vmatpush3.bf16.msra.mxu1 %v12882_v1  ;;  %v8952_v1 = vpack.c.bf16 %v8945_v38, %v8944_v13  ;;  %v9107_v13 = vld [vmem:[#allocation4 + $0x4e] sm:$0xff] }
 0xbb3   : > { %12355 = vmatpush3.bf16.msra.mxu0 %v12883_v29  ;;  %12318 = vmatprep.subr.bf16.mxu1 %v12990_v31  ;;  %v8786_v29 = vpack.c.bf16 %v8779_v35, %v16347_v4 }
 0xbb4   : > { %12356 = vmatprep.subr.bf16.mxu0 %v12990_v31 }
 0xbb5   : > { %12255 = vmatmul.mubr.msk.bf16.gmra.mrb[12].mxu1 %vm1330_vm3, %v8450_v63 }
 0xbb6   : > { %12258 = vmatprep.mubr.msk.bf16.mxu1 %vm12991_vm7, %v12990_v31  ;;  %12319 = vmatpush3.bf16.msra.mxu1 %v12884_v60 }
 0xbb7   : > { %12357 = vmatpush3.bf16.msra.mxu0 %v12885_v54  ;;  %12320 = vmatprep.subr.bf16.mxu1 %v12990_v31  ;;  %v8953_v54 = vpack.c.bf16 %v8946_v7, %v8946_v7 }
 0xbb9   : > { %12295 = vmatmul.mubr.msk.bf16.gmra.mrb[32].mxu0 %vm1330_vm3, %v8617_v22 }
 0xbba   : > { %12298 = vmatprep.mubr.msk.bf16.mxu0 %vm12991_vm7, %v12990_v31  ;;  %12321 = vmatpush3.bf16.msra.mxu1 %v12886_v37 }
 0xbbb   : > { %12386 = vmatprep.subr.bf16.mxu1 %v12990_v31 }
 0xbbd   : > { %12259 = vmatmul.mubr.msk.bf16.gmra.mrb[16].mxu1 %vm1330_vm3, %v8451_v25  ;;  %v8787_v25 = vpack.c.bf16 %v8780_v44, %v8780_v44 }
 0xbbe   : > { %12262 = vmatprep.mubr.msk.bf16.mxu1 %vm12991_vm7, %v12990_v31 }
 0xbc1   : > { %12299 = vmatmul.mubr.msk.bf16.gmra.mrb[36].mxu0 %vm1330_vm3, %v8618_v40 }
 0xbc2   : > { %12302 = vmatprep.mubr.msk.bf16.mxu0 %vm12991_vm7, %v12990_v31 }
 0xbc5   : > { %12263 = vmatmul.mubr.msk.bf16.gmra.mrb[20].mxu1 %vm1330_vm3, %v8452_v11 }
 0xbc6   : > { %12266 = vmatprep.mubr.msk.bf16.mxu1 %vm12991_vm7, %v12990_v31 }
 0xbc9   : > { %12303 = vmatmul.mubr.msk.bf16.gmra.mrb[40].mxu0 %vm1330_vm3, %v8619_v53 }
 0xbca   : > { %12306 = vmatprep.mubr.msk.bf16.mxu0 %vm12991_vm7, %v12990_v31 }
 0xbcd   : > { %12267 = vmatmul.mubr.msk.bf16.gmra.mrb[24].mxu1 %vm1330_vm3, %v8453_v51 }
 0xbce   : > { %12270 = vmatprep.mubr.msk.bf16.mxu1 %vm12991_vm7, %v12990_v31 }
 0xbd1   : > { %12307 = vmatmul.mubr.msk.bf16.gmra.mrb[44].mxu0 %vm1330_vm3, %v8620_v18 }
 0xbd2   : > { %12310 = vmatprep.mubr.msk.bf16.mxu0 %vm12991_vm7, %v12990_v31 }
 0xbd5   : > { %12271 = vmatmul.mubr.msk.bf16.gmra.mrb[28].mxu1 %vm1330_vm3, %v8454_v41 }
 0xbd6   : > { %12274 = vmatprep.mubr.msk.bf16.mxu1 %vm12991_vm7, %v12990_v31 }
 0xbd9   : > { %12311 = vmatmul.mubr.msk.bf16.gmra.mrb[48].mxu0 %vm1330_vm3, %v8621_v0  ;;  %v9102_v0 = vld [vmem:[#allocation4 + $0x26] sm:$0xff] }
 0xbda   : > { %12358 = vmatprep.mubr.msk.bf16.mxu0 %vm12991_vm7, %v12990_v31 }
 0xbdd   : > { %12275 = vmatmul.mubr.msk.bf16.gmra.mrb[32].mxu1 %vm1330_vm3, %v8455_v45 }
 0xbde   : > { %12322 = vmatprep.mubr.msk.bf16.mxu1 %vm12991_vm7, %v12990_v31 }
 0xbe1   : > { %12359 = vmatmul.mubr.msk.bf16.vlgmr.msra.gmra.mrb[52].mxu0 %vm1330_vm3, %v8947_v10 }
 0xbe2   : > { %12362 = vmatprep.mubr.msk.bf16.mxu0 %vm12991_vm7, %v12990_v31 }
 0xbe5   : > { %12323 = vmatmul.mubr.msk.bf16.vlgmr.msra.gmra.mrb[36].mxu1 %vm1330_vm3, %v8781_v33 }
 0xbe6   : > { %12326 = vmatprep.mubr.msk.bf16.mxu1 %vm12991_vm7, %v12990_v31  ;;  %12387 = vmatpush3.bf16.msra.mxu1 %v12887_v47  ;;  %v9114_v47 = vpack.c.bf16 %v9103_v32, %v9102_v0 }
 0xbe7   : > { %12388 = vmatprep.subr.bf16.mxu1 %v12990_v31 }
 0xbe9   : > { %12363 = vmatmul.mubr.msk.bf16.gmra.mrb[56].mxu0 %vm1330_vm3, %v8948_v42 }
 0xbea   : > { %12366 = vmatprep.mubr.msk.bf16.mxu0 %vm12991_vm7, %v12990_v31  ;;  %12389 = vmatpush3.bf16.msra.mxu1 %v12888_v28 }
 0xbeb   : > { %12390 = vmatprep.subr.bf16.mxu1 %v12990_v31 }
 0xbed   : > { %12327 = vmatmul.mubr.msk.bf16.gmra.mrb[40].mxu1 %vm1330_vm3, %v8782_v9  ;;  %v9104_v9 = vld [vmem:[#allocation4 + $0x36] sm:$0xff] }
 0xbee   : > { %12330 = vmatprep.mubr.msk.bf16.mxu1 %vm12991_vm7, %v12990_v31  ;;  %12391 = vmatpush3.bf16.msra.mxu1 %v12889_v55  ;;  %v9115_v27 = vpack.c.bf16 %v9105_v24, %v9104_v9 }
 0xbef   : > { %12392 = vmatprep.subr.bf16.mxu1 %v12990_v31 }
 0xbf1   : > { %12367 = vmatmul.mubr.msk.bf16.gmra.mrb[60].mxu0 %vm1330_vm3, %v8949_v26 }
 0xbf2   : > { %12370 = vmatprep.mubr.msk.bf16.mxu0 %vm12991_vm7, %v12990_v31  ;;  %12393 = vmatpush3.bf16.msra.mxu1 %v12890_v52 }
 0xbf5   : > { %12331 = vmatmul.mubr.msk.bf16.gmra.mrb[44].mxu1 %vm1330_vm3, %v8783_v16 }
 0xbf6   : > { %12334 = vmatprep.mubr.msk.bf16.mxu1 %vm12991_vm7, %v12990_v31 }
 0xbf9   : > { %12371 = vmatmul.mubr.msk.bf16.gmra.mrb[64].mxu0 %vm1330_vm3, %v8950_v56 }
 0xbfa   : > { %12374 = vmatprep.mubr.msk.bf16.mxu0 %vm12991_vm7, %v12990_v31 }
 0xbfd   : > { %12335 = vmatmul.mubr.msk.bf16.gmra.mrb[48].mxu1 %vm1330_vm3, %v8784_v39 }
 0xbfe   : > { %12338 = vmatprep.mubr.msk.bf16.mxu1 %vm12991_vm7, %v12990_v31 }
 0xc01   : > { %12375 = vmatmul.mubr.msk.bf16.gmra.mrb[68].mxu0 %vm1330_vm3, %v8951_v43 }
 0xc02   : > { %12378 = vmatprep.mubr.msk.bf16.mxu0 %vm12991_vm7, %v12990_v31 }
 0xc05   : > { %12339 = vmatmul.mubr.msk.bf16.gmra.mrb[52].mxu1 %vm1330_vm3, %v8785_v20  ;;  %v9106_v20 = vld [vmem:[#allocation4 + $0x46] sm:$0xff] }
 0xc06   : > { %12342 = vmatprep.mubr.msk.bf16.mxu1 %vm12991_vm7, %v12990_v31  ;;  %v9116_v7 = vpack.c.bf16 %v9107_v13, %v9106_v20 }
 0xc09   : > { %12379 = vmatmul.mubr.msk.bf16.gmra.mrb[72].mxu0 %vm1330_vm3, %v8952_v1 }
 0xc0a   : > { %12382 = vmatprep.mubr.msk.bf16.mxu0 %vm12991_vm7, %v12990_v31 }
 0xc0c   : > { %v8050_v34 = vpop.f32.mrb[224].mxu0 }
 0xc0d   : > { %12343 = vmatmul.mubr.msk.bf16.gmra.mrb[56].mxu1 %vm1330_vm3, %v8786_v29  ;;  %v12144_v60 = vpop.f32.mrb[225].mxu0 }
 0xc0e   : > { %12346 = vmatprep.mubr.msk.bf16.mxu1 %vm12991_vm7, %v12990_v31  ;;  %v8053_v63 = vpop.f32.mrb[226].mxu0 }
 0xc0f   : > { %v12145_v48 = vpop.f32.mrb[227].mxu0 }
 0xc10   : > { %v7917_v37 = vpop.f32.mrb[208].mxu1 }
 0xc11   : > { %12383 = vmatmul.mubr.msk.bf16.gmra.mrb[76].mxu0 %vm1330_vm3, %v8953_v54  ;;  %v12108_v22 = vpop.f32.mrb[209].mxu1  ;;  %v16429_v50 = vadd.f32 %v8050_v34, %v7917_v37  ;;  %v9108_v37 = vld [vmem:[#allocation4 + $0x56] sm:$0xff] }
 0xc12   : > { %v7920_v57 = vpop.f32.mrb[210].mxu1  ;;  %v9109_v22 = vld [vmem:[#allocation4 + $0x5e] sm:$0xff] }
 0xc13   : > { %v12109_v3 = vpop.f32.mrb[211].mxu1  ;;  %v16431_v5 = vadd.f32 %v8053_v63, %v7920_v57 }
 0xc14   : > { %v8058_v40 = vpop.f32.mrb[228].mxu0 }
 0xc15   : > { %12347 = vmatmul.mubr.msk.bf16.gmra.mrb[60].mxu1 %vm1330_vm3, %v8787_v25  ;;  %v12148_v61 = vpop.f32.mrb[229].mxu0 }
 0xc16   : > { %12394 = vmatprep.mubr.msk.bf16.mxu1 %vm12991_vm7, %v12990_v31  ;;  %v8061_v23 = vpop.f32.mrb[230].mxu0  ;;  %v9117_v61 = vpack.c.bf16 %v9109_v22, %v9108_v37 }
 0xc17   : > { %v12149_v11 = vpop.f32.mrb[231].mxu0 }
 0xc18   : > { %v7925_v19 = vpop.f32.mrb[212].mxu1 }
 0xc19   : > { %v12112_v53 = vpop.f32.mrb[213].mxu1  ;;  %v16436_v62 = vadd.f32 %v8058_v40, %v7925_v19 }
 0xc1a   : > { %v7928_v51 = vpop.f32.mrb[214].mxu1 }
 0xc1b   : > { %v12113_v4 = vpop.f32.mrb[215].mxu1  ;;  %v16438_v18 = vadd.f32 %v8061_v23, %v7928_v51  ;;  %v9110_v51 = vld [vmem:[#allocation4 + $0x66] sm:$0xff] }
 0xc1c   : > { %v8066_v12 = vpop.f32.mrb[232].mxu0 }
 0xc1d   : > { %12395 = vmatmul.mubr.msk.bf16.vlgmr.msra.gmra.mrb[64].mxu1 %vm1330_vm3, %v9113_v14  ;;  %v12152_v46 = vpop.f32.mrb[233].mxu0  ;;  %v9111_v14 = vld [vmem:[#allocation4 + $0x6e] sm:$0xff] }
 0xc1e   : > { %12398 = vmatprep.mubr.msk.bf16.mxu1 %vm12991_vm7, %v12990_v31  ;;  %v8069_v41 = vpop.f32.mrb[234].mxu0 }
 0xc1f   : > { %v12153_v30 = vpop.f32.mrb[235].mxu0 }
 0xc20   : > { %v7933_v45 = vpop.f32.mrb[216].mxu1  ;;  %v9118_v30 = vpack.c.bf16 %v9111_v14, %v9110_v51 }
 0xc21   : > { %v12116_v2 = vpop.f32.mrb[217].mxu1  ;;  %v16443_v17 = vadd.f32 %v8066_v12, %v7933_v45 }
 0xc22   : > { %v7936_v10 = vpop.f32.mrb[218].mxu1 }
 0xc23   : > { %v12117_v33 = vpop.f32.mrb[219].mxu1  ;;  %v16445_v6 = vadd.f32 %v8069_v41, %v7936_v10 }
 0xc24   : > { %v8074_v15 = vpop.f32.mrb[236].mxu0 }
 0xc25   : > { %12399 = vmatmul.mubr.msk.bf16.gmra.mrb[68].mxu1 %vm1330_vm3, %v9114_v47  ;;  %v12156_v28 = vpop.f32.mrb[237].mxu0  ;;  %v9112_v47 = vld [vmem:[#allocation4 + $0x76] sm:$0xf] }
 0xc26   : > { %12402 = vmatprep.mubr.msk.bf16.mxu1 %vm12991_vm7, %v12990_v31  ;;  %v8077_v42 = vpop.f32.mrb[238].mxu0 }
 0xc27   : > { %v12157_v55 = vpop.f32.mrb[239].mxu0 }
 0xc28   : > { %v7941_v59 = vpop.f32.mrb[220].mxu1  ;;  %v9119_v55 = vpack.c.bf16 %v9112_v47, %v9112_v47 }
 0xc29   : > { %v12120_v52 = vpop.f32.mrb[221].mxu1  ;;  %v16450_v26 = vadd.f32 %v8074_v15, %v7941_v59 }
 0xc2a   : > { %v7944_v16 = vpop.f32.mrb[222].mxu1 }
 0xc2b   : > { %v12121_v8 = vpop.f32.mrb[223].mxu1  ;;  %v16452_v56 = vadd.f32 %v8077_v42, %v7944_v16 }
 0xc2c   : > { %v8082_v39 = vpop.f32.mrb[240].mxu0 }
 0xc2d   : > { %12403 = vmatmul.mubr.msk.bf16.gmra.mrb[72].mxu1 %vm1330_vm3, %v9115_v27  ;;  %v12160_v36 = vpop.f32.mrb[241].mxu0 }
 0xc2e   : > { %12406 = vmatprep.mubr.msk.bf16.mxu1 %vm12991_vm7, %v12990_v31  ;;  %v8085_v58 = vpop.f32.mrb[242].mxu0 }
 0xc2f   : > { %v12161_v43 = vpop.f32.mrb[243].mxu0 }
 0xc30   : > { %v7949_v38 = vpop.f32.mrb[224].mxu1 }
 0xc31   : > { %v12124_v1 = vpop.f32.mrb[225].mxu1  ;;  %v16457_v35 = vadd.f32 %v8082_v39, %v7949_v38 }
 0xc32   : > { %v7952_v29 = vpop.f32.mrb[226].mxu1 }
 0xc33   : > { %v12125_v34 = vpop.f32.mrb[227].mxu1  ;;  %v16459_v60 = vadd.f32 %v8085_v58, %v7952_v29 }
 0xc34   : > { %v8090_v63 = vpop.f32.mrb[244].mxu0 }
 0xc35   : > { %12407 = vmatmul.mubr.msk.bf16.gmra.mrb[76].mxu1 %vm1330_vm3, %v9116_v7  ;;  %v12164_v54 = vpop.f32.mrb[245].mxu0 }
 0xc36   : > { %12410 = vmatprep.mubr.msk.bf16.mxu1 %vm12991_vm7, %v12990_v31  ;;  %v8093_v48 = vpop.f32.mrb[246].mxu0 }
 0xc37   : > { %v12165_v44 = vpop.f32.mrb[247].mxu0 }
 0xc38   : > { %v7957_v57 = vpop.f32.mrb[228].mxu1 }
 0xc39   : > { %v12128_v25 = vpop.f32.mrb[229].mxu1  ;;  %v16464_v3 = vadd.f32 %v8090_v63, %v7957_v57 }
 0xc3a   : > { %v7960_v40 = vpop.f32.mrb[230].mxu1 }
 0xc3b   : > { %v12129_v23 = vpop.f32.mrb[231].mxu1  ;;  %v16466_v11 = vadd.f32 %v8093_v48, %v7960_v40 }
 0xc3c   : > { %v8098_v21 = vpop.f32.mrb[248].mxu0 }
 0xc3d   : > { %12411 = vmatmul.mubr.msk.bf16.gmra.mrb[80].mxu1 %vm1330_vm3, %v9117_v61  ;;  %v12168_v19 = vpop.f32.mrb[249].mxu0 }
 0xc3e   : > { %12414 = vmatprep.mubr.msk.bf16.mxu1 %vm12991_vm7, %v12990_v31  ;;  %v8101_v53 = vpop.f32.mrb[250].mxu0 }
 0xc3f   : > { %v12169_v49 = vpop.f32.mrb[251].mxu0 }
 0xc40   : > { %v7965_v4 = vpop.f32.mrb[232].mxu1 }
 0xc41   : > { %v12132_v12 = vpop.f32.mrb[233].mxu1  ;;  %v16471_v46 = vadd.f32 %v8098_v21, %v7965_v4 }
 0xc42   : > { %v7968_v41 = vpop.f32.mrb[234].mxu1 }
 0xc43   : > { %v12133_v0 = vpop.f32.mrb[235].mxu1 }
 0xc44   : > { %v8369_v32 = vpop.f32.mrb[252].mxu0 }
 0xc45   : > { %12415 = vmatmul.mubr.msk.bf16.gmra.mrb[84].mxu1 %vm1330_vm3, %v9118_v30  ;;  %v12216_v45 = vpop.f32.mrb[253].mxu0 }
 0xc46   : > { %12418 = vmatprep.mubr.msk.bf16.mxu1 %vm12991_vm7, %v12990_v31  ;;  %v8372_v2 = vpop.f32.mrb[254].mxu0 }
 0xc47   : > { %v12217_v10 = vpop.f32.mrb[255].mxu0 }
 0xc48   : > { %v8203_v33 = vpop.f32.mrb[236].mxu1 }
 0xc49   : > { %v8257_v15 = vadd.f32 %v8203_v33, %v16429_v50  ;;  %v12180_v28 = vpop.f32.mrb[237].mxu1 }
 0xc4a   : > { %v8206_v42 = vpop.f32.mrb[238].mxu1 }
 0xc4b   : > { %v16477_v9 = vadd.f32 %v8369_v32, %v8257_v15  ;;  %v8258_v24 = vadd.f32 %v8206_v42, %v16431_v5  ;;  %v12181_v59 = vpop.f32.mrb[239].mxu1 }
 0xc4c   : > { %v8377_v52 = vpop.f32.mrb[0].mxu0 }
 0xc4d   : > { %12419 = vmatmul.mubr.msk.bf16.gmra.mrb[88].mxu1 %vm1330_vm3, %v9119_v55  ;;  %v16481_v16 = vadd.f32 %v8372_v2, %v8258_v24  ;;  %v12220_v31 = vpop.f32.mrb[1].mxu0 }
 0xc4e   : > { %v8380_v27 = vpop.f32.mrb[2].mxu0 }
 0xc4f   : > { %v12221_v8 = vpop.f32.mrb[3].mxu0 }
 0xc50   : > { %v8211_v39 = vpop.f32.mrb[240].mxu1 }
 0xc51   : > { %v8259_v36 = vadd.f32 %v8211_v39, %v16436_v62  ;;  %v12184_v50 = vpop.f32.mrb[241].mxu1 }
 0xc52   : > { %v8214_v58 = vpop.f32.mrb[242].mxu1 }
 0xc53   : > { %v16484_v43 = vadd.f32 %v8377_v52, %v8259_v36  ;;  %v8260_v20 = vadd.f32 %v8214_v58, %v16438_v18  ;;  %v12185_v13 = vpop.f32.mrb[243].mxu1 }
 0xc54   : > { %v8385_v5 = vpop.f32.mrb[4].mxu0 }
 0xc55   : > { %v16487_v38 = vadd.f32 %v8380_v27, %v8260_v20  ;;  %v12224_v1 = vpop.f32.mrb[5].mxu0 }
 0xc56   : > { %v8388_v29 = vpop.f32.mrb[6].mxu0 }
 0xc57   : > { %v12225_v7 = vpop.f32.mrb[7].mxu0 }
 0xc58   : > { %v8219_v34 = vpop.f32.mrb[244].mxu1 }
 0xc59   : > { %v8261_v63 = vadd.f32 %v8219_v34, %v16443_v17  ;;  %v12188_v54 = vpop.f32.mrb[245].mxu1 }
 0xc5a   : > { %v8222_v48 = vpop.f32.mrb[246].mxu1 }
 0xc5b   : > { %v16490_v44 = vadd.f32 %v8385_v5, %v8261_v63  ;;  %v8262_v62 = vadd.f32 %v8222_v48, %v16445_v6  ;;  %v12189_v37 = vpop.f32.mrb[247].mxu1 }
 0xc5c   : > { %v8393_v22 = vpop.f32.mrb[8].mxu0 }
 0xc5d   : > { %v16493_v57 = vadd.f32 %v8388_v29, %v8262_v62  ;;  %v12228_v18 = vpop.f32.mrb[9].mxu0 }
 0xc5e   : > { %v8396_v25 = vpop.f32.mrb[10].mxu0 }
 0xc5f   : > { %v12229_v40 = vpop.f32.mrb[11].mxu0 }
 0xc60   : > { %v8227_v61 = vpop.f32.mrb[248].mxu1 }
 0xc61   : > { %v8263_v23 = vadd.f32 %v8227_v61, %v16450_v26  ;;  %v12192_v21 = vpop.f32.mrb[249].mxu1 }
 0xc62   : > { %v8230_v19 = vpop.f32.mrb[250].mxu1 }
 0xc63   : > { %v16496_v53 = vadd.f32 %v8393_v22, %v8263_v23  ;;  %v8264_v17 = vadd.f32 %v8230_v19, %v16452_v56  ;;  %v12193_v49 = vpop.f32.mrb[251].mxu1 }
 0xc64   : > { %v8401_v51 = vpop.f32.mrb[12].mxu0 }
 0xc65   : > { %v16499_v14 = vadd.f32 %v8396_v25, %v8264_v17  ;;  %v12232_v6 = vpop.f32.mrb[13].mxu0 }
 0xc66   : > { %v8404_v4 = vpop.f32.mrb[14].mxu0 }
 0xc67   : > { %v12233_v12 = vpop.f32.mrb[15].mxu0 }
 0xc68   : > { %v8235_v41 = vpop.f32.mrb[252].mxu1 }
 0xc69   : > { %v8265_v30 = vadd.f32 %v8235_v41, %v16457_v35  ;;  %v12196_v0 = vpop.f32.mrb[253].mxu1 }
 0xc6a   : > { %v8238_v32 = vpop.f32.mrb[254].mxu1 }
 0xc6b   : > { %v16502_v45 = vadd.f32 %v8401_v51, %v8265_v30  ;;  %v8266_v26 = vadd.f32 %v8238_v32, %v16459_v60  ;;  %v12197_v2 = vpop.f32.mrb[255].mxu1 }
 0xc6c   : > { %v8409_v10 = vpop.f32.mrb[16].mxu0 }
 0xc6d   : > { %v16505_v47 = vadd.f32 %v8404_v4, %v8266_v26  ;;  %v12236_v56 = vpop.f32.mrb[17].mxu0 }
 0xc6e   : > { %v8412_v33 = vpop.f32.mrb[18].mxu0 }
 0xc6f   : > { %v12237_v15 = vpop.f32.mrb[19].mxu0 }
 0xc70   : > { %v8243_v28 = vpop.f32.mrb[0].mxu1 }
 0xc71   : > { %v8267_v42 = vadd.f32 %v8243_v28, %v16464_v3  ;;  %v12200_v55 = vpop.f32.mrb[1].mxu1 }
 0xc72   : > { %v8246_v24 = vpop.f32.mrb[2].mxu1 }
 0xc73   : > { %v16508_v59 = vadd.f32 %v8409_v10, %v8267_v42  ;;  %v8268_v35 = vadd.f32 %v8246_v24, %v16466_v11  ;;  %v12201_v52 = vpop.f32.mrb[3].mxu1 }
 0xc74   : > { %v8417_v31 = vpop.f32.mrb[20].mxu0 }
 0xc75   : > { %v16511_v27 = vadd.f32 %v8412_v33, %v8268_v35  ;;  %v12240_v60 = vpop.f32.mrb[21].mxu0 }
 0xc76   : > { %v8420_v8 = vpop.f32.mrb[22].mxu0 }
 0xc77   : > { %v12241_v39 = vpop.f32.mrb[23].mxu0 }
 0xc78   : > { %v8251_v36 = vpop.f32.mrb[4].mxu1 }
 0xc79   : > { %v8269_v50 = vadd.f32 %v8251_v36, %v16471_v46  ;;  %v12204_v58 = vpop.f32.mrb[5].mxu1 }
 0xc7a   : > { %v8254_v20 = vpop.f32.mrb[6].mxu1 }
 0xc7b   : > { %v12205_v13 = vpop.f32.mrb[7].mxu1  ;;  %v16514_v3 = vadd.f32 %v8417_v31, %v8269_v50 }
 0xc7c   : > { %v8701_v5 = vpop.f32.mrb[24].mxu0 }
 0xc7d   : > { %v12288_v1 = vpop.f32.mrb[25].mxu0 }
 0xc7e   : > { %v8704_v29 = vpop.f32.mrb[26].mxu0 }
 0xc7f   : > { %v12289_v7 = vpop.f32.mrb[27].mxu0 }
 0xc80   : > { %v8535_v11 = vpop.f32.mrb[8].mxu1 }
 0xc81   : > { %v8589_v34 = vadd.f32 %v8535_v11, %v16477_v9  ;;  %v12252_v63 = vpop.f32.mrb[9].mxu1 }
 0xc82   : > { %v8538_v54 = vpop.f32.mrb[10].mxu1 }
 0xc83   : > { %v8590_v48 = vadd.f32 %v8538_v54, %v16481_v16  ;;  %v12253_v62 = vpop.f32.mrb[11].mxu1  ;;  %v16518_v37 = vadd.f32 %v8701_v5, %v8589_v34 }
 0xc84   : > { %v8709_v46 = vpop.f32.mrb[28].mxu0 }
 0xc85   : > { %v12292_v22 = vpop.f32.mrb[29].mxu0  ;;  %v16520_v18 = vadd.f32 %v8704_v29, %v8590_v48 }
 0xc86   : > { %v8712_v25 = vpop.f32.mrb[30].mxu0 }
 0xc87   : > { %v12293_v40 = vpop.f32.mrb[31].mxu0 }
 0xc88   : > { %v8543_v61 = vpop.f32.mrb[12].mxu1 }
 0xc89   : > { %v8591_v23 = vadd.f32 %v8543_v61, %v16484_v43  ;;  %v12256_v21 = vpop.f32.mrb[13].mxu1 }
 0xc8a   : > { %v8546_v19 = vpop.f32.mrb[14].mxu1 }
 0xc8b   : > { %v8592_v9 = vadd.f32 %v8546_v19, %v16487_v38  ;;  %v12257_v17 = vpop.f32.mrb[15].mxu1  ;;  %v16524_v49 = vadd.f32 %v8709_v46, %v8591_v23 }
 0xc8c   : > { %v8717_v16 = vpop.f32.mrb[32].mxu0 }
 0xc8d   : > { %v12296_v51 = vpop.f32.mrb[33].mxu0  ;;  %v16526_v6 = vadd.f32 %v8712_v25, %v8592_v9 }
 0xc8e   : > { %v8720_v4 = vpop.f32.mrb[34].mxu0 }
 0xc8f   : > { %v12297_v12 = vpop.f32.mrb[35].mxu0 }
 0xc90   : > { %v8551_v41 = vpop.f32.mrb[16].mxu1 }
 0xc91   : > { %v8593_v30 = vadd.f32 %v8551_v41, %v16490_v44  ;;  %v12260_v0 = vpop.f32.mrb[17].mxu1 }
 0xc92   : > { %v8554_v32 = vpop.f32.mrb[18].mxu1 }
 0xc93   : > { %v8594_v43 = vadd.f32 %v8554_v32, %v16493_v57  ;;  %v12261_v26 = vpop.f32.mrb[19].mxu1  ;;  %v16530_v2 = vadd.f32 %v8717_v16, %v8593_v30 }
 0xc94   : > { %v8725_v38 = vpop.f32.mrb[36].mxu0 }
 0xc95   : > { %v12300_v10 = vpop.f32.mrb[37].mxu0  ;;  %v16532_v56 = vadd.f32 %v8720_v4, %v8594_v43 }
 0xc96   : > { %v8728_v33 = vpop.f32.mrb[38].mxu0 }
 0xc97   : > { %v12301_v15 = vpop.f32.mrb[39].mxu0 }
 0xc98   : > { %v8559_v28 = vpop.f32.mrb[20].mxu1 }
 0xc99   : > { %v8595_v42 = vadd.f32 %v8559_v28, %v16496_v53  ;;  %v12264_v55 = vpop.f32.mrb[21].mxu1 }
 0xc9a   : > { %v8562_v24 = vpop.f32.mrb[22].mxu1 }
 0xc9b   : > { %v8596_v44 = vadd.f32 %v8562_v24, %v16499_v14  ;;  %v12265_v35 = vpop.f32.mrb[23].mxu1  ;;  %v16536_v52 = vadd.f32 %v8725_v38, %v8595_v42 }
 0xc9c   : > { %v8733_v57 = vpop.f32.mrb[40].mxu0 }
 0xc9d   : > { %v12304_v31 = vpop.f32.mrb[41].mxu0  ;;  %v16538_v60 = vadd.f32 %v8728_v33, %v8596_v44 }
 0xc9e   : > { %v8736_v8 = vpop.f32.mrb[42].mxu0 }
 0xc9f   : > { %v12305_v39 = vpop.f32.mrb[43].mxu0 }
 0xca0   : > { %v8567_v36 = vpop.f32.mrb[24].mxu1 }
 0xca1   : > { %v8597_v50 = vadd.f32 %v8567_v36, %v16502_v45  ;;  %v12268_v58 = vpop.f32.mrb[25].mxu1  ;;  %v9313_v45 = vld [vmem:[%s16725_s8] sm:$0xff] }
 0xca2   : > { %v8570_v20 = vpop.f32.mrb[26].mxu1  ;;  %12448 = vmatprep.mubr.msk.f32.mxu0 %vm3995_vm8, %v9313_v45 }
 0xca3   : > { %v8598_v53 = vadd.f32 %v8570_v20, %v16505_v47  ;;  %v12269_v13 = vpop.f32.mrb[27].mxu1  ;;  %v16542_v5 = vadd.f32 %v8733_v57, %v8597_v50 }
 0xca4   : > { %v8741_v14 = vpop.f32.mrb[44].mxu0 }
 0xca5   : > { %v12308_v1 = vpop.f32.mrb[45].mxu0  ;;  %v16544_v29 = vadd.f32 %v8736_v8, %v8598_v53 }
 0xca6   : > { %v8744_v7 = vpop.f32.mrb[46].mxu0 }
 0xca7   : > { %v12309_v11 = vpop.f32.mrb[47].mxu0 }
 0xca8   : > { %v8575_v34 = vpop.f32.mrb[28].mxu1 }
 0xca9   : > { %v8599_v63 = vadd.f32 %v8575_v34, %v16508_v59  ;;  %v12272_v54 = vpop.f32.mrb[29].mxu1 }
 0xcaa   : > { %v8578_v48 = vpop.f32.mrb[30].mxu1 }
 0xcab   : > { %v8600_v47 = vadd.f32 %v8578_v48, %v16511_v27  ;;  %v12273_v62 = vpop.f32.mrb[31].mxu1  ;;  %v16551_v46 = vadd.f32 %v8741_v14, %v8599_v63 }
 0xcac   : > { %v8749_v22 = vpop.f32.mrb[48].mxu0 }
 0xcad   : > { %v12312_v25 = vpop.f32.mrb[49].mxu0  ;;  %v16554_v40 = vadd.f32 %v8744_v7, %v8600_v47 }
 0xcae   : > { %v8752_v61 = vpop.f32.mrb[50].mxu0 }
 0xcaf   : > { %v12313_v23 = vpop.f32.mrb[51].mxu0 }
 0xcb0   : > { %v8583_v59 = vpop.f32.mrb[32].mxu1 }
 0xcb1   : > { %v8601_v21 = vadd.f32 %v8583_v59, %v16514_v3  ;;  %v12276_v19 = vpop.f32.mrb[33].mxu1 }
 0xcb2   : > { %v8586_v9 = vpop.f32.mrb[34].mxu1 }
 0xcb3   : > { %v12277_v17 = vpop.f32.mrb[35].mxu1  ;;  %v16557_v16 = vadd.f32 %v8749_v22, %v8601_v21 }
 0xcb4   : > { %v9033_v27 = vpop.f32.mrb[52].mxu0 }
 0xcb5   : > { %v12360_v51 = vpop.f32.mrb[53].mxu0 }
 0xcb6   : > { %v9036_v4 = vpop.f32.mrb[54].mxu0 }
 0xcb7   : > { %v12361_v12 = vpop.f32.mrb[55].mxu0 }
 0xcb8   : > { %v8867_v41 = vpop.f32.mrb[36].mxu1 }
 0xcb9   : > { %v8921_v30 = vadd.f32 %v8867_v41, %v16518_v37  ;;  %v12324_v0 = vpop.f32.mrb[37].mxu1 }
 0xcba   : > { %v8870_v32 = vpop.f32.mrb[38].mxu1 }
 0xcbb   : > { %v8922_v43 = vadd.f32 %v8870_v32, %v16520_v18  ;;  %v12325_v26 = vpop.f32.mrb[39].mxu1  ;;  %v16561_v38 = vadd.f32 %v9033_v27, %v8921_v30 }
 0xcbc   : > { %v9041_v3 = vpop.f32.mrb[56].mxu0 }
 0xcbd   : > { %v12364_v10 = vpop.f32.mrb[57].mxu0  ;;  %v16563_v33 = vadd.f32 %v9036_v4, %v8922_v43 }
 0xcbe   : > { %v9044_v15 = vpop.f32.mrb[58].mxu0 }
 0xcbf   : > { %v12365_v28 = vpop.f32.mrb[59].mxu0 }
 0xcc0   : > { %v8875_v42 = vpop.f32.mrb[40].mxu1 }
 0xcc1   : > { %v8923_v55 = vadd.f32 %v8875_v42, %v16524_v49  ;;  %v12328_v24 = vpop.f32.mrb[41].mxu1 }
 0xcc2   : > { %v8878_v44 = vpop.f32.mrb[42].mxu1 }
 0xcc3   : > { %v8924_v37 = vadd.f32 %v8878_v44, %v16526_v6  ;;  %v12329_v35 = vpop.f32.mrb[43].mxu1  ;;  %v16567_v57 = vadd.f32 %v9041_v3, %v8923_v55 }
 0xcc4   : > { %v9049_v18 = vpop.f32.mrb[60].mxu0 }
 0xcc5   : > { %v12368_v31 = vpop.f32.mrb[61].mxu0  ;;  %v16569_v8 = vadd.f32 %v9044_v15, %v8924_v37 }
 0xcc6   : > { %v9052_v39 = vpop.f32.mrb[62].mxu0 }
 0xcc7   : > { %v12369_v36 = vpop.f32.mrb[63].mxu0 }
 0xcc8   : > { %v8883_v50 = vpop.f32.mrb[44].mxu1 }
 0xcc9   : > { %v8925_v58 = vadd.f32 %v8883_v50, %v16530_v2  ;;  %v12332_v20 = vpop.f32.mrb[45].mxu1 }
 0xcca   : > { %v8886_v53 = vpop.f32.mrb[46].mxu1  ;;  %v7712_v20 = vld [vmem:[#allocation3 + $0xb] sm:$0xff] }
 0xccb   : > { %v8926_v49 = vadd.f32 %v8886_v53, %v16532_v56  ;;  %v12333_v13 = vpop.f32.mrb[47].mxu1  ;;  %v16573_v14 = vadd.f32 %v9049_v18, %v8925_v58 }
 0xccc   : > { %v9057_v6 = vpop.f32.mrb[64].mxu0  ;;  %v7713_v13 = vld [vmem:[#allocation3 + $0x13] sm:$0xff] }
 0xccd   : > { %v12372_v1 = vpop.f32.mrb[65].mxu0  ;;  %v16575_v7 = vadd.f32 %v9052_v39, %v8926_v49 }
 0xcce   : > { %v9060_v11 = vpop.f32.mrb[66].mxu0 }
 0xccf   : > { %v12373_v34 = vpop.f32.mrb[67].mxu0 }
 0xcd0   : > { %v8891_v63 = vpop.f32.mrb[48].mxu1 }
 0xcd1   : > { %v8927_v54 = vadd.f32 %v8891_v63, %v16536_v52  ;;  %v12336_v48 = vpop.f32.mrb[49].mxu1 }
 0xcd2   : > { %v8894_v45 = vpop.f32.mrb[50].mxu1 }
 0xcd3   : > { %v8928_v2 = vadd.f32 %v8894_v45, %v16538_v60  ;;  %v12337_v47 = vpop.f32.mrb[51].mxu1  ;;  %v16579_v62 = vadd.f32 %v9057_v6, %v8927_v54 }
 0xcd4   : > { %v9065_v56 = vpop.f32.mrb[68].mxu0  ;;  %v7714_v47 = vld [vmem:[#allocation3 + $0x1b] sm:$0xff] }
 0xcd5   : > { %v12376_v22 = vpop.f32.mrb[69].mxu0  ;;  %v16581_v25 = vadd.f32 %v9060_v11, %v8928_v2 }
 0xcd6   : > { %v9068_v61 = vpop.f32.mrb[70].mxu0 }
 0xcd7   : > { %v12377_v23 = vpop.f32.mrb[71].mxu0 }
 0xcd8   : > { %v8899_v59 = vpop.f32.mrb[52].mxu1 }
 0xcd9   : > { %v8929_v21 = vadd.f32 %v8899_v59, %v16542_v5  ;;  %v12340_v19 = vpop.f32.mrb[53].mxu1 }
 0xcda   : > { %v8902_v9 = vpop.f32.mrb[54].mxu1 }
 0xcdb   : > { %v8930_v52 = vadd.f32 %v8902_v9, %v16544_v29  ;;  %v12341_v17 = vpop.f32.mrb[55].mxu1  ;;  %v16585_v27 = vadd.f32 %v9065_v56, %v8929_v21 }
 0xcdc   : > { %v9073_v60 = vpop.f32.mrb[72].mxu0 }
 0xcdd   : > { %v12380_v51 = vpop.f32.mrb[73].mxu0  ;;  %v16587_v4 = vadd.f32 %v9068_v61, %v8930_v52  ;;  %v7715_v61 = vld [vmem:[#allocation3 + $0x23] sm:$0xff] }
 0xcde   : > { %v9076_v12 = vpop.f32.mrb[74].mxu0 }
 0xcdf   : > { %v12381_v41 = vpop.f32.mrb[75].mxu0 }
 0xce0   : > { %v8907_v30 = vpop.f32.mrb[56].mxu1 }
 0xce1   : > { %v8931_v0 = vadd.f32 %v8907_v30, %v16551_v46  ;;  %v12344_v32 = vpop.f32.mrb[57].mxu1 }
 0xce2   : > { %v8910_v43 = vpop.f32.mrb[58].mxu1 }
 0xce3   : > { %v8932_v5 = vadd.f32 %v8910_v43, %v16554_v40  ;;  %v12345_v26 = vpop.f32.mrb[59].mxu1  ;;  %v16591_v3 = vadd.f32 %v9073_v60, %v8931_v0  ;;  %v16601_v40 = vld [vmem:[%s16722_s5 + $0x3] ss:$0 sm:$0xff] }
 0xce4   : > { %v9081_v29 = vpop.f32.mrb[76].mxu0  ;;  %v7717_v0 = vld [vmem:[#allocation3 + $0x33] sm:$0xff] }
 0xce5   : > { %v16593_v10 = vadd.f32 %v9076_v12, %v8932_v5  ;;  %v12384_v15 = vpop.f32.mrb[77].mxu0  ;;  %v7716_v12 = vld [vmem:[#allocation3 + $0x2b] sm:$0xff] }
 0xce6   : > { %v9084_v28 = vpop.f32.mrb[78].mxu0 }
 0xce7   : > { %v12385_v42 = vpop.f32.mrb[79].mxu0 }
 0xce8   : > { %v8915_v55 = vpop.f32.mrb[60].mxu1 }
 0xce9   : > { %v8933_v24 = vadd.f32 %v8915_v55, %v16557_v16  ;;  %v12348_v44 = vpop.f32.mrb[61].mxu1 }
 0xcea   : > { %v8918_v37 = vpop.f32.mrb[62].mxu1 }
 0xceb   : > { %v16596_v35 = vadd.f32 %v9081_v29, %v8933_v24  ;;  %v12349_v46 = vpop.f32.mrb[63].mxu1  ;;  %v7718_v24 = vld [vmem:[#allocation3 + $0x3b] sm:$0xff] }
 0xcec   : > { %v7719_v46 = vld [vmem:[#allocation3 + $0x43] sm:$0xff] }
 0xcf0   : > { %v9199_v18 = vpop.f32.mrb[64].mxu1 }
 0xcf1   : > { %v9253_v31 = vadd.f32 %v9199_v18, %v16561_v38  ;;  %v12396_v39 = vpop.f32.mrb[65].mxu1 }
 0xcf2   : > { %v9202_v36 = vpop.f32.mrb[66].mxu1 }
 0xcf3   : > { %v9274_v50 = vadd.f32 %v16601_v40, %v9253_v31  ;;  %v9254_v58 = vadd.f32 %v9202_v36, %v16563_v33  ;;  %v12397_v16 = vpop.f32.mrb[67].mxu1 }
 0xcf5   : > { %v9287_v53 = vadd.f32 %v9274_v50, %v7712_v20  ;;  %v9275_v49 = vadd.f32 %v16601_v40, %v9254_v58 }
 0xcf7   : > { %v9288_v6 = vadd.f32 %v9275_v49, %v7713_v13  ;;  %v9300_v11 = vmax.f32 %v9287_v53, 0.0  ;;  %v7720_v49 = vld [vmem:[#allocation3 + $0x4b] sm:$0xff] }
 0xcf8   : > { %v9207_v1 = vpop.f32.mrb[68].mxu1 }
 0xcf9   : > { %v9301_v34 = vmax.f32 %v9288_v6, 0.0  ;;  %v9255_v63 = vadd.f32 %v9207_v1, %v16567_v57  ;;  %v12400_v54 = vpop.f32.mrb[69].mxu1  ;;  %v7721_v1 = vld [vmem:[#allocation3 + $0x53] sm:$0xff] }
 0xcfa   : > { %v9210_v38 = vpop.f32.mrb[70].mxu1 }
 0xcfb   : > { %v9276_v48 = vadd.f32 %v16601_v40, %v9255_v63  ;;  %v9256_v45 = vadd.f32 %v9210_v38, %v16569_v8  ;;  %v12401_v2 = vpop.f32.mrb[71].mxu1  ;;  %v12580_v33 = vpack.c.bf16 %v9301_v34, %v9300_v11 }
 0xcfd   : > { %v9289_v56 = vadd.f32 %v9276_v48, %v7714_v47  ;;  %v9277_v22 = vadd.f32 %v16601_v40, %v9256_v45  ;;  %12581 = vmatprep.subr.bf16.mxu0 %v12580_v33  ;;  %v7722_v47 = vld [vmem:[#allocation3 + $0x5b] sm:$0xff] }
 0xcfe   : > { %12583 = vmatpush3.bf16.msra.mxu0 %v12580_v33 }
 0xcff   : > { %v9290_v23 = vadd.f32 %v9277_v22, %v7715_v61  ;;  %v9302_v21 = vmax.f32 %v9289_v56, 0.0  ;;  %v7723_v61 = vld [vmem:[#allocation3 + $0x63] sm:$0xff] }
 0xd00   : > { %v9215_v59 = vpop.f32.mrb[72].mxu1 }
 0xd01   : > { %v9303_v19 = vmax.f32 %v9290_v23, 0.0  ;;  %v9257_v57 = vadd.f32 %v9215_v59, %v16573_v14  ;;  %v12404_v9 = vpop.f32.mrb[73].mxu1 }
 0xd02   : > { %v9218_v52 = vpop.f32.mrb[74].mxu1 }
 0xd03   : > { %v9278_v17 = vadd.f32 %v16601_v40, %v9257_v57  ;;  %v9258_v8 = vadd.f32 %v9218_v52, %v16575_v7  ;;  %v12405_v60 = vpop.f32.mrb[75].mxu1  ;;  %v12584_v51 = vpack.c.bf16 %v9303_v19, %v9302_v21 }
 0xd05   : > { %v9291_v41 = vadd.f32 %v9278_v17, %v7716_v12  ;;  %v9279_v30 = vadd.f32 %v16601_v40, %v9258_v8  ;;  %12585 = vmatprep.subr.bf16.mxu0 %v12584_v51  ;;  %v7724_v8 = vld [vmem:[#allocation3 + $0x6b] sm:$0xf]  ;;  %v9314_v12 = vld [vmem:[%s16725_s8 + $0x8] sm:$0xff] }
 0xd06   : > { %12587 = vmatpush3.bf16.msra.mxu0 %v12584_v51 }
 0xd07   : > { %v9292_v32 = vadd.f32 %v9279_v30, %v7717_v0  ;;  %v9304_v5 = vmax.f32 %v9291_v41, 0.0  ;;  %v9317_v41 = vld [vmem:[%s16725_s8 + $0x20] sm:$0xff]  ;;  %v9318_v30 = vld [vmem:[%s16725_s8 + $0x28] sm:$0xff]  ;;  %v9319_v0 = vld [vmem:[%s16725_s8 + $0x30] sm:$0xff] }
 0xd08   : > { %v9223_v43 = vpop.f32.mrb[76].mxu1 }
 0xd09   : > { %v9305_v26 = vmax.f32 %v9292_v32, 0.0  ;;  %v9259_v14 = vadd.f32 %v9223_v43, %v16579_v62  ;;  %v12408_v29 = vpop.f32.mrb[77].mxu1  ;;  %v9320_v32 = vld [vmem:[%s16725_s8 + $0x38] sm:$0xff] }
 0xd0a   : > { %v9226_v15 = vpop.f32.mrb[78].mxu1 }
 0xd0b   : > { %v9280_v28 = vadd.f32 %v16601_v40, %v9259_v14  ;;  %v9260_v7 = vadd.f32 %v9226_v15, %v16581_v25  ;;  %v12409_v42 = vpop.f32.mrb[79].mxu1  ;;  %v12588_v55 = vpack.c.bf16 %v9305_v26, %v9304_v5 }
 0xd0d   : > { %v9293_v44 = vadd.f32 %v9280_v28, %v7718_v24  ;;  %v9281_v37 = vadd.f32 %v16601_v40, %v9260_v7  ;;  %12589 = vmatprep.subr.bf16.mxu0 %v12588_v55 }
 0xd0e   : > { %12591 = vmatpush3.bf16.msra.mxu0 %v12588_v55 }
 0xd0f   : > { %v9294_v18 = vadd.f32 %v9281_v37, %v7719_v46  ;;  %v9306_v39 = vmax.f32 %v9293_v44, 0.0 }
 0xd10   : > { %v9231_v31 = vpop.f32.mrb[80].mxu1 }
 0xd11   : > { %v9307_v36 = vmax.f32 %v9294_v18, 0.0  ;;  %v9261_v62 = vadd.f32 %v9231_v31, %v16585_v27  ;;  %v12412_v50 = vpop.f32.mrb[81].mxu1 }
 0xd12   : > { %v9234_v58 = vpop.f32.mrb[82].mxu1 }
 0xd13   : > { %v9282_v16 = vadd.f32 %v16601_v40, %v9261_v62  ;;  %v9262_v25 = vadd.f32 %v9234_v58, %v16587_v4  ;;  %v12413_v20 = vpop.f32.mrb[83].mxu1  ;;  %v12592_v53 = vpack.c.bf16 %v9307_v36, %v9306_v39 }
 0xd15   : > { %v9295_v13 = vadd.f32 %v9282_v16, %v7720_v49  ;;  %v9283_v6 = vadd.f32 %v16601_v40, %v9262_v25  ;;  %12593 = vmatprep.subr.bf16.mxu0 %v12592_v53 }
 0xd16   : > { %12595 = vmatpush3.bf16.msra.mxu0 %v12592_v53 }
 0xd17   : > { %v9296_v11 = vadd.f32 %v9283_v6, %v7721_v1  ;;  %v9308_v63 = vmax.f32 %v9295_v13, 0.0 }
 0xd18   : > { %v9239_v34 = vpop.f32.mrb[84].mxu1 }
 0xd19   : > { %v9309_v54 = vmax.f32 %v9296_v11, 0.0  ;;  %v9263_v27 = vadd.f32 %v9239_v34, %v16591_v3  ;;  %v12416_v38 = vpop.f32.mrb[85].mxu1 }
 0xd1a   : > { %v9242_v48 = vpop.f32.mrb[86].mxu1 }
 0xd1b   : > { %v9284_v45 = vadd.f32 %v16601_v40, %v9263_v27  ;;  %v9264_v4 = vadd.f32 %v9242_v48, %v16593_v10  ;;  %v12417_v2 = vpop.f32.mrb[87].mxu1  ;;  %v12596_v33 = vpack.c.bf16 %v9309_v54, %v9308_v63 }
 0xd1d   : > { %v9297_v56 = vadd.f32 %v9284_v45, %v7722_v47  ;;  %v9285_v22 = vadd.f32 %v16601_v40, %v9264_v4  ;;  %12597 = vmatprep.subr.bf16.mxu0 %v12596_v33 }
 0xd1e   : > { %12599 = vmatpush3.bf16.msra.mxu0 %v12596_v33 }
 0xd1f   : > { %v9298_v23 = vadd.f32 %v9285_v22, %v7723_v61  ;;  %v9310_v21 = vmax.f32 %v9297_v56, 0.0 }
 0xd20   : > { %v9247_v59 = vpop.f32.mrb[88].mxu1 }
 0xd21   : > { %v9311_v19 = vmax.f32 %v9298_v23, 0.0  ;;  %v9265_v3 = vadd.f32 %v9247_v59, %v16596_v35  ;;  %v12420_v57 = vpop.f32.mrb[89].mxu1  ;;  %v9315_v35 = vld [vmem:[%s16725_s8 + $0x10] sm:$0xff] }
 0xd22   : > { %v9250_v9 = vpop.f32.mrb[90].mxu1 }
 0xd23   : > { %v9286_v52 = vadd.f32 %v16601_v40, %v9265_v3  ;;  %v12600_v10 = vpack.c.bf16 %v9311_v19, %v9310_v21  ;;  %v12421_v17 = vpop.f32.mrb[91].mxu1  ;;  %v9316_v40 = vld [vmem:[%s16725_s8 + $0x18] sm:$0xff] }
 0xd25   : > { %v9299_v60 = vadd.f32 %v9286_v52, %v7724_v8  ;;  %12601 = vmatprep.subr.bf16.mxu0 %v12600_v10 }
 0xd26   : > { %12603 = vmatpush3.bf16.msra.mxu0 %v12600_v10 }
 0xd27   : > { %v9312_v51 = vmax.f32 %v9299_v60, 0.0 }
 0xd29   : > { %12446 = vmatprep.subr.msk.mxu0 %vm2096_vm5, %v9312_v51 }
 0xd2a   : > { %12447 = vmatpush3.msk.msra.mxu0 %vm2096_vm5, %v9312_v51 }
 0xd2b   : > { %12449 = vmatmul.mubr.msk.f32.vlgmr.msra.gmra.mrb[80].mxu0 %vm3995_vm8, %v9314_v12 }
 0xd2c   : > { %12451 = vmatprep.mubr.msk.f32.mxu0 %vm3995_vm8, %v9315_v35 }
 0xd2f   : > { %12452 = vmatmul.mubr.msk.f32.gmra.mrb[82].mxu0 %vm3995_vm8, %v9316_v40 }
 0xd30   : > { %12454 = vmatprep.mubr.msk.f32.mxu0 %vm3995_vm8, %v9317_v41 }
 0xd33   : > { %12455 = vmatmul.mubr.msk.f32.gmra.mrb[84].mxu0 %vm3995_vm8, %v9318_v30 }
 0xd34   : > { %12457 = vmatprep.mubr.msk.f32.mxu0 %vm3995_vm8, %v9319_v0 }
 0xd37   : > { %12458 = vmatmul.mubr.msk.f32.gmra.mrb[86].mxu0 %vm3995_vm8, %v9320_v32 }
 0xdfe   : > { %v12450_v43 = vpop.f32.mrb[80].mxu0 }
 0xdff   : > { %9454 = vst.msk [vmem:[%s325_s21 + $0x8] sm:$0xff] %vm1330_vm3, %v12450_v43  ;;  %v9414_v5 = vpop.f32.mrb[81].mxu0 }
 0xe00   : > { %9453 = vst.msk [vmem:[%s325_s21] sm:$0xff] %vm1330_vm3, %v9414_v5 }
 0xe02   : > { %v12453_v26 = vpop.f32.mrb[82].mxu0 }
 0xe03   : > { %9456 = vst.msk [vmem:[%s325_s21 + $0x18] sm:$0xff] %vm1330_vm3, %v12453_v26  ;;  %v9424_v14 = vpop.f32.mrb[83].mxu0 }
 0xe04   : > { %9455 = vst.msk [vmem:[%s325_s21 + $0x10] sm:$0xff] %vm1330_vm3, %v9424_v14 }
 0xe06   : > { %v12456_v29 = vpop.f32.mrb[84].mxu0 }
 0xe07   : > { %9458 = vst.msk [vmem:[%s325_s21 + $0x28] sm:$0xff] %vm1330_vm3, %v12456_v29  ;;  %v9434_v15 = vpop.f32.mrb[85].mxu0 }
 0xe08   : > { %9457 = vst.msk [vmem:[%s325_s21 + $0x20] sm:$0xff] %vm1330_vm3, %v9434_v15 }
 0xe0a   : > { %v12459_v28 = vpop.f32.mrb[86].mxu0 }
 0xe0b   : > { %9460 = vst.msk [vmem:[%s325_s21 + $0x38] sm:$0xff] %vm1330_vm3, %v12459_v28  ;;  %v9444_v7 = vpop.f32.mrb[87].mxu0 }
 0xe0c   : > { %9459 = vst.msk [vmem:[%s325_s21 + $0x30] sm:$0xff] %vm1330_vm3, %v9444_v7 }
 0xe0d   : > { %12937 = shalt.err (!%p12934_p3)
}
 0xe0e   : > { %s12938_s27 = scalar_lea.hbm %s16670_s25, 1024  ;;  %s12942_s22 = scalar_lea.hbm %s16726_s9, 2048 }
 0xe0f   : > { %p12939_p4 = scmp.ne.s32.totalorder %s16670_s25, %s12938_s27  ;;  %p12943_p9 = scmp.lt.u32.totalorder %s16670_s25, %s16726_s9 }
 0xe10   : > { %p12944_p10 = scmp.lt.u32.totalorder %s12942_s22, %s12938_s27  ;;  %p12946_p12 = scmp.lt.u32.totalorder %s12938_s27, %s16670_s25 }
 0xe11   : > { %p12940_p7 = pnand %p12939_p4, %p13083_p5 }
 0xe12   : > { %p12945_p11 = por %p12944_p10, %p12943_p9 }
 0xe13   : > { %p12941_p8 = pneg %p12940_p7 }
 0xe14   : > { %p12947_p13 = por %p12946_p12, %p12945_p11 }
 0xe16   : > { %p12948_p0 = pnand %p12947_p13, %p12941_p8 }
 0xe18   : > { %12951 = shalt.err (!%p12948_p0)
}
 0xe19   : > { %s12993_s26 = smov 128   ;;  %s12994_s29 = smov 8  }
 0xe1a   : > { %12621 = dma.vmem_to_hbm [thread:$0]  (%p13083_p5), %s16672_s17, 1024, %s16670_s25, %s16676_s13, %s12993_s26, %s12993_s26, %s12994_s29  }
 0xe1b PF: > { %p12627_p1 = scmp.ge.s32.totalorder %s12986_s12, 2  ;;  %s9490_s28 = sand.u32 1, %s12974_s30  }
 0xe1c   : > { %s9491_s14 = scalar_lea.sflag [#allocation6], %s9490_s28 }
 0xe1d   : > { %p12624_p2 = pnand %p12627_p1, %p13087_p6 }
 0xe1f   : > { %12969 = dma.done.wait (!%p12624_p2), %s9491_s14, 1024  }
 0xe20   : > { %12971 = vsyncadd (!%p12624_p2), %s9491_s14, 4294966272  ;;  %p19_p3 = scmp.ge.s32.totalorder %s13070_s15, 4   ;;  %s16729_s30 = smov %s12978_s10 }
 0xe21   : > { %s16730_s10 = smov %s12982_s11  ;;  %s16731_s11 = smov %s13081_s18 }
 0xe22   : > { %s16732_s12 = smov %s13070_s15  ;;  %21 = sbr.rel (!%p19_p3) target bundleno = 3 (0x3), region = 97 }
 0xe29   :  { %9496 = vsyncpa [#allocation6], 1 }
 0xe2a   :  { %9498 = vsyncpa [#allocation6 + $0x1], 1 }

</bundles_post_ra>
